<compile_context>
chip_gen: v7x
topology: tpu7x:2x2x1
jax: 0.10.0
libtpu: 0.0.40
codegen_flags: <defaults>
</compile_context>

<pallas_src>
import functools

import jax
import jax.numpy as jnp
from jax import lax
from jax.experimental import pallas as pl
from jax.experimental.pallas import tpu as pltpu

LEAKY_SLOPE = 0.01   # nn.LeakyReLU() default
BN_EPS = 1e-5        # nn.BatchNorm3d default


def _round_up(x, m):
    return ((x + m - 1) // m) * m


def _vmem_limit_bytes():
    """Generation-aware VMEM budget (v5e/v6e: 128 MiB phys, v7x: 64 MiB)."""
    cap = None
    try:
        cap = int(pltpu.get_tpu_info().vmem_capacity_bytes)
    except Exception:
        cap = None
    if cap is None:
        try:
            kind = jax.devices()[0].device_kind.lower()
        except Exception:
            kind = ""
        cap = (64 if "v7" in kind else 128) * 1024 * 1024
    return int(min(cap * 3 // 4, 100 * 1024 * 1024))


def _mxu_k_cap():
    """Fused contraction-length cap: 128 on the 128-wide v5e MXU, else 256."""
    try:
        kind = jax.devices()[0].device_kind.lower()
    except Exception:
        kind = ""
    if "v5 lite" in kind or "v5lite" in kind or "v5e" in kind:
        return 128
    return 256


# ---------------------------------------------------------------------------
# Kernel 1: fused dual-branch conv (3x3x3 pad 1  +  1x1x1 pad 0).
# Grid = (N, D); each step produces one output depth slice as (L, 2*cpad):
# lanes [:cpad] = 3x3x3 branch, lanes [cpad:] = 1x1x1 branch.  A tap-stacked
# im2col LHS is built in a VMEM scratch so the MXU sees big-K matmuls, and
# masked per-channel sum / sum-of-squares are emitted for batch-norm stats.
# ---------------------------------------------------------------------------
def _fused_conv_kernel(x0_ref, x1_ref, x2_ref, w_ref, b_ref,
                       out_ref, stats_ref, lhs_ref, *,
                       Wp, Wo, L, Cin, tpg, n_groups):
    refs = (x0_ref, x1_ref, x2_ref)
    Kg = tpg * Cin
    Kg_pad = lhs_ref.shape[-1]

    # zero the K padding columns (never overwritten by the tap fills)
    if Kg_pad > Kg:
        lhs_ref[:, Kg:] = jnp.zeros((L, Kg_pad - Kg), lhs_ref.dtype)

    acc = None
    for g in range(n_groups):
        # build the tap-stacked LHS for this group (per-slice im2col in VMEM)
        for j in range(tpg):
            t = g * tpg + j
            kd, r = divmod(t, 9)
            kh, kw = divmod(r, 3)
            off = kh * Wp + kw
            lhs_ref[:, j * Cin:(j + 1) * Cin] = refs[kd][0, 0, off:off + L, :]
        part = jnp.dot(lhs_ref[...], w_ref[g],
                       preferred_element_type=jnp.float32)
        acc = part if acc is None else acc + part
    acc = acc + b_ref[...]                                   # (L, 2*cpad) f32

    out_ref[0, 0] = acc.astype(out_ref.dtype)

    # partial batch-norm statistics over the valid output window only.  The
    # two garbage W columns per row group (cross-row reads of the flat slab)
    # are masked here and cropped after pass 2.
    rows = lax.broadcasted_iota(jnp.int32, (L, 1), 0)
    valid = (rows % Wp) < Wo
    v = jnp.where(valid, acc, 0.0)
    stats_ref[0, 0] = jnp.concatenate(
        [jnp.sum(v, axis=0, keepdims=True),
         jnp.sum(v * v, axis=0, keepdims=True)], axis=0)


# ---------------------------------------------------------------------------
# Kernel 2: BatchNorm (batch statistics) + LeakyReLU on both branches, add.
# Processes a block of several (n, d) slices per grid step; iterates over the
# slices inside the kernel to keep the live working set small.
# ---------------------------------------------------------------------------
def _bn_lrelu_add_kernel(ab_ref, p_ref, o_ref, *, cpad):
    scale = p_ref[0:1, :]        # (1, 2*cpad)
    shift = p_ref[1:2, :]

    def body(i, carry):
        v = ab_ref[i].astype(jnp.float32)              # (L, 2*cpad)
        z = v * scale + shift
        z = jnp.where(z >= 0, z, LEAKY_SLOPE * z)
        o_ref[i] = z[:, :cpad] + z[:, cpad:]
        return carry

    lax.fori_loop(0, ab_ref.shape[0], body, 0)


# ---------------------------------------------------------------------------
# ResPath3D forward wrapper (NCDHW in / NCDHW out, like the torch module).
# ---------------------------------------------------------------------------
def respath3d_forward(params, x):
    wA, bA = params["conv1_w"], params["conv1_b"]      # (Cout,Cin,3,3,3), (Cout,)
    wB, bB = params["conv_w"], params["conv_b"]        # (Cout,Cin,1,1,1), (Cout,)
    g1, be1 = params["bn1_gamma"], params["bn1_beta"]
    g2, be2 = params["bn_gamma"], params["bn_beta"]

    N, Cin, D, H, W = x.shape
    Cout = wA.shape[0]
    cpad = _round_up(Cout, 128)
    C2 = 2 * cpad

    Dp = D + 2
    Hpp = H + 3          # pad 1 top / 1 bottom + 1 slack row so shifted flat-
    Wp = W + 2           # slab reads never run past the buffer
    S = Hpp * Wp         # rows of one flattened, padded depth-slice slab
    L = H * Wp           # rows covering all outputs of one depth slice

    vmem_limit = _vmem_limit_bytes()

    # taps per matmul group so the fused contraction fits the MXU width
    kcap = max(_mxu_k_cap(), Cin)
    tpg = 1
    for cand in (27, 9, 3):
        if cand * Cin <= kcap:
            tpg = cand
            break
    n_groups = 27 // tpg
    Kg = tpg * Cin
    Kg_pad = _round_up(Kg, 128)

    # one layout change at the module boundary: NCDHW -> NDHWC, pad, bf16
    xcl = jnp.transpose(x, (0, 2, 3, 4, 1))
    xpad = jnp.pad(xcl, ((0, 0), (1, 1), (1, 2), (1, 1), (0, 0)))
    xflat = xpad.reshape(N, Dp, S, Cin).astype(jnp.bfloat16)
    # NOTE: for large Cin / D a lane-dense slab layout ((Hpp, Wp*Cin)) and a
    # Db-slice rolling depth window would cut the 3x slab re-fetch; at the
    # shapes used here the input traffic is negligible.

    # fused weights: rows = (kd, kh, kw, cin); cols = [branch A | branch B]
    wA_rows = jnp.transpose(wA, (2, 3, 4, 1, 0)).reshape(27 * Cin, Cout)
    wB_rows = jnp.zeros((27 * Cin, Cout), jnp.float32)
    wB_rows = wB_rows.at[13 * Cin:14 * Cin].set(wB.reshape(Cout, Cin).T)
    wF = jnp.concatenate(
        [jnp.pad(wA_rows, ((0, 0), (0, cpad - Cout))),
         jnp.pad(wB_rows, ((0, 0), (0, cpad - Cout)))], axis=1)   # (27*Cin, C2)
    wF = wF.reshape(n_groups, Kg, C2)
    wF = jnp.pad(wF, ((0, 0), (0, Kg_pad - Kg), (0, 0))).astype(jnp.bfloat16)
    bF = jnp.concatenate([jnp.pad(bA, (0, cpad - Cout)),
                          jnp.pad(bB, (0, cpad - Cout))]
                         ).reshape(1, C2).astype(jnp.float32)

    kernel1 = functools.partial(_fused_conv_kernel, Wp=Wp, Wo=W, L=L, Cin=Cin,
                                tpg=tpg, n_groups=n_groups)

    def xspec(kd):
        return pl.BlockSpec((1, 1, S, Cin),
                            lambda n, d, kd=kd: (n, d + kd, 0, 0))

    outAB, stats = pl.pallas_call(
        kernel1,
        out_shape=(
            jax.ShapeDtypeStruct((N, D, L, C2), jnp.bfloat16),
            jax.ShapeDtypeStruct((N, D, 2, C2), jnp.float32),
        ),
        grid=(N, D),
        in_specs=[
            xspec(0), xspec(1), xspec(2),
            pl.BlockSpec((n_groups, Kg_pad, C2), lambda n, d: (0, 0, 0)),
            pl.BlockSpec((1, C2), lambda n, d: (0, 0)),
        ],
        out_specs=(
            pl.BlockSpec((1, 1, L, C2), lambda n, d: (n, d, 0, 0)),
            pl.BlockSpec((1, 1, 2, C2), lambda n, d: (n, d, 0, 0)),
        ),
        scratch_shapes=[pltpu.VMEM((L, Kg_pad), jnp.bfloat16)],
        compiler_params=pltpu.CompilerParams(
            dimension_semantics=("parallel", "parallel"),
            vmem_limit_bytes=vmem_limit),
    )(xflat, xflat, xflat, wF, bF)
    # NOTE: for very large H*W (e.g. 128^2) an extra L-row tiling grid axis
    # keeps the per-slice blocks inside v7x's 64 MiB VMEM.

    # tiny per-channel reduction -> BN scale/shift (training batch statistics)
    sums = jnp.sum(stats, axis=(0, 1))                 # (2, C2) f32
    cnt = float(N * D * H * W)
    gamma = jnp.concatenate([jnp.pad(g1, (0, cpad - Cout)),
                             jnp.pad(g2, (0, cpad - Cout))])
    beta = jnp.concatenate([jnp.pad(be1, (0, cpad - Cout)),
                            jnp.pad(be2, (0, cpad - Cout))])
    mean = sums[0] / cnt
    var = jnp.maximum(sums[1] / cnt - mean * mean, 0.0)
    scale = gamma * lax.rsqrt(var + BN_EPS)
    shift = beta - mean * scale
    pparams = jnp.stack([scale, shift], axis=0)        # (2, C2)

    # pass 2: BN + LeakyReLU on both branches and add, multi-slice blocks
    ND = N * D
    per_slice = L * C2 * 2 + L * cpad * 4              # bf16 in + f32 out
    Bnd = 1
    for c in range(1, ND + 1):
        if ND % c == 0 and c * per_slice <= 4 * 1024 * 1024:
            Bnd = c

    ab = outAB.reshape(ND, L, C2)
    y = pl.pallas_call(
        functools.partial(_bn_lrelu_add_kernel, cpad=cpad),
        out_shape=jax.ShapeDtypeStruct((ND, L, cpad), jnp.float32),
        grid=(ND // Bnd,),
        in_specs=[
            pl.BlockSpec((Bnd, L, C2), lambda i: (i, 0, 0)),
            pl.BlockSpec((2, C2), lambda i: (0, 0)),
        ],
        out_specs=pl.BlockSpec((Bnd, L, cpad), lambda i: (i, 0, 0)),
        compiler_params=pltpu.CompilerParams(
            dimension_semantics=("parallel",),
            vmem_limit_bytes=vmem_limit),
    )(ab, pparams)

    # drop padded W columns / padded lanes and return to NCDHW (XLA fuses the
    # slice and the transpose into one copy)
    y = y.reshape(N, D, H, Wp, cpad)[:, :, :, :W, :Cout]
    return jnp.transpose(y, (0, 4, 1, 2, 3))


# ---------------------------------------------------------------------------
# Parameters (PyTorch-like deterministic init) and a pure-JAX reference.
# ---------------------------------------------------------------------------
def make_respath3d_params(key, inC, outC):
    ks = jax.random.split(key, 4)
    b1 = 1.0 / float(inC * 27) ** 0.5
    b2 = 1.0 / float(inC) ** 0.5
    return {
        "conv1_w": jax.random.uniform(ks[0], (outC, inC, 3, 3, 3), jnp.float32, -b1, b1),
        "conv1_b": jax.random.uniform(ks[1], (outC,), jnp.float32, -b1, b1),
        "conv_w": jax.random.uniform(ks[2], (outC, inC, 1, 1, 1), jnp.float32, -b2, b2),
        "conv_b": jax.random.uniform(ks[3], (outC,), jnp.float32, -b2, b2),
        "bn1_gamma": jnp.ones((outC,), jnp.float32),
        "bn1_beta": jnp.zeros((outC,), jnp.float32),
        "bn_gamma": jnp.ones((outC,), jnp.float32),
        "bn_beta": jnp.zeros((outC,), jnp.float32),
    }


def respath3d_reference(params, x):
    dn = ("NCDHW", "OIDHW", "NCDHW")
    cA = lax.conv_general_dilated(x, params["conv1_w"], (1, 1, 1),
                                  ((1, 1), (1, 1), (1, 1)), dimension_numbers=dn)
    cA = cA + params["conv1_b"].reshape(1, -1, 1, 1, 1)
    cB = lax.conv_general_dilated(x, params["conv_w"], (1, 1, 1),
                                  ((0, 0), (0, 0), (0, 0)), dimension_numbers=dn)
    cB = cB + params["conv_b"].reshape(1, -1, 1, 1, 1)

    def bn_lrelu(c, g, b):
        mean = jnp.mean(c, axis=(0, 2, 3, 4), keepdims=True)
        var = jnp.mean((c - mean) ** 2, axis=(0, 2, 3, 4), keepdims=True)
        y = (c - mean) * lax.rsqrt(var + BN_EPS) * g.reshape(1, -1, 1, 1, 1) \
            + b.reshape(1, -1, 1, 1, 1)
        return jnp.where(y >= 0, y, LEAKY_SLOPE * y)

    return (bn_lrelu(cA, params["bn1_gamma"], params["bn1_beta"]) +
            bn_lrelu(cB, params["bn_gamma"], params["bn_beta"]))


# ---------------------------------------------------------------------------
if __name__ == "__main__":
    key = jax.random.PRNGKey(0)
    kp, kx = jax.random.split(key)

    N, Cin, D, H, W = 2, 8, 8, 16, 16
    Cout = 16
    x = jax.random.normal(kx, (N, Cin, D, H, W), jnp.float32)
    params = make_respath3d_params(kp, Cin, Cout)

    fwd = jax.jit(respath3d_forward)
    out = jax.block_until_ready(fwd(params, x))

    assert out.shape == (N, Cout, D, H, W), out.shape
    assert bool(jnp.all(jnp.isfinite(out)))

    ref = respath3d_reference(params, x)
    err = float(jnp.linalg.norm(out - ref) / (jnp.linalg.norm(ref) + 1e-12))
    assert err < 5e-2, f"relative L2 error too large: {err}"

    print("KERNEL_OK")
</pallas_src>

<mosaic_0001>
module attributes {stable_mosaic.version = 11 : i64} {
  func.func @_fused_conv_kernel(%arg0: i32, %arg1: i32, %arg2: memref<1x1x342x8xbf16, #tpu.memory_space<vmem>>, %arg3: memref<1x1x342x8xbf16, #tpu.memory_space<vmem>>, %arg4: memref<1x1x342x8xbf16, #tpu.memory_space<vmem>>, %arg5: memref<1x256x256xbf16, #tpu.memory_space<vmem>>, %arg6: memref<1x256xf32, #tpu.memory_space<vmem>>, %arg7: memref<1x1x288x256xbf16, #tpu.memory_space<vmem>>, %arg8: memref<1x1x2x256xf32, #tpu.memory_space<vmem>>, %arg9: memref<288x256xbf16, #tpu.memory_space<vmem>>) attributes {dimension_semantics = [#tpu.dimension_semantics<parallel>, #tpu.dimension_semantics<parallel>], iteration_bounds = array<i64: 2, 8>, scalar_prefetch = 0 : i64, scratch_operands = 1 : i64, tpu.core_type = #tpu.core_type<tc>, window_params = [{transform_indices = @transform_0, window_bounds = array<i64: 1, 1, 342, 8>}, {transform_indices = @transform_1, window_bounds = array<i64: 1, 1, 342, 8>}, {transform_indices = @transform_2, window_bounds = array<i64: 1, 1, 342, 8>}, {pipeline_mode = #tpu.pipeline_mode<synchronous>, transform_indices = @transform_3, window_bounds = array<i64: 1, 256, 256>}, {pipeline_mode = #tpu.pipeline_mode<synchronous>, transform_indices = @transform_4, window_bounds = array<i64: 1, 256>}, {transform_indices = @transform_5, window_bounds = array<i64: 1, 1, 288, 256>}, {transform_indices = @transform_6, window_bounds = array<i64: 1, 1, 2, 256>}]} {
    %cst = arith.constant 0.000000e+00 : bf16
    %0 = vector.broadcast %cst : bf16 to vector<288x40xbf16>
    %c0 = arith.constant 0 : index
    %c216 = arith.constant 216 : index
    %1 = vector.load %arg9[%c0, %c216] : memref<288x256xbf16, #tpu.memory_space<vmem>>, vector<288x40xbf16>
    tpu.vector_store %arg9[%c0, %c216], %0 {strides = array<i32>} : memref<288x256xbf16, #tpu.memory_space<vmem>>, vector<288x40xbf16>,
    %c0_0 = arith.constant 0 : index
    %c0_1 = arith.constant 0 : index
    %c0_2 = arith.constant 0 : index
    %c0_3 = arith.constant 0 : index
    %2 = vector.load %arg2[%c0_0, %c0_1, %c0_2, %c0_3] : memref<1x1x342x8xbf16, #tpu.memory_space<vmem>>, vector<1x1x288x8xbf16>
    %3 = vector.shape_cast %2 : vector<1x1x288x8xbf16> to vector<288x8xbf16>
    %c0_4 = arith.constant 0 : index
    %c0_5 = arith.constant 0 : index
    %4 = vector.load %arg9[%c0_4, %c0_5] : memref<288x256xbf16, #tpu.memory_space<vmem>>, vector<288x8xbf16>
    tpu.vector_store %arg9[%c0_4, %c0_5], %3 {strides = array<i32>} : memref<288x256xbf16, #tpu.memory_space<vmem>>, vector<288x8xbf16>,
    %c0_6 = arith.constant 0 : index
    %c0_7 = arith.constant 0 : index
    %c1 = arith.constant 1 : index
    %c0_8 = arith.constant 0 : index
    %5 = vector.load %arg2[%c0_6, %c0_7, %c1, %c0_8] : memref<1x1x342x8xbf16, #tpu.memory_space<vmem>>, vector<1x1x288x8xbf16>
    %6 = vector.shape_cast %5 : vector<1x1x288x8xbf16> to vector<288x8xbf16>
    %c0_9 = arith.constant 0 : index
    %c8 = arith.constant 8 : index
    %7 = vector.load %arg9[%c0_9, %c8] : memref<288x256xbf16, #tpu.memory_space<vmem>>, vector<288x8xbf16>
    tpu.vector_store %arg9[%c0_9, %c8], %6 {strides = array<i32>} : memref<288x256xbf16, #tpu.memory_space<vmem>>, vector<288x8xbf16>,
    %c0_10 = arith.constant 0 : index
    %c0_11 = arith.constant 0 : index
    %c2 = arith.constant 2 : index
    %c0_12 = arith.constant 0 : index
    %8 = vector.load %arg2[%c0_10, %c0_11, %c2, %c0_12] : memref<1x1x342x8xbf16, #tpu.memory_space<vmem>>, vector<1x1x288x8xbf16>
    %9 = vector.shape_cast %8 : vector<1x1x288x8xbf16> to vector<288x8xbf16>
    %c0_13 = arith.constant 0 : index
    %c16 = arith.constant 16 : index
    %10 = vector.load %arg9[%c0_13, %c16] : memref<288x256xbf16, #tpu.memory_space<vmem>>, vector<288x8xbf16>
    tpu.vector_store %arg9[%c0_13, %c16], %9 {strides = array<i32>} : memref<288x256xbf16, #tpu.memory_space<vmem>>, vector<288x8xbf16>,
    %c0_14 = arith.constant 0 : index
    %c0_15 = arith.constant 0 : index
    %c18 = arith.constant 18 : index
    %c0_16 = arith.constant 0 : index
    %11 = vector.load %arg2[%c0_14, %c0_15, %c18, %c0_16] : memref<1x1x342x8xbf16, #tpu.memory_space<vmem>>, vector<1x1x288x8xbf16>
    %12 = vector.shape_cast %11 : vector<1x1x288x8xbf16> to vector<288x8xbf16>
    %c0_17 = arith.constant 0 : index
    %c24 = arith.constant 24 : index
    %13 = vector.load %arg9[%c0_17, %c24] : memref<288x256xbf16, #tpu.memory_space<vmem>>, vector<288x8xbf16>
    tpu.vector_store %arg9[%c0_17, %c24], %12 {strides = array<i32>} : memref<288x256xbf16, #tpu.memory_space<vmem>>, vector<288x8xbf16>,
    %c0_18 = arith.constant 0 : index
    %c0_19 = arith.constant 0 : index
    %c19 = arith.constant 19 : index
    %c0_20 = arith.constant 0 : index
    %14 = vector.load %arg2[%c0_18, %c0_19, %c19, %c0_20] : memref<1x1x342x8xbf16, #tpu.memory_space<vmem>>, vector<1x1x288x8xbf16>
    %15 = vector.shape_cast %14 : vector<1x1x288x8xbf16> to vector<288x8xbf16>
    %c0_21 = arith.constant 0 : index
    %c32 = arith.constant 32 : index
    %16 = vector.load %arg9[%c0_21, %c32] : memref<288x256xbf16, #tpu.memory_space<vmem>>, vector<288x8xbf16>
    tpu.vector_store %arg9[%c0_21, %c32], %15 {strides = array<i32>} : memref<288x256xbf16, #tpu.memory_space<vmem>>, vector<288x8xbf16>,
    %c0_22 = arith.constant 0 : index
    %c0_23 = arith.constant 0 : index
    %c20 = arith.constant 20 : index
    %c0_24 = arith.constant 0 : index
    %17 = vector.load %arg2[%c0_22, %c0_23, %c20, %c0_24] : memref<1x1x342x8xbf16, #tpu.memory_space<vmem>>, vector<1x1x288x8xbf16>
    %18 = vector.shape_cast %17 : vector<1x1x288x8xbf16> to vector<288x8xbf16>
    %c0_25 = arith.constant 0 : index
    %c40 = arith.constant 40 : index
    %19 = vector.load %arg9[%c0_25, %c40] : memref<288x256xbf16, #tpu.memory_space<vmem>>, vector<288x8xbf16>
    tpu.vector_store %arg9[%c0_25, %c40], %18 {strides = array<i32>} : memref<288x256xbf16, #tpu.memory_space<vmem>>, vector<288x8xbf16>,
    %c0_26 = arith.constant 0 : index
    %c0_27 = arith.constant 0 : index
    %c36 = arith.constant 36 : index
    %c0_28 = arith.constant 0 : index
    %20 = vector.load %arg2[%c0_26, %c0_27, %c36, %c0_28] : memref<1x1x342x8xbf16, #tpu.memory_space<vmem>>, vector<1x1x288x8xbf16>
    %21 = vector.shape_cast %20 : vector<1x1x288x8xbf16> to vector<288x8xbf16>
    %c0_29 = arith.constant 0 : index
    %c48 = arith.constant 48 : index
    %22 = vector.load %arg9[%c0_29, %c48] : memref<288x256xbf16, #tpu.memory_space<vmem>>, vector<288x8xbf16>
    tpu.vector_store %arg9[%c0_29, %c48], %21 {strides = array<i32>} : memref<288x256xbf16, #tpu.memory_space<vmem>>, vector<288x8xbf16>,
    %c0_30 = arith.constant 0 : index
    %c0_31 = arith.constant 0 : index
    %c37 = arith.constant 37 : index
    %c0_32 = arith.constant 0 : index
    %23 = vector.load %arg2[%c0_30, %c0_31, %c37, %c0_32] : memref<1x1x342x8xbf16, #tpu.memory_space<vmem>>, vector<1x1x288x8xbf16>
    %24 = vector.shape_cast %23 : vector<1x1x288x8xbf16> to vector<288x8xbf16>
    %c0_33 = arith.constant 0 : index
    %c56 = arith.constant 56 : index
    %25 = vector.load %arg9[%c0_33, %c56] : memref<288x256xbf16, #tpu.memory_space<vmem>>, vector<288x8xbf16>
    tpu.vector_store %arg9[%c0_33, %c56], %24 {strides = array<i32>} : memref<288x256xbf16, #tpu.memory_space<vmem>>, vector<288x8xbf16>,
    %c0_34 = arith.constant 0 : index
    %c0_35 = arith.constant 0 : index
    %c38 = arith.constant 38 : index
    %c0_36 = arith.constant 0 : index
    %26 = vector.load %arg2[%c0_34, %c0_35, %c38, %c0_36] : memref<1x1x342x8xbf16, #tpu.memory_space<vmem>>, vector<1x1x288x8xbf16>
    %27 = vector.shape_cast %26 : vector<1x1x288x8xbf16> to vector<288x8xbf16>
    %c0_37 = arith.constant 0 : index
    %c64 = arith.constant 64 : index
    %28 = vector.load %arg9[%c0_37, %c64] : memref<288x256xbf16, #tpu.memory_space<vmem>>, vector<288x8xbf16>
    tpu.vector_store %arg9[%c0_37, %c64], %27 {strides = array<i32>} : memref<288x256xbf16, #tpu.memory_space<vmem>>, vector<288x8xbf16>,
    %c0_38 = arith.constant 0 : index
    %c0_39 = arith.constant 0 : index
    %c0_40 = arith.constant 0 : index
    %c0_41 = arith.constant 0 : index
    %29 = vector.load %arg3[%c0_38, %c0_39, %c0_40, %c0_41] : memref<1x1x342x8xbf16, #tpu.memory_space<vmem>>, vector<1x1x288x8xbf16>
    %30 = vector.shape_cast %29 : vector<1x1x288x8xbf16> to vector<288x8xbf16>
    %c0_42 = arith.constant 0 : index
    %c72 = arith.constant 72 : index
    %31 = vector.load %arg9[%c0_42, %c72] : memref<288x256xbf16, #tpu.memory_space<vmem>>, vector<288x8xbf16>
    tpu.vector_store %arg9[%c0_42, %c72], %30 {strides = array<i32>} : memref<288x256xbf16, #tpu.memory_space<vmem>>, vector<288x8xbf16>,
    %c0_43 = arith.constant 0 : index
    %c0_44 = arith.constant 0 : index
    %c1_45 = arith.constant 1 : index
    %c0_46 = arith.constant 0 : index
    %32 = vector.load %arg3[%c0_43, %c0_44, %c1_45, %c0_46] : memref<1x1x342x8xbf16, #tpu.memory_space<vmem>>, vector<1x1x288x8xbf16>
    %33 = vector.shape_cast %32 : vector<1x1x288x8xbf16> to vector<288x8xbf16>
    %c0_47 = arith.constant 0 : index
    %c80 = arith.constant 80 : index
    %34 = vector.load %arg9[%c0_47, %c80] : memref<288x256xbf16, #tpu.memory_space<vmem>>, vector<288x8xbf16>
    tpu.vector_store %arg9[%c0_47, %c80], %33 {strides = array<i32>} : memref<288x256xbf16, #tpu.memory_space<vmem>>, vector<288x8xbf16>,
    %c0_48 = arith.constant 0 : index
    %c0_49 = arith.constant 0 : index
    %c2_50 = arith.constant 2 : index
    %c0_51 = arith.constant 0 : index
    %35 = vector.load %arg3[%c0_48, %c0_49, %c2_50, %c0_51] : memref<1x1x342x8xbf16, #tpu.memory_space<vmem>>, vector<1x1x288x8xbf16>
    %36 = vector.shape_cast %35 : vector<1x1x288x8xbf16> to vector<288x8xbf16>
    %c0_52 = arith.constant 0 : index
    %c88 = arith.constant 88 : index
    %37 = vector.load %arg9[%c0_52, %c88] : memref<288x256xbf16, #tpu.memory_space<vmem>>, vector<288x8xbf16>
    tpu.vector_store %arg9[%c0_52, %c88], %36 {strides = array<i32>} : memref<288x256xbf16, #tpu.memory_space<vmem>>, vector<288x8xbf16>,
    %c0_53 = arith.constant 0 : index
    %c0_54 = arith.constant 0 : index
    %c18_55 = arith.constant 18 : index
    %c0_56 = arith.constant 0 : index
    %38 = vector.load %arg3[%c0_53, %c0_54, %c18_55, %c0_56] : memref<1x1x342x8xbf16, #tpu.memory_space<vmem>>, vector<1x1x288x8xbf16>
    %39 = vector.shape_cast %38 : vector<1x1x288x8xbf16> to vector<288x8xbf16>
    %c0_57 = arith.constant 0 : index
    %c96 = arith.constant 96 : index
    %40 = vector.load %arg9[%c0_57, %c96] : memref<288x256xbf16, #tpu.memory_space<vmem>>, vector<288x8xbf16>
    tpu.vector_store %arg9[%c0_57, %c96], %39 {strides = array<i32>} : memref<288x256xbf16, #tpu.memory_space<vmem>>, vector<288x8xbf16>,
    %c0_58 = arith.constant 0 : index
    %c0_59 = arith.constant 0 : index
    %c19_60 = arith.constant 19 : index
    %c0_61 = arith.constant 0 : index
    %41 = vector.load %arg3[%c0_58, %c0_59, %c19_60, %c0_61] : memref<1x1x342x8xbf16, #tpu.memory_space<vmem>>, vector<1x1x288x8xbf16>
    %42 = vector.shape_cast %41 : vector<1x1x288x8xbf16> to vector<288x8xbf16>
    %c0_62 = arith.constant 0 : index
    %c104 = arith.constant 104 : index
    %43 = vector.load %arg9[%c0_62, %c104] : memref<288x256xbf16, #tpu.memory_space<vmem>>, vector<288x8xbf16>
    tpu.vector_store %arg9[%c0_62, %c104], %42 {strides = array<i32>} : memref<288x256xbf16, #tpu.memory_space<vmem>>, vector<288x8xbf16>,
    %c0_63 = arith.constant 0 : index
    %c0_64 = arith.constant 0 : index
    %c20_65 = arith.constant 20 : index
    %c0_66 = arith.constant 0 : index
    %44 = vector.load %arg3[%c0_63, %c0_64, %c20_65, %c0_66] : memref<1x1x342x8xbf16, #tpu.memory_space<vmem>>, vector<1x1x288x8xbf16>
    %45 = vector.shape_cast %44 : vector<1x1x288x8xbf16> to vector<288x8xbf16>
    %c0_67 = arith.constant 0 : index
    %c112 = arith.constant 112 : index
    %46 = vector.load %arg9[%c0_67, %c112] : memref<288x256xbf16, #tpu.memory_space<vmem>>, vector<288x8xbf16>
    tpu.vector_store %arg9[%c0_67, %c112], %45 {strides = array<i32>} : memref<288x256xbf16, #tpu.memory_space<vmem>>, vector<288x8xbf16>,
    %c0_68 = arith.constant 0 : index
    %c0_69 = arith.constant 0 : index
    %c36_70 = arith.constant 36 : index
    %c0_71 = arith.constant 0 : index
    %47 = vector.load %arg3[%c0_68, %c0_69, %c36_70, %c0_71] : memref<1x1x342x8xbf16, #tpu.memory_space<vmem>>, vector<1x1x288x8xbf16>
    %48 = vector.shape_cast %47 : vector<1x1x288x8xbf16> to vector<288x8xbf16>
    %c0_72 = arith.constant 0 : index
    %c120 = arith.constant 120 : index
    %49 = vector.load %arg9[%c0_72, %c120] : memref<288x256xbf16, #tpu.memory_space<vmem>>, vector<288x8xbf16>
    tpu.vector_store %arg9[%c0_72, %c120], %48 {strides = array<i32>} : memref<288x256xbf16, #tpu.memory_space<vmem>>, vector<288x8xbf16>,
    %c0_73 = arith.constant 0 : index
    %c0_74 = arith.constant 0 : index
    %c37_75 = arith.constant 37 : index
    %c0_76 = arith.constant 0 : index
    %50 = vector.load %arg3[%c0_73, %c0_74, %c37_75, %c0_76] : memref<1x1x342x8xbf16, #tpu.memory_space<vmem>>, vector<1x1x288x8xbf16>
    %51 = vector.shape_cast %50 : vector<1x1x288x8xbf16> to vector<288x8xbf16>
    %c0_77 = arith.constant 0 : index
    %c128 = arith.constant 128 : index
    %52 = vector.load %arg9[%c0_77, %c128] : memref<288x256xbf16, #tpu.memory_space<vmem>>, vector<288x8xbf16>
    tpu.vector_store %arg9[%c0_77, %c128], %51 {strides = array<i32>} : memref<288x256xbf16, #tpu.memory_space<vmem>>, vector<288x8xbf16>,
    %c0_78 = arith.constant 0 : index
    %c0_79 = arith.constant 0 : index
    %c38_80 = arith.constant 38 : index
    %c0_81 = arith.constant 0 : index
    %53 = vector.load %arg3[%c0_78, %c0_79, %c38_80, %c0_81] : memref<1x1x342x8xbf16, #tpu.memory_space<vmem>>, vector<1x1x288x8xbf16>
    %54 = vector.shape_cast %53 : vector<1x1x288x8xbf16> to vector<288x8xbf16>
    %c0_82 = arith.constant 0 : index
    %c136 = arith.constant 136 : index
    %55 = vector.load %arg9[%c0_82, %c136] : memref<288x256xbf16, #tpu.memory_space<vmem>>, vector<288x8xbf16>
    tpu.vector_store %arg9[%c0_82, %c136], %54 {strides = array<i32>} : memref<288x256xbf16, #tpu.memory_space<vmem>>, vector<288x8xbf16>,
    %c0_83 = arith.constant 0 : index
    %c0_84 = arith.constant 0 : index
    %c0_85 = arith.constant 0 : index
    %c0_86 = arith.constant 0 : index
    %56 = vector.load %arg4[%c0_83, %c0_84, %c0_85, %c0_86] : memref<1x1x342x8xbf16, #tpu.memory_space<vmem>>, vector<1x1x288x8xbf16>
    %57 = vector.shape_cast %56 : vector<1x1x288x8xbf16> to vector<288x8xbf16>
    %c0_87 = arith.constant 0 : index
    %c144 = arith.constant 144 : index
    %58 = vector.load %arg9[%c0_87, %c144] : memref<288x256xbf16, #tpu.memory_space<vmem>>, vector<288x8xbf16>
    tpu.vector_store %arg9[%c0_87, %c144], %57 {strides = array<i32>} : memref<288x256xbf16, #tpu.memory_space<vmem>>, vector<288x8xbf16>,
    %c0_88 = arith.constant 0 : index
    %c0_89 = arith.constant 0 : index
    %c1_90 = arith.constant 1 : index
    %c0_91 = arith.constant 0 : index
    %59 = vector.load %arg4[%c0_88, %c0_89, %c1_90, %c0_91] : memref<1x1x342x8xbf16, #tpu.memory_space<vmem>>, vector<1x1x288x8xbf16>
    %60 = vector.shape_cast %59 : vector<1x1x288x8xbf16> to vector<288x8xbf16>
    %c0_92 = arith.constant 0 : index
    %c152 = arith.constant 152 : index
    %61 = vector.load %arg9[%c0_92, %c152] : memref<288x256xbf16, #tpu.memory_space<vmem>>, vector<288x8xbf16>
    tpu.vector_store %arg9[%c0_92, %c152], %60 {strides = array<i32>} : memref<288x256xbf16, #tpu.memory_space<vmem>>, vector<288x8xbf16>,
    %c0_93 = arith.constant 0 : index
    %c0_94 = arith.constant 0 : index
    %c2_95 = arith.constant 2 : index
    %c0_96 = arith.constant 0 : index
    %62 = vector.load %arg4[%c0_93, %c0_94, %c2_95, %c0_96] : memref<1x1x342x8xbf16, #tpu.memory_space<vmem>>, vector<1x1x288x8xbf16>
    %63 = vector.shape_cast %62 : vector<1x1x288x8xbf16> to vector<288x8xbf16>
    %c0_97 = arith.constant 0 : index
    %c160 = arith.constant 160 : index
    %64 = vector.load %arg9[%c0_97, %c160] : memref<288x256xbf16, #tpu.memory_space<vmem>>, vector<288x8xbf16>
    tpu.vector_store %arg9[%c0_97, %c160], %63 {strides = array<i32>} : memref<288x256xbf16, #tpu.memory_space<vmem>>, vector<288x8xbf16>,
    %c0_98 = arith.constant 0 : index
    %c0_99 = arith.constant 0 : index
    %c18_100 = arith.constant 18 : index
    %c0_101 = arith.constant 0 : index
    %65 = vector.load %arg4[%c0_98, %c0_99, %c18_100, %c0_101] : memref<1x1x342x8xbf16, #tpu.memory_space<vmem>>, vector<1x1x288x8xbf16>
    %66 = vector.shape_cast %65 : vector<1x1x288x8xbf16> to vector<288x8xbf16>
    %c0_102 = arith.constant 0 : index
    %c168 = arith.constant 168 : index
    %67 = vector.load %arg9[%c0_102, %c168] : memref<288x256xbf16, #tpu.memory_space<vmem>>, vector<288x8xbf16>
    tpu.vector_store %arg9[%c0_102, %c168], %66 {strides = array<i32>} : memref<288x256xbf16, #tpu.memory_space<vmem>>, vector<288x8xbf16>,
    %c0_103 = arith.constant 0 : index
    %c0_104 = arith.constant 0 : index
    %c19_105 = arith.constant 19 : index
    %c0_106 = arith.constant 0 : index
    %68 = vector.load %arg4[%c0_103, %c0_104, %c19_105, %c0_106] : memref<1x1x342x8xbf16, #tpu.memory_space<vmem>>, vector<1x1x288x8xbf16>
    %69 = vector.shape_cast %68 : vector<1x1x288x8xbf16> to vector<288x8xbf16>
    %c0_107 = arith.constant 0 : index
    %c176 = arith.constant 176 : index
    %70 = vector.load %arg9[%c0_107, %c176] : memref<288x256xbf16, #tpu.memory_space<vmem>>, vector<288x8xbf16>
    tpu.vector_store %arg9[%c0_107, %c176], %69 {strides = array<i32>} : memref<288x256xbf16, #tpu.memory_space<vmem>>, vector<288x8xbf16>,
    %c0_108 = arith.constant 0 : index
    %c0_109 = arith.constant 0 : index
    %c20_110 = arith.constant 20 : index
    %c0_111 = arith.constant 0 : index
    %71 = vector.load %arg4[%c0_108, %c0_109, %c20_110, %c0_111] : memref<1x1x342x8xbf16, #tpu.memory_space<vmem>>, vector<1x1x288x8xbf16>
    %72 = vector.shape_cast %71 : vector<1x1x288x8xbf16> to vector<288x8xbf16>
    %c0_112 = arith.constant 0 : index
    %c184 = arith.constant 184 : index
    %73 = vector.load %arg9[%c0_112, %c184] : memref<288x256xbf16, #tpu.memory_space<vmem>>, vector<288x8xbf16>
    tpu.vector_store %arg9[%c0_112, %c184], %72 {strides = array<i32>} : memref<288x256xbf16, #tpu.memory_space<vmem>>, vector<288x8xbf16>,
    %c0_113 = arith.constant 0 : index
    %c0_114 = arith.constant 0 : index
    %c36_115 = arith.constant 36 : index
    %c0_116 = arith.constant 0 : index
    %74 = vector.load %arg4[%c0_113, %c0_114, %c36_115, %c0_116] : memref<1x1x342x8xbf16, #tpu.memory_space<vmem>>, vector<1x1x288x8xbf16>
    %75 = vector.shape_cast %74 : vector<1x1x288x8xbf16> to vector<288x8xbf16>
    %c0_117 = arith.constant 0 : index
    %c192 = arith.constant 192 : index
    %76 = vector.load %arg9[%c0_117, %c192] : memref<288x256xbf16, #tpu.memory_space<vmem>>, vector<288x8xbf16>
    tpu.vector_store %arg9[%c0_117, %c192], %75 {strides = array<i32>} : memref<288x256xbf16, #tpu.memory_space<vmem>>, vector<288x8xbf16>,
    %c0_118 = arith.constant 0 : index
    %c0_119 = arith.constant 0 : index
    %c37_120 = arith.constant 37 : index
    %c0_121 = arith.constant 0 : index
    %77 = vector.load %arg4[%c0_118, %c0_119, %c37_120, %c0_121] : memref<1x1x342x8xbf16, #tpu.memory_space<vmem>>, vector<1x1x288x8xbf16>
    %78 = vector.shape_cast %77 : vector<1x1x288x8xbf16> to vector<288x8xbf16>
    %c0_122 = arith.constant 0 : index
    %c200 = arith.constant 200 : index
    %79 = vector.load %arg9[%c0_122, %c200] : memref<288x256xbf16, #tpu.memory_space<vmem>>, vector<288x8xbf16>
    tpu.vector_store %arg9[%c0_122, %c200], %78 {strides = array<i32>} : memref<288x256xbf16, #tpu.memory_space<vmem>>, vector<288x8xbf16>,
    %c0_123 = arith.constant 0 : index
    %c0_124 = arith.constant 0 : index
    %c38_125 = arith.constant 38 : index
    %c0_126 = arith.constant 0 : index
    %80 = vector.load %arg4[%c0_123, %c0_124, %c38_125, %c0_126] : memref<1x1x342x8xbf16, #tpu.memory_space<vmem>>, vector<1x1x288x8xbf16>
    %81 = vector.shape_cast %80 : vector<1x1x288x8xbf16> to vector<288x8xbf16>
    %c0_127 = arith.constant 0 : index
    %c208 = arith.constant 208 : index
    %82 = vector.load %arg9[%c0_127, %c208] : memref<288x256xbf16, #tpu.memory_space<vmem>>, vector<288x8xbf16>
    tpu.vector_store %arg9[%c0_127, %c208], %81 {strides = array<i32>} : memref<288x256xbf16, #tpu.memory_space<vmem>>, vector<288x8xbf16>,
    %c0_128 = arith.constant 0 : index
    %c0_129 = arith.constant 0 : index
    %83 = vector.load %arg9[%c0_128, %c0_129] : memref<288x256xbf16, #tpu.memory_space<vmem>>, vector<288x256xbf16>
    %c0_130 = arith.constant 0 : index
    %c0_131 = arith.constant 0 : index
    %c0_132 = arith.constant 0 : index
    %84 = vector.load %arg5[%c0_130, %c0_131, %c0_132] : memref<1x256x256xbf16, #tpu.memory_space<vmem>>, vector<1x256x256xbf16>
    %85 = vector.shape_cast %84 : vector<1x256x256xbf16> to vector<256x256xbf16>
    %cst_133 = arith.constant dense<0.000000e+00> : vector<288x256xf32>
    %86 = tpu.matmul %83, %85, %cst_133 {dimension_numbers = #tpu.dot_dimension_numbers<[1], [0], [0], [1], [0, 0, 1, 1], [], []>} : vector<288x256xbf16>, vector<256x256xbf16>, vector<288x256xf32> -> vector<288x256xf32>
    %c0_134 = arith.constant 0 : index
    %c0_135 = arith.constant 0 : index
    %87 = vector.load %arg6[%c0_134, %c0_135] : memref<1x256xf32, #tpu.memory_space<vmem>>, vector<1x256xf32>
    %88 = vector.broadcast %87 : vector<1x256xf32> to vector<288x256xf32>
    %89 = arith.addf %86, %88 : vector<288x256xf32>
    %90 = arith.truncf %89 : vector<288x256xf32> to vector<288x256xbf16>
    %c0_136 = arith.constant 0 : index
    %c0_137 = arith.constant 0 : index
    %c0_138 = arith.constant 0 : index
    %c0_139 = arith.constant 0 : index
    %91 = vector.load %arg7[%c0_136, %c0_137, %c0_138, %c0_139] : memref<1x1x288x256xbf16, #tpu.memory_space<vmem>>, vector<1x1x288x256xbf16>
    %92 = vector.shape_cast %91 : vector<1x1x288x256xbf16> to vector<288x256xbf16>
    %93 = vector.shape_cast %90 : vector<288x256xbf16> to vector<1x1x288x256xbf16>
    tpu.vector_store %arg7[%c0_136, %c0_137, %c0_138, %c0_139], %93 {strides = array<i32>} : memref<1x1x288x256xbf16, #tpu.memory_space<vmem>>, vector<1x1x288x256xbf16>,
    %94 = tpu.iota {dimensions = array<i32: 0>} : vector<288x1xi32>
    %c18_i32 = arith.constant 18 : i32
    %c0_i32 = arith.constant 0 : i32
    %95 = arith.cmpi eq, %c18_i32, %c0_i32 : i32
    %c1_i32 = arith.constant 1 : i32
    %96 = arith.select %95, %c1_i32, %c18_i32 : i32
    %97 = vector.broadcast %96 : i32 to vector<288x1xi32>
    %98 = arith.remsi %94, %97 : vector<288x1xi32>
    %c0_i32_140 = arith.constant 0 : i32
    %99 = vector.broadcast %c0_i32_140 : i32 to vector<288x1xi32>
    %100 = arith.cmpi ne, %98, %99 : vector<288x1xi32>
    %c0_i32_141 = arith.constant 0 : i32
    %101 = vector.broadcast %c0_i32_141 : i32 to vector<288x1xi32>
    %102 = arith.cmpi slt, %98, %101 : vector<288x1xi32>
    %c0_i32_142 = arith.constant 0 : i32
    %103 = arith.cmpi slt, %96, %c0_i32_142 : i32
    %104 = vector.broadcast %103 : i1 to vector<288x1xi1>
    %105 = vector.broadcast %104 : vector<288x1xi1> to vector<288x1xi1>
    %106 = arith.xori %102, %105 : vector<288x1xi1>
    %107 = arith.andi %106, %100 : vector<288x1xi1>
    %108 = vector.broadcast %96 : i32 to vector<288x1xi32>
    %109 = arith.addi %98, %108 : vector<288x1xi32>
    %110 = arith.select %107, %109, %98 : vector<288x1xi1>, vector<288x1xi32>
    %c16_i32 = arith.constant 16 : i32
    %111 = vector.broadcast %c16_i32 : i32 to vector<288x1xi32>
    %112 = arith.cmpi slt, %110, %111 : vector<288x1xi32>
    %cst_143 = arith.constant 0.000000e+00 : f32
    %113 = vector.shape_cast %112 : vector<288x1xi1> to vector<288x1xi1>
    %114 = vector.broadcast %113 : vector<288x1xi1> to vector<288x256xi1>
    %115 = vector.broadcast %cst_143 : f32 to vector<288x256xf32>
    %116 = arith.select %114, %89, %115 : vector<288x256xi1>, vector<288x256xf32>
    %cst_144 = arith.constant dense<0.000000e+00> : vector<256xf32>
    %117 = vector.multi_reduction <add>, %116, %cst_144 [0] : vector<288x256xf32> to vector<256xf32>
    %118 = vector.shape_cast %117 : vector<256xf32> to vector<1x256xf32>
    %119 = arith.mulf %116, %116 : vector<288x256xf32>
    %cst_145 = arith.constant dense<0.000000e+00> : vector<256xf32>
    %120 = vector.multi_reduction <add>, %119, %cst_145 [0] : vector<288x256xf32> to vector<256xf32>
    %121 = vector.shape_cast %120 : vector<256xf32> to vector<1x256xf32>
    %122 = tpu.concatenate %118, %121 in 0 : vector<1x256xf32>, vector<1x256xf32> -> vector<2x256xf32>
    %c0_146 = arith.constant 0 : index
    %c0_147 = arith.constant 0 : index
    %c0_148 = arith.constant 0 : index
    %c0_149 = arith.constant 0 : index
    %123 = vector.load %arg8[%c0_146, %c0_147, %c0_148, %c0_149] : memref<1x1x2x256xf32, #tpu.memory_space<vmem>>, vector<1x1x2x256xf32>
    %124 = vector.shape_cast %123 : vector<1x1x2x256xf32> to vector<2x256xf32>
    %125 = vector.shape_cast %122 : vector<2x256xf32> to vector<1x1x2x256xf32>
    tpu.vector_store %arg8[%c0_146, %c0_147, %c0_148, %c0_149], %125 {strides = array<i32>} : memref<1x1x2x256xf32, #tpu.memory_space<vmem>>, vector<1x1x2x256xf32>,
    return
  }
  func.func @transform_0(%arg0: i32, %arg1: i32) -> (i32, i32, i32, i32) {
    %c0_i32 = arith.constant 0 : i32
    %0 = arith.addi %arg1, %c0_i32 : i32
    %c0_i32_0 = arith.constant 0 : i32
    %c0_i32_1 = arith.constant 0 : i32
    %c0_i32_2 = arith.constant 0 : i32
    return %arg0, %0, %c0_i32_0, %c0_i32_1 : i32, i32, i32, i32
  }
  func.func @transform_1(%arg0: i32, %arg1: i32) -> (i32, i32, i32, i32) {
    %c1_i32 = arith.constant 1 : i32
    %0 = arith.addi %arg1, %c1_i32 : i32
    %c0_i32 = arith.constant 0 : i32
    %c0_i32_0 = arith.constant 0 : i32
    %c0_i32_1 = arith.constant 0 : i32
    return %arg0, %0, %c0_i32, %c0_i32_0 : i32, i32, i32, i32
  }
  func.func @transform_2(%arg0: i32, %arg1: i32) -> (i32, i32, i32, i32) {
    %c2_i32 = arith.constant 2 : i32
    %0 = arith.addi %arg1, %c2_i32 : i32
    %c0_i32 = arith.constant 0 : i32
    %c0_i32_0 = arith.constant 0 : i32
    %c0_i32_1 = arith.constant 0 : i32
    return %arg0, %0, %c0_i32, %c0_i32_0 : i32, i32, i32, i32
  }
  func.func @transform_3(%arg0: i32, %arg1: i32) -> (i32, i32, i32) {
    %c0_i32 = arith.constant 0 : i32
    %c0_i32_0 = arith.constant 0 : i32
    %c0_i32_1 = arith.constant 0 : i32
    %c0_i32_2 = arith.constant 0 : i32
    return %c0_i32, %c0_i32_0, %c0_i32_1 : i32, i32, i32
  }
  func.func @transform_4(%arg0: i32, %arg1: i32) -> (i32, i32) {
    %c0_i32 = arith.constant 0 : i32
    %c0_i32_0 = arith.constant 0 : i32
    %c0_i32_1 = arith.constant 0 : i32
    return %c0_i32, %c0_i32_0 : i32, i32
  }
  func.func @transform_5(%arg0: i32, %arg1: i32) -> (i32, i32, i32, i32) {
    %c0_i32 = arith.constant 0 : i32
    %c0_i32_0 = arith.constant 0 : i32
    %c0_i32_1 = arith.constant 0 : i32
    return %arg0, %arg1, %c0_i32, %c0_i32_0 : i32, i32, i32, i32
  }
  func.func @transform_6(%arg0: i32, %arg1: i32) -> (i32, i32, i32, i32) {
    %c0_i32 = arith.constant 0 : i32
    %c0_i32_0 = arith.constant 0 : i32
    %c0_i32_1 = arith.constant 0 : i32
    return %arg0, %arg1, %c0_i32, %c0_i32_0 : i32, i32, i32, i32
  }
}

module attributes {stable_mosaic.version = 11 : i64} {
  func.func @_bn_lrelu_add_kernel(%arg0: i32, %arg1: memref<8x288x256xbf16, #tpu.memory_space<vmem>>, %arg2: memref<2x256xf32, #tpu.memory_space<vmem>>, %arg3: memref<8x288x128xf32, #tpu.memory_space<vmem>>) attributes {dimension_semantics = [#tpu.dimension_semantics<parallel>], iteration_bounds = array<i64: 2>, scalar_prefetch = 0 : i64, scratch_operands = 0 : i64, tpu.core_type = #tpu.core_type<tc>, window_params = [{transform_indices = @transform_0, window_bounds = array<i64: 8, 288, 256>}, {pipeline_mode = #tpu.pipeline_mode<synchronous>, transform_indices = @transform_1, window_bounds = array<i64: 2, 256>}, {transform_indices = @transform_2, window_bounds = array<i64: 8, 288, 128>}]} {
    %c0 = arith.constant 0 : index
    %c0_0 = arith.constant 0 : index
    %0 = vector.load %arg2[%c0, %c0_0] : memref<2x256xf32, #tpu.memory_space<vmem>>, vector<1x256xf32>
    %c1 = arith.constant 1 : index
    %c0_1 = arith.constant 0 : index
    %1 = vector.load %arg2[%c1, %c0_1] : memref<2x256xf32, #tpu.memory_space<vmem>>, vector<1x256xf32>
    %c0_i32 = arith.constant 0 : i32
    %c8_i32 = arith.constant 8 : i32
    %2 = arith.addi %c0_i32, %c8_i32 : i32
    %c1_i32 = arith.constant 1 : i32
    scf.for %arg4 = %c0_i32 to %2 step %c1_i32  : i32 {
      %3 = arith.index_cast %arg4 : i32 to index
      %c0_3 = arith.constant 0 : index
      %c0_4 = arith.constant 0 : index
      %4 = vector.load %arg1[%3, %c0_3, %c0_4] : memref<8x288x256xbf16, #tpu.memory_space<vmem>>, vector<1x288x256xbf16>
      %5 = vector.shape_cast %4 : vector<1x288x256xbf16> to vector<288x256xbf16>
      %6 = arith.extf %5 : vector<288x256xbf16> to vector<288x256xf32>
      %7 = vector.broadcast %0 : vector<1x256xf32> to vector<288x256xf32>
      %8 = arith.mulf %6, %7 : vector<288x256xf32>
      %9 = vector.broadcast %1 : vector<1x256xf32> to vector<288x256xf32>
      %10 = arith.addf %8, %9 : vector<288x256xf32>
      %cst = arith.constant 0.000000e+00 : f32
      %11 = vector.broadcast %cst : f32 to vector<288x256xf32>
      %12 = arith.cmpf oge, %10, %11 : vector<288x256xf32>
      %cst_5 = arith.constant 0.00999999977 : f32
      %13 = vector.broadcast %cst_5 : f32 to vector<288x256xf32>
      %14 = arith.mulf %13, %10 : vector<288x256xf32>
      %15 = arith.select %12, %10, %14 : vector<288x256xi1>, vector<288x256xf32>
      %16 = vector.extract_strided_slice %15 {offsets = [0, 0], sizes = [288, 128], strides = [1, 1]} : vector<288x256xf32> to vector<288x128xf32>
      %17 = vector.extract_strided_slice %15 {offsets = [0, 128], sizes = [288, 128], strides = [1, 1]} : vector<288x256xf32> to vector<288x128xf32>
      %18 = arith.addf %16, %17 : vector<288x128xf32>
      %19 = arith.index_cast %arg4 : i32 to index
      %c0_6 = arith.constant 0 : index
      %c0_7 = arith.constant 0 : index
      %20 = vector.load %arg3[%19, %c0_6, %c0_7] : memref<8x288x128xf32, #tpu.memory_space<vmem>>, vector<1x288x128xf32>
      %21 = vector.shape_cast %20 : vector<1x288x128xf32> to vector<288x128xf32>
      %22 = vector.shape_cast %18 : vector<288x128xf32> to vector<1x288x128xf32>
      tpu.vector_store %arg3[%19, %c0_6, %c0_7], %22 {strides = array<i32>} : memref<8x288x128xf32, #tpu.memory_space<vmem>>, vector<1x288x128xf32>,
    }
    %c8_i32_2 = arith.constant 8 : i32
    return
  }
  func.func @transform_0(%arg0: i32) -> (i32, i32, i32) {
    %c0_i32 = arith.constant 0 : i32
    %c0_i32_0 = arith.constant 0 : i32
    %c0_i32_1 = arith.constant 0 : i32
    return %arg0, %c0_i32, %c0_i32_0 : i32, i32, i32
  }
  func.func @transform_1(%arg0: i32) -> (i32, i32) {
    %c0_i32 = arith.constant 0 : i32
    %c0_i32_0 = arith.constant 0 : i32
    %c0_i32_1 = arith.constant 0 : i32
    return %c0_i32, %c0_i32_0 : i32, i32
  }
  func.func @transform_2(%arg0: i32) -> (i32, i32, i32) {
    %c0_i32 = arith.constant 0 : i32
    %c0_i32_0 = arith.constant 0 : i32
    %c0_i32_1 = arith.constant 0 : i32
    return %arg0, %c0_i32, %c0_i32_0 : i32, i32, i32
  }
}

</mosaic_0001>

<bundles_post_ra>
// kernel: respath3d_forward.3
= control target key start
LH: loop header
LB: loop body
LE: loop exit
PB: predicated region body
PF: predicated region fallthrough
CT: control target
= control target key end

     0   :  { %7 = vsyncpa [#allocation3], 0  ;;  %s1564_s0 = inlined_call_operand.hbm [shape: bf16[16,288,256], index: 0, kind: input, shape index: {}]   ;;  %s1565_s1 = inlined_call_operand.hbm [shape: f32[2,256], index: 1, kind: input, shape index: {}]   ;;  %s1566_s2 = inlined_call_operand.hbm [shape: f32[16,288,128], index: 2, kind: output, shape index: {}]  }
   0x1   :  { %9 = vsyncpa [#allocation3 + $0x1], 0 }
   0x2   :  { %10 = vsyncpa [#allocation6], 0 }
   0x3   :  { %11 = vsyncpa [#allocation4], 0 }
   0x4   :  { %13 = vsyncpa [#allocation4 + $0x1], 0  ;;  %s1110_s9 = smov 0   ;;  %s1112_s10 = smov 0  }
   0x5   :  { %s1114_s11 = smov 0   ;;  %s1116_s12 = smov 0  }
   0x6 LB: > { %s1131_s13 = sadd.s32 4294967295, %s1082_s12   ;;  %s861_s14 = sadd.s32 4294967294, %s1082_s12   ;;  %s1082_s12 = sphi %s1116_s12, %s1591_s12   ;;  %s1078_s11 = sphi %s1114_s11, %s1590_s11   ;;  %s1074_s10 = sphi %s1112_s10, %s1589_s10   ;;  %s1070_s9 = sphi %s1110_s9, %s1588_s9  }
   0x7   : > { %s1135_s15 = sadd.s32 1, %s1082_s12   ;;  %s26_s16 = sadd.s32 1, %s1078_s11 }
   0x8   : > { %s23_s17 = ssub.s32 %s1082_s12, %s1135_s15  ;;  %p33_p0 = scmp.ne.s32.totalorder %s1078_s11, %s1074_s10 }
   0x9   : > { %p24_p1 = scmp.eq.s32.totalorder %s23_s17, 0  ;;  %p34_p2 = scmp.eq.s32.totalorder %s1082_s12, 0 }
   0xa   : > { %p39_p3 = scmp.ne.s32.totalorder %s1074_s10, %s1070_s9  ;;  %p1567_p4 = scmp.eq.s32.totalorder %s1131_s13, 0 }
   0xb   : > { %s1147_s18 = scalar_select %p24_p1, %s1078_s11, %s26_s16  }
   0xc   : > { %p1149_p5 = por %p34_p2, %p33_p0  ;;  %p1155_p6 = por %p1567_p4, %p39_p3 }
   0xd   : > { %p84_p7 = scmp.eq.s32.totalorder %s1131_s13, 1  ;;  %p90_p8 = scmp.eq.s32.totalorder %s861_s14, 1 }
   0xe   : > { %s1573_s20 = scalar_select %p1155_p6, 1, 0 }
   0xf   : > { %p862_p9 = scmp.ge.s32.totalorder %s1082_s12, 1  ;;  %p97_p10 = scmp.lt.s32.totalorder %s1082_s12, 3 }
  0x10   : > { %p1162_p11 = por %p84_p7, %p33_p0  ;;  %p1166_p12 = por %p90_p8, %p39_p3 }
  0x11   : > { %p1170_p13 = pnand %p862_p9, %p97_p10  ;;  %s1088_s24 = smov [#allocation5]  }
  0x12   : > { %s1574_s21 = scalar_select %p1162_p11, 1, 0 }
  0x13   : > { %s1575_s22 = scalar_select %p1166_p12, 1, 0 }
  0x14   : > { %s1576_s23 = scalar_select %p1170_p13, 1, 0 }
  0x15   : > { %p889_p2 = pneg %p1170_p13  ;;  %s110_s25 = sshll.u32 %s1088_s24, 4  ;;  %s111_s25 = int_to_ptr.vmem [resolvable:$true] %s110_s25 }
  0x16   : > { %p902_p4 = scmp.lt.s32.totalorder %s1082_s12, 2  ;;  %p1577_p0 = scmp.eq.s32.totalorder %s1131_s13, 0 }
  0x17   : > { %s121_s27 = sand.u32 1, %s1078_s11   ;;  %s950_s4 = scalar_lea.hbm %s1565_s1, 64 }
  0x18   : > { %p1180_p7 = pnand %p889_p2, %p1577_p0  ;;  %p1187_p3 = pnand %p902_p4, %p1149_p5 }
  0x19   : > { %s877_s29 = smul.u32 2304, %s121_s27  ;;  %p951_p8 = scmp.ne.s32.totalorder %s1565_s1, %s950_s4 }
  0x1a   : > { %s1579_s28 = scalar_select %p1187_p3, 1, 0 }
  0x1b   : > { %p952_p9 = pneg %p1180_p7  ;;  %p957_p4 = scmp.lt.u32.totalorder %s950_s4, %s1565_s1 }
  0x1d   : > { %p953_p10 = pnand %p952_p9, %p951_p8 }
  0x1f   : > { %p954_p2 = pneg %p953_p10 }
  0x21   : > { %p959_p5 = pnand %p957_p4, %p954_p2 }
  0x23   : > { %962 = shalt.err (!%p959_p5)
}
  0x24   : > { %s963_s14 = scalar_lea.vmem %s111_s25, 64  ;;  %p971_p11 = scmp.lt.s32.totalorder %s111_s25, %s111_s25 }
  0x25   : > { %p964_p0 = scmp.ne.s32.totalorder %s111_s25, %s963_s14  ;;  %p972_p6 = scmp.lt.s32.totalorder %s963_s14, %s963_s14 }
  0x27   : > { %p966_p1 = pnand %p964_p0, %p952_p9  ;;  %p973_p13 = por %p972_p6, %p971_p11 }
  0x29   : > { %p967_p12 = pneg %p966_p1 }
  0x2b   : > { %p974_p3 = pnand %p973_p13, %p967_p12 }
  0x2d   : > { %977 = shalt.err (!%p974_p3)
}
  0x2e   : > { %892 = dma.hbm_to_vmem [thread:$0]  (!%p1180_p7), %s1565_s1, 64, %s111_s25, [#allocation6]  }
  0x2f   : > { %s878_s19 = smul.u32 36864, %s1082_s12  ;;  %s125_s24 = scalar_lea.vmem [#allocation2], %s877_s29 }
  0x30   : > { %s133_s30 = sshll.u32 %s125_s24, 4  ;;  %s1215_s26 = scalar_lea.sflag [#allocation3], %s121_s27  ;;  %s1208_s30 = int_to_ptr.vmem [resolvable:$true] %s133_s30 }
  0x31   : > { %s1213_s5 = scalar_lea.hbm %s1564_s0, %s878_s19  ;;  %p1580_p11 = scmp.ne.s32.totalorder %s1579_s28, 0 }
  0x32   : > { %s978_s6 = scalar_lea.hbm %s1213_s5, 36864  ;;  %s983_s7 = scalar_lea.hbm %s1564_s0, 73728 }
  0x33   : > { %p979_p6 = scmp.ne.s32.totalorder %s1213_s5, %s978_s6  ;;  %p980_p12 = pneg %p1580_p11 }
  0x34   : > { %p984_p7 = scmp.lt.u32.totalorder %s1213_s5, %s1564_s0  ;;  %p985_p3 = scmp.lt.u32.totalorder %s983_s7, %s978_s6 }
  0x35   : > { %p981_p13 = pnand %p980_p12, %p979_p6  ;;  %p987_p9 = scmp.lt.u32.totalorder %s978_s6, %s1213_s5 }
  0x36   : > { %p986_p8 = por %p985_p3, %p984_p7 }
  0x37   : > { %p982_p1 = pneg %p981_p13 }
  0x38   : > { %p988_p10 = por %p987_p9, %p986_p8 }
  0x3a   : > { %p989_p2 = pnand %p988_p10, %p982_p1 }
  0x3c   : > { %992 = shalt.err (!%p989_p2)
}
  0x3d   : > { %s993_s27 = scalar_lea.vmem %s1208_s30, 36864  ;;  %s1089_s16 = smov [#allocation2]  }
  0x3e   : > { %p994_p4 = scmp.ne.s32.totalorder %s1208_s30, %s993_s27  ;;  %s998_s17 = sshll.u32 %s1089_s16, 4  ;;  %s999_s17 = int_to_ptr.vmem [resolvable:$false] %s998_s17 }
  0x3f   : > { %s1000_s19 = scalar_lea.vmem %s999_s17, 73728  ;;  %p1001_p6 = scmp.lt.s32.totalorder %s1208_s30, %s999_s17 }
  0x40   : > { %p996_p5 = pnand %p994_p4, %p980_p12  ;;  %p1002_p13 = scmp.lt.s32.totalorder %s1000_s19, %s993_s27 }
  0x42   : > { %p997_p0 = pneg %p996_p5  ;;  %p1003_p7 = por %p1002_p13, %p1001_p6 }
  0x44   : > { %p1004_p3 = pnand %p1003_p7, %p997_p0 }
  0x46   : > { %1007 = shalt.err (!%p1004_p3)
}
  0x47   : > { %s1090_s24 = smov 128   ;;  %s1091_s3 = smov 8  }
  0x48   : > { %896 = dma.hbm_to_vmem [thread:$0]  (!%p1580_p11), %s1213_s5, 36864, %s1208_s30, %s1215_s26, %s1090_s24, %s1090_s24, %s1091_s3  }
  0x49   : > { %p1581_p12 = scmp.ne.s32.totalorder %s1576_s23, 0 }
  0x4a   : > { %s1246_s4 = sand.u32 (!%p1581_p12), 1, %s1074_s10   ;;  %p1582_p1 = scmp.ne.s32.totalorder (!%p1581_p12), %s1573_s20, 0 }
  0x4b   : > { %145 = sbr.rel (%p1581_p12) target bundleno = 231 (0xe7), region = 28  ;;  %s148_s25 = scalar_lea.sflag (!%p1581_p12), [#allocation3], %s1246_s4 }
  0x4c   : > { %s879_s6 = smul.u32 (!%p1581_p12), 2304, %s1246_s4 }
  0x4e   : > { %s1250_s29 = scalar_lea.vmem (!%p1581_p12), [#allocation2], %s879_s6 }
  0x52   : > { %1057 = dma.done.wait (%p1582_p1), %s148_s25, 36864  }
  0x53   : > { %1059 = vsyncadd (%p1582_p1), %s148_s25, 4294930432  ;;  %p1583_p11 = scmp.eq.s32.totalorder %s1131_s13, 0 }
  0x55   : > { %1061 = dma.done.wait (%p1583_p11), [#allocation6], 64   ;;  %p1584_p8 = pmov %p1583_p11 }
  0x56   : > { %v1260_v0 = vld [vmem:[#allocation5] ss:$2 sm:$0x3]  ;;  %v1262_v1 = vld [vmem:[#allocation5 + $0x1] ss:$2 sm:$0x3] }
  0x57   : > { %1063 = vsyncadd (%p1584_p8), [#allocation6], 4294967232  ;;  %s1264_s23 = scalar_lea.vmem [#allocation7], %s879_s6  ;;  %s1266_s28 = smov 0  }
  0x58 LB: >> { %v299_v2 = vlaneseq  ;;  %s876_s20 = smul.u32 288, %s1086_s28  ;;  %s186_s28 = sadd.s32 1, %s1086_s28   ;;  %s1086_s28 = sphi %s1266_s28, %s186_s28  }
  0x59   : >> { %p183_p9 = scmp.ge.s32.totalorder %s186_s28, 8  }
  0x5a   : >> { %v300_v3 = vshrl.u32 %v299_v2, 7  ;;  %s1275_s30 = scalar_lea.vmem %s1250_s29, %s876_s20 [#allocation2]  ;;  %s1308_s5 = scalar_lea.vmem %s1264_s23, %s876_s20 [#allocation7] }
  0x5b   : >> { %v190_v6 = vld [vmem:[%s1275_s30] sm:$0xff]  ;;  %v191_v7 = vld [vmem:[%s1275_s30 + $0x8] sm:$0xff]  ;;  %v192_v8 = vld [vmem:[%s1275_s30 + $0x10] sm:$0xff]  ;;  %s880_s26 = smul.u32 (%p183_p9), 36864, %s1131_s13  ;;  %s769_s7 = sshll.u32 (%p183_p9), %s1264_s23, 4  ;;  %s1520_s7 = int_to_ptr.vmem [resolvable:$true] %s769_s7 }
  0x5c   : >> { %v301_v4 = vsub.s32 0, %v300_v3  ;;  %v305_v5 = vsub.s32 1, %v300_v3  ;;  %v226_v9 = vunpack.c.l.bf16 %v190_v6  ;;  %v227_v10 = vunpack.c.h.bf16 %v190_v6  ;;  %v193_v13 = vld [vmem:[%s1275_s30 + $0x18] sm:$0xff]  ;;  %v194_v46 = vld [vmem:[%s1275_s30 + $0x20] sm:$0xff]  ;;  %v195_v47 = vld [vmem:[%s1275_s30 + $0x28] sm:$0xff]  ;;  %s755_s16 = scalar_lea.sflag (%p183_p9), [#allocation4], %s1246_s4 }
  0x5d   : >> { %v228_v16 = vunpack.c.l.bf16 %v191_v7  ;;  %v229_v17 = vunpack.c.h.bf16 %v191_v7  ;;  %v230_v20 = vunpack.c.l.bf16 %v192_v8  ;;  %v231_v21 = vunpack.c.h.bf16 %v192_v8  ;;  %v196_v57 = vld [vmem:[%s1275_s30 + $0x30] sm:$0xff]  ;;  %v197_v3 = vld [vmem:[%s1275_s30 + $0x38] sm:$0xff]  ;;  %s1518_s27 = scalar_lea.hbm (%p183_p9), %s1566_s2, %s880_s26  ;;  %s1008_s17 = scalar_lea.vmem (%p183_p9), %s1520_s7, 36864 }
  0x5e   : >> { %v1281_v11 = vrot.slane %v1260_v0, %v301_v4  ;;  %v1284_v12 = vrot.slane %v1260_v0, %v305_v5  ;;  %v1288_v14 = vrot.slane %v1262_v1, %v301_v4  ;;  %v1291_v15 = vrot.slane %v1262_v1, %v305_v5  ;;  %p1009_p10 = scmp.ne.s32.totalorder (%p183_p9), %s1520_s7, %s1008_s17  ;;  %p1585_p2 = scmp.ne.s32.totalorder (%p183_p9), %s1574_s21, 0 }
  0x5f   : >> { %v232_v24 = vunpack.c.l.bf16 %v193_v13  ;;  %v233_v25 = vunpack.c.h.bf16 %v193_v13  ;;  %v234_v54 = vunpack.c.l.bf16 %v194_v46  ;;  %v235_v55 = vunpack.c.h.bf16 %v194_v46  ;;  %s1092_s19 = smov (%p183_p9), [#allocation7]  }
  0x60   : >> { %v309_v18 = vmul.f32 %v1281_v11, %v226_v9  ;;  %v310_v19 = vmul.f32 %v1284_v12, %v227_v10  ;;  %v311_v22 = vmul.f32 %v1281_v11, %v228_v16  ;;  %v312_v23 = vmul.f32 %v1284_v12, %v229_v17  ;;  %p1010_p4 = pnand (%p183_p9), %p1009_p10, %p1585_p2  ;;  %s1012_s24 = sshll.u32 (%p183_p9), %s1092_s19, 4  ;;  %s1013_s24 = int_to_ptr.vmem [resolvable:$false] %s1012_s24 }
  0x61   : >> { %v313_v28 = vmul.f32 %v1281_v11, %v230_v20  ;;  %v314_v29 = vmul.f32 %v1284_v12, %v231_v21  ;;  %v315_v32 = vmul.f32 %v1281_v11, %v232_v24  ;;  %v316_v33 = vmul.f32 %v1284_v12, %v233_v25  ;;  %s1014_s13 = scalar_lea.vmem (%p183_p9), %s1013_s24, 73728  ;;  %p1015_p0 = scmp.lt.s32.totalorder (%p183_p9), %s1520_s7, %s1013_s24 }
  0x62   : >> { %v392_v26 = vadd.f32 %v1288_v14, %v309_v18  ;;  %v393_v27 = vadd.f32 %v1291_v15, %v310_v19  ;;  %v394_v30 = vadd.f32 %v1288_v14, %v311_v22  ;;  %v395_v31 = vadd.f32 %v1291_v15, %v312_v23  ;;  %p1011_p5 = pneg (%p183_p9), %p1010_p4  ;;  %p1016_p6 = scmp.lt.s32.totalorder (%p183_p9), %s1014_s13, %s1008_s17 }
  0x63   : >> { %v396_v40 = vadd.f32 %v1288_v14, %v313_v28  ;;  %v397_v41 = vadd.f32 %v1291_v15, %v314_v29  ;;  %v398_v45 = vadd.f32 %v1288_v14, %v315_v32  ;;  %v399_v51 = vadd.f32 %v1291_v15, %v316_v33  ;;  %v198_v29 = vld [vmem:[%s1275_s30 + $0x40] sm:$0xff] }
  0x64   : >> { %vm464_vm0 = vcmp.ge.f32.partialorder %v392_v26, 0.0  ;;  %vm465_vm1 = vcmp.ge.f32.partialorder %v393_v27, 0.0  ;;  %v536_v34 = vmul.f32 0.01, %v392_v26  ;;  %v537_v35 = vmul.f32 0.01, %v393_v27  ;;  %p1017_p13 = por (%p183_p9), %p1016_p6, %p1015_p0 }
  0x65   : >> { %vm466_vm2 = vcmp.ge.f32.partialorder %v394_v30, 0.0  ;;  %vm467_vm3 = vcmp.ge.f32.partialorder %v395_v31, 0.0  ;;  %v538_v36 = vmul.f32 0.01, %v394_v30  ;;  %v539_v37 = vmul.f32 0.01, %v395_v31 }
  0x66   : >> { %v608_v38 = vsel %vm464_vm0, %v392_v26, %v536_v34  ;;  %v609_v39 = vsel %vm465_vm1, %v393_v27, %v537_v35  ;;  %vm468_vm4 = vcmp.ge.f32.partialorder %v396_v40, 0.0  ;;  %vm469_vm5 = vcmp.ge.f32.partialorder %v397_v41, 0.0  ;;  %p1018_p7 = pnand (%p183_p9), %p1017_p13, %p1011_p5 }
  0x67   : >> { %v680_v42 = vadd.f32 %v609_v39, %v608_v38  ;;  %v610_v43 = vsel %vm466_vm2, %v394_v30, %v538_v36  ;;  %v611_v44 = vsel %vm467_vm3, %v395_v31, %v539_v37  ;;  %v540_v49 = vmul.f32 0.01, %v396_v40  ;;  %v199_v39 = vld [vmem:[%s1275_s30 + $0x48] sm:$0xff] }
  0x68   : >> { %v681_v48 = vadd.f32 %v611_v44, %v610_v43  ;;  %v541_v50 = vmul.f32 0.01, %v397_v41  ;;  %vm470_vm6 = vcmp.ge.f32.partialorder %v398_v45, 0.0  ;;  %v542_v52 = vmul.f32 0.01, %v398_v45 }
  0x69   : >> { %718 = vst [vmem:[%s1308_s5] sm:$0xff] %v680_v42  ;;  %v612_v53 = vsel %vm468_vm4, %v396_v40, %v540_v49  ;;  %v236_v56 = vunpack.c.l.bf16 %v195_v47  ;;  %vm471_vm7 = vcmp.ge.f32.partialorder %v399_v51, 0.0  ;;  %v543_v59 = vmul.f32 0.01, %v399_v51  ;;  %v200_v40 = vld [vmem:[%s1275_s30 + $0x50] sm:$0xff] }
  0x6a   : >> { %719 = vst [vmem:[%s1308_s5 + $0x8] sm:$0xff] %v681_v48  ;;  %v613_v58 = vsel %vm469_vm5, %v397_v41, %v541_v50  ;;  %v614_v60 = vsel %vm470_vm6, %v398_v45, %v542_v52  ;;  %v317_v62 = vmul.f32 %v1281_v11, %v234_v54  ;;  %v318_v63 = vmul.f32 %v1284_v12, %v235_v55 }
  0x6b   : >> { %v682_v61 = vadd.f32 %v613_v58, %v612_v53  ;;  %v237_v2 = vunpack.c.h.bf16 %v195_v47  ;;  %v615_v4 = vsel %vm471_vm7, %v399_v51, %v543_v59  ;;  %v319_v5 = vmul.f32 %v1281_v11, %v236_v56 }
  0x6c   : >> { %v238_v6 = vunpack.c.l.bf16 %v196_v57  ;;  %v239_v7 = vunpack.c.h.bf16 %v196_v57  ;;  %v683_v8 = vadd.f32 %v615_v4, %v614_v60  ;;  %v400_v9 = vadd.f32 %v1288_v14, %v317_v62 }
  0x6d   : >> { %720 = vst [vmem:[%s1308_s5 + $0x10] sm:$0xff] %v682_v61  ;;  %v401_v10 = vadd.f32 %v1291_v15, %v318_v63  ;;  %v320_v13 = vmul.f32 %v1284_v12, %v237_v2  ;;  %v402_v16 = vadd.f32 %v1288_v14, %v319_v5  ;;  %v240_v19 = vunpack.c.l.bf16 %v197_v3  ;;  %v201_v63 = vld [vmem:[%s1275_s30 + $0x58] sm:$0xff] }
  0x6e   : >> { %v321_v17 = vmul.f32 %v1281_v11, %v238_v6  ;;  %v322_v18 = vmul.f32 %v1284_v12, %v239_v7  ;;  %721 = vst [vmem:[%s1308_s5 + $0x18] sm:$0xff] %v683_v8  ;;  %vm472_vm8 = vcmp.ge.f32.partialorder %v400_v9, 0.0  ;;  %v544_v20 = vmul.f32 0.01, %v400_v9 }
  0x6f   : >> { %vm473_vm9 = vcmp.ge.f32.partialorder %v401_v10, 0.0  ;;  %v545_v21 = vmul.f32 0.01, %v401_v10  ;;  %v403_v22 = vadd.f32 %v1291_v15, %v320_v13  ;;  %vm474_vm10 = vcmp.ge.f32.partialorder %v402_v16, 0.0 }
  0x70   : >> { %v546_v23 = vmul.f32 0.01, %v402_v16  ;;  %v404_v24 = vadd.f32 %v1288_v14, %v321_v17  ;;  %v616_v25 = vsel %vm472_vm8, %v400_v9, %v544_v20  ;;  %v405_v27 = vadd.f32 %v1291_v15, %v322_v18  ;;  %v202_v18 = vld [vmem:[%s1275_s30 + $0x60] sm:$0xff] }
  0x71   : >> { %v617_v26 = vsel %vm473_vm9, %v401_v10, %v545_v21  ;;  %v241_v28 = vunpack.c.h.bf16 %v197_v3  ;;  %vm475_vm11 = vcmp.ge.f32.partialorder %v403_v22, 0.0  ;;  %v547_v31 = vmul.f32 0.01, %v403_v22 }
  0x72   : >> { %v684_v30 = vadd.f32 %v617_v26, %v616_v25  ;;  %v618_v32 = vsel %vm474_vm10, %v402_v16, %v546_v23  ;;  %vm476_vm12 = vcmp.ge.f32.partialorder %v404_v24, 0.0  ;;  %vm477_vm13 = vcmp.ge.f32.partialorder %v405_v27, 0.0  ;;  %v203_v26 = vld [vmem:[%s1275_s30 + $0x68] sm:$0xff] }
  0x73   : >> { %v548_v33 = vmul.f32 0.01, %v404_v24  ;;  %v549_v34 = vmul.f32 0.01, %v405_v27  ;;  %v619_v35 = vsel %vm475_vm11, %v403_v22, %v547_v31  ;;  %v323_v36 = vmul.f32 %v1281_v11, %v240_v19 }
  0x74   : >> { %722 = vst [vmem:[%s1308_s5 + $0x20] sm:$0xff] %v684_v30  ;;  %v324_v37 = vmul.f32 %v1284_v12, %v241_v28  ;;  %v242_v38 = vunpack.c.l.bf16 %v198_v29  ;;  %v685_v41 = vadd.f32 %v619_v35, %v618_v32  ;;  %v243_v44 = vunpack.c.h.bf16 %v198_v29 }
  0x75   : >> { %v620_v42 = vsel %vm476_vm12, %v404_v24, %v548_v33  ;;  %v621_v43 = vsel %vm477_vm13, %v405_v27, %v549_v34  ;;  %v406_v46 = vadd.f32 %v1288_v14, %v323_v36  ;;  %v244_v50 = vunpack.c.l.bf16 %v199_v39 }
  0x76   : >> { %v686_v45 = vadd.f32 %v621_v43, %v620_v42  ;;  %v407_v47 = vadd.f32 %v1291_v15, %v324_v37  ;;  %v325_v48 = vmul.f32 %v1281_v11, %v242_v38  ;;  %723 = vst [vmem:[%s1308_s5 + $0x28] sm:$0xff] %v685_v41  ;;  %v326_v49 = vmul.f32 %v1284_v12, %v243_v44  ;;  %v204_v38 = vld [vmem:[%s1275_s30 + $0x70] sm:$0xff] }
  0x77   : >> { %v245_v51 = vunpack.c.h.bf16 %v199_v39  ;;  %v246_v52 = vunpack.c.l.bf16 %v200_v40  ;;  %vm478_vm14 = vcmp.ge.f32.partialorder %v406_v46, 0.0  ;;  %v550_v53 = vmul.f32 0.01, %v406_v46 }
  0x78   : >> { %724 = vst [vmem:[%s1308_s5 + $0x30] sm:$0xff] %v686_v45  ;;  %vm479_vm15 = vcmp.ge.f32.partialorder %v407_v47, 0.0  ;;  %v551_v54 = vmul.f32 0.01, %v407_v47  ;;  %v408_v55 = vadd.f32 %v1288_v14, %v325_v48  ;;  %v409_v56 = vadd.f32 %v1291_v15, %v326_v49 }
  0x79   : >> { %v327_v57 = vmul.f32 %v1281_v11, %v244_v50  ;;  %v328_v58 = vmul.f32 %v1284_v12, %v245_v51  ;;  %v622_v59 = vsel %vm478_vm14, %v406_v46, %v550_v53  ;;  %v247_v61 = vunpack.c.h.bf16 %v200_v40 }
  0x7a   : >> { %v623_v60 = vsel %vm479_vm15, %v407_v47, %v551_v54  ;;  %v329_v62 = vmul.f32 %v1281_v11, %v246_v52  ;;  %vm480_vm0 = vcmp.ge.f32.partialorder %v408_v55, 0.0  ;;  %vm481_vm1 = vcmp.ge.f32.partialorder %v409_v56, 0.0 }
  0x7b   : >> { %v687_v2 = vadd.f32 %v623_v60, %v622_v59  ;;  %v552_v3 = vmul.f32 0.01, %v408_v55  ;;  %v553_v4 = vmul.f32 0.01, %v409_v56  ;;  %v410_v5 = vadd.f32 %v1288_v14, %v327_v57 }
  0x7c   : >> { %v411_v6 = vadd.f32 %v1291_v15, %v328_v58  ;;  %v330_v7 = vmul.f32 %v1284_v12, %v247_v61  ;;  %v412_v9 = vadd.f32 %v1288_v14, %v329_v62  ;;  %v248_v10 = vunpack.c.l.bf16 %v201_v63 }
  0x7d   : >> { %725 = vst [vmem:[%s1308_s5 + $0x38] sm:$0xff] %v687_v2  ;;  %v624_v8 = vsel %vm480_vm0, %v408_v55, %v552_v3  ;;  %v249_v13 = vunpack.c.h.bf16 %v201_v63  ;;  %v625_v16 = vsel %vm481_vm1, %v409_v56, %v553_v4  ;;  %vm482_vm2 = vcmp.ge.f32.partialorder %v410_v5, 0.0  ;;  %v205_v56 = vld [vmem:[%s1275_s30 + $0x78] sm:$0xff] }
  0x7e   : >> { %vm483_vm3 = vcmp.ge.f32.partialorder %v411_v6, 0.0  ;;  %v554_v17 = vmul.f32 0.01, %v410_v5  ;;  %v688_v19 = vadd.f32 %v625_v16, %v624_v8  ;;  %v555_v20 = vmul.f32 0.01, %v411_v6 }
  0x7f   : >> { %v413_v21 = vadd.f32 %v1291_v15, %v330_v7  ;;  %vm484_vm4 = vcmp.ge.f32.partialorder %v412_v9, 0.0  ;;  %v556_v23 = vmul.f32 0.01, %v412_v9  ;;  %v331_v24 = vmul.f32 %v1281_v11, %v248_v10 }
  0x80   : >> { %v626_v22 = vsel %vm482_vm2, %v410_v5, %v554_v17  ;;  %v332_v25 = vmul.f32 %v1284_v12, %v249_v13  ;;  %726 = vst [vmem:[%s1308_s5 + $0x40] sm:$0xff] %v688_v19  ;;  %v627_v27 = vsel %vm483_vm3, %v411_v6, %v555_v20  ;;  %v250_v29 = vunpack.c.l.bf16 %v202_v18  ;;  %v206_v5 = vld [vmem:[%s1275_s30 + $0x80] sm:$0xff]  ;;  %v207_v19 = vld [vmem:[%s1275_s30 + $0x88] sm:$0xff]  ;;  %v208_v20 = vld [vmem:[%s1275_s30 + $0x90] sm:$0xff] }
  0x81   : >> { %vm485_vm5 = vcmp.ge.f32.partialorder %v413_v21, 0.0  ;;  %v557_v28 = vmul.f32 0.01, %v413_v21  ;;  %v689_v30 = vadd.f32 %v627_v27, %v626_v22  ;;  %v628_v31 = vsel %vm484_vm4, %v412_v9, %v556_v23 }
  0x82   : >> { %v414_v32 = vadd.f32 %v1288_v14, %v331_v24  ;;  %v415_v33 = vadd.f32 %v1291_v15, %v332_v25  ;;  %v251_v35 = vunpack.c.h.bf16 %v202_v18  ;;  %v333_v36 = vmul.f32 %v1281_v11, %v250_v29 }
  0x83   : >> { %v629_v34 = vsel %vm485_vm5, %v413_v21, %v557_v28  ;;  %v252_v37 = vunpack.c.l.bf16 %v203_v26  ;;  %727 = vst [vmem:[%s1308_s5 + $0x48] sm:$0xff] %v689_v30  ;;  %v253_v44 = vunpack.c.h.bf16 %v203_v26  ;;  %v254_v47 = vunpack.c.l.bf16 %v204_v38 }
  0x84   : >> { %v690_v39 = vadd.f32 %v629_v34, %v628_v31  ;;  %vm486_vm6 = vcmp.ge.f32.partialorder %v414_v32, 0.0  ;;  %vm487_vm7 = vcmp.ge.f32.partialorder %v415_v33, 0.0  ;;  %v558_v40 = vmul.f32 0.01, %v414_v32 }
  0x85   : >> { %v559_v41 = vmul.f32 0.01, %v415_v33  ;;  %v334_v42 = vmul.f32 %v1284_v12, %v251_v35  ;;  %v416_v43 = vadd.f32 %v1288_v14, %v333_v36  ;;  %v335_v46 = vmul.f32 %v1281_v11, %v252_v37 }
  0x86   : >> { %728 = vst [vmem:[%s1308_s5 + $0x50] sm:$0xff] %v690_v39  ;;  %v630_v45 = vsel %vm486_vm6, %v414_v32, %v558_v40  ;;  %v255_v48 = vunpack.c.h.bf16 %v204_v38  ;;  %v336_v53 = vmul.f32 %v1284_v12, %v253_v44  ;;  %v337_v55 = vmul.f32 %v1281_v11, %v254_v47 }
  0x87   : >> { %v631_v49 = vsel %vm487_vm7, %v415_v33, %v559_v41  ;;  %v417_v50 = vadd.f32 %v1291_v15, %v334_v42  ;;  %vm488_vm8 = vcmp.ge.f32.partialorder %v416_v43, 0.0  ;;  %v560_v51 = vmul.f32 0.01, %v416_v43 }
  0x88   : >> { %v691_v52 = vadd.f32 %v631_v49, %v630_v45  ;;  %v418_v54 = vadd.f32 %v1288_v14, %v335_v46  ;;  %v338_v59 = vmul.f32 %v1284_v12, %v255_v48  ;;  %v419_v60 = vadd.f32 %v1291_v15, %v336_v53 }
  0x89   : >> { %vm489_vm9 = vcmp.ge.f32.partialorder %v417_v50, 0.0  ;;  %v561_v57 = vmul.f32 0.01, %v417_v50  ;;  %v632_v58 = vsel %vm488_vm8, %v416_v43, %v560_v51  ;;  %v420_v62 = vadd.f32 %v1288_v14, %v337_v55  ;;  %v209_v43 = vld [vmem:[%s1275_s30 + $0x98] sm:$0xff] }
  0x8a   : >> { %729 = vst [vmem:[%s1308_s5 + $0x58] sm:$0xff] %v691_v52  ;;  %vm490_vm10 = vcmp.ge.f32.partialorder %v418_v54, 0.0  ;;  %v562_v61 = vmul.f32 0.01, %v418_v54  ;;  %v421_v2 = vadd.f32 %v1291_v15, %v338_v59  ;;  %v256_v3 = vunpack.c.l.bf16 %v205_v56 }
  0x8b   : >> { %v633_v63 = vsel %vm489_vm9, %v417_v50, %v561_v57  ;;  %v257_v4 = vunpack.c.h.bf16 %v205_v56  ;;  %vm491_vm11 = vcmp.ge.f32.partialorder %v419_v60, 0.0  ;;  %v563_v7 = vmul.f32 0.01, %v419_v60  ;;  %v210_v56 = vld [vmem:[%s1275_s30 + $0xa0] sm:$0xff] }
  0x8c   : >> { %v692_v6 = vadd.f32 %v633_v63, %v632_v58  ;;  %v634_v8 = vsel %vm490_vm10, %v418_v54, %v562_v61  ;;  %vm492_vm12 = vcmp.ge.f32.partialorder %v420_v62, 0.0  ;;  %vm493_vm13 = vcmp.ge.f32.partialorder %v421_v2, 0.0 }
  0x8d   : >> { %v564_v9 = vmul.f32 0.01, %v420_v62  ;;  %v565_v10 = vmul.f32 0.01, %v421_v2  ;;  %v635_v13 = vsel %vm491_vm11, %v419_v60, %v563_v7  ;;  %v339_v16 = vmul.f32 %v1281_v11, %v256_v3 }
  0x8e   : >> { %730 = vst [vmem:[%s1308_s5 + $0x60] sm:$0xff] %v692_v6  ;;  %v340_v17 = vmul.f32 %v1284_v12, %v257_v4  ;;  %v258_v18 = vunpack.c.l.bf16 %v206_v5  ;;  %v693_v21 = vadd.f32 %v635_v13, %v634_v8  ;;  %v259_v24 = vunpack.c.h.bf16 %v206_v5 }
  0x8f   : >> { %v636_v22 = vsel %vm492_vm12, %v420_v62, %v564_v9  ;;  %v637_v23 = vsel %vm493_vm13, %v421_v2, %v565_v10  ;;  %v422_v26 = vadd.f32 %v1288_v14, %v339_v16  ;;  %v260_v30 = vunpack.c.l.bf16 %v207_v19  ;;  %v211_v2 = vld [vmem:[%s1275_s30 + $0xa8] sm:$0xff] }
  0x90   : >> { %v694_v25 = vadd.f32 %v637_v23, %v636_v22  ;;  %v423_v27 = vadd.f32 %v1291_v15, %v340_v17  ;;  %v341_v28 = vmul.f32 %v1281_v11, %v258_v18  ;;  %731 = vst [vmem:[%s1308_s5 + $0x68] sm:$0xff] %v693_v21  ;;  %v342_v29 = vmul.f32 %v1284_v12, %v259_v24  ;;  %v212_v18 = vld [vmem:[%s1275_s30 + $0xb0] sm:$0xff] }
  0x91   : >> { %v261_v31 = vunpack.c.h.bf16 %v207_v19  ;;  %v262_v32 = vunpack.c.l.bf16 %v208_v20  ;;  %vm494_vm14 = vcmp.ge.f32.partialorder %v422_v26, 0.0  ;;  %v566_v33 = vmul.f32 0.01, %v422_v26 }
  0x92   : >> { %732 = vst [vmem:[%s1308_s5 + $0x70] sm:$0xff] %v694_v25  ;;  %vm495_vm15 = vcmp.ge.f32.partialorder %v423_v27, 0.0  ;;  %v567_v34 = vmul.f32 0.01, %v423_v27  ;;  %v424_v35 = vadd.f32 %v1288_v14, %v341_v28  ;;  %v425_v36 = vadd.f32 %v1291_v15, %v342_v29 }
  0x93   : >> { %v343_v37 = vmul.f32 %v1281_v11, %v260_v30  ;;  %v344_v38 = vmul.f32 %v1284_v12, %v261_v31  ;;  %v638_v39 = vsel %vm494_vm14, %v422_v26, %v566_v33  ;;  %v263_v41 = vunpack.c.h.bf16 %v208_v20 }
  0x94   : >> { %v639_v40 = vsel %vm495_vm15, %v423_v27, %v567_v34  ;;  %v345_v42 = vmul.f32 %v1281_v11, %v262_v32  ;;  %vm496_vm0 = vcmp.ge.f32.partialorder %v424_v35, 0.0  ;;  %vm497_vm1 = vcmp.ge.f32.partialorder %v425_v36, 0.0 }
  0x95   : >> { %v695_v44 = vadd.f32 %v639_v40, %v638_v39  ;;  %v568_v45 = vmul.f32 0.01, %v424_v35  ;;  %v569_v46 = vmul.f32 0.01, %v425_v36  ;;  %v426_v47 = vadd.f32 %v1288_v14, %v343_v37 }
  0x96   : >> { %v427_v48 = vadd.f32 %v1291_v15, %v344_v38  ;;  %v346_v49 = vmul.f32 %v1284_v12, %v263_v41  ;;  %v428_v51 = vadd.f32 %v1288_v14, %v345_v42  ;;  %v264_v52 = vunpack.c.l.bf16 %v209_v43 }
  0x97   : >> { %733 = vst [vmem:[%s1308_s5 + $0x78] sm:$0xff] %v695_v44  ;;  %v640_v50 = vsel %vm496_vm0, %v424_v35, %v568_v45  ;;  %v265_v53 = vunpack.c.h.bf16 %v209_v43  ;;  %v641_v54 = vsel %vm497_vm1, %v425_v36, %v569_v46  ;;  %vm498_vm2 = vcmp.ge.f32.partialorder %v426_v47, 0.0  ;;  %v213_v36 = vld [vmem:[%s1275_s30 + $0xb8] sm:$0xff] }
  0x98   : >> { %vm499_vm3 = vcmp.ge.f32.partialorder %v427_v48, 0.0  ;;  %v570_v55 = vmul.f32 0.01, %v426_v47  ;;  %v696_v57 = vadd.f32 %v641_v54, %v640_v50  ;;  %v571_v58 = vmul.f32 0.01, %v427_v48 }
  0x99   : >> { %v429_v59 = vadd.f32 %v1291_v15, %v346_v49  ;;  %vm500_vm4 = vcmp.ge.f32.partialorder %v428_v51, 0.0  ;;  %v572_v61 = vmul.f32 0.01, %v428_v51  ;;  %v347_v62 = vmul.f32 %v1281_v11, %v264_v52 }
  0x9a   : >> { %v642_v60 = vsel %vm498_vm2, %v426_v47, %v570_v55  ;;  %v348_v63 = vmul.f32 %v1284_v12, %v265_v53  ;;  %734 = vst [vmem:[%s1308_s5 + $0x80] sm:$0xff] %v696_v57  ;;  %v643_v3 = vsel %vm499_vm3, %v427_v48, %v571_v58  ;;  %v266_v5 = vunpack.c.l.bf16 %v210_v56  ;;  %v214_v47 = vld [vmem:[%s1275_s30 + $0xc0] sm:$0xff]  ;;  %v215_v57 = vld [vmem:[%s1275_s30 + $0xc8] sm:$0xff]  ;;  %v216_v58 = vld [vmem:[%s1275_s30 + $0xd0] sm:$0xff] }
  0x9b   : >> { %vm501_vm5 = vcmp.ge.f32.partialorder %v429_v59, 0.0  ;;  %v573_v4 = vmul.f32 0.01, %v429_v59  ;;  %v697_v6 = vadd.f32 %v643_v3, %v642_v60  ;;  %v644_v7 = vsel %vm500_vm4, %v428_v51, %v572_v61 }
  0x9c   : >> { %v430_v8 = vadd.f32 %v1288_v14, %v347_v62  ;;  %v431_v9 = vadd.f32 %v1291_v15, %v348_v63  ;;  %v267_v13 = vunpack.c.h.bf16 %v210_v56  ;;  %v349_v16 = vmul.f32 %v1281_v11, %v266_v5 }
  0x9d   : >> { %v645_v10 = vsel %vm501_vm5, %v429_v59, %v573_v4  ;;  %v268_v17 = vunpack.c.l.bf16 %v211_v2  ;;  %735 = vst [vmem:[%s1308_s5 + $0x88] sm:$0xff] %v697_v6  ;;  %v269_v24 = vunpack.c.h.bf16 %v211_v2  ;;  %v270_v27 = vunpack.c.l.bf16 %v212_v18 }
  0x9e   : >> { %v698_v19 = vadd.f32 %v645_v10, %v644_v7  ;;  %vm502_vm6 = vcmp.ge.f32.partialorder %v430_v8, 0.0  ;;  %vm503_vm7 = vcmp.ge.f32.partialorder %v431_v9, 0.0  ;;  %v574_v20 = vmul.f32 0.01, %v430_v8 }
  0x9f   : >> { %v575_v21 = vmul.f32 0.01, %v431_v9  ;;  %v350_v22 = vmul.f32 %v1284_v12, %v267_v13  ;;  %v432_v23 = vadd.f32 %v1288_v14, %v349_v16  ;;  %v351_v26 = vmul.f32 %v1281_v11, %v268_v17 }
  0xa0   : >> { %736 = vst [vmem:[%s1308_s5 + $0x90] sm:$0xff] %v698_v19  ;;  %v646_v25 = vsel %vm502_vm6, %v430_v8, %v574_v20  ;;  %v271_v28 = vunpack.c.h.bf16 %v212_v18  ;;  %v352_v33 = vmul.f32 %v1284_v12, %v269_v24  ;;  %v353_v35 = vmul.f32 %v1281_v11, %v270_v27 }
  0xa1   : >> { %v647_v29 = vsel %vm503_vm7, %v431_v9, %v575_v21  ;;  %v433_v30 = vadd.f32 %v1291_v15, %v350_v22  ;;  %vm504_vm8 = vcmp.ge.f32.partialorder %v432_v23, 0.0  ;;  %v576_v31 = vmul.f32 0.01, %v432_v23 }
  0xa2   : >> { %v699_v32 = vadd.f32 %v647_v29, %v646_v25  ;;  %v434_v34 = vadd.f32 %v1288_v14, %v351_v26  ;;  %v354_v39 = vmul.f32 %v1284_v12, %v271_v28  ;;  %v435_v40 = vadd.f32 %v1291_v15, %v352_v33 }
  0xa3   : >> { %vm505_vm9 = vcmp.ge.f32.partialorder %v433_v30, 0.0  ;;  %v577_v37 = vmul.f32 0.01, %v433_v30  ;;  %v648_v38 = vsel %vm504_vm8, %v432_v23, %v576_v31  ;;  %v436_v42 = vadd.f32 %v1288_v14, %v353_v35  ;;  %v217_v23 = vld [vmem:[%s1275_s30 + $0xd8] sm:$0xff] }
  0xa4   : >> { %737 = vst [vmem:[%s1308_s5 + $0x98] sm:$0xff] %v699_v32  ;;  %vm506_vm10 = vcmp.ge.f32.partialorder %v434_v34, 0.0  ;;  %v578_v41 = vmul.f32 0.01, %v434_v34  ;;  %v437_v44 = vadd.f32 %v1291_v15, %v354_v39  ;;  %v272_v45 = vunpack.c.l.bf16 %v213_v36 }
  0xa5   : >> { %v649_v43 = vsel %vm505_vm9, %v433_v30, %v577_v37  ;;  %v273_v46 = vunpack.c.h.bf16 %v213_v36  ;;  %vm507_vm11 = vcmp.ge.f32.partialorder %v435_v40, 0.0  ;;  %v579_v49 = vmul.f32 0.01, %v435_v40  ;;  %v218_v36 = vld [vmem:[%s1275_s30 + $0xe0] sm:$0xff] }
  0xa6   : >> { %v700_v48 = vadd.f32 %v649_v43, %v648_v38  ;;  %v650_v50 = vsel %vm506_vm10, %v434_v34, %v578_v41  ;;  %vm508_vm12 = vcmp.ge.f32.partialorder %v436_v42, 0.0  ;;  %vm509_vm13 = vcmp.ge.f32.partialorder %v437_v44, 0.0 }
  0xa7   : >> { %v580_v51 = vmul.f32 0.01, %v436_v42  ;;  %v581_v52 = vmul.f32 0.01, %v437_v44  ;;  %v651_v53 = vsel %vm507_vm11, %v435_v40, %v579_v49  ;;  %v355_v54 = vmul.f32 %v1281_v11, %v272_v45 }
  0xa8   : >> { %738 = vst [vmem:[%s1308_s5 + $0xa0] sm:$0xff] %v700_v48  ;;  %v356_v55 = vmul.f32 %v1284_v12, %v273_v46  ;;  %v274_v56 = vunpack.c.l.bf16 %v214_v47  ;;  %v701_v59 = vadd.f32 %v651_v53, %v650_v50  ;;  %v275_v62 = vunpack.c.h.bf16 %v214_v47 }
  0xa9   : >> { %v652_v60 = vsel %vm508_vm12, %v436_v42, %v580_v51  ;;  %v653_v61 = vsel %vm509_vm13, %v437_v44, %v581_v52  ;;  %v438_v2 = vadd.f32 %v1288_v14, %v355_v54  ;;  %v276_v6 = vunpack.c.l.bf16 %v215_v57  ;;  %v219_v44 = vld [vmem:[%s1275_s30 + $0xe8] sm:$0xff] }
  0xaa   : >> { %v702_v63 = vadd.f32 %v653_v61, %v652_v60  ;;  %v439_v3 = vadd.f32 %v1291_v15, %v356_v55  ;;  %v357_v4 = vmul.f32 %v1281_v11, %v274_v56  ;;  %739 = vst [vmem:[%s1308_s5 + $0xa8] sm:$0xff] %v701_v59  ;;  %v358_v5 = vmul.f32 %v1284_v12, %v275_v62  ;;  %v220_v56 = vld [vmem:[%s1275_s30 + $0xf0] sm:$0xff] }
  0xab   : >> { %v277_v7 = vunpack.c.h.bf16 %v215_v57  ;;  %v278_v8 = vunpack.c.l.bf16 %v216_v58  ;;  %vm510_vm14 = vcmp.ge.f32.partialorder %v438_v2, 0.0  ;;  %v582_v9 = vmul.f32 0.01, %v438_v2 }
  0xac   : >> { %740 = vst [vmem:[%s1308_s5 + $0xb0] sm:$0xff] %v702_v63  ;;  %vm511_vm15 = vcmp.ge.f32.partialorder %v439_v3, 0.0  ;;  %v583_v10 = vmul.f32 0.01, %v439_v3  ;;  %v440_v13 = vadd.f32 %v1288_v14, %v357_v4  ;;  %v441_v16 = vadd.f32 %v1291_v15, %v358_v5 }
  0xad   : >> { %v359_v17 = vmul.f32 %v1281_v11, %v276_v6  ;;  %v360_v18 = vmul.f32 %v1284_v12, %v277_v7  ;;  %v654_v19 = vsel %vm510_vm14, %v438_v2, %v582_v9  ;;  %v279_v21 = vunpack.c.h.bf16 %v216_v58 }
  0xae   : >> { %v655_v20 = vsel %vm511_vm15, %v439_v3, %v583_v10  ;;  %v361_v22 = vmul.f32 %v1281_v11, %v278_v8  ;;  %vm512_vm0 = vcmp.ge.f32.partialorder %v440_v13, 0.0  ;;  %vm513_vm1 = vcmp.ge.f32.partialorder %v441_v16, 0.0 }
  0xaf   : >> { %v703_v24 = vadd.f32 %v655_v20, %v654_v19  ;;  %v584_v25 = vmul.f32 0.01, %v440_v13  ;;  %v585_v26 = vmul.f32 0.01, %v441_v16  ;;  %v442_v27 = vadd.f32 %v1288_v14, %v359_v17 }
  0xb0   : >> { %v443_v28 = vadd.f32 %v1291_v15, %v360_v18  ;;  %v362_v29 = vmul.f32 %v1284_v12, %v279_v21  ;;  %v444_v31 = vadd.f32 %v1288_v14, %v361_v22  ;;  %v280_v32 = vunpack.c.l.bf16 %v217_v23 }
  0xb1   : >> { %741 = vst [vmem:[%s1308_s5 + $0xb8] sm:$0xff] %v703_v24  ;;  %v656_v30 = vsel %vm512_vm0, %v440_v13, %v584_v25  ;;  %v281_v33 = vunpack.c.h.bf16 %v217_v23  ;;  %v657_v34 = vsel %vm513_vm1, %v441_v16, %v585_v26  ;;  %vm514_vm2 = vcmp.ge.f32.partialorder %v442_v27, 0.0  ;;  %v221_v16 = vld [vmem:[%s1275_s30 + $0xf8] sm:$0xff] }
  0xb2   : >> { %vm515_vm3 = vcmp.ge.f32.partialorder %v443_v28, 0.0  ;;  %v586_v35 = vmul.f32 0.01, %v442_v27  ;;  %v704_v37 = vadd.f32 %v657_v34, %v656_v30  ;;  %v587_v38 = vmul.f32 0.01, %v443_v28 }
  0xb3   : >> { %v445_v39 = vadd.f32 %v1291_v15, %v362_v29  ;;  %vm516_vm4 = vcmp.ge.f32.partialorder %v444_v31, 0.0  ;;  %v588_v41 = vmul.f32 0.01, %v444_v31  ;;  %v363_v42 = vmul.f32 %v1281_v11, %v280_v32 }
  0xb4   : >> { %v658_v40 = vsel %vm514_vm2, %v442_v27, %v586_v35  ;;  %v364_v43 = vmul.f32 %v1284_v12, %v281_v33  ;;  %742 = vst [vmem:[%s1308_s5 + $0xc0] sm:$0xff] %v704_v37  ;;  %v659_v45 = vsel %vm515_vm3, %v443_v28, %v587_v38  ;;  %v282_v47 = vunpack.c.l.bf16 %v218_v36  ;;  %v222_v27 = vld [vmem:[%s1275_s30 + $0x100] sm:$0xff]  ;;  %v223_v37 = vld [vmem:[%s1275_s30 + $0x108] sm:$0xff]  ;;  %v224_v38 = vld [vmem:[%s1275_s30 + $0x110] sm:$0xff] }
  0xb5   : >> { %vm517_vm5 = vcmp.ge.f32.partialorder %v445_v39, 0.0  ;;  %v589_v46 = vmul.f32 0.01, %v445_v39  ;;  %v705_v48 = vadd.f32 %v659_v45, %v658_v40  ;;  %v660_v49 = vsel %vm516_vm4, %v444_v31, %v588_v41 }
  0xb6   : >> { %v446_v50 = vadd.f32 %v1288_v14, %v363_v42  ;;  %v447_v51 = vadd.f32 %v1291_v15, %v364_v43  ;;  %v283_v53 = vunpack.c.h.bf16 %v218_v36  ;;  %v365_v54 = vmul.f32 %v1281_v11, %v282_v47 }
  0xb7   : >> { %v661_v52 = vsel %vm517_vm5, %v445_v39, %v589_v46  ;;  %v284_v55 = vunpack.c.l.bf16 %v219_v44  ;;  %743 = vst [vmem:[%s1308_s5 + $0xc8] sm:$0xff] %v705_v48  ;;  %v285_v62 = vunpack.c.h.bf16 %v219_v44  ;;  %v286_v3 = vunpack.c.l.bf16 %v220_v56 }
  0xb8   : >> { %v706_v57 = vadd.f32 %v661_v52, %v660_v49  ;;  %vm518_vm6 = vcmp.ge.f32.partialorder %v446_v50, 0.0  ;;  %vm519_vm7 = vcmp.ge.f32.partialorder %v447_v51, 0.0  ;;  %v590_v58 = vmul.f32 0.01, %v446_v50 }
  0xb9   : >> { %v591_v59 = vmul.f32 0.01, %v447_v51  ;;  %v366_v60 = vmul.f32 %v1284_v12, %v283_v53  ;;  %v448_v61 = vadd.f32 %v1288_v14, %v365_v54  ;;  %v367_v2 = vmul.f32 %v1281_v11, %v284_v55 }
  0xba   : >> { %744 = vst [vmem:[%s1308_s5 + $0xd0] sm:$0xff] %v706_v57  ;;  %v662_v63 = vsel %vm518_vm6, %v446_v50, %v590_v58  ;;  %v287_v4 = vunpack.c.h.bf16 %v220_v56  ;;  %v368_v9 = vmul.f32 %v1284_v12, %v285_v62  ;;  %v369_v13 = vmul.f32 %v1281_v11, %v286_v3 }
  0xbb   : >> { %v663_v5 = vsel %vm519_vm7, %v447_v51, %v591_v59  ;;  %v449_v6 = vadd.f32 %v1291_v15, %v366_v60  ;;  %vm520_vm8 = vcmp.ge.f32.partialorder %v448_v61, 0.0  ;;  %v592_v7 = vmul.f32 0.01, %v448_v61 }
  0xbc   : >> { %v707_v8 = vadd.f32 %v663_v5, %v662_v63  ;;  %v450_v10 = vadd.f32 %v1288_v14, %v367_v2  ;;  %v370_v19 = vmul.f32 %v1284_v12, %v287_v4  ;;  %v451_v20 = vadd.f32 %v1291_v15, %v368_v9 }
  0xbd   : >> { %vm521_vm9 = vcmp.ge.f32.partialorder %v449_v6, 0.0  ;;  %v593_v17 = vmul.f32 0.01, %v449_v6  ;;  %v664_v18 = vsel %vm520_vm8, %v448_v61, %v592_v7  ;;  %v452_v22 = vadd.f32 %v1288_v14, %v369_v13  ;;  %v225_v61 = vld [vmem:[%s1275_s30 + $0x118] sm:$0xff] }
  0xbe   : >> { %745 = vst [vmem:[%s1308_s5 + $0xd8] sm:$0xff] %v707_v8  ;;  %vm522_vm10 = vcmp.ge.f32.partialorder %v450_v10, 0.0  ;;  %v594_v21 = vmul.f32 0.01, %v450_v10  ;;  %v453_v24 = vadd.f32 %v1291_v15, %v370_v19  ;;  %v288_v25 = vunpack.c.l.bf16 %v221_v16 }
  0xbf   : >> { %v665_v23 = vsel %vm521_vm9, %v449_v6, %v593_v17  ;;  %v289_v26 = vunpack.c.h.bf16 %v221_v16  ;;  %vm523_vm11 = vcmp.ge.f32.partialorder %v451_v20, 0.0  ;;  %v595_v29 = vmul.f32 0.01, %v451_v20 }
  0xc0   : >> { %v708_v28 = vadd.f32 %v665_v23, %v664_v18  ;;  %v666_v30 = vsel %vm522_vm10, %v450_v10, %v594_v21  ;;  %vm524_vm12 = vcmp.ge.f32.partialorder %v452_v22, 0.0  ;;  %vm525_vm13 = vcmp.ge.f32.partialorder %v453_v24, 0.0 }
  0xc1   : >> { %v596_v31 = vmul.f32 0.01, %v452_v22  ;;  %v597_v32 = vmul.f32 0.01, %v453_v24  ;;  %v667_v33 = vsel %vm523_vm11, %v451_v20, %v595_v29  ;;  %v371_v34 = vmul.f32 %v1281_v11, %v288_v25 }
  0xc2   : >> { %746 = vst [vmem:[%s1308_s5 + $0xe0] sm:$0xff] %v708_v28  ;;  %v372_v35 = vmul.f32 %v1284_v12, %v289_v26  ;;  %v290_v36 = vunpack.c.l.bf16 %v222_v27  ;;  %v709_v39 = vadd.f32 %v667_v33, %v666_v30  ;;  %v291_v42 = vunpack.c.h.bf16 %v222_v27 }
  0xc3   : >> { %v668_v40 = vsel %vm524_vm12, %v452_v22, %v596_v31  ;;  %v669_v41 = vsel %vm525_vm13, %v453_v24, %v597_v32  ;;  %v454_v44 = vadd.f32 %v1288_v14, %v371_v34  ;;  %v292_v48 = vunpack.c.l.bf16 %v223_v37 }
  0xc4   : >> { %v710_v43 = vadd.f32 %v669_v41, %v668_v40  ;;  %v455_v45 = vadd.f32 %v1291_v15, %v372_v35  ;;  %v373_v46 = vmul.f32 %v1281_v11, %v290_v36  ;;  %747 = vst [vmem:[%s1308_s5 + $0xe8] sm:$0xff] %v709_v39  ;;  %v374_v47 = vmul.f32 %v1284_v12, %v291_v42 }
  0xc5   : >> { %v293_v49 = vunpack.c.h.bf16 %v223_v37  ;;  %v294_v50 = vunpack.c.l.bf16 %v224_v38  ;;  %vm526_vm14 = vcmp.ge.f32.partialorder %v454_v44, 0.0  ;;  %v598_v51 = vmul.f32 0.01, %v454_v44 }
  0xc6   : >> { %748 = vst [vmem:[%s1308_s5 + $0xf0] sm:$0xff] %v710_v43  ;;  %vm527_vm15 = vcmp.ge.f32.partialorder %v455_v45, 0.0  ;;  %v599_v52 = vmul.f32 0.01, %v455_v45  ;;  %v456_v53 = vadd.f32 %v1288_v14, %v373_v46  ;;  %v457_v54 = vadd.f32 %v1291_v15, %v374_v47 }
  0xc7   : >> { %v375_v55 = vmul.f32 %v1281_v11, %v292_v48  ;;  %v376_v56 = vmul.f32 %v1284_v12, %v293_v49  ;;  %v670_v57 = vsel %vm526_vm14, %v454_v44, %v598_v51  ;;  %v295_v59 = vunpack.c.h.bf16 %v224_v38 }
  0xc8   : >> { %v671_v58 = vsel %vm527_vm15, %v455_v45, %v599_v52  ;;  %v377_v60 = vmul.f32 %v1281_v11, %v294_v50  ;;  %vm528_vm0 = vcmp.ge.f32.partialorder %v456_v53, 0.0  ;;  %vm529_vm1 = vcmp.ge.f32.partialorder %v457_v54, 0.0 }
  0xc9   : >> { %v711_v62 = vadd.f32 %v671_v58, %v670_v57  ;;  %v600_v63 = vmul.f32 0.01, %v456_v53  ;;  %v601_v2 = vmul.f32 0.01, %v457_v54  ;;  %v458_v3 = vadd.f32 %v1288_v14, %v375_v55 }
  0xca   : >> { %v459_v4 = vadd.f32 %v1291_v15, %v376_v56  ;;  %v378_v5 = vmul.f32 %v1284_v12, %v295_v59  ;;  %v460_v7 = vadd.f32 %v1288_v14, %v377_v60  ;;  %v296_v8 = vunpack.c.l.bf16 %v225_v61 }
  0xcb   : >> { %749 = vst [vmem:[%s1308_s5 + $0xf8] sm:$0xff] %v711_v62  ;;  %v672_v6 = vsel %vm528_vm0, %v456_v53, %v600_v63  ;;  %v297_v9 = vunpack.c.h.bf16 %v225_v61  ;;  %v673_v10 = vsel %vm529_vm1, %v457_v54, %v601_v2  ;;  %vm530_vm2 = vcmp.ge.f32.partialorder %v458_v3, 0.0 }
  0xcc   : >> { %vm531_vm3 = vcmp.ge.f32.partialorder %v459_v4, 0.0  ;;  %v602_v13 = vmul.f32 0.01, %v458_v3  ;;  %v712_v16 = vadd.f32 %v673_v10, %v672_v6  ;;  %v603_v17 = vmul.f32 0.01, %v459_v4 }
  0xcd   : >> { %v461_v18 = vadd.f32 %v1291_v15, %v378_v5  ;;  %vm532_vm4 = vcmp.ge.f32.partialorder %v460_v7, 0.0  ;;  %v604_v20 = vmul.f32 0.01, %v460_v7  ;;  %v379_v21 = vmul.f32 %v1281_v11, %v296_v8 }
  0xce   : >> { %v674_v19 = vsel %vm530_vm2, %v458_v3, %v602_v13  ;;  %v380_v22 = vmul.f32 %v1284_v12, %v297_v9  ;;  %750 = vst [vmem:[%s1308_s5 + $0x100] sm:$0xff] %v712_v16  ;;  %v675_v23 = vsel %vm531_vm3, %v459_v4, %v603_v17 }
  0xcf   : >> { %vm533_vm5 = vcmp.ge.f32.partialorder %v461_v18, 0.0  ;;  %v605_v24 = vmul.f32 0.01, %v461_v18  ;;  %v713_v25 = vadd.f32 %v675_v23, %v674_v19  ;;  %v676_v26 = vsel %vm532_vm4, %v460_v7, %v604_v20 }
  0xd0   : >> { %v462_v27 = vadd.f32 %v1288_v14, %v379_v21  ;;  %v463_v28 = vadd.f32 %v1291_v15, %v380_v22 }
  0xd1   : >> { %v677_v29 = vsel %vm533_vm5, %v461_v18, %v605_v24  ;;  %751 = vst [vmem:[%s1308_s5 + $0x108] sm:$0xff] %v713_v25 }
  0xd2   : >> { %v714_v30 = vadd.f32 %v677_v29, %v676_v26  ;;  %vm534_vm6 = vcmp.ge.f32.partialorder %v462_v27, 0.0  ;;  %vm535_vm7 = vcmp.ge.f32.partialorder %v463_v28, 0.0  ;;  %v606_v11 = vmul.f32 0.01, %v462_v27  ;;  %185 = sbr.rel (!%p183_p9) target bundleno = 88 (0x58), region = 87 }
  0xd3   : >> { %v607_v31 = vmul.f32 0.01, %v463_v28 }
  0xd4   : >> { %752 = vst [vmem:[%s1308_s5 + $0x110] sm:$0xff] %v714_v30  ;;  %v678_v12 = vsel %vm534_vm6, %v462_v27, %v606_v11 }
  0xd5   : >> { %v679_v32 = vsel %vm535_vm7, %v463_v28, %v607_v31 }
  0xd6   : >> { %v715_v33 = vadd.f32 %v679_v32, %v678_v12 }
  0xd8   : >> { %753 = vst [vmem:[%s1308_s5 + $0x118] sm:$0xff] %v715_v33 }
  0xd9   : > { %1021 = shalt.err (!%p1018_p7)
}
  0xda   : > { %s1022_s3 = scalar_lea.hbm %s1518_s27, 36864  ;;  %s1026_s29 = scalar_lea.hbm %s1566_s2, 73728 }
  0xdb   : > { %p1023_p3 = scmp.ne.s32.totalorder %s1518_s27, %s1022_s3  ;;  %p1027_p11 = scmp.lt.u32.totalorder %s1518_s27, %s1566_s2 }
  0xdc   : > { %p1028_p8 = scmp.lt.u32.totalorder %s1026_s29, %s1022_s3  ;;  %p1030_p10 = scmp.lt.u32.totalorder %s1022_s3, %s1518_s27 }
  0xdd   : > { %p1024_p12 = pnand %p1023_p3, %p1585_p2 }
  0xde   : > { %p1029_p9 = por %p1028_p8, %p1027_p11 }
  0xdf   : > { %p1025_p1 = pneg %p1024_p12 }
  0xe0   : > { %p1031_p4 = por %p1030_p10, %p1029_p9 }
  0xe2   : > { %p1032_p5 = pnand %p1031_p4, %p1025_p1 }
  0xe4   : > { %1035 = shalt.err (!%p1032_p5)
}
  0xe5   : > { %s1093_s20 = smov 128   ;;  %s1094_s30 = smov 8  }
  0xe6   : > { %887 = dma.vmem_to_hbm [thread:$0]  (%p1585_p2), %s1520_s7, 36864, %s1518_s27, %s755_s16, %s1093_s20, %s1093_s20, %s1094_s30  }
  0xe7 PF: > { %s784_s5 = sand.u32 1, %s1070_s9   ;;  %p1586_p0 = scmp.ne.s32.totalorder %s1575_s22, 0 }
  0xe8   : > { %p1587_p6 = scmp.ge.s32.totalorder %s1082_s12, 2  ;;  %s785_s26 = scalar_lea.sflag [#allocation4], %s784_s5 }
  0xea   : > { %p898_p13 = pnand %p1587_p6, %p1586_p0 }
  0xec   : > { %1065 = dma.done.wait (!%p898_p13), %s785_s26, 36864  }
  0xed   : > { %1067 = vsyncadd (!%p898_p13), %s785_s26, 4294930432  ;;  %p16_p7 = scmp.ge.s32.totalorder %s1135_s15, 4   ;;  %s1588_s9 = smov %s1074_s10 }
  0xee   : > { %s1589_s10 = smov %s1078_s11  ;;  %s1590_s11 = smov %s1147_s18 }
  0xef   : > { %s1591_s12 = smov %s1135_s15  ;;  %18 = sbr.rel (!%p16_p7) target bundleno = 6 (0x6), region = 98 }
  0xf6   :  { %790 = vsyncpa [#allocation3], 1 }
  0xf7   :  { %792 = vsyncpa [#allocation3 + $0x1], 1 }
  0xf8   :  { %793 = vsyncpa [#allocation6], 1 }
  0xf9   :  { %794 = vsyncpa [#allocation4], 1 }
  0xfa   :  { %796 = vsyncpa [#allocation4 + $0x1], 1 }

// kernel: respath3d_forward.2
= control target key start
LH: loop header
LB: loop body
LE: loop exit
PB: predicated region body
PF: predicated region fallthrough
CT: control target
= control target key end

     0   :  { %s16607_s0 = inlined_call_operand.hbm [shape: bf16[2,10,342,8], index: 0, kind: input, shape index: {}, may-alias: {0,1,2}]   ;;  %s16608_s1 = inlined_call_operand.hbm [shape: bf16[2,10,342,8], index: 1, kind: input, shape index: {}, may-alias: {0,1,2}]   ;;  %s16609_s2 = inlined_call_operand.hbm [shape: bf16[2,10,342,8], index: 2, kind: input, shape index: {}, may-alias: {0,1,2}]   ;;  %s16610_s3 = inlined_call_operand.hbm [shape: bf16[1,256,256], index: 3, kind: input, shape index: {}]   ;;  %s16611_s4 = inlined_call_operand.hbm [shape: f32[1,256], index: 4, kind: input, shape index: {}]   ;;  %s16612_s5 = inlined_call_operand.hbm [shape: bf16[2,8,288,256], index: 5, kind: output, shape index: {0}]   ;;  %s16613_s6 = inlined_call_operand.hbm [shape: f32[2,8,2,256], index: 6, kind: output, shape index: {1}]  }
   0x1   :  { %16674 = sst [smem:[#allocation33_spill]] %s16607_s0 }
   0x2   :  { %16675 = sst [smem:[#allocation34_spill]] %s16608_s1 }
   0x3   :  { %16676 = sst [smem:[#allocation35_spill]] %s16609_s2 }
   0x4   :  { %16677 = sst [smem:[#allocation36_spill]] %s16610_s3 }
   0x5   :  { %16678 = sst [smem:[#allocation37_spill]] %s16611_s4 }
   0x6   :  { %16679 = sst [smem:[#allocation38_spill]] %s16612_s5 }
   0x7   :  { %16680 = sst [smem:[#allocation39_spill]] %s16613_s6 }
   0x8   :  { %12 = vsyncpa [#allocation4], 0 }
   0x9   :  { %14 = vsyncpa [#allocation4 + $0x1], 0 }
   0xa   :  { %15 = vsyncpa [#allocation7], 0 }
   0xb   :  { %17 = vsyncpa [#allocation7 + $0x1], 0 }
   0xc   :  { %18 = vsyncpa [#allocation10], 0 }
   0xd   :  { %19 = vsyncpa [#allocation5], 0 }
   0xe   :  { %21 = vsyncpa [#allocation5 + $0x1], 0 }
   0xf   :  { %22 = vsyncpa [#allocation14], 0 }
  0x10   :  { %24 = vsyncpa [#allocation14 + $0x1], 0  ;;  %s11727_s21 = smov 0   ;;  %s11729_s22 = smov 0  }
  0x11   :  { %s11731_s23 = smov 0   ;;  %s11733_s24 = smov 0  }
  0x12   :  { %s11735_s25 = smov 0   ;;  %s11737_s26 = smov 0  }
  0x13   :  { %s11739_s27 = smov 0   ;;  %s11741_s28 = smov 0  }
  0x14   :  { %s11743_s29 = smov 0   ;;  %s11745_s30 = smov 0  }
  0x15   :  { %s11747_s7 = smov 0   ;;  %s11749_s8 = smov 0  }
  0x16   :  { %s11751_s9 = smov 0   ;;  %s11753_s10 = smov 0  }
  0x17 LB: > { %16681 = sst [smem:[#allocation21_spill]] %s11610_s21  ;;  %s11798_s11 = sadd.s32 4294967295, %s11662_s10   ;;  %s11662_s10 = sphi %s11753_s10, %s30_s10   ;;  %s11658_s9 = sphi %s11751_s9, %s16971_s9   ;;  %s11654_s8 = sphi %s11749_s8, %s16970_s8   ;;  %s11650_s7 = sphi %s11747_s7, %s16969_s7   ;;  %s11646_s30 = sphi %s11745_s30, %s16968_s30   ;;  %s11642_s29 = sphi %s11743_s29, %s16979_s29   ;;  %s11638_s28 = sphi %s11741_s28, %s16978_s28   ;;  %s11634_s27 = sphi %s11739_s27, %s16977_s27   ;;  %s11630_s26 = sphi %s11737_s26, %s16976_s26   ;;  %s11626_s25 = sphi %s11735_s25, %s16975_s25   ;;  %s11622_s24 = sphi %s11733_s24, %s16974_s24   ;;  %s11618_s23 = sphi %s11731_s23, %s16973_s23   ;;  %s11614_s22 = sphi %s11729_s22, %s16965_s22   ;;  %s11610_s21 = sphi %s11727_s21, %s16964_s21  }
  0x18   : > { %16682 = sst [smem:[#allocation22_spill]] %s11614_s22  ;;  %p9835_p0 = scmp.ge.s32.totalorder %s11662_s10, 1 }
  0x19   : > { %16683 = sst [smem:[#allocation23_spill]] %s11618_s23  ;;  %p16615_p1 = scmp.eq.s32.totalorder %s11798_s11, 0 }
  0x1a   : > { %16684 = sst [smem:[#allocation24_spill]] %s11626_s25  ;;  %p233_p3 = scmp.lt.s32.totalorder %s11662_s10, 17 }
  0x1b   : > { %16685 = sst [smem:[#allocation25_spill]] %s11646_s30  ;;  %s11664_s13 = smov [#allocation9]  }
  0x1c   : > { %16686 = sst [smem:[#allocation26_spill]] %s11650_s7  ;;  %p11804_p4 = pnand %p9835_p0, %p233_p3 }
  0x1d   : > { %16687 = sst [smem:[#allocation27_spill]] %s11654_s8  ;;  %s245_s14 = sshll.u32 %s11664_s13, 4  ;;  %s246_s14 = int_to_ptr.vmem [resolvable:$true] %s245_s14 }
  0x1e   : > { %16688 = sst [smem:[#allocation28_spill]] %s11658_s9  ;;  %p10601_p5 = pneg %p11804_p4 }
  0x1f   : > { %s16689_s12 = scalar_select %p11804_p4, 1, 0 }
  0x20   : > { %p11812_p6 = pnand %p10601_p5, %p16615_p1  ;;  %s16692_s3 = sld [smem:[#allocation36_spill]] }
  0x21   : > { %16690 = sst [smem:[#allocation29_spill]] %s16689_s12 }
  0x22   : > { %p16630_p8 = pneg %p11812_p6 }
  0x26   : > { %s11324_s18 = scalar_lea.hbm %s16692_s3, 4096 }
  0x27   : > { %p11325_p7 = scmp.ne.s32.totalorder %s16692_s3, %s11324_s18  ;;  %p11331_p11 = scmp.lt.u32.totalorder %s11324_s18, %s16692_s3 }
  0x29   : > { %p11327_p9 = pnand %p16630_p8, %p11325_p7 }
  0x2b   : > { %p11328_p10 = pneg %p11327_p9 }
  0x2d   : > { %p11333_p12 = pnand %p11331_p11, %p11328_p10 }
  0x2f   : > { %11336 = shalt.err (!%p11333_p12)
}
  0x30   : > { %s11337_s16 = scalar_lea.vmem %s246_s14, 4096  ;;  %p11345_p5 = scmp.lt.s32.totalorder %s246_s14, %s246_s14 }
  0x31   : > { %p11338_p13 = scmp.ne.s32.totalorder %s246_s14, %s11337_s16  ;;  %p11346_p2 = scmp.lt.s32.totalorder %s11337_s16, %s11337_s16 }
  0x33   : > { %p11340_p0 = pnand %p11338_p13, %p16630_p8  ;;  %p11347_p1 = por %p11346_p2, %p11345_p5 }
  0x35   : > { %p11341_p3 = pneg %p11340_p0 }
  0x37   : > { %p11348_p4 = pnand %p11347_p1, %p11341_p3 }
  0x39   : > { %11351 = shalt.err (!%p11348_p4)
}
  0x3a   : > { %s11665_s17 = smov 128   ;;  %s11666_s6 = smov 8  }
  0x3b   : > { %10604 = dma.hbm_to_vmem [thread:$0]  (!%p11812_p6), %s16692_s3, 4096, %s246_s14, [#allocation10], %s11665_s17, %s11665_s17, %s11666_s6  }
  0x3c   : > { %s39_s20 = sadd.s32 1, %s11654_s8  ;;  %s42_s13 = sadd.s32 1, %s11658_s9 }
  0x3d   : > { %p40_p1 = scmp.ge.s32.totalorder %s39_s20, 8  ;;  %p16629_p2 = scmp.eq.s32.totalorder %s11662_s10, 0 }
  0x3e   : > { %s81_s16 = sadd.s32 1, %s11630_s26  ;;  %p88_p4 = scmp.ne.s32.totalorder %s11630_s26, %s11626_s25 }
  0x3f   : > { %s11844_s5 = scalar_select %p40_p1, 0, %s39_s20  }
  0x40   : > { %s16981_s13 = smov (!%p40_p1, %s42_s13), %s11658_s9  ;;  %p11852_p9 = por %p88_p4, %p16629_p2 }
  0x41   : > { %16693 = sst [smem:[#allocation30_spill]] %s11844_s5  ;;  %s75_s30 = sadd.s32 1, %s11844_s5 }
  0x42   : > { %p44_p7 = scmp.ge.s32.totalorder %s16981_s13, 2  ;;  %s77_s14 = ssub.s32 %s39_s20, %s75_s30 }
  0x43   : > { %p94_p10 = scmp.ne.s32.totalorder %s11626_s25, %s11622_s24  ;;  %p16696_p11 = scmp.eq.s32.totalorder %s11798_s11, 0 }
  0x44   : > { %s16983_s13 = smov (%p44_p7, %s16981_s13), 0  ;;  %s104_s18 = sadd.s32 2, %s11654_s8 }
  0x45   : > { %16695 = sst [smem:[#allocation31_spill]] %s16983_s13  ;;  %p11862_p12 = por %p94_p10, %p16696_p11 }
  0x46   : > { %s11869_s19 = ssub.s32 %s11658_s9, %s16983_s13  ;;  %s105_s30 = sadd.s32 2, %s11844_s5 }
  0x47   : > { %s16697_s6 = scalar_select %p11862_p12, 1, 0 }
  0x48   : > { %s78_s20 = sor.u32 %s77_s14, %s11869_s19  ;;  %s107_s7 = ssub.s32 %s104_s18, %s105_s30 }
  0x49   : > { %16698 = sst [smem:[#allocation32_spill]] %s16697_s6  ;;  %p79_p13 = scmp.eq.s32.totalorder %s78_s20, 0 }
  0x4a   : > { %s108_s24 = sor.u32 %s107_s7, %s11869_s19  ;;  %p16628_p3 = scmp.lt.s32.totalorder %s11662_s10, 16 }
  0x4b   : > { %p11874_p0 = scmp.eq.s32.totalorder %s108_s24, 0  ;;  %s10501_s6 = smul.u32 43, %s11654_s8 }
  0x4c   : > { %s11880_s25 = scalar_select %p79_p13, %s11630_s26, %s81_s16  }
  0x4d   : > { %s16699_s3 = scalar_select %p11874_p0, 1, 0 }
  0x4e   : > { %s10502_s12 = smul.u32 430, %s11658_s9  ;;  %s293_s13 = sand.u32 1, %s11662_s10  }
  0x4f   : > { %s295_s2 = sand.u32 1, %s11630_s26   ;;  %s16700_s1 = sld [smem:[#allocation34_spill]] }
  0x50   : > { %s280_s21 = sadd.s32 %s10502_s12, %s10501_s6  ;;  %s10503_s23 = smul.u32 172, %s295_s2 }
  0x51   : > { %s11886_s22 = sshll.u32 %s280_s21, 6  ;;  %p11896_p5 = pnand %p16628_p3, %p11852_p9 }
  0x52   : > { %s297_s21 = scalar_lea.vmem [#allocation6], %s10503_s23  ;;  %s11904_s2 = scalar_lea.sflag [#allocation7], %s293_s13 }
  0x53   : > { %s307_s12 = sshll.u32 %s297_s21, 4  ;;  %p11354_p4 = pneg %p11896_p5  ;;  %s11902_s12 = int_to_ptr.vmem [resolvable:$true] %s307_s12 }
  0x55   : > { %s9696_s7 = scalar_lea.hbm %s16700_s1, %s11886_s22  ;;  %s11357_s24 = scalar_lea.hbm %s16700_s1, 55040 }
  0x56   : > { %s11900_s16 = scalar_lea.hbm %s9696_s7, 2752  ;;  %s11382_s6 = scalar_lea.hbm %s9696_s7, 5504 }
  0x57   : > { %p11353_p1 = scmp.ne.s32.totalorder %s11900_s16, %s11382_s6  ;;  %p11358_p10 = scmp.lt.u32.totalorder %s11900_s16, %s16700_s1 }
  0x58   : > { %p11359_p11 = scmp.lt.u32.totalorder %s11357_s24, %s11382_s6  ;;  %p11361_p3 = scmp.lt.u32.totalorder %s11382_s6, %s11900_s16 }
  0x59   : > { %p11355_p7 = pnand %p11354_p4, %p11353_p1 }
  0x5a   : > { %p11360_p13 = por %p11359_p11, %p11358_p10 }
  0x5b   : > { %p11356_p9 = pneg %p11355_p7 }
  0x5c   : > { %p11362_p2 = por %p11361_p3, %p11360_p13 }
  0x5e   : > { %p11363_p8 = pnand %p11362_p2, %p11356_p9 }
  0x60   : > { %11366 = shalt.err (!%p11363_p8)
}
  0x61   : > { %s11367_s23 = scalar_lea.vmem %s11902_s12, 2752  ;;  %s11667_s13 = smov [#allocation6]  }
  0x62   : > { %p11368_p1 = scmp.ne.s32.totalorder %s11902_s12, %s11367_s23  ;;  %s11372_s7 = sshll.u32 %s11667_s13, 4  ;;  %s11373_s7 = int_to_ptr.vmem [resolvable:$false] %s11372_s7 }
  0x63   : > { %s11374_s21 = scalar_lea.vmem %s11373_s7, 5504  ;;  %p11375_p0 = scmp.lt.s32.totalorder %s11902_s12, %s11373_s7 }
  0x64   : > { %p11370_p7 = pnand %p11368_p1, %p11354_p4  ;;  %p11376_p10 = scmp.lt.s32.totalorder %s11374_s21, %s11367_s23 }
  0x66   : > { %p11371_p12 = pneg %p11370_p7  ;;  %p11377_p11 = por %p11376_p10, %p11375_p0 }
  0x68   : > { %p11378_p3 = pnand %p11377_p11, %p11371_p12 }
  0x6a   : > { %11381 = shalt.err (!%p11378_p3)
}
  0x6b   : > { %s16632_s6 = smov 64   ;;  %s16634_s17 = smov 4  }
  0x6c   : > { %10614 = dma.hbm_to_vmem [thread:$0]  (!%p11896_p5), %s11900_s16, 2752, %s11902_s12, %s11904_s2, %s16632_s6, %s16632_s6, %s16634_s17  }
  0x6d   : > { %s11670_s20 = smov [#allocation11]   ;;  %s16702_s4 = sld [smem:[#allocation37_spill]] }
  0x6e   : > { %s259_s24 = sshll.u32 %s11670_s20, 4  ;;  %p16703_p2 = pneg %p11812_p6  ;;  %s260_s24 = int_to_ptr.vmem [resolvable:$true] %s259_s24 }
  0x73   : > { %s11383_s23 = scalar_lea.hbm %s16702_s4, 32 }
  0x74   : > { %p11384_p8 = scmp.ne.s32.totalorder %s16702_s4, %s11383_s23  ;;  %p11390_p4 = scmp.lt.u32.totalorder %s11383_s23, %s16702_s4 }
  0x76   : > { %p11386_p12 = pnand %p11384_p8, %p16703_p2 }
  0x78   : > { %p11387_p0 = pneg %p11386_p12 }
  0x7a   : > { %p11392_p5 = pnand %p11390_p4, %p11387_p0 }
  0x7c   : > { %11395 = shalt.err (!%p11392_p5)
}
  0x7d   : > { %s11396_s16 = scalar_lea.vmem %s260_s24, 32  ;;  %p16704_p13 = pmov %p16703_p2 }
  0x7e   : > { %p11397_p9 = scmp.ne.s32.totalorder %s260_s24, %s11396_s16  ;;  %p11404_p10 = scmp.lt.s32.totalorder %s260_s24, %s260_s24 }
  0x7f   : > { %p11405_p11 = scmp.lt.s32.totalorder %s11396_s16, %s11396_s16 }
  0x80   : > { %p11399_p1 = pnand %p11397_p9, %p16704_p13 }
  0x81   : > { %p11406_p3 = por %p11405_p11, %p11404_p10 }
  0x82   : > { %p11400_p7 = pneg %p11399_p1 }
  0x84   : > { %p11407_p2 = pnand %p11406_p3, %p11400_p7 }
  0x86   : > { %11410 = shalt.err (!%p11407_p2)
}
  0x87   : > { %10607 = dma.hbm_to_vmem [thread:$0]  (!%p11812_p6), %s16702_s4, 32, %s260_s24, [#allocation10]  }
  0x88   : > { %s9834_s15 = sadd.s32 4294967294, %s11662_s10   ;;  %s16705_s14 = ssub.s32 %s11654_s8, %s11844_s5 }
  0x89   : > { %s48_s18 = sor.u32 %s16705_s14, %s11869_s19  ;;  %s51_s23 = sadd.s32 1, %s11642_s29 }
  0x8a   : > { %p49_p8 = scmp.eq.s32.totalorder %s48_s18, 0  ;;  %p58_p12 = scmp.ne.s32.totalorder %s11642_s29, %s11638_s28 }
  0x8b   : > { %p64_p0 = scmp.ne.s32.totalorder %s11638_s28, %s11634_s27  ;;  %p16706_p4 = scmp.eq.s32.totalorder %s11662_s10, 0 }
  0x8c   : > { %s11965_s13 = scalar_select %p49_p8, %s11642_s29, %s51_s23  }
  0x8d   : > { %p60_p5 = por %p16706_p4, %p58_p12  ;;  %p16707_p9 = scmp.eq.s32.totalorder %s11798_s11, 0 }
  0x8e   : > { %p16709_p1 = scmp.eq.s32.totalorder %s11798_s11, 15  ;;  %p198_p6 = scmp.eq.s32.totalorder %s9834_s15, 15 }
  0x8f   : > { %p11971_p13 = por %p16707_p9, %p64_p0  ;;  %s270_s19 = sand.u32 1, %s11642_s29  }
  0x90   : > { %p11977_p7 = por %p16709_p1, %p58_p12  ;;  %s16711_s0 = sld [smem:[#allocation33_spill]] }
  0x91   : > { %p11988_p10 = por %p198_p6, %p64_p0  ;;  %s10500_s20 = smul.u32 172, %s270_s19 }
  0x92   : > { %s16710_s24 = scalar_select %p11977_p7, 1, 0 }
  0x93   : > { %s16712_s12 = scalar_select %p11988_p10, 1, 0 }
  0x94   : > { %p16713_p11 = scmp.lt.s32.totalorder %s11662_s10, 16  ;;  %s274_s15 = scalar_lea.vmem [#allocation3], %s10500_s20 }
  0x95   : > { %s283_s18 = sshll.u32 %s274_s15, 4  ;;  %s12000_s23 = scalar_lea.sflag [#allocation4], %s270_s19  ;;  %s11998_s18 = int_to_ptr.vmem [resolvable:$true] %s283_s18 }
  0x96   : > { %s11986_s16 = scalar_lea.hbm %s16711_s0, %s11886_s22  ;;  %p11994_p3 = pnand %p16713_p11, %p60_p5 }
  0x97   : > { %s11411_s30 = scalar_lea.hbm %s11986_s16, 2752  ;;  %s11416_s17 = scalar_lea.hbm %s16711_s0, 55040 }
  0x98   : > { %p11412_p2 = scmp.ne.s32.totalorder %s11986_s16, %s11411_s30  ;;  %p11413_p8 = pneg %p11994_p3 }
  0x99   : > { %p11417_p4 = scmp.lt.u32.totalorder %s11986_s16, %s16711_s0  ;;  %p11418_p5 = scmp.lt.u32.totalorder %s11416_s17, %s11411_s30 }
  0x9a   : > { %p11414_p12 = pnand %p11413_p8, %p11412_p2  ;;  %p11420_p1 = scmp.lt.u32.totalorder %s11411_s30, %s11986_s16 }
  0x9b   : > { %p11419_p9 = por %p11418_p5, %p11417_p4 }
  0x9c   : > { %p11415_p0 = pneg %p11414_p12 }
  0x9d   : > { %p11421_p6 = por %p11420_p1, %p11419_p9 }
  0x9f   : > { %p11422_p11 = pnand %p11421_p6, %p11415_p0 }
  0xa1   : > { %11425 = shalt.err (!%p11422_p11)
}
  0xa2   : > { %s11426_s19 = scalar_lea.vmem %s11998_s18, 2752  ;;  %s11671_s6 = smov [#allocation3]  }
  0xa3   : > { %p11427_p2 = scmp.ne.s32.totalorder %s11998_s18, %s11426_s19  ;;  %s11431_s20 = sshll.u32 %s11671_s6, 4  ;;  %s11432_s20 = int_to_ptr.vmem [resolvable:$false] %s11431_s20 }
  0xa4   : > { %s11433_s1 = scalar_lea.vmem %s11432_s20, 5504  ;;  %p11434_p7 = scmp.lt.s32.totalorder %s11998_s18, %s11432_s20 }
  0xa5   : > { %p11429_p12 = pnand %p11427_p2, %p11413_p8  ;;  %p11435_p4 = scmp.lt.s32.totalorder %s11433_s1, %s11426_s19 }
  0xa7   : > { %p11430_p10 = pneg %p11429_p12  ;;  %p11436_p5 = por %p11435_p4, %p11434_p7 }
  0xa9   : > { %p11437_p9 = pnand %p11436_p5, %p11430_p10 }
  0xab   : > { %11440 = shalt.err (!%p11437_p9)
}
  0xac   : > { %s16715_s4 = smov 4   ;;  %s16716_s17 = smov 64  }
  0xad   : > { %s16717_s15 = sld [smem:[#allocation23_spill]]  ;;  %s16718_s30 = sld [smem:[#allocation22_spill]] }
  0xae   : > { %s16719_s21 = sld [smem:[#allocation21_spill]]  ;;  %p16720_p10 = scmp.ne.s32.totalorder %s16699_s3, 0 }
  0xaf   : > { %10611 = dma.hbm_to_vmem [thread:$0]  (!%p11994_p3), %s11986_s16, 2752, %s11998_s18, %s12000_s23, %s16716_s17, %s16716_s17, %s16715_s4  }
  0xb0   : > { %p16721_p8 = scmp.eq.s32.totalorder %s11662_s10, 0  ;;  %s16722_s0 = sld [smem:[#allocation35_spill]] }
  0xb1   : > { %p16723_p6 = scmp.eq.s32.totalorder %s11798_s11, 0  ;;  %p16725_p3 = scmp.lt.s32.totalorder %s11662_s10, 16 }
  0xb3   : > { %s111_s14 = sadd.s32 1, %s16717_s15  ;;  %p118_p7 = scmp.ne.s32.totalorder %s16717_s15, %s16718_s30 }
  0xb4   : > { %s12037_s19 = scalar_select %p16720_p10, %s16717_s15, %s111_s14  }
  0xb5   : > { %p120_p0 = por %p118_p7, %p16721_p8  ;;  %p124_p1 = scmp.ne.s32.totalorder %s16718_s30, %s16719_s21 }
  0xb6   : > { %s319_s6 = sand.u32 1, %s16717_s15   ;;  %s9705_s5 = scalar_lea.hbm %s16722_s0, %s11886_s22 }
  0xb7   : > { %p12050_p11 = por %p124_p1, %p16723_p6  ;;  %s10504_s8 = smul.u32 172, %s319_s6 }
  0xb8   : > { %p12056_p2 = pnand %p16725_p3, %p120_p0  ;;  %s12060_s3 = scalar_lea.hbm %s9705_s5, 5504 }
  0xb9   : > { %s16724_s9 = scalar_select %p12050_p11, 1, 0 }
  0xba   : > { %s321_s18 = scalar_lea.vmem [#allocation8], %s10504_s8  ;;  %s11471_s23 = scalar_lea.hbm %s9705_s5, 8256 }
  0xbb   : > { %s331_s22 = sshll.u32 %s321_s18, 4  ;;  %p11442_p12 = scmp.ne.s32.totalorder %s12060_s3, %s11471_s23  ;;  %s12062_s22 = int_to_ptr.vmem [resolvable:$true] %s331_s22 }
  0xbc   : > { %p11443_p4 = pneg %p12056_p2  ;;  %s11446_s21 = scalar_lea.hbm %s16722_s0, 55040 }
  0xbd   : > { %p11447_p7 = scmp.lt.u32.totalorder %s12060_s3, %s16722_s0  ;;  %p11448_p10 = scmp.lt.u32.totalorder %s11446_s21, %s11471_s23 }
  0xbe   : > { %p11444_p5 = pnand %p11443_p4, %p11442_p12  ;;  %p11450_p0 = scmp.lt.u32.totalorder %s11471_s23, %s12060_s3 }
  0xbf   : > { %p11449_p8 = por %p11448_p10, %p11447_p7 }
  0xc0   : > { %p11445_p9 = pneg %p11444_p5 }
  0xc1   : > { %p11451_p1 = por %p11450_p0, %p11449_p8 }
  0xc3   : > { %p11452_p6 = pnand %p11451_p1, %p11445_p9 }
  0xc5   : > { %11455 = shalt.err (!%p11452_p6)
}
  0xc6   : > { %s11456_s5 = scalar_lea.vmem %s12062_s22, 2752  ;;  %s11672_s8 = smov [#allocation8]  }
  0xc7   : > { %p11457_p3 = scmp.ne.s32.totalorder %s12062_s22, %s11456_s5  ;;  %s11461_s20 = sshll.u32 %s11672_s8, 4  ;;  %s11462_s20 = int_to_ptr.vmem [resolvable:$false] %s11461_s20 }
  0xc8   : > { %s11463_s1 = scalar_lea.vmem %s11462_s20, 5504  ;;  %p11464_p11 = scmp.lt.s32.totalorder %s12062_s22, %s11462_s20 }
  0xc9   : > { %p11459_p12 = pnand %p11457_p3, %p11443_p4  ;;  %p11465_p7 = scmp.lt.s32.totalorder %s11463_s1, %s11456_s5 }
  0xcb   : > { %p11460_p5 = pneg %p11459_p12  ;;  %p11466_p10 = por %p11465_p7, %p11464_p11 }
  0xcd   : > { %p11467_p8 = pnand %p11466_p10, %p11460_p5 }
  0xcf   : > { %11470 = shalt.err (!%p11467_p8)
}
  0xd0   : > { %10617 = dma.hbm_to_vmem [thread:$0]  (!%p12056_p2), %s12060_s3, 2752, %s12062_s22, %s11904_s2, %s16716_s17, %s16716_s17, %s16715_s4  }
  0xd1   : > { %s16727_s18 = sld [smem:[#allocation29_spill]] }
  0xd7   : > { %p16728_p4 = scmp.ne.s32.totalorder %s16727_s18, 0 }
  0xd8   : > { %s12095_s23 = sand.u32 (!%p16728_p4), 1, %s11638_s28  }
  0xd9   : > { %343 = sbr.rel (%p16728_p4) target bundleno = 1542 (0x606), region = 40  ;;  %s346_s30 = scalar_lea.sflag (!%p16728_p4), [#allocation4], %s12095_s23 }
  0xda   : > { %s10505_s15 = smul.u32 (!%p16728_p4), 172, %s12095_s23 }
  0xdc   : > { %s12099_s21 = scalar_lea.vmem (!%p16728_p4), [#allocation3], %s10505_s15 }
  0xe0   : > { %11585 = dma.done.wait (%p11971_p13), %s346_s30, 2752  }
  0xe1   : > { %11587 = vsyncadd (%p11971_p13), %s346_s30, 4294964544  ;;  %s16729_s2 = sld [smem:[#allocation24_spill]]  ;;  %s16730_s4 = sld [smem:[#allocation32_spill]] }
  0xe2   : > { %s354_s17 = sand.u32 1, %s11798_s11  }
  0xe3   : > { %s355_s22 = scalar_lea.sflag [#allocation7], %s354_s17 }
  0xe7   : > { %s356_s16 = sand.u32 1, %s16729_s2   ;;  %p16731_p11 = scmp.ne.s32.totalorder %s16730_s4, 0 }
  0xe8   : > { %s10506_s3 = smul.u32 172, %s356_s16 }
  0xea   : > { %s12107_s14 = scalar_lea.vmem [#allocation6], %s10506_s3 }
  0xeb   : > { %11589 = dma.done.wait (%p16731_p11), %s355_s22, 2752  }
  0xec   : > { %11591 = vsyncadd (%p16731_p11), %s355_s22, 4294964544  ;;  %s16732_s6 = sld [smem:[#allocation22_spill]]  ;;  %p16733_p13 = scmp.ne.s32.totalorder %s16724_s9, 0 }
  0xf2   : > { %s365_s5 = sand.u32 1, %s16732_s6  }
  0xf3   : > { %s10507_s8 = smul.u32 172, %s365_s5 }
  0xf5   : > { %s12114_s7 = scalar_lea.vmem [#allocation8], %s10507_s8 }
  0xf6   : > { %11593 = dma.done.wait (%p16733_p13), %s355_s22, 2752  }
  0xf7   : > { %11595 = vsyncadd (%p16733_p13), %s355_s22, 4294964544  ;;  %p16734_p2 = scmp.eq.s32.totalorder %s11798_s11, 0 }
  0xf9   : > { %11597 = dma.done.wait (%p16734_p2), [#allocation10], 4128   ;;  %p16735_p9 = pmov %p16734_p2 }
  0xfa   : > { %vm16658_vm0 = vsmask.f32 7424  ;;  %v10766_v0 = vld [vmem:[%s12099_s21] sm:$0xff]   ;;  %v10767_v1 = vld [vmem:[%s12099_s21 + $0x8] sm:$0xff]   ;;  %v10768_v5 = vld [vmem:[%s12099_s21 + $0x10] sm:$0xff]   ;;  %s11673_s9 = smov 8  }
  0xfb   : > { %11599 = vsyncadd (%p16735_p9), [#allocation10], 4294963168  ;;  %v736_v2 = vshrl.u32 %v10766_v0, 16  ;;  %v738_v3 = vshll.u32 %v10766_v0, 16  ;;  %v743_v4 = vshll.u32 %v10767_v1, 16  ;;  %v10769_v6 = vld [vmem:[%s12099_s21 + $0x18] sm:$0xff]  }
  0xfc   : > { %v747_v7 = vshrl.u32 %v10767_v1, 16  ;;  %v751_v10 = vshll.u32 %v10768_v5, 16  ;;  %v755_v11 = vshrl.u32 %v10768_v5, 16  ;;  %v10770_v12 = vld [vmem:[%s12099_s21 + $0x20] sm:$0xff]   ;;  %v10771_v13 = vld [vmem:[%s12099_s21 + $0x28] sm:$0xff]   ;;  %v759_v14 = vshll.u32 %v10769_v6, 16 }
  0xfd   : > { %v740_v8 = vrot.slane %v738_v3, 1  ;;  %v745_v9 = vrot.slane %v743_v4, 1  ;;  %v763_v15 = vshrl.u32 %v10769_v6, 16  ;;  %v767_v19 = vshll.u32 %v10770_v12, 16  ;;  %v10772_v23 = vld [vmem:[%s12099_s21 + $0x30] sm:$0xff]   ;;  %v10773_v25 = vld [vmem:[%s12099_s21 + $0x38] sm:$0xff]  }
  0xfe   : > { %v753_v17 = vrot.slane %v751_v10, 1  ;;  %v761_v20 = vrot.slane %v759_v14, 1  ;;  %v771_v21 = vshrl.u32 %v10770_v12, 16  ;;  %v775_v22 = vshll.u32 %v10771_v13, 16  ;;  %v10774_v29 = vld [vmem:[%s12099_s21 + $0x40] sm:$0xff]   ;;  %v10775_v34 = vld [vmem:[%s12099_s21 + $0x48] sm:$0xff]  }
  0xff   : > { %v741_v16 = vor.u32 %v740_v8, %v736_v2  ;;  %v749_v18 = vor.u32 %v747_v7, %v745_v9  ;;  %v779_v24 = vshrl.u32 %v10771_v13, 16  ;;  %v769_v28 = vrot.slane %v767_v19, 1  ;;  %v10776_v46 = vld [vmem:[%s12099_s21 + $0x50] sm:$0xff]   ;;  %v10777_v52 = vld [vmem:[%s12099_s21 + $0x58] sm:$0xff]   ;;  %v10778_v54 = vld [vmem:[%s12099_s21 + $0x60] sm:$0xff]   ;;  %s11674_s11 = smov 16  }
 0x100   : > { %v757_v27 = vor.u32 %v755_v11, %v753_v17  ;;  %v765_v31 = vor.u32 %v763_v15, %v761_v20  ;;  %v777_v32 = vrot.slane %v775_v22, 1  ;;  %v783_v33 = vshll.u32 %v10772_v23, 16  ;;  %v10779_v59 = vld [vmem:[%s12099_s21 + $0x68] sm:$0xff]   ;;  %v10780_v61 = vld [vmem:[%s12099_s21 + $0x70] sm:$0xff]   ;;  %v10781_v7 = vld [vmem:[%s12099_s21 + $0x78] sm:$0xff]   ;;  %s11675_s20 = smov 24  }
 0x101   : > { %v746_v26 = vsel %vm16658_vm0, %v741_v16, %v745_v9  ;;  %v754_v30 = vsel %vm16658_vm0, %v749_v18, %v753_v17  ;;  %v773_v36 = vor.u32 %v771_v21, %v769_v28  ;;  %v787_v37 = vshrl.u32 %v10772_v23, 16  ;;  %v10782_v13 = vld [vmem:[%s12099_s21 + $0x80] sm:$0xff]   ;;  %v10783_v19 = vld [vmem:[%s12099_s21 + $0x88] sm:$0xff]   ;;  %s11676_s1 = smov 32   ;;  %s11677_s18 = smov 40  }
 0x102   : > { %883 = vrot.lane.b32.xlu0 %v746_v26, %s11673_s9  ;;  %v762_v35 = vsel %vm16658_vm0, %v757_v27, %v761_v20  ;;  %v791_v38 = vshll.u32 %v10773_v25, 16  ;;  %v781_v39 = vor.u32 %v779_v24, %v777_v32  ;;  %v785_v40 = vrot.slane %v783_v33, 1  ;;  %s11678_s15 = smov 48   ;;  %s11679_s30 = smov 56  }
 0x103   : > { %887 = vrot.lane.b32.xlu1 %v762_v35, %s11673_s9  ;;  %v799_v41 = vshll.u32 %v10774_v29, 16  ;;  %v770_v42 = vsel %vm16658_vm0, %v765_v31, %v769_v28  ;;  %v795_v44 = vshrl.u32 %v10773_v25, 16  ;;  %v807_v45 = vshll.u32 %v10775_v34, 16  ;;  %v10784_v25 = vld [vmem:[%s12099_s21 + $0x90] ss:$0 sps:$4 sm:$0x11]  }
 0x104   : > { %v793_v43 = vrot.slane %v791_v38, 1  ;;  %v778_v47 = vsel %vm16658_vm0, %v773_v36, %v777_v32  ;;  %v789_v48 = vor.u32 %v787_v37, %v785_v40  ;;  %v803_v50 = vshrl.u32 %v10774_v29, 16  ;;  %s11680_s2 = smov 64   ;;  %s11682_s4 = smov 80  }
 0x105   : > { %v801_v49 = vrot.slane %v799_v41, 1  ;;  %v815_v51 = vshll.u32 %v10776_v46, 16  ;;  %v786_v53 = vsel %vm16658_vm0, %v781_v39, %v785_v40  ;;  %v809_v56 = vrot.slane %v807_v45, 1  ;;  %v10786_v40 = vld [vmem:[%s12099_s21 + $0x8] sm:$0xff]   ;;  %s11683_s17 = smov 88   ;;  %s11684_s16 = smov 96  }
 0x106   : > { %885 = vrot.lane.b32.xlu0 %v754_v30, %s11673_s9  ;;  %v797_v55 = vor.u32 %v795_v44, %v793_v43  ;;  %v811_v57 = vshrl.u32 %v10775_v34, 16  ;;  %v823_v58 = vshll.u32 %v10777_v52, 16  ;;  %v819_v60 = vshrl.u32 %v10776_v46, 16  ;;  %s11685_s3 = smov 104   ;;  %s11686_s22 = smov 112  }
 0x107   : > { %889 = vrot.lane.b32.xlu1 %v770_v42, %s11673_s9  ;;  %v794_v62 = vsel %vm16658_vm0, %v789_v48, %v793_v43  ;;  %v805_v63 = vor.u32 %v803_v50, %v801_v49  ;;  %v817_v0 = vrot.slane %v815_v51, 1  ;;  %v831_v1 = vshll.u32 %v10778_v54, 16  ;;  %v10785_v43 = vld [vmem:[%s12099_s21] sm:$0xfe]   ;;  %v10788_v51 = vld [vmem:[%s12099_s21 + $0x18] sm:$0xff]   ;;  %s11688_s6 = smov 120  }
 0x108   : > { %v827_v2 = vshrl.u32 %v10777_v52, 16  ;;  %v839_v3 = vshll.u32 %v10779_v59, 16  ;;  %v802_v4 = vsel %vm16658_vm0, %v797_v55, %v801_v49  ;;  %v813_v5 = vor.u32 %v811_v57, %v809_v56  ;;  %v10790_v57 = vld [vmem:[%s12099_s21 + $0x28] sm:$0xff]   ;;  %s10508_s5 = smul.u32 288, %s12095_s23  ;;  %p16960_p1 = scmp.ne.s32.totalorder %s16710_s24, 0 }
 0x109   : > { %v825_v6 = vrot.slane %v823_v58, 1  ;;  %v835_v8 = vshrl.u32 %v10778_v54, 16  ;;  %v847_v9 = vshll.u32 %v10780_v61, 16  ;;  %v810_v10 = vsel %vm16658_vm0, %v805_v63, %v809_v56  ;;  %v10789_v54 = vld [vmem:[%s12099_s21 + $0x20] sm:$0xff]   ;;  %v10792_v63 = vld [vmem:[%s12099_s21 + $0x38] sm:$0xff]  }
 0x10a   : > { %891 = vrot.lane.b32.xlu0 %v778_v47, %s11673_s9  ;;  %v821_v11 = vor.u32 %v819_v60, %v817_v0  ;;  %v833_v12 = vrot.slane %v831_v1, 1  ;;  %v841_v14 = vrot.slane %v839_v3, 1  ;;  %v843_v15 = vshrl.u32 %v10779_v59, 16  ;;  %v10787_v47 = vld [vmem:[%s12099_s21 + $0x10] sm:$0xff]   ;;  %s15263_s8 = scalar_lea.vmem [#allocation12], %s10508_s5 }
 0x10b   : > { %893 = vrot.lane.b32.xlu1 %v786_v53, %s11673_s9  ;;  %v818_v16 = vsel %vm16658_vm0, %v813_v5, %v817_v0  ;;  %v829_v17 = vor.u32 %v827_v2, %v825_v6  ;;  %v855_v18 = vshll.u32 %v10781_v7, 16  ;;  %v849_v20 = vrot.slane %v847_v9, 1  ;;  %v10791_v60 = vld [vmem:[%s12099_s21 + $0x30] sm:$0xff]   ;;  %v10793_v2 = vld [vmem:[%s12099_s21 + $0x40] sm:$0xff]   ;;  %v10794_v5 = vld [vmem:[%s12099_s21 + $0x48] sm:$0xff]  }
 0x10c   : > { %v851_v21 = vshrl.u32 %v10780_v61, 16  ;;  %v826_v22 = vsel %vm16658_vm0, %v821_v11, %v825_v6  ;;  %v837_v23 = vor.u32 %v835_v8, %v833_v12  ;;  %v863_v24 = vshll.u32 %v10782_v13, 16  ;;  %v10795_v8 = vld [vmem:[%s12099_s21 + $0x50] sm:$0xff]   ;;  %v10796_v11 = vld [vmem:[%s12099_s21 + $0x58] sm:$0xff]  }
 0x10d   : > { %v859_v26 = vshrl.u32 %v10781_v7, 16  ;;  %v834_v27 = vsel %vm16658_vm0, %v829_v17, %v833_v12  ;;  %v845_v28 = vor.u32 %v843_v15, %v841_v14  ;;  %v857_v29 = vrot.slane %v855_v18, 1  ;;  %v10798_v17 = vld [vmem:[%s12099_s21 + $0x68] sm:$0xff]  }
 0x10e   : > { %895 = vrot.lane.b32.xlu0 %v794_v62, %s11673_s9  ;;  %v871_v30 = vshll.u32 %v10783_v19, 16  ;;  %v842_v31 = vsel %vm16658_vm0, %v837_v23, %v841_v14  ;;  %v853_v32 = vor.u32 %v851_v21, %v849_v20  ;;  %v865_v33 = vrot.slane %v863_v24, 1  ;;  %v10797_v14 = vld [vmem:[%s12099_s21 + $0x60] sm:$0xff]   ;;  %v10800_v23 = vld [vmem:[%s12099_s21 + $0x78] sm:$0xff]  }
 0x10f   : > { %897 = vrot.lane.b32.xlu1 %v802_v4, %s11673_s9  ;;  %v867_v34 = vshrl.u32 %v10782_v13, 16  ;;  %v875_v35 = vshrl.u32 %v10783_v19, 16  ;;  %v850_v36 = vsel %vm16658_vm0, %v845_v28, %v849_v20  ;;  %v861_v37 = vor.u32 %v859_v26, %v857_v29  ;;  %v10799_v20 = vld [vmem:[%s12099_s21 + $0x70] sm:$0xff]   ;;  %v10801_v26 = vld [vmem:[%s12099_s21 + $0x80] sm:$0xff]  }
 0x110   : > { %v873_v38 = vrot.slane %v871_v30, 1  ;;  %v879_v39 = vshll.u32 %v10784_v25, 16  ;;  %v858_v41 = vsel %vm16658_vm0, %v853_v32, %v857_v29  ;;  %v1088_v48 = vrot.slane %v10786_v40, 1  ;;  %v10802_v29 = vld [vmem:[%s12099_s21 + $0x88] sm:$0xff]  }
 0x111   : > { %v869_v42 = vor.u32 %v867_v34, %v865_v33  ;;  %v866_v44 = vsel %vm16658_vm0, %v861_v37, %v865_v33  ;;  %v1087_v50 = vrot.slane %v10785_v43, 1  ;;  %vm16672_vm1 = vcmask 1046528   ;;  %v10803_v32 = vld [vmem:[%s12099_s21 + $0x90] ss:$0 sps:$4 sm:$0x11]   ;;  %v10828_v37 = vld [vmem:[%s12099_s21] sm:$0xff]  }
 0x112   : > { %899 = vrot.lane.b32.xlu0 %v810_v10, %s11673_s9  ;;  %v877_v45 = vor.u32 %v875_v35, %v873_v38  ;;  %v881_v46 = vrot.slane %v879_v39, 1  ;;  %v1090_v53 = vrot.slane %v10787_v47, 1  ;;  %v1092_v56 = vrot.slane %v10788_v51, 1  ;;  %v10805_v33 = vld [vmem:[%s12099_s21 + $0x10] sm:$0xff]   ;;  %v10833_v47 = vld [vmem:[%s12099_s21 + $0x18] sm:$0xff]  }
 0x113   : > { %901 = vrot.lane.b32.xlu1 %v818_v16, %s11673_s9  ;;  %v874_v49 = vsel %vm16658_vm0, %v869_v42, %v873_v38  ;;  %v1089_v55 = vsel %vm16672_vm1, %v1087_v50, %v1088_v48  ;;  %v1094_v59 = vrot.slane %v10789_v54, 1  ;;  %v1096_v62 = vrot.slane %v10790_v57, 1  ;;  %v10829_v38 = vld [vmem:[%s12099_s21 + $0x10] sm:$0xff]   ;;  %v10808_v50 = vld [vmem:[%s12099_s21 + $0x28] sm:$0xff]   ;;  %v10810_v54 = vld [vmem:[%s12099_s21 + $0x38] sm:$0xff]  }
 0x114   : > { %v882_v52 = vsel %vm16658_vm0, %v877_v45, %v881_v46  ;;  %v1091_v58 = vsel %vm16672_vm1, %v1088_v48, %v1090_v53  ;;  %v1093_v61 = vsel %vm16672_vm1, %v1090_v53, %v1092_v56  ;;  %v1098_v1 = vrot.slane %v10791_v60, 1  ;;  %v10807_v45 = vld [vmem:[%s12099_s21 + $0x20] sm:$0xff]   ;;  %v10832_v46 = vld [vmem:[%s12099_s21 + $0x8] sm:$0xff]   ;;  %v10809_v53 = vld [vmem:[%s12099_s21 + $0x30] sm:$0xff]  }
 0x115   : > { %v1095_v0 = vsel %vm16672_vm1, %v1092_v56, %v1094_v59  ;;  %v1097_v3 = vsel %vm16672_vm1, %v1094_v59, %v1096_v62  ;;  %v1100_v4 = vrot.slane %v10792_v63, 1  ;;  %v1102_v7 = vrot.slane %v10793_v2, 1  ;;  %v10836_v57 = vld [vmem:[%s12099_s21 + $0x20] sm:$0xff]   ;;  %v10813_v63 = vld [vmem:[%s12099_s21 + $0x50] sm:$0xff]   ;;  %v10814_v2 = vld [vmem:[%s12099_s21 + $0x58] sm:$0xff]  }
 0x116   : > { %903 = vrot.lane.b32.xlu0 %v826_v22, %s11673_s9  ;;  %v1099_v6 = vsel %vm16672_vm1, %v1096_v62, %v1098_v1  ;;  %v1104_v10 = vrot.slane %v10794_v5, 1  ;;  %v1106_v13 = vrot.slane %v10795_v8, 1  ;;  %v1108_v16 = vrot.slane %v10796_v11, 1  ;;  %v10812_v62 = vld [vmem:[%s12099_s21 + $0x48] sm:$0xff]  }
 0x117   : > { %905 = vrot.lane.b32.xlu1 %v834_v27, %s11673_s9  ;;  %v1101_v9 = vsel %vm16672_vm1, %v1098_v1, %v1100_v4  ;;  %v1103_v12 = vsel %vm16672_vm1, %v1100_v4, %v1102_v7  ;;  %v1110_v19 = vrot.slane %v10797_v14, 1  ;;  %v1112_v22 = vrot.slane %v10798_v17, 1  ;;  %v10841_v4 = vld [vmem:[%s12099_s21 + $0x38] sm:$0xff]   ;;  %v10816_v8 = vld [vmem:[%s12099_s21 + $0x68] sm:$0xff]  }
 0x118   : > { %v1105_v15 = vsel %vm16672_vm1, %v1102_v7, %v1104_v10  ;;  %v1107_v18 = vsel %vm16672_vm1, %v1104_v10, %v1106_v13  ;;  %v1109_v21 = vsel %vm16672_vm1, %v1106_v13, %v1108_v16  ;;  %v1114_v25 = vrot.slane %v10799_v20, 1  ;;  %v10815_v7 = vld [vmem:[%s12099_s21 + $0x60] sm:$0xff]   ;;  %v10845_v20 = vld [vmem:[%s12099_s21 + $0x48] sm:$0xff]  }
 0x119   : > { %v1111_v24 = vsel %vm16672_vm1, %v1108_v16, %v1110_v19  ;;  %v1113_v27 = vsel %vm16672_vm1, %v1110_v19, %v1112_v22  ;;  %v1116_v28 = vrot.slane %v10800_v23, 1  ;;  %vm16671_vm2 = vcmask 64512   ;;  %v12280_v13 = vld [vmem:[%s12099_s21 + $0x80] sm:$0xff]  }
 0x11a   : > { %907 = vrot.lane.b32.xlu0 %v842_v31, %s11673_s9  ;;  %v1115_v30 = vsel %vm16672_vm1, %v1112_v22, %v1114_v25  ;;  %v1118_v31 = vrot.slane %v10801_v26, 1  ;;  %v1120_v35 = vrot.slane %v10802_v29, 1  ;;  %v1122_v40 = vrot.slane %v10803_v32, 1  ;;  %586 = vst.msk [vmem:[#allocation2] sm:$0xff] %vm16671_vm2, %v10828_v37  ;;  %588 = vst.msk [vmem:[#allocation2 + $0x20] sm:$0xff] %vm16671_vm2, %v10829_v38  ;;  %v10844_v19 = vld [vmem:[%s12099_s21 + $0x40] sm:$0xff]  }
 0x11b   : > { %909 = vrot.lane.b32.xlu1 %v850_v36, %s11673_s9  ;;  %v1117_v34 = vsel %vm16672_vm1, %v1114_v25, %v1116_v28  ;;  %v10804_v36 = vld [vmem:[%s12099_s21 + $0x8] sm:$0xfe]   ;;  %v1328_v42 = vrot.slane %v10805_v33, 1  ;;  %587 = vst.msk [vmem:[#allocation2 + $0x10] sm:$0xff] %vm16671_vm2, %v10832_v46  ;;  %589 = vst.msk [vmem:[#allocation2 + $0x30] sm:$0xff] %vm16671_vm2, %v10833_v47  ;;  %v1334_v56 = vrot.slane %v10808_v50, 1 }
 0x11c   : > { %v1119_v39 = vsel %vm16672_vm1, %v1116_v28, %v1118_v31  ;;  %v1121_v43 = vsel %vm16672_vm1, %v1118_v31, %v1120_v35  ;;  %v1123_v48 = vsel %vm16672_vm1, %v1120_v35, %v1122_v40  ;;  %v1336_v60 = vrot.slane %v10809_v53, 1  ;;  %590 = vst.msk [vmem:[#allocation2 + $0x40] sm:$0xff] %vm16671_vm2, %v10836_v57  ;;  %593 = vst.msk [vmem:[#allocation2 + $0x70] sm:$0xff] %vm16671_vm2, %v10841_v4  ;;  %v10824_v22 = vld [vmem:[%s12099_s21 + $0x10] sm:$0xff]   ;;  %v10825_v25 = vld [vmem:[%s12099_s21 + $0x18] sm:$0xff]  }
 0x11d   : > { %v1338_v1 = vrot.slane %v10810_v54, 1  ;;  %v1342_v11 = vrot.slane %v10812_v62, 1  ;;  %v1344_v14 = vrot.slane %v10813_v63, 1  ;;  %v1346_v17 = vrot.slane %v10814_v2, 1  ;;  %594 = vst.msk [vmem:[#allocation2 + $0x80] sm:$0xff] %vm16671_vm2, %v10844_v19  ;;  %595 = vst.msk [vmem:[#allocation2 + $0x90] sm:$0xff] %vm16671_vm2, %v10845_v20 }
 0x11e   : > { %911 = vrot.lane.b32.xlu0 %v858_v41, %s11673_s9  ;;  %v10806_v41 = vld [vmem:[%s12099_s21 + $0x18] sm:$0xff]   ;;  %v1337_v5 = vsel %vm16672_vm1, %v1334_v56, %v1336_v60  ;;  %v12298_v26 = vld [vmem:[%s12099_s21 + $0x90] sm:$0xff]   ;;  %v10823_v28 = vld [vmem:[%s12099_s21 + $0x8] sm:$0xfe]   ;;  %v1356_v31 = vrot.slane %v12280_v13, 1  ;;  %v1577_v35 = vshrl.u32 %v10824_v22, 16 }
 0x11f   : > { %913 = vrot.lane.b32.xlu1 %v866_v44, %s11673_s9  ;;  %v1327_v44 = vrot.slane %v10804_v36, 1  ;;  %v1339_v10 = vsel %vm16672_vm1, %v1336_v60, %v1338_v1  ;;  %v1345_v29 = vsel %vm16672_vm1, %v1342_v11, %v1344_v14  ;;  %v10848_v32 = vld [vmem:[%s12099_s21 + $0x50] sm:$0xff]   ;;  %v10849_v33 = vld [vmem:[%s12099_s21 + $0x58] sm:$0xff]   ;;  %v1347_v36 = vsel %vm16672_vm1, %v1344_v14, %v1346_v17  ;;  %v10852_v47 = vld [vmem:[%s12099_s21 + $0x60] sm:$0xff]  }
 0x120   : > { %v1580_v37 = vshll.u32 %v10824_v22, 16  ;;  %v1586_v38 = vshrl.u32 %v10825_v25, 16  ;;  %596 = vst.msk [vmem:[#allocation2 + $0xa0] sm:$0xff] %vm16671_vm2, %v10848_v32  ;;  %597 = vst.msk [vmem:[#allocation2 + $0xb0] sm:$0xff] %vm16671_vm2, %v10849_v33  ;;  %v1589_v40 = vshll.u32 %v10825_v25, 16  ;;  %v10830_v46 = vld [vmem:[%s12099_s21 + $0x30] sm:$0xff]  }
 0x121   : > { %v1329_v51 = vsel %vm16672_vm1, %v1327_v44, %v1328_v42  ;;  %v1360_v44 = vrot.slane %v12298_v26, 1  ;;  %v1572_v50 = vshll.u32 %v10823_v28, 16  ;;  %598 = vst.msk [vmem:[#allocation2 + $0xc0] sm:$0xff] %vm16671_vm2, %v10852_v47  ;;  %vm16669_vm3 = vsmask.f32 6400  ;;  %v10857_v2 = vld [vmem:[%s12099_s21 + $0x78] sm:$0xff]  }
 0x122   : > { %915 = vrot.lane.b32.xlu0 %v874_v49, %s11673_s9  ;;  %v1330_v49 = vrot.slane %v10806_v41, 1  ;;  %v10826_v41 = vld [vmem:[%s12099_s21 + $0x20] sm:$0xff]   ;;  %v1582_v53 = vrot.slane %v1580_v37, 2  ;;  %v1588_v54 = vrot.slane %v1586_v38, 1  ;;  %v1591_v57 = vrot.slane %v1589_v40, 2  ;;  %601 = vst.msk [vmem:[#allocation2 + $0xf0] sm:$0xff] %vm16671_vm2, %v10857_v2 }
 0x123   : > { %917 = vrot.lane.b32.xlu1 %v882_v52, %s11673_s9  ;;  %v1332_v52 = vrot.slane %v10807_v45, 1  ;;  %v1574_v63 = vrot.slane %v1572_v50, 2  ;;  %v1616_v4 = vshll.u32 %v10830_v46, 16  ;;  %v10835_v14 = vld [vmem:[%s12099_s21 + $0x48] sm:$0xff]   ;;  %vm16673_vm4 = vcmask 130112  }
 0x124   : > { %v1592_v25 = vor.u32 %v1591_v57, %v1588_v54  ;;  %v1643_v33 = vshll.u32 %v10835_v14, 16  ;;  %v10843_v47 = vld [vmem:[%s12099_s21 + $0x68] sm:$0xff]   ;;  %vm1941_vm5 = vcmask 1045504   ;;  %vm16670_vm6 = vcmask 195712  }
 0x125   : > { %v1333_v59 = vsel %vm16672_vm1, %v1330_v49, %v1332_v52  ;;  %vm1418_vm7 = vcmask 261312   ;;  %vm2422_vm8 = vsmask.f32 5376  ;;  %vm1792_vm9 = vcmask 326912  }
 0x126   : > { %1124 = vrot.lane.b32.xlu0 %v1089_v55, %s11674_s11  ;;  %v1331_v55 = vsel %vm16672_vm1, %v1328_v42, %v1330_v49  ;;  %v10827_v42 = vld [vmem:[%s12099_s21 + $0x28] sm:$0xff]   ;;  %vm2796_vm10 = vcmask 1044480   ;;  %vm2033_vm11 = vcmask 392512   ;;  %vm16662_vm12 = vcmask 458112  }
 0x127   : > { %1126 = vrot.lane.b32.xlu1 %v1091_v58, %s11674_s11  ;;  %v10837_v58 = vld [vmem:[%s12099_s21 + $0x28] sm:$0xff]   ;;  %v1607_v60 = vshll.u32 %v10827_v42, 16  ;;  %vm16643_vm13 = vcmask 523712   ;;  %vm16641_vm14 = vcmask 589312   ;;  %vm16642_vm15 = vcmask 654912  }
 0x128   : > { %591 = vst.msk [vmem:[#allocation2 + $0x50] sm:$0xff] %vm16671_vm2, %v10837_v58  ;;  %v1598_v58 = vshll.u32 %v10826_v41, 16 }
 0x12a   : > { %1128 = vrot.lane.b32.xlu0 %v1093_v61, %s11674_s11  ;;  %v10811_v61 = vld [vmem:[%s12099_s21 + $0x40] sm:$0xff]  }
 0x12b   : > { %1130 = vrot.lane.b32.xlu1 %v1095_v0, %s11674_s11  ;;  %v1335_v0 = vsel %vm16672_vm1, %v1332_v52, %v1334_v56  ;;  %v1579_v52 = vrot.slane %v1577_v35, 1 }
 0x12d   : > { %v1583_v19 = vor.u32 %v1582_v53, %v1579_v52  ;;  %v10846_v53 = vld [vmem:[%s12099_s21 + $0x70] sm:$0xff]  }
 0x12e   : > { %1132 = vrot.lane.b32.xlu0 %v1097_v3, %s11674_s11  ;;  %v10840_v3 = vld [vmem:[%s12099_s21 + $0x30] sm:$0xff]   ;;  %v1685_v2 = vshrl.u32 %v10846_v53, 16 }
 0x12f   : > { %1134 = vrot.lane.b32.xlu1 %v1099_v6, %s11674_s11  ;;  %v1340_v6 = vrot.slane %v10811_v61, 1  ;;  %592 = vst.msk [vmem:[#allocation2 + $0x60] sm:$0xff] %vm16671_vm2, %v10840_v3  ;;  %v10831_v61 = vld [vmem:[%s12099_s21 + $0x38] sm:$0xff]  }
 0x131   : > { %v1341_v16 = vsel %vm16672_vm1, %v1338_v1, %v1340_v6  ;;  %v1343_v23 = vsel %vm16672_vm1, %v1340_v6, %v1342_v11  ;;  %v10856_v1 = vld [vmem:[%s12099_s21 + $0x70] sm:$0xff]   ;;  %v1600_v6 = vrot.slane %v1598_v58, 2  ;;  %v1625_v11 = vshll.u32 %v10831_v61, 16 }
 0x132   : > { %1136 = vrot.lane.b32.xlu0 %v1101_v9, %s11674_s11  ;;  %v12272_v9 = vld [vmem:[%s12099_s21 + $0x70] sm:$0xff]   ;;  %600 = vst.msk [vmem:[#allocation2 + $0xe0] sm:$0xff] %vm16671_vm2, %v10856_v1 }
 0x133   : > { %1138 = vrot.lane.b32.xlu1 %v1103_v12, %s11674_s11  ;;  %v12277_v12 = vld [vmem:[%s12099_s21 + $0x78] sm:$0xff]  }
 0x136   : > { %1140 = vrot.lane.b32.xlu0 %v1105_v15, %s11674_s11  ;;  %v12284_v15 = vld [vmem:[%s12099_s21 + $0x88] sm:$0xff]  }
 0x137   : > { %1142 = vrot.lane.b32.xlu1 %v1107_v18, %s11674_s11  ;;  %v1348_v18 = vrot.slane %v10815_v7, 1  ;;  %v10834_v7 = vld [vmem:[%s12099_s21 + $0x40] sm:$0xff]  }
 0x138   : > { %v1631_v20 = vshrl.u32 %v10834_v7, 16  ;;  %v1634_v22 = vshll.u32 %v10834_v7, 16  ;;  %v1688_v7 = vshll.u32 %v10846_v53, 16 }
 0x13a   : > { %1144 = vrot.lane.b32.xlu0 %v1109_v21, %s11674_s11  ;;  %v1350_v21 = vrot.slane %v10816_v8, 1  ;;  %v1633_v32 = vrot.slane %v1631_v20, 1 }
 0x13b   : > { %1146 = vrot.lane.b32.xlu1 %v1111_v24, %s11674_s11  ;;  %v1352_v24 = vrot.slane %v12272_v9, 1  ;;  %v1609_v9 = vrot.slane %v1607_v60, 2  ;;  %v1679_v60 = vshll.u32 %v10843_v47, 16 }
 0x13d   : > { %v1353_v49 = vsel %vm16672_vm1, %v1350_v21, %v1352_v24 }
 0x13e   : > { %1148 = vrot.lane.b32.xlu0 %v1113_v27, %s11674_s11  ;;  %v12301_v27 = vld [vmem:[%s12099_s21 + $0x98] ss:$0 sps:$4 sm:$0x11]  }
 0x13f   : > { %1150 = vrot.lane.b32.xlu1 %v1115_v30, %s11674_s11  ;;  %v1354_v30 = vrot.slane %v12277_v12, 1  ;;  %v1362_v45 = vrot.slane %v12301_v27, 1  ;;  %v1627_v27 = vrot.slane %v1625_v11, 2  ;;  %v10851_v11 = vld [vmem:[%s12099_s21 + $0x88] sm:$0xff]  }
 0x141   : > { %v1355_v62 = vsel %vm16672_vm1, %v1352_v24, %v1354_v30  ;;  %v1363_v24 = vsel %vm16672_vm1, %v1360_v44, %v1362_v45 }
 0x142   : > { %1152 = vrot.lane.b32.xlu0 %v1117_v34, %s11674_s11  ;;  %v1358_v34 = vrot.slane %v12284_v15, 1  ;;  %v1618_v15 = vrot.slane %v1616_v4, 2 }
 0x143   : > { %1154 = vrot.lane.b32.xlu1 %v1119_v39, %s11674_s11  ;;  %v1569_v39 = vshrl.u32 %v10823_v28, 16  ;;  %v1640_v28 = vshrl.u32 %v10835_v14, 16 }
 0x144   : > { %v1359_v12 = vsel %vm16672_vm1, %v1356_v31, %v1358_v34 }
 0x145   : > { %v1571_v56 = vrot.slane %v1569_v39, 1  ;;  %v10842_v39 = vld [vmem:[%s12099_s21 + $0x60] sm:$0xff]   ;;  %v1642_v40 = vrot.slane %v1640_v28, 1 }
 0x146   : > { %1156 = vrot.lane.b32.xlu0 %v1121_v43, %s11674_s11  ;;  %v1349_v43 = vsel %vm16672_vm1, %v1346_v17, %v1348_v18  ;;  %v1361_v17 = vsel %vm16672_vm1, %v1358_v34, %v1360_v44  ;;  %v1636_v34 = vrot.slane %v1634_v22, 2  ;;  %v1645_v44 = vrot.slane %v1643_v33, 2 }
 0x147   : > { %1158 = vrot.lane.b32.xlu1 %v1123_v48, %s11674_s11  ;;  %v1351_v48 = vsel %vm16672_vm1, %v1348_v18, %v1350_v21  ;;  %v1575_v18 = vor.u32 %v1574_v63, %v1571_v56  ;;  %v10861_v21 = vld [vmem:[%s12099_s21 + $0x80] sm:$0xff]   ;;  %v1670_v57 = vshll.u32 %v10842_v39, 16  ;;  %v1690_v22 = vrot.slane %v1688_v7, 2 }
 0x148   : > { %602 = vst.msk [vmem:[#allocation2 + $0x100] sm:$0xff] %vm16671_vm2, %v10861_v21 }
 0x14a   : > { %1364 = vrot.lane.b32.xlu0 %v1329_v51, %s11675_s20  ;;  %v10853_v51 = vld [vmem:[%s12099_s21 + $0x68] sm:$0xff]  }
 0x14b   : > { %1366 = vrot.lane.b32.xlu1 %v1331_v55, %s11675_s20  ;;  %v1595_v55 = vshrl.u32 %v10826_v41, 16  ;;  %599 = vst.msk [vmem:[#allocation2 + $0xd0] sm:$0xff] %vm16671_vm2, %v10853_v51  ;;  %v1667_v51 = vshrl.u32 %v10842_v39, 16 }
 0x14d   : > { %v1597_v3 = vrot.slane %v1595_v55, 1  ;;  %v1637_v55 = vor.u32 %v1636_v34, %v1633_v32  ;;  %v1669_v63 = vrot.slane %v1667_v51, 1 }
 0x14e   : > { %1368 = vrot.lane.b32.xlu0 %v1333_v59, %s11675_s20  ;;  %v1604_v59 = vshrl.u32 %v10827_v42, 16 }
 0x14f   : > { %1370 = vrot.lane.b32.xlu1 %v1335_v0, %s11675_s20  ;;  %v1613_v0 = vshrl.u32 %v10830_v46, 16 }
 0x150   : > { %v1606_v8 = vrot.slane %v1604_v59, 1  ;;  %v1676_v59 = vshrl.u32 %v10843_v47, 16 }
 0x151   : > { %v1615_v13 = vrot.slane %v1613_v0, 1  ;;  %v10847_v0 = vld [vmem:[%s12099_s21 + $0x78] sm:$0xff]  }
 0x152   : > { %1372 = vrot.lane.b32.xlu0 %v1337_v5, %s11675_s20  ;;  %v1357_v5 = vsel %vm16672_vm1, %v1354_v30, %v1356_v31  ;;  %v1584_v30 = vsel %vm16669_vm3, %v1575_v18, %v1583_v19  ;;  %v1601_v31 = vor.u32 %v1600_v6, %v1597_v3  ;;  %v1610_v37 = vor.u32 %v1609_v9, %v1606_v8  ;;  %v10850_v3 = vld [vmem:[%s12099_s21 + $0x80] sm:$0xff]  }
 0x153   : > { %1374 = vrot.lane.b32.xlu1 %v1339_v10, %s11675_s20  ;;  %v1622_v10 = vshrl.u32 %v10831_v61, 16  ;;  %v1672_v6 = vrot.slane %v1670_v57, 2  ;;  %v1678_v9 = vrot.slane %v1676_v59, 1  ;;  %v1694_v14 = vshrl.u32 %v10847_v0, 16  ;;  %v10858_v57 = vld [vmem:[%s12099_s21 + $0x8] sm:$0xfc]  }
 0x154   : > { %v1602_v42 = vsel %vm16669_vm3, %v1592_v25, %v1601_v31  ;;  %v1703_v18 = vshrl.u32 %v10850_v3, 16 }
 0x155   : > { %v1624_v26 = vrot.slane %v1622_v10, 1  ;;  %v1681_v10 = vrot.slane %v1679_v60, 2  ;;  %v1673_v21 = vor.u32 %v1672_v6, %v1669_v63  ;;  %v10859_v60 = vld [vmem:[%s12099_s21 + $0x10] sm:$0xff]  }
 0x156   : > { %1376 = vrot.lane.b32.xlu0 %v1341_v16, %s11675_s20  ;;  %v10838_v16 = vld [vmem:[%s12099_s21 + $0x50] sm:$0xff]   ;;  %v1705_v33 = vrot.slane %v1703_v18, 1 }
 0x157   : > { %1378 = vrot.lane.b32.xlu1 %v1343_v23, %s11675_s20  ;;  %v10862_v23 = vld [vmem:[%s12099_s21 + $0x88] sm:$0xff]   ;;  %v1649_v35 = vshrl.u32 %v10838_v16, 16  ;;  %v1652_v38 = vshll.u32 %v10838_v16, 16 }
 0x158   : > { %603 = vst.msk [vmem:[#allocation2 + $0x110] sm:$0xff] %vm16671_vm2, %v10862_v23  ;;  %v10854_v23 = vld [vmem:[%s12099_s21 + $0x90] sm:$0xff]  }
 0x159   : > { %v1651_v46 = vrot.slane %v1649_v35, 1  ;;  %v1654_v50 = vrot.slane %v1652_v38, 2  ;;  %v1724_v38 = vshll.u32 %v10854_v23, 16 }
 0x15a   : > { %1380 = vrot.lane.b32.xlu0 %v1345_v29, %s11675_s20  ;;  %v10839_v29 = vld [vmem:[%s12099_s21 + $0x58] sm:$0xff]  }
 0x15b   : > { %1382 = vrot.lane.b32.xlu1 %v1347_v36, %s11675_s20  ;;  %v1593_v36 = vsel %vm16669_vm3, %v1583_v19, %v1592_v25  ;;  %v1658_v41 = vshrl.u32 %v10839_v29, 16  ;;  %v1661_v45 = vshll.u32 %v10839_v29, 16  ;;  %v1706_v19 = vshll.u32 %v10850_v3, 16 }
 0x15c   : > { %v1682_v29 = vor.u32 %v1681_v10, %v1678_v9  ;;  %v1942_v3 = vrot.slane %v10858_v57, 2  ;;  %v10864_v9 = vld [vmem:[%s12099_s21 + $0x28] sm:$0xff]  }
 0x15d   : > { %v1660_v52 = vrot.slane %v1658_v41, 1  ;;  %v1663_v56 = vrot.slane %v1661_v45, 2  ;;  %v1708_v34 = vrot.slane %v1706_v19, 2  ;;  %v10876_v57 = vld [vmem:[%s12099_s21 + $0x88] sm:$0xff]  }
 0x15e   : > { %1384 = vrot.lane.b32.xlu0 %v1349_v43, %s11675_s20  ;;  %v1619_v43 = vor.u32 %v1618_v15, %v1615_v13  ;;  %v1697_v15 = vshll.u32 %v10847_v0, 16  ;;  %v10860_v0 = vld [vmem:[%s12099_s21 + $0x18] sm:$0xff]  }
 0x15f   : > { %1386 = vrot.lane.b32.xlu1 %v1351_v48, %s11675_s20  ;;  %v1611_v48 = vsel %vm16669_vm3, %v1601_v31, %v1610_v37  ;;  %v1664_v13 = vor.u32 %v1663_v56, %v1660_v52 }
 0x160   : > { %v1620_v54 = vsel %vm16669_vm3, %v1610_v37, %v1619_v43  ;;  %v1699_v31 = vrot.slane %v1697_v15, 2  ;;  %v1721_v37 = vshrl.u32 %v10854_v23, 16 }
 0x161   : > { %v1674_v35 = vsel %vm16669_vm3, %v1664_v13, %v1673_v21 }
 0x162   : > { %1388 = vrot.lane.b32.xlu0 %v1353_v49, %s11675_s20  ;;  %v1628_v49 = vor.u32 %v1627_v27, %v1624_v26  ;;  %v1712_v26 = vshrl.u32 %v10851_v11, 16  ;;  %v1715_v27 = vshll.u32 %v10851_v11, 16 }
 0x163   : > { %1390 = vrot.lane.b32.xlu1 %v1355_v62, %s11675_s20  ;;  %v1646_v62 = vor.u32 %v1645_v44, %v1642_v40 }
 0x164   : > { %v1629_v61 = vsel %vm16669_vm3, %v1619_v43, %v1628_v49  ;;  %v1638_v4 = vsel %vm16669_vm3, %v1628_v49, %v1637_v55  ;;  %v1714_v40 = vrot.slane %v1712_v26, 1  ;;  %v1717_v41 = vrot.slane %v1715_v27, 2 }
 0x165   : > { %v1723_v49 = vrot.slane %v1721_v37, 1  ;;  %v10871_v37 = vld [vmem:[%s12099_s21 + $0x60] sm:$0xff]  }
 0x166   : > { %1392 = vrot.lane.b32.xlu0 %v1357_v5, %s11675_s20  ;;  %v1655_v5 = vor.u32 %v1654_v50, %v1651_v46  ;;  %v1726_v50 = vrot.slane %v1724_v38, 2  ;;  %v1718_v53 = vor.u32 %v1717_v41, %v1714_v40  ;;  %v10872_v41 = vld [vmem:[%s12099_s21 + $0x68] sm:$0xff]  }
 0x167   : > { %1394 = vrot.lane.b32.xlu1 %v1359_v12, %s11675_s20  ;;  %v1647_v12 = vsel %vm16669_vm3, %v1637_v55, %v1646_v62 }
 0x168   : > { %v1656_v20 = vsel %vm16669_vm3, %v1646_v62, %v1655_v5  ;;  %v1665_v28 = vsel %vm16669_vm3, %v1655_v5, %v1664_v13  ;;  %v1727_v59 = vor.u32 %v1726_v50, %v1723_v49  ;;  %v10863_v5 = vld [vmem:[%s12099_s21 + $0x20] sm:$0xff]   ;;  %v10865_v13 = vld [vmem:[%s12099_s21 + $0x30] sm:$0xff]   ;;  %v10874_v49 = vld [vmem:[%s12099_s21 + $0x78] sm:$0xff]  }
 0x16a   : > { %1396 = vrot.lane.b32.xlu0 %v1361_v17, %s11675_s20  ;;  %v1687_v17 = vrot.slane %v1685_v2, 1  ;;  %v1728_v2 = vsel %vm16669_vm3, %v1718_v53, %v1727_v59 }
 0x16b   : > { %1398 = vrot.lane.b32.xlu1 %v1363_v24, %s11675_s20  ;;  %v10855_v24 = vld [vmem:[%s12099_s21 + $0x98] ss:$0 sps:$4 sm:$0x33]  }
 0x16c   : > { %v1730_v44 = vshrl.u32 %v10855_v24, 16  ;;  %v1733_v45 = vshll.u32 %v10855_v24, 16 }
 0x16e   : > { %1738 = vrot.lane.b32.xlu0 %v1584_v30, %s11676_s1  ;;  %v1696_v30 = vrot.slane %v1694_v14, 1  ;;  %v1735_v55 = vrot.slane %v1733_v45, 2  ;;  %v10873_v45 = vld [vmem:[%s12099_s21 + $0x70] sm:$0xff]  }
 0x16f   : > { %1740 = vrot.lane.b32.xlu1 %v1593_v36, %s11676_s1  ;;  %v1691_v36 = vor.u32 %v1690_v22, %v1687_v17  ;;  %v10866_v17 = vld [vmem:[%s12099_s21 + $0x38] sm:$0xff]  }
 0x170   : > { %v1700_v43 = vor.u32 %v1699_v31, %v1696_v30  ;;  %v1953_v24 = vrot.slane %v10866_v17, 2 }
 0x171   : > { %v1692_v47 = vsel %vm16669_vm3, %v1682_v29, %v1691_v36 }
 0x172   : > { %1742 = vrot.lane.b32.xlu0 %v1602_v42, %s11676_s1  ;;  %v1683_v42 = vsel %vm16669_vm3, %v1673_v21, %v1682_v29  ;;  %v1701_v52 = vsel %vm16669_vm3, %v1691_v36, %v1700_v43  ;;  %v10867_v21 = vld [vmem:[%s12099_s21 + $0x40] sm:$0xff]   ;;  %v10869_v29 = vld [vmem:[%s12099_s21 + $0x50] sm:$0xff]  }
 0x173   : > { %1744 = vrot.lane.b32.xlu1 %v1611_v48, %s11676_s1  ;;  %v1709_v48 = vor.u32 %v1708_v34, %v1705_v33  ;;  %v10870_v33 = vld [vmem:[%s12099_s21 + $0x58] sm:$0xff]   ;;  %v1959_v36 = vrot.slane %v10869_v29, 2 }
 0x174   : > { %v884_v58 = vpop.permute.xlu0 %883  ;;  %v1961_v40 = vrot.slane %v10870_v33, 2 }
 0x175   : > { %938 = vst.msk [vmem:[#allocation2] sm:$0xff] %vm16673_vm4, %v884_v58  ;;  %v888_v1 = vpop.permute.xlu1 %887  ;;  %v1710_v58 = vsel %vm16669_vm3, %v1700_v43, %v1709_v48  ;;  %v1719_v62 = vsel %vm16669_vm3, %v1709_v48, %v1718_v53  ;;  %v1965_v48 = vrot.slane %v10872_v41, 2  ;;  %v10875_v53 = vld [vmem:[%s12099_s21 + $0x80] sm:$0xff]  }
 0x176   : > { %1746 = vrot.lane.b32.xlu0 %v1620_v54, %s11676_s1  ;;  %940 = vst.msk [vmem:[#allocation2 + $0x20] sm:$0xff] %vm16673_vm4, %v888_v1  ;;  %v1732_v54 = vrot.slane %v1730_v44, 1  ;;  %v1963_v44 = vrot.slane %v10871_v37, 2  ;;  %v10888_v37 = vld [vmem:[%s12099_s21 + $0x58] sm:$0xff]  }
 0x177   : > { %1748 = vrot.lane.b32.xlu1 %v1629_v61, %s11676_s1 }
 0x178   : > { %v886_v8 = vpop.permute.xlu0 %885  ;;  %v1736_v63 = vor.u32 %v1735_v55, %v1732_v54  ;;  %v1966_v55 = vsel %vm1941_vm5, %v1963_v44, %v1965_v48 }
 0x179   : > { %939 = vst.msk [vmem:[#allocation2 + $0x10] sm:$0xff] %vm16673_vm4, %v886_v8  ;;  %v890_v16 = vpop.permute.xlu1 %889  ;;  %v1945_v8 = vrot.slane %v10860_v0, 2 }
 0x17a   : > { %1750 = vrot.lane.b32.xlu0 %v1638_v4, %s11676_s1  ;;  %941 = vst.msk [vmem:[#allocation2 + $0x30] sm:$0xff] %vm16673_vm4, %v890_v16  ;;  %v1943_v4 = vrot.slane %v10859_v60, 2  ;;  %v1737_v7 = vsel %vm16669_vm3, %v1727_v59, %v1736_v63  ;;  %v1949_v16 = vrot.slane %v10864_v9, 2  ;;  %v10877_v59 = vld [vmem:[%s12099_s21 + $0x90] sm:$0xff]  }
 0x17b   : > { %1752 = vrot.lane.b32.xlu1 %v1647_v12, %s11676_s1  ;;  %v1947_v12 = vrot.slane %v10863_v5, 2  ;;  %v10878_v63 = vld [vmem:[%s12099_s21 + $0x98] ss:$0 sps:$4 sm:$0x33]  }
 0x17c   : > { %v892_v25 = vpop.permute.xlu0 %891  ;;  %v1944_v11 = vsel %vm1941_vm5, %v1942_v3, %v1943_v4  ;;  %v1946_v15 = vsel %vm1941_vm5, %v1943_v4, %v1945_v8  ;;  %v1975_v3 = vrot.slane %v10877_v59, 2  ;;  %v10880_v4 = vld [vmem:[%s12099_s21 + $0x18] sm:$0xff]   ;;  %v1977_v9 = vrot.slane %v10878_v63, 2 }
 0x17d   : > { %942 = vst.msk [vmem:[#allocation2 + $0x40] sm:$0xff] %vm16673_vm4, %v892_v25  ;;  %v894_v32 = vpop.permute.xlu1 %893  ;;  %v1948_v19 = vsel %vm1941_vm5, %v1945_v8, %v1947_v12  ;;  %v1950_v23 = vsel %vm1941_vm5, %v1947_v12, %v1949_v16  ;;  %v10868_v25 = vld [vmem:[%s12099_s21 + $0x48] sm:$0xff]   ;;  %v2183_v12 = vrot.slane %v10880_v4, 2  ;;  %v12535_v63 = vld [vmem:[%s12099_s21 + $0x98] sm:$0xff]   ;;  %v10900_v4 = vld [vmem:[%s12099_s21 + $0x20] sm:$0xff]  }
 0x17e   : > { %1754 = vrot.lane.b32.xlu0 %v1656_v20, %s11676_s1  ;;  %943 = vst.msk [vmem:[#allocation2 + $0x50] sm:$0xff] %vm16673_vm4, %v894_v32  ;;  %v1951_v20 = vrot.slane %v10865_v13, 2  ;;  %v1957_v32 = vrot.slane %v10868_v25, 2  ;;  %v1978_v17 = vsel %vm1941_vm5, %v1975_v3, %v1977_v9 }
 0x17f   : > { %1756 = vrot.lane.b32.xlu1 %v1665_v28, %s11676_s1  ;;  %v1955_v28 = vrot.slane %v10867_v21, 2 }
 0x180   : > { %v896_v39 = vpop.permute.xlu0 %895  ;;  %v1952_v27 = vsel %vm1941_vm5, %v1949_v16, %v1951_v20  ;;  %v1954_v31 = vsel %vm1941_vm5, %v1951_v20, %v1953_v24  ;;  %v1960_v43 = vsel %vm1941_vm5, %v1957_v32, %v1959_v36 }
 0x181   : > { %944 = vst.msk [vmem:[#allocation2 + $0x60] sm:$0xff] %vm16673_vm4, %v896_v39  ;;  %v898_v46 = vpop.permute.xlu1 %897  ;;  %v1958_v39 = vsel %vm1941_vm5, %v1955_v28, %v1957_v32 }
 0x182   : > { %1758 = vrot.lane.b32.xlu0 %v1674_v35, %s11676_s1  ;;  %945 = vst.msk [vmem:[#allocation2 + $0x70] sm:$0xff] %vm16673_vm4, %v898_v46  ;;  %v1956_v35 = vsel %vm1941_vm5, %v1953_v24, %v1955_v28 }
 0x183   : > { %1760 = vrot.lane.b32.xlu1 %v1683_v42, %s11676_s1 }
 0x184   : > { %v900_v51 = vpop.permute.xlu0 %899 }
 0x185   : > { %946 = vst.msk [vmem:[#allocation2 + $0x80] sm:$0xff] %vm16673_vm4, %v900_v51  ;;  %v902_v56 = vpop.permute.xlu1 %901  ;;  %v1964_v51 = vsel %vm1941_vm5, %v1961_v40, %v1963_v44 }
 0x186   : > { %1762 = vrot.lane.b32.xlu0 %v1692_v47, %s11676_s1  ;;  %947 = vst.msk [vmem:[#allocation2 + $0x90] sm:$0xff] %vm16673_vm4, %v902_v56  ;;  %v1962_v47 = vsel %vm1941_vm5, %v1959_v36, %v1961_v40  ;;  %v1969_v56 = vrot.slane %v10874_v49, 2  ;;  %v10889_v40 = vld [vmem:[%s12099_s21 + $0x60] sm:$0xff]  }
 0x187   : > { %1764 = vrot.lane.b32.xlu1 %v1701_v52, %s11676_s1  ;;  %v1967_v52 = vrot.slane %v10873_v45, 2  ;;  %v10891_v45 = vld [vmem:[%s12099_s21 + $0x70] sm:$0xff]  }
 0x188   : > { %v904_v61 = vpop.permute.xlu0 %903 }
 0x189   : > { %948 = vst.msk [vmem:[#allocation2 + $0xa0] sm:$0xff] %vm16673_vm4, %v904_v61  ;;  %v906_v1 = vpop.permute.xlu1 %905  ;;  %v1968_v60 = vsel %vm1941_vm5, %v1965_v48, %v1967_v52  ;;  %v1971_v61 = vrot.slane %v10875_v53, 2  ;;  %v1970_v0 = vsel %vm1941_vm5, %v1967_v52, %v1969_v56  ;;  %v10892_v48 = vld [vmem:[%s12099_s21 + $0x78] sm:$0xff]  }
 0x18a   : > { %1766 = vrot.lane.b32.xlu0 %v1710_v58, %s11676_s1  ;;  %949 = vst.msk [vmem:[#allocation2 + $0xb0] sm:$0xff] %vm16673_vm4, %v906_v1  ;;  %v1973_v1 = vrot.slane %v10876_v57, 2  ;;  %v12527_v57 = vld [vmem:[%s12099_s21 + $0x90] sm:$0xff]   ;;  %v2207_v59 = vrot.slane %v10892_v48, 2 }
 0x18b   : > { %1768 = vrot.lane.b32.xlu1 %v1719_v62, %s11676_s1  ;;  %v1972_v5 = vsel %vm1941_vm5, %v1969_v56, %v1971_v61  ;;  %v2205_v56 = vrot.slane %v10891_v45, 2  ;;  %v2213_v9 = vrot.slane %v12527_v57, 2 }
 0x18c   : > { %v908_v6 = vpop.permute.xlu0 %907  ;;  %v1974_v8 = vsel %vm1941_vm5, %v1971_v61, %v1973_v1  ;;  %v1976_v13 = vsel %vm1941_vm5, %v1973_v1, %v1975_v3  ;;  %v10898_v1 = vld [vmem:[%s12099_s21 + $0x10] sm:$0xfc]  }
 0x18d   : > { %950 = vst.msk [vmem:[#allocation2 + $0xc0] sm:$0xff] %vm16673_vm4, %v908_v6  ;;  %v910_v10 = vpop.permute.xlu1 %909  ;;  %v10879_v6 = vld [vmem:[%s12099_s21 + $0x10] sm:$0xfc]  }
 0x18e   : > { %1770 = vrot.lane.b32.xlu0 %v1728_v2, %s11676_s1  ;;  %951 = vst.msk [vmem:[#allocation2 + $0xd0] sm:$0xff] %vm16673_vm4, %v910_v10  ;;  %v10881_v10 = vld [vmem:[%s12099_s21 + $0x20] sm:$0xff]  }
 0x18f   : > { %1772 = vrot.lane.b32.xlu1 %v1737_v7, %s11676_s1 }
 0x190   : > { %v912_v14 = vpop.permute.xlu0 %911 }
 0x191   : > { %952 = vst.msk [vmem:[#allocation2 + $0xe0] sm:$0xff] %vm16673_vm4, %v912_v14  ;;  %v914_v18 = vpop.permute.xlu1 %913  ;;  %v2182_v14 = vrot.slane %v10879_v6, 2 }
 0x192   : > { %1979 = vrot.lane.b32.xlu0 %v1944_v11, %s11677_s18  ;;  %953 = vst.msk [vmem:[#allocation2 + $0xf0] sm:$0xff] %vm16673_vm4, %v914_v18  ;;  %v2185_v18 = vrot.slane %v10881_v10, 2  ;;  %v2215_v10 = vrot.slane %v12535_v63, 2 }
 0x193   : > { %1981 = vrot.lane.b32.xlu1 %v1946_v15, %s11677_s18  ;;  %v10882_v15 = vld [vmem:[%s12099_s21 + $0x28] sm:$0xff]   ;;  %v2184_v21 = vsel %vm1941_vm5, %v2182_v14, %v2183_v12 }
 0x194   : > { %v916_v22 = vpop.permute.xlu0 %915  ;;  %v2186_v25 = vsel %vm1941_vm5, %v2183_v12, %v2185_v18  ;;  %v2424_v12 = vshrl.u32 %v10898_v1, 16  ;;  %v2216_v45 = vsel %vm1941_vm5, %v2213_v9, %v2215_v10 }
 0x195   : > { %954 = vst.msk [vmem:[#allocation2 + $0x100] sm:$0xff] %vm16673_vm4, %v916_v22  ;;  %v918_v26 = vpop.permute.xlu1 %917  ;;  %v2187_v22 = vrot.slane %v10882_v15, 2  ;;  %v2441_v15 = vshrl.u32 %v10900_v4, 16 }
 0x196   : > { %1983 = vrot.lane.b32.xlu0 %v1948_v19, %s11677_s18  ;;  %955 = vst.msk [vmem:[#allocation2 + $0x110] sm:$0xff] %vm16673_vm4, %v918_v26  ;;  %v10883_v19 = vld [vmem:[%s12099_s21 + $0x30] sm:$0xff]  }
 0x197   : > { %1985 = vrot.lane.b32.xlu1 %v1950_v23, %s11677_s18  ;;  %v10884_v23 = vld [vmem:[%s12099_s21 + $0x38] sm:$0xff]   ;;  %v2189_v26 = vrot.slane %v10883_v19, 2  ;;  %v2188_v29 = vsel %vm1941_vm5, %v2185_v18, %v2187_v22 }
 0x198   : > { %v1125_v30 = vpop.permute.xlu0 %1124 }
 0x199   : > { %1179 = vst.msk [vmem:[#allocation2] sm:$0xff] %vm16670_vm6, %v1125_v30  ;;  %v1127_v34 = vpop.permute.xlu1 %1126  ;;  %v2191_v30 = vrot.slane %v10884_v23, 2  ;;  %v2190_v33 = vsel %vm1941_vm5, %v2187_v22, %v2189_v26  ;;  %v2444_v22 = vshll.u32 %v10900_v4, 16  ;;  %v10902_v23 = vld [vmem:[%s12099_s21 + $0x30] sm:$0xff]  }
 0x19a   : > { %1987 = vrot.lane.b32.xlu0 %v1952_v27, %s11677_s18  ;;  %1180 = vst.msk [vmem:[#allocation2 + $0x10] sm:$0xff] %vm16670_vm6, %v1127_v34  ;;  %v10885_v27 = vld [vmem:[%s12099_s21 + $0x40] sm:$0xff]  }
 0x19b   : > { %1989 = vrot.lane.b32.xlu1 %v1954_v31, %s11677_s18  ;;  %v10886_v31 = vld [vmem:[%s12099_s21 + $0x48] sm:$0xff]   ;;  %v2193_v34 = vrot.slane %v10885_v27, 2 }
 0x19c   : > { %v1129_v38 = vpop.permute.xlu0 %1128 }
 0x19d   : > { %1181 = vst.msk [vmem:[#allocation2 + $0x20] sm:$0xff] %vm16670_vm6, %v1129_v38  ;;  %v1131_v42 = vpop.permute.xlu1 %1130  ;;  %v2192_v38 = vsel %vm1941_vm5, %v2189_v26, %v2191_v30 }
 0x19e   : > { %1991 = vrot.lane.b32.xlu0 %v1956_v35, %s11677_s18  ;;  %1182 = vst.msk [vmem:[#allocation2 + $0x30] sm:$0xff] %vm16670_vm6, %v1131_v42  ;;  %v10887_v35 = vld [vmem:[%s12099_s21 + $0x50] sm:$0xff]   ;;  %v10890_v42 = vld [vmem:[%s12099_s21 + $0x68] sm:$0xff]  }
 0x19f   : > { %1993 = vrot.lane.b32.xlu1 %v1958_v39, %s11677_s18  ;;  %v2195_v39 = vrot.slane %v10886_v31, 2  ;;  %v2197_v44 = vrot.slane %v10887_v35, 2  ;;  %v2203_v53 = vrot.slane %v10890_v42, 2  ;;  %v2443_v31 = vrot.slane %v2441_v15, 2  ;;  %v10909_v15 = vld [vmem:[%s12099_s21 + $0x68] sm:$0xff]  }
 0x1a0   : > { %v1133_v46 = vpop.permute.xlu0 %1132  ;;  %v2459_v35 = vshrl.u32 %v10902_v23, 16 }
 0x1a1   : > { %1183 = vst.msk [vmem:[#allocation2 + $0x40] sm:$0xff] %vm16670_vm6, %v1133_v46  ;;  %v1135_v50 = vpop.permute.xlu1 %1134  ;;  %v2196_v49 = vsel %vm1941_vm5, %v2193_v34, %v2195_v39  ;;  %v2206_v14 = vsel %vm1941_vm5, %v2203_v53, %v2205_v56 }
 0x1a2   : > { %1995 = vrot.lane.b32.xlu0 %v1960_v43, %s11677_s18  ;;  %1184 = vst.msk [vmem:[#allocation2 + $0x50] sm:$0xff] %vm16670_vm6, %v1135_v50  ;;  %v2194_v43 = vsel %vm1941_vm5, %v2191_v30, %v2193_v34  ;;  %v2201_v50 = vrot.slane %v10889_v40, 2  ;;  %v2446_v34 = vrot.slane %v2444_v22, 3 }
 0x1a3   : > { %1997 = vrot.lane.b32.xlu1 %v1962_v47, %s11677_s18  ;;  %v2199_v47 = vrot.slane %v10888_v37, 2  ;;  %v2462_v37 = vshll.u32 %v10902_v23, 16 }
 0x1a4   : > { %v1137_v54 = vpop.permute.xlu0 %1136 }
 0x1a5   : > { %1185 = vst.msk [vmem:[#allocation2 + $0x60] sm:$0xff] %vm16670_vm6, %v1137_v54  ;;  %v1139_v58 = vpop.permute.xlu1 %1138  ;;  %v12522_v54 = vld [vmem:[%s12099_s21 + $0x88] sm:$0xff]   ;;  %v2200_v61 = vsel %vm1941_vm5, %v2197_v44, %v2199_v47 }
 0x1a6   : > { %1999 = vrot.lane.b32.xlu0 %v1964_v51, %s11677_s18  ;;  %1186 = vst.msk [vmem:[#allocation2 + $0x70] sm:$0xff] %vm16670_vm6, %v1139_v58  ;;  %v12518_v51 = vld [vmem:[%s12099_s21 + $0x80] sm:$0xff]   ;;  %v2211_v3 = vrot.slane %v12522_v54, 2  ;;  %v2464_v54 = vrot.slane %v2462_v37, 3 }
 0x1a7   : > { %2001 = vrot.lane.b32.xlu1 %v1966_v55, %s11677_s18  ;;  %v2198_v55 = vsel %vm1941_vm5, %v2195_v39, %v2197_v44 }
 0x1a8   : > { %v1141_v62 = vpop.permute.xlu0 %1140  ;;  %v2214_v39 = vsel %vm1941_vm5, %v2211_v3, %v2213_v9 }
 0x1a9   : > { %1187 = vst.msk [vmem:[#allocation2 + $0x80] sm:$0xff] %vm16670_vm6, %v1141_v62  ;;  %v1143_v2 = vpop.permute.xlu1 %1142  ;;  %v2209_v62 = vrot.slane %v12518_v51, 2  ;;  %v10906_v51 = vld [vmem:[%s12099_s21 + $0x50] sm:$0xff]  }
 0x1aa   : > { %2003 = vrot.lane.b32.xlu0 %v1968_v60, %s11677_s18  ;;  %1188 = vst.msk [vmem:[#allocation2 + $0x90] sm:$0xff] %vm16670_vm6, %v1143_v2  ;;  %v10899_v60 = vld [vmem:[%s12099_s21 + $0x18] sm:$0xff]   ;;  %v2202_v2 = vsel %vm1941_vm5, %v2199_v47, %v2201_v50  ;;  %v2498_v4 = vshll.u32 %v10906_v51, 16 }
 0x1ab   : > { %2005 = vrot.lane.b32.xlu1 %v1970_v0, %s11677_s18  ;;  %v2432_v6 = vshrl.u32 %v10899_v60, 16  ;;  %v2210_v27 = vsel %vm1941_vm5, %v2207_v59, %v2209_v62 }
 0x1ac   : > { %v1145_v7 = vpop.permute.xlu0 %1144 }
 0x1ad   : > { %1189 = vst.msk [vmem:[#allocation2 + $0xa0] sm:$0xff] %vm16670_vm6, %v1145_v7  ;;  %v1147_v11 = vpop.permute.xlu1 %1146  ;;  %v2435_v7 = vshll.u32 %v10899_v60, 16  ;;  %v2434_v18 = vrot.slane %v2432_v6, 2 }
 0x1ae   : > { %2007 = vrot.lane.b32.xlu0 %v1972_v5, %s11677_s18  ;;  %1190 = vst.msk [vmem:[#allocation2 + $0xb0] sm:$0xff] %vm16670_vm6, %v1147_v11 }
 0x1af   : > { %2009 = vrot.lane.b32.xlu1 %v1974_v8, %s11677_s18  ;;  %v2204_v8 = vsel %vm1941_vm5, %v2201_v50, %v2203_v53  ;;  %v2437_v19 = vrot.slane %v2435_v7, 3  ;;  %v2447_v50 = vor.u32 %v2446_v34, %v2443_v31  ;;  %v2461_v53 = vrot.slane %v2459_v35, 2  ;;  %v10908_v7 = vld [vmem:[%s12099_s21 + $0x60] sm:$0xff]  }
 0x1b0   : > { %v1149_v16 = vpop.permute.xlu0 %1148  ;;  %v2513_v22 = vshrl.u32 %v10908_v7, 16  ;;  %v2516_v23 = vshll.u32 %v10908_v7, 16 }
 0x1b1   : > { %1191 = vst.msk [vmem:[#allocation2 + $0xc0] sm:$0xff] %vm16670_vm6, %v1149_v16  ;;  %v1151_v20 = vpop.permute.xlu1 %1150  ;;  %v10901_v16 = vld [vmem:[%s12099_s21 + $0x28] sm:$0xff]   ;;  %v2465_v6 = vor.u32 %v2464_v54, %v2461_v53 }
 0x1b2   : > { %2011 = vrot.lane.b32.xlu0 %v1976_v13, %s11677_s18  ;;  %1192 = vst.msk [vmem:[#allocation2 + $0xd0] sm:$0xff] %vm16670_vm6, %v1151_v20  ;;  %v2427_v13 = vshll.u32 %v10898_v1, 16  ;;  %v2208_v20 = vsel %vm1941_vm5, %v2205_v56, %v2207_v59  ;;  %v10907_v59 = vld [vmem:[%s12099_s21 + $0x58] sm:$0xff]   ;;  %v2515_v37 = vrot.slane %v2513_v22, 2 }
 0x1b3   : > { %2013 = vrot.lane.b32.xlu1 %v1978_v17, %s11677_s18 }
 0x1b4   : > { %v1153_v24 = vpop.permute.xlu0 %1152  ;;  %v2429_v26 = vrot.slane %v2427_v13, 3 }
 0x1b5   : > { %1193 = vst.msk [vmem:[#allocation2 + $0xe0] sm:$0xff] %vm16670_vm6, %v1153_v24  ;;  %v1155_v28 = vpop.permute.xlu1 %1154 }
 0x1b6   : > { %2219 = vrot.lane.b32.xlu0 %v2184_v21, %s11678_s15  ;;  %1194 = vst.msk [vmem:[#allocation2 + $0xf0] sm:$0xff] %vm16670_vm6, %v1155_v28  ;;  %v10897_v21 = vld [vmem:[%s12099_s21 + $0xa0] ss:$0 sps:$4 sm:$0x33]   ;;  %v2450_v28 = vshrl.u32 %v10901_v16, 16 }
 0x1b7   : > { %2221 = vrot.lane.b32.xlu1 %v2186_v25, %s11678_s15  ;;  %v2426_v25 = vrot.slane %v2424_v12, 2  ;;  %v2217_v40 = vrot.slane %v10897_v21, 2 }
 0x1b8   : > { %v1157_v32 = vpop.permute.xlu0 %1156 }
 0x1b9   : > { %1195 = vst.msk [vmem:[#allocation2 + $0x100] sm:$0xff] %vm16670_vm6, %v1157_v32  ;;  %v1159_v36 = vpop.permute.xlu1 %1158  ;;  %v10903_v32 = vld [vmem:[%s12099_s21 + $0x38] sm:$0xff]   ;;  %v2430_v48 = vor.u32 %v2429_v26, %v2426_v25  ;;  %v2218_v57 = vsel %vm1941_vm5, %v2215_v10, %v2217_v40  ;;  %v10912_v40 = vld [vmem:[%s12099_s21 + $0x80] sm:$0xff]  }
 0x1ba   : > { %2223 = vrot.lane.b32.xlu0 %v2188_v29, %s11678_s15  ;;  %1196 = vst.msk [vmem:[#allocation2 + $0x110] sm:$0xff] %vm16670_vm6, %v1159_v36  ;;  %v2453_v29 = vshll.u32 %v10901_v16, 16  ;;  %v2471_v47 = vshll.u32 %v10903_v32, 16 }
 0x1bb   : > { %2225 = vrot.lane.b32.xlu1 %v2190_v33, %s11678_s15  ;;  %v2212_v33 = vsel %vm1941_vm5, %v2209_v62, %v2211_v3  ;;  %v2495_v3 = vshrl.u32 %v10906_v51, 16 }
 0x1bc   : > { %v1365_v41 = vpop.permute.xlu0 %1364  ;;  %v2455_v42 = vrot.slane %v2453_v29, 3  ;;  %v2522_v29 = vshrl.u32 %v10909_v15, 16 }
 0x1bd   : > { %1419 = vst.msk [vmem:[#allocation2] sm:$0xff] %vm1418_vm7, %v1365_v41  ;;  %v1367_v46 = vpop.permute.xlu1 %1366  ;;  %v2452_v41 = vrot.slane %v2450_v28, 2 }
 0x1be   : > { %2227 = vrot.lane.b32.xlu0 %v2192_v38, %s11678_s15  ;;  %1420 = vst.msk [vmem:[#allocation2 + $0x10] sm:$0xff] %vm1418_vm7, %v1367_v46  ;;  %v10904_v38 = vld [vmem:[%s12099_s21 + $0x40] sm:$0xff]   ;;  %v2468_v46 = vshrl.u32 %v10903_v32, 16 }
 0x1bf   : > { %2229 = vrot.lane.b32.xlu1 %v2194_v43, %s11678_s15  ;;  %v10905_v43 = vld [vmem:[%s12099_s21 + $0x48] sm:$0xff]   ;;  %v2480_v56 = vshll.u32 %v10904_v38, 16 }
 0x1c0   : > { %v1369_v52 = vpop.permute.xlu0 %1368  ;;  %v2470_v62 = vrot.slane %v2468_v46, 2  ;;  %v2489_v1 = vshll.u32 %v10905_v43, 16 }
 0x1c1   : > { %1421 = vst.msk [vmem:[#allocation2 + $0x20] sm:$0xff] %vm1418_vm7, %v1369_v52  ;;  %v1371_v58 = vpop.permute.xlu1 %1370  ;;  %v2482_v9 = vrot.slane %v2480_v56, 3 }
 0x1c2   : > { %2231 = vrot.lane.b32.xlu0 %v2196_v49, %s11678_s15  ;;  %1422 = vst.msk [vmem:[#allocation2 + $0x30] sm:$0xff] %vm1418_vm7, %v1371_v58  ;;  %v2438_v49 = vor.u32 %v2437_v19, %v2434_v18  ;;  %v2486_v58 = vshrl.u32 %v10905_v43, 16  ;;  %v2500_v18 = vrot.slane %v2498_v4, 3  ;;  %v2507_v19 = vshll.u32 %v10907_v59, 16 }
 0x1c3   : > { %2233 = vrot.lane.b32.xlu1 %v2198_v55, %s11678_s15  ;;  %v2477_v55 = vshrl.u32 %v10904_v38, 16  ;;  %v2518_v38 = vrot.slane %v2516_v23, 3 }
 0x1c4   : > { %v1373_v0 = vpop.permute.xlu0 %1372  ;;  %v2488_v10 = vrot.slane %v2486_v58, 2 }
 0x1c5   : > { %1423 = vst.msk [vmem:[#allocation2 + $0x40] sm:$0xff] %vm1418_vm7, %v1373_v0  ;;  %v1375_v5 = vpop.permute.xlu1 %1374  ;;  %v2473_v0 = vrot.slane %v2471_v47, 3  ;;  %v10913_v47 = vld [vmem:[%s12099_s21 + $0x88] sm:$0xff]   ;;  %v2519_v56 = vor.u32 %v2518_v38, %v2515_v37 }
 0x1c6   : > { %2235 = vrot.lane.b32.xlu0 %v2200_v61, %s11678_s15  ;;  %1424 = vst.msk [vmem:[#allocation2 + $0x50] sm:$0xff] %vm1418_vm7, %v1375_v5  ;;  %v2456_v61 = vor.u32 %v2455_v42, %v2452_v41  ;;  %v2448_v5 = vsel %vm2422_vm8, %v2438_v49, %v2447_v50 }
 0x1c7   : > { %2237 = vrot.lane.b32.xlu1 %v2202_v2, %s11678_s15  ;;  %v2439_v2 = vsel %vm2422_vm8, %v2430_v48, %v2438_v49  ;;  %v2474_v16 = vor.u32 %v2473_v0, %v2470_v62  ;;  %v10914_v48 = vld [vmem:[%s12099_s21 + $0x90] sm:$0xff]   ;;  %v2558_v62 = vshrl.u32 %v10913_v47, 16  ;;  %v2561_v0 = vshll.u32 %v10913_v47, 16 }
 0x1c8   : > { %v1377_v11 = vpop.permute.xlu0 %1376  ;;  %v2457_v13 = vsel %vm2422_vm8, %v2447_v50, %v2456_v61  ;;  %v2570_v4 = vshll.u32 %v10914_v48, 16 }
 0x1c9   : > { %1425 = vst.msk [vmem:[#allocation2 + $0x60] sm:$0xff] %vm1418_vm7, %v1377_v11  ;;  %v1379_v17 = vpop.permute.xlu1 %1378  ;;  %v2504_v11 = vshrl.u32 %v10907_v59, 16  ;;  %v2475_v31 = vsel %vm2422_vm8, %v2465_v6, %v2474_v16  ;;  %v2552_v59 = vshll.u32 %v10912_v40, 16 }
 0x1ca   : > { %2239 = vrot.lane.b32.xlu0 %v2204_v8, %s11678_s15  ;;  %1426 = vst.msk [vmem:[#allocation2 + $0x70] sm:$0xff] %vm1418_vm7, %v1379_v17  ;;  %v2479_v8 = vrot.slane %v2477_v55, 2  ;;  %v2497_v17 = vrot.slane %v2495_v3, 2  ;;  %v2549_v55 = vshrl.u32 %v10912_v40, 16 }
 0x1cb   : > { %2241 = vrot.lane.b32.xlu1 %v2206_v14, %s11678_s15  ;;  %v2491_v14 = vrot.slane %v2489_v1, 3  ;;  %v2506_v26 = vrot.slane %v2504_v11, 2  ;;  %v2567_v1 = vshrl.u32 %v10914_v48, 16  ;;  %v10921_v48 = vld [vmem:[%s12099_s21 + $0x30] sm:$0xff]  }
 0x1cc   : > { %v1381_v24 = vpop.permute.xlu0 %1380  ;;  %v2483_v25 = vor.u32 %v2482_v9, %v2479_v8  ;;  %v2551_v8 = vrot.slane %v2549_v55, 2  ;;  %v2554_v9 = vrot.slane %v2552_v59, 3  ;;  %v2804_v59 = vrot.slane %v10921_v48, 3 }
 0x1cd   : > { %1427 = vst.msk [vmem:[#allocation2 + $0x80] sm:$0xff] %vm1418_vm7, %v1381_v24  ;;  %v1383_v30 = vpop.permute.xlu1 %1382  ;;  %v2466_v24 = vsel %vm2422_vm8, %v2456_v61, %v2465_v6  ;;  %v2492_v32 = vor.u32 %v2491_v14, %v2488_v10  ;;  %v2563_v14 = vrot.slane %v2561_v0, 3 }
 0x1ce   : > { %2243 = vrot.lane.b32.xlu0 %v2208_v20, %s11678_s15  ;;  %1428 = vst.msk [vmem:[#allocation2 + $0x90] sm:$0xff] %vm1418_vm7, %v1383_v30  ;;  %v10910_v20 = vld [vmem:[%s12099_s21 + $0x70] sm:$0xff]   ;;  %v2525_v30 = vshll.u32 %v10909_v15, 16  ;;  %v2484_v41 = vsel %vm2422_vm8, %v2474_v16, %v2483_v25  ;;  %v2569_v15 = vrot.slane %v2567_v1, 2  ;;  %v2572_v16 = vrot.slane %v2570_v4, 3 }
 0x1cf   : > { %2245 = vrot.lane.b32.xlu1 %v2210_v27, %s11678_s15  ;;  %v10911_v27 = vld [vmem:[%s12099_s21 + $0x78] sm:$0xff]   ;;  %v2531_v34 = vshrl.u32 %v10910_v20, 16  ;;  %v2493_v49 = vsel %vm2422_vm8, %v2483_v25, %v2492_v32  ;;  %v2555_v22 = vor.u32 %v2554_v9, %v2551_v8  ;;  %v10925_v1 = vld [vmem:[%s12099_s21 + $0x50] sm:$0xff]   ;;  %v10927_v8 = vld [vmem:[%s12099_s21 + $0x60] sm:$0xff]  }
 0x1d0   : > { %v1385_v36 = vpop.permute.xlu0 %1384  ;;  %v2540_v42 = vshrl.u32 %v10911_v27, 16  ;;  %v2543_v43 = vshll.u32 %v10911_v27, 16  ;;  %v2527_v46 = vrot.slane %v2525_v30, 3 }
 0x1d1   : > { %1429 = vst.msk [vmem:[#allocation2 + $0xa0] sm:$0xff] %vm1418_vm7, %v1385_v36  ;;  %v1387_v44 = vpop.permute.xlu1 %1386  ;;  %v2501_v36 = vor.u32 %v2500_v18, %v2497_v17  ;;  %v2533_v51 = vrot.slane %v2531_v34, 2 }
 0x1d2   : > { %2247 = vrot.lane.b32.xlu0 %v2212_v33, %s11678_s15  ;;  %1430 = vst.msk [vmem:[#allocation2 + $0xb0] sm:$0xff] %vm1418_vm7, %v1387_v44  ;;  %v2509_v33 = vrot.slane %v2507_v19, 3  ;;  %v2545_v58 = vrot.slane %v2543_v43, 3 }
 0x1d3   : > { %2249 = vrot.lane.b32.xlu1 %v2214_v39, %s11678_s15  ;;  %v2534_v39 = vshll.u32 %v10910_v20, 16  ;;  %v2502_v53 = vsel %vm2422_vm8, %v2492_v32, %v2501_v36 }
 0x1d4   : > { %v1389_v52 = vpop.permute.xlu0 %1388  ;;  %v2510_v50 = vor.u32 %v2509_v33, %v2506_v26  ;;  %v2573_v33 = vor.u32 %v2572_v16, %v2569_v15  ;;  %v10929_v16 = vld [vmem:[%s12099_s21 + $0x70] sm:$0xff]  }
 0x1d5   : > { %1431 = vst.msk [vmem:[#allocation2 + $0xc0] sm:$0xff] %vm1418_vm7, %v1389_v52  ;;  %v1391_v60 = vpop.permute.xlu1 %1390  ;;  %v2536_v54 = vrot.slane %v2534_v39, 3  ;;  %v10919_v39 = vld [vmem:[%s12099_s21 + $0x20] sm:$0xff]  }
 0x1d6   : > { %2251 = vrot.lane.b32.xlu0 %v2216_v45, %s11678_s15  ;;  %1432 = vst.msk [vmem:[#allocation2 + $0xd0] sm:$0xff] %vm1418_vm7, %v1391_v60  ;;  %v2524_v45 = vrot.slane %v2522_v29, 2  ;;  %v2511_v3 = vsel %vm2422_vm8, %v2501_v36, %v2510_v50  ;;  %v2520_v6 = vsel %vm2422_vm8, %v2510_v50, %v2519_v56  ;;  %v10917_v36 = vld [vmem:[%s12099_s21 + $0x10] sm:$0xf8]  }
 0x1d7   : > { %2253 = vrot.lane.b32.xlu1 %v2218_v57, %s11678_s15  ;;  %v2542_v57 = vrot.slane %v2540_v42, 2  ;;  %v2537_v7 = vor.u32 %v2536_v54, %v2533_v51  ;;  %v2797_v47 = vrot.slane %v10917_v36, 3  ;;  %v2800_v51 = vrot.slane %v10919_v39, 3  ;;  %v10934_v39 = vld [vmem:[%s12099_s21 + $0x98] sm:$0xff]  }
 0x1d8   : > { %v1393_v63 = vpop.permute.xlu0 %1392  ;;  %v2528_v61 = vor.u32 %v2527_v46, %v2524_v45  ;;  %v10920_v45 = vld [vmem:[%s12099_s21 + $0x28] sm:$0xff]  }
 0x1d9   : > { %1433 = vst.msk [vmem:[#allocation2 + $0xe0] sm:$0xff] %vm1418_vm7, %v1393_v63  ;;  %v1395_v12 = vpop.permute.xlu1 %1394  ;;  %v10916_v63 = vld [vmem:[%s12099_s21 + $0xa0] ss:$0 sps:$4 sm:$0x77]   ;;  %v2802_v55 = vrot.slane %v10920_v45, 3 }
 0x1da   : > { %2593 = vrot.lane.b32.xlu0 %v2439_v2, %s11679_s30  ;;  %1434 = vst.msk [vmem:[#allocation2 + $0xf0] sm:$0xff] %vm1418_vm7, %v1395_v12  ;;  %v10915_v2 = vld [vmem:[%s12099_s21 + $0x98] sm:$0xff]   ;;  %v2529_v11 = vsel %vm2422_vm8, %v2519_v56, %v2528_v61  ;;  %v2546_v12 = vor.u32 %v2545_v58, %v2542_v57  ;;  %v2585_v20 = vshrl.u32 %v10916_v63, 16  ;;  %v2588_v23 = vshll.u32 %v10916_v63, 16  ;;  %v10923_v56 = vld [vmem:[%s12099_s21 + $0x40] sm:$0xff]  }
 0x1db   : > { %2595 = vrot.lane.b32.xlu1 %v2448_v5, %s11679_s30  ;;  %v2576_v17 = vshrl.u32 %v10915_v2, 16  ;;  %v2579_v18 = vshll.u32 %v10915_v2, 16  ;;  %v2808_v4 = vrot.slane %v10923_v56, 3  ;;  %v10937_v56 = vld [vmem:[%s12107_s14 + $0x8] sm:$0xff]  }
 0x1dc   : > { %v1397_v21 = vpop.permute.xlu0 %1396  ;;  %v2547_v25 = vsel %vm2422_vm8, %v2537_v7, %v2546_v12  ;;  %v2587_v30 = vrot.slane %v2585_v20, 2  ;;  %v2556_v32 = vsel %vm2422_vm8, %v2546_v12, %v2555_v22  ;;  %v2590_v34 = vrot.slane %v2588_v23, 3  ;;  %v10930_v23 = vld [vmem:[%s12099_s21 + $0x78] sm:$0xff]  }
 0x1dd   : > { %1435 = vst.msk [vmem:[#allocation2 + $0x100] sm:$0xff] %vm1418_vm7, %v1397_v21  ;;  %v1399_v28 = vpop.permute.xlu1 %1398  ;;  %v2538_v21 = vsel %vm2422_vm8, %v2528_v61, %v2537_v7  ;;  %v2578_v27 = vrot.slane %v2576_v17, 2  ;;  %v10924_v61 = vld [vmem:[%s12099_s21 + $0x48] sm:$0xff]  }
 0x1de   : > { %2597 = vrot.lane.b32.xlu0 %v2457_v13, %s11679_s30  ;;  %1436 = vst.msk [vmem:[#allocation2 + $0x110] sm:$0xff] %vm1418_vm7, %v1399_v28  ;;  %v2560_v13 = vrot.slane %v2558_v62, 2  ;;  %v2581_v28 = vrot.slane %v2579_v18, 3  ;;  %v2591_v42 = vor.u32 %v2590_v34, %v2587_v30  ;;  %v2803_v62 = vsel %vm2796_vm10, %v2800_v51, %v2802_v55 }
 0x1df   : > { %2599 = vrot.lane.b32.xlu1 %v2466_v24, %s11679_s30  ;;  %v2810_v7 = vrot.slane %v10924_v61, 3 }
 0x1e0   : > { %v1739_v35 = vpop.permute.xlu0 %1738  ;;  %v2564_v26 = vor.u32 %v2563_v14, %v2560_v13  ;;  %v2582_v38 = vor.u32 %v2581_v28, %v2578_v27  ;;  %v10928_v13 = vld [vmem:[%s12099_s21 + $0x68] sm:$0xff]   ;;  %v2820_v27 = vrot.slane %v10929_v16, 3 }
 0x1e1   : > { %1793 = vst.msk [vmem:[#allocation2] sm:$0xff] %vm1792_vm9, %v1739_v35  ;;  %v1741_v44 = vpop.permute.xlu1 %1740  ;;  %v2811_v14 = vsel %vm2796_vm10, %v2808_v4, %v2810_v7 }
 0x1e2   : > { %2601 = vrot.lane.b32.xlu0 %v2475_v31, %s11679_s30  ;;  %1794 = vst.msk [vmem:[#allocation2 + $0x10] sm:$0xff] %vm1792_vm9, %v1741_v44  ;;  %v10918_v31 = vld [vmem:[%s12099_s21 + $0x18] sm:$0xff]   ;;  %v2565_v37 = vsel %vm2422_vm8, %v2555_v22, %v2564_v26  ;;  %v2583_v46 = vsel %vm2422_vm8, %v2573_v33, %v2582_v38  ;;  %v2592_v50 = vsel %vm2422_vm8, %v2582_v38, %v2591_v42  ;;  %v2818_v22 = vrot.slane %v10928_v13, 3 }
 0x1e3   : > { %2603 = vrot.lane.b32.xlu1 %v2484_v41, %s11679_s30  ;;  %v2574_v41 = vsel %vm2422_vm8, %v2564_v26, %v2573_v33  ;;  %v2798_v44 = vrot.slane %v10918_v31, 3  ;;  %v2822_v31 = vrot.slane %v10930_v23, 3  ;;  %v10957_v23 = vld [vmem:[%s12107_s14 + $0x18] sm:$0xff]  }
 0x1e4   : > { %v1743_v52 = vpop.permute.xlu0 %1742  ;;  %v2821_v34 = vsel %vm2796_vm10, %v2818_v22, %v2820_v27 }
 0x1e5   : > { %1795 = vst.msk [vmem:[#allocation2 + $0x20] sm:$0xff] %vm1792_vm9, %v1743_v52  ;;  %v1745_v60 = vpop.permute.xlu1 %1744  ;;  %v2799_v54 = vsel %vm2796_vm10, %v2797_v47, %v2798_v44  ;;  %v2801_v58 = vsel %vm2796_vm10, %v2798_v44, %v2800_v51 }
 0x1e6   : > { %2605 = vrot.lane.b32.xlu0 %v2493_v49, %s11679_s30  ;;  %1796 = vst.msk [vmem:[#allocation2 + $0x30] sm:$0xff] %vm1792_vm9, %v1745_v60 }
 0x1e7   : > { %2607 = vrot.lane.b32.xlu1 %v2502_v53, %s11679_s30  ;;  %v10922_v53 = vld [vmem:[%s12099_s21 + $0x38] sm:$0xff]  }
 0x1e8   : > { %v1747_v5 = vpop.permute.xlu0 %1746  ;;  %v2806_v0 = vrot.slane %v10922_v53, 3 }
 0x1e9   : > { %1797 = vst.msk [vmem:[#allocation2 + $0x40] sm:$0xff] %vm1792_vm9, %v1747_v5  ;;  %v1749_v10 = vpop.permute.xlu1 %1748  ;;  %v10926_v5 = vld [vmem:[%s12099_s21 + $0x58] sm:$0xff]  }
 0x1ea   : > { %2609 = vrot.lane.b32.xlu0 %v2511_v3, %s11679_s30  ;;  %1798 = vst.msk [vmem:[#allocation2 + $0x50] sm:$0xff] %vm1792_vm9, %v1749_v10  ;;  %v2805_v3 = vsel %vm2796_vm10, %v2802_v55, %v2804_v59  ;;  %v2809_v10 = vsel %vm2796_vm10, %v2806_v0, %v2808_v4  ;;  %v2814_v15 = vrot.slane %v10926_v5, 3  ;;  %v10936_v55 = vld [vmem:[%s12107_s14] sm:$0xff]   ;;  %v10942_v4 = vld [vmem:[%s12107_s14 + $0x30] sm:$0xff]   ;;  %v10943_v5 = vld [vmem:[%s12107_s14 + $0x38] sm:$0xff]  }
 0x1eb   : > { %2611 = vrot.lane.b32.xlu1 %v2520_v6, %s11679_s30  ;;  %v2807_v6 = vsel %vm2796_vm10, %v2804_v59, %v2806_v0  ;;  %v10938_v59 = vld [vmem:[%s12107_s14 + $0x10] sm:$0xff]   ;;  %v10940_v0 = vld [vmem:[%s12107_s14 + $0x20] sm:$0xff]  }
 0x1ec   : > { %v1751_v19 = vpop.permute.xlu0 %1750 }
 0x1ed   : > { %1799 = vst.msk [vmem:[#allocation2 + $0x60] sm:$0xff] %vm1792_vm9, %v1751_v19  ;;  %v1753_v24 = vpop.permute.xlu1 %1752  ;;  %v2816_v19 = vrot.slane %v10927_v8, 3 }
 0x1ee   : > { %2613 = vrot.lane.b32.xlu0 %v2529_v11, %s11679_s30  ;;  %1800 = vst.msk [vmem:[#allocation2 + $0x70] sm:$0xff] %vm1792_vm9, %v1753_v24  ;;  %v2812_v11 = vrot.slane %v10925_v1, 3  ;;  %v10941_v1 = vld [vmem:[%s12107_s14 + $0x28] sm:$0xff]  }
 0x1ef   : > { %2615 = vrot.lane.b32.xlu1 %v2538_v21, %s11679_s30  ;;  %v2817_v26 = vsel %vm2796_vm10, %v2814_v15, %v2816_v19  ;;  %v2819_v30 = vsel %vm2796_vm10, %v2816_v19, %v2818_v22 }
 0x1f0   : > { %v1755_v29 = vpop.permute.xlu0 %1754  ;;  %v2813_v18 = vsel %vm2796_vm10, %v2810_v7, %v2812_v11  ;;  %v2815_v21 = vsel %vm2796_vm10, %v2812_v11, %v2814_v15  ;;  %v10944_v7 = vld [vmem:[%s12107_s14 + $0x40] sm:$0xff]   ;;  %v10946_v11 = vld [vmem:[%s12107_s14 + $0x50] sm:$0xff]   ;;  %v10955_v15 = vld [vmem:[%s12107_s14 + $0x8] sm:$0xff]  }
 0x1f1   : > { %1801 = vst.msk [vmem:[#allocation2 + $0x80] sm:$0xff] %vm1792_vm9, %v1755_v29  ;;  %v1757_v35 = vpop.permute.xlu1 %1756  ;;  %v10932_v29 = vld [vmem:[%s12099_s21 + $0x88] sm:$0xff]   ;;  %v3244_v22 = vshll.u32 %v10955_v15, 16 }
 0x1f2   : > { %2617 = vrot.lane.b32.xlu0 %v2547_v25, %s11679_s30  ;;  %1802 = vst.msk [vmem:[#allocation2 + $0x90] sm:$0xff] %vm1792_vm9, %v1757_v35  ;;  %v10931_v25 = vld [vmem:[%s12099_s21 + $0x80] sm:$0xff]   ;;  %v2826_v38 = vrot.slane %v10932_v29, 3 }
 0x1f3   : > { %2619 = vrot.lane.b32.xlu1 %v2556_v32, %s11679_s30  ;;  %v10933_v32 = vld [vmem:[%s12099_s21 + $0x90] sm:$0xff]   ;;  %v2824_v35 = vrot.slane %v10931_v25, 3  ;;  %v10950_v25 = vld [vmem:[%s12107_s14 + $0x70] sm:$0xff]  }
 0x1f4   : > { %v1759_v40 = vpop.permute.xlu0 %1758 }
 0x1f5   : > { %1803 = vst.msk [vmem:[#allocation2 + $0xa0] sm:$0xff] %vm1792_vm9, %v1759_v40  ;;  %v1761_v43 = vpop.permute.xlu1 %1760  ;;  %v10935_v40 = vld [vmem:[%s12099_s21 + $0xa0] ss:$0 sps:$4 sm:$0x77]   ;;  %v2825_v42 = vsel %vm2796_vm10, %v2822_v31, %v2824_v35  ;;  %v2827_v45 = vsel %vm2796_vm10, %v2824_v35, %v2826_v38  ;;  %s11681_s21 = smov 72   ;;  %v3260_v35 = vshll.u32 %v10957_v23, 16 }
 0x1f6   : > { %2621 = vrot.lane.b32.xlu0 %v2565_v37, %s11679_s30  ;;  %1804 = vst.msk [vmem:[#allocation2 + $0xb0] sm:$0xff] %vm1792_vm9, %v1761_v43  ;;  %v2823_v37 = vsel %vm2796_vm10, %v2820_v27, %v2822_v31  ;;  %v2828_v43 = vrot.slane %v10933_v32, 3  ;;  %v10958_v27 = vld [vmem:[%s12107_s14 + $0x20] sm:$0xff]   ;;  %v3248_v32 = vshrl.u32 %v10955_v15, 16 }
 0x1f7   : > { %2623 = vrot.lane.b32.xlu1 %v2574_v41, %s11679_s30 }
 0x1f8   : > { %v1763_v49 = vpop.permute.xlu0 %1762  ;;  %v2829_v48 = vsel %vm2796_vm10, %v2826_v38, %v2828_v43 }
 0x1f9   : > { %1805 = vst.msk [vmem:[#allocation2 + $0xc0] sm:$0xff] %vm1792_vm9, %v1763_v49  ;;  %v1765_v52 = vpop.permute.xlu1 %1764  ;;  %v2832_v49 = vrot.slane %v10935_v40, 3  ;;  %v3268_v40 = vshll.u32 %v10958_v27, 16 }
 0x1fa   : > { %2625 = vrot.lane.b32.xlu0 %v2583_v46, %s11679_s30  ;;  %1806 = vst.msk [vmem:[#allocation2 + $0xd0] sm:$0xff] %vm1792_vm9, %v1765_v52  ;;  %v2830_v46 = vrot.slane %v10934_v39, 3 }
 0x1fb   : > { %2627 = vrot.lane.b32.xlu1 %v2592_v50, %s11679_s30 }
 0x1fc   : > { %v1767_v57 = vpop.permute.xlu0 %1766  ;;  %v2831_v51 = vsel %vm2796_vm10, %v2828_v43, %v2830_v46  ;;  %v2833_v53 = vsel %vm2796_vm10, %v2830_v46, %v2832_v49  ;;  %v10960_v43 = vld [vmem:[%s12107_s14 + $0x30] sm:$0xff]   ;;  %v10961_v49 = vld [vmem:[%s12107_s14 + $0x38] sm:$0xff]  }
 0x1fd   : > { %1807 = vst.msk [vmem:[#allocation2 + $0xe0] sm:$0xff] %vm1792_vm9, %v1767_v57  ;;  %v1769_v60 = vpop.permute.xlu1 %1768 }
 0x1fe   : > { %2834 = vrot.lane.b32.xlu0 %v2799_v54, %s11680_s2  ;;  %1808 = vst.msk [vmem:[#allocation2 + $0xf0] sm:$0xff] %vm1792_vm9, %v1769_v60  ;;  %v10939_v60 = vld [vmem:[%s12107_s14 + $0x18] sm:$0xff]  }
 0x1ff   : > { %2836 = vrot.lane.b32.xlu1 %v2801_v58, %s11680_s2 }
 0x200   : > { %v1771_v2 = vpop.permute.xlu0 %1770 }
 0x201   : > { %1809 = vst.msk [vmem:[#allocation2 + $0x100] sm:$0xff] %vm1792_vm9, %v1771_v2  ;;  %v1773_v63 = vpop.permute.xlu1 %1772 }
 0x202   : > { %2838 = vrot.lane.b32.xlu0 %v2803_v62, %s11680_s2  ;;  %1810 = vst.msk [vmem:[#allocation2 + $0x110] sm:$0xff] %vm1792_vm9, %v1773_v63 }
 0x203   : > { %2840 = vrot.lane.b32.xlu1 %v2805_v3, %s11680_s2 }
 0x204   : > { %v1980_v9 = vpop.permute.xlu0 %1979 }
 0x205   : > { %2034 = vst.msk [vmem:[#allocation2] sm:$0xff] %vm2033_vm11, %v1980_v9  ;;  %v1982_v12 = vpop.permute.xlu1 %1981  ;;  %v10945_v9 = vld [vmem:[%s12107_s14 + $0x48] sm:$0xff]  }
 0x206   : > { %2842 = vrot.lane.b32.xlu0 %v2807_v6, %s11680_s2  ;;  %2035 = vst.msk [vmem:[#allocation2 + $0x10] sm:$0xff] %vm2033_vm11, %v1982_v12  ;;  %v10954_v12 = vld [vmem:[%s12107_s14] sm:$0xff]  }
 0x207   : > { %2844 = vrot.lane.b32.xlu1 %v2809_v10, %s11680_s2  ;;  %v3239_v19 = vshll.u32 %v10954_v12, 16  ;;  %v3237_v29 = vshrl.u32 %v10954_v12, 16 }
 0x208   : > { %v1984_v17 = vpop.permute.xlu0 %1983 }
 0x209   : > { %2036 = vst.msk [vmem:[#allocation2 + $0x20] sm:$0xff] %vm2033_vm11, %v1984_v17  ;;  %v1986_v20 = vpop.permute.xlu1 %1985  ;;  %v10948_v17 = vld [vmem:[%s12107_s14 + $0x60] sm:$0xff]  }
 0x20a   : > { %2846 = vrot.lane.b32.xlu0 %v2811_v14, %s11680_s2  ;;  %2037 = vst.msk [vmem:[#allocation2 + $0x30] sm:$0xff] %vm2033_vm11, %v1986_v20  ;;  %v10947_v14 = vld [vmem:[%s12107_s14 + $0x58] sm:$0xff]  }
 0x20b   : > { %2848 = vrot.lane.b32.xlu1 %v2813_v18, %s11680_s2  ;;  %v10956_v18 = vld [vmem:[%s12107_s14 + $0x10] sm:$0xff]  }
 0x20c   : > { %v1988_v24 = vpop.permute.xlu0 %1987  ;;  %v3256_v39 = vshrl.u32 %v10956_v18, 16 }
 0x20d   : > { %2038 = vst.msk [vmem:[#allocation2 + $0x40] sm:$0xff] %vm2033_vm11, %v1988_v24  ;;  %v1990_v28 = vpop.permute.xlu1 %1989 }
 0x20e   : > { %2850 = vrot.lane.b32.xlu0 %v2815_v21, %s11680_s2  ;;  %2039 = vst.msk [vmem:[#allocation2 + $0x50] sm:$0xff] %vm2033_vm11, %v1990_v28  ;;  %v10949_v21 = vld [vmem:[%s12107_s14 + $0x68] sm:$0xff]   ;;  %v10951_v28 = vld [vmem:[%s12107_s14 + $0x78] sm:$0xff]  }
 0x20f   : > { %2852 = vrot.lane.b32.xlu1 %v2817_v26, %s11680_s2  ;;  %v3252_v26 = vshll.u32 %v10956_v18, 16 }
 0x210   : > { %v1992_v33 = vpop.permute.xlu0 %1991 }
 0x211   : > { %2040 = vst.msk [vmem:[#allocation2 + $0x60] sm:$0xff] %vm2033_vm11, %v1992_v33  ;;  %v1994_v36 = vpop.permute.xlu1 %1993  ;;  %v10959_v33 = vld [vmem:[%s12107_s14 + $0x28] sm:$0xff]   ;;  %v3254_v38 = vrot.slane %v3252_v26, 1 }
 0x212   : > { %2854 = vrot.lane.b32.xlu0 %v2819_v30, %s11680_s2  ;;  %2041 = vst.msk [vmem:[#allocation2 + $0x70] sm:$0xff] %vm2033_vm11, %v1994_v36  ;;  %v3241_v30 = vrot.slane %v3239_v19, 1  ;;  %v3276_v46 = vshll.u32 %v10959_v33, 16  ;;  %v10966_v19 = vld [vmem:[%s12107_s14 + $0x60] sm:$0xff]  }
 0x213   : > { %2856 = vrot.lane.b32.xlu1 %v2821_v34, %s11680_s2  ;;  %v3246_v34 = vrot.slane %v3244_v22, 1 }
 0x214   : > { %v1996_v41 = vpop.permute.xlu0 %1995 }
 0x215   : > { %2042 = vst.msk [vmem:[#allocation2 + $0x80] sm:$0xff] %vm2033_vm11, %v1996_v41  ;;  %v1998_v44 = vpop.permute.xlu1 %1997  ;;  %v10953_v41 = vld [vmem:[%s12107_s14 + $0x88] sm:$0xff]  }
 0x216   : > { %2858 = vrot.lane.b32.xlu0 %v2823_v37, %s11680_s2  ;;  %2043 = vst.msk [vmem:[#allocation2 + $0x90] sm:$0xff] %vm2033_vm11, %v1998_v44  ;;  %v10952_v37 = vld [vmem:[%s12107_s14 + $0x80] sm:$0xff]  }
 0x217   : > { %2860 = vrot.lane.b32.xlu1 %v2825_v42, %s11680_s2  ;;  %v3242_v42 = vor.u32 %v3241_v30, %v3237_v29 }
 0x218   : > { %v2000_v47 = vpop.permute.xlu0 %1999 }
 0x219   : > { %2044 = vst.msk [vmem:[#allocation2 + $0xa0] sm:$0xff] %vm2033_vm11, %v2000_v47  ;;  %v2002_v50 = vpop.permute.xlu1 %2001  ;;  %v3250_v47 = vor.u32 %v3248_v32, %v3246_v34 }
 0x21a   : > { %2862 = vrot.lane.b32.xlu0 %v2827_v45, %s11680_s2  ;;  %2045 = vst.msk [vmem:[#allocation2 + $0xb0] sm:$0xff] %vm2033_vm11, %v2002_v50  ;;  %v3264_v45 = vshrl.u32 %v10957_v23, 16 }
 0x21b   : > { %2864 = vrot.lane.b32.xlu1 %v2829_v48, %s11680_s2  ;;  %v3262_v48 = vrot.slane %v3260_v35, 1 }
 0x21c   : > { %v2004_v52 = vpop.permute.xlu0 %2003 }
 0x21d   : > { %2046 = vst.msk [vmem:[#allocation2 + $0xc0] sm:$0xff] %vm2033_vm11, %v2004_v52  ;;  %v2006_v54 = vpop.permute.xlu1 %2005  ;;  %v3270_v52 = vrot.slane %v3268_v40, 1 }
 0x21e   : > { %2866 = vrot.lane.b32.xlu0 %v2831_v51, %s11680_s2  ;;  %2047 = vst.msk [vmem:[#allocation2 + $0xd0] sm:$0xff] %vm2033_vm11, %v2006_v54  ;;  %v3258_v51 = vor.u32 %v3256_v39, %v3254_v38  ;;  %v3247_v54 = vsel %vm16658_vm0, %v3242_v42, %v3246_v34  ;;  %v10968_v34 = vld [vmem:[%s12107_s14 + $0x70] sm:$0xff]  }
 0x21f   : > { %2868 = vrot.lane.b32.xlu1 %v2833_v53, %s11680_s2  ;;  %v3272_v53 = vshrl.u32 %v10958_v27, 16 }
 0x220   : > { %v2008_v57 = vpop.permute.xlu0 %2007 }
 0x221   : > { %2048 = vst.msk [vmem:[#allocation2 + $0xe0] sm:$0xff] %vm2033_vm11, %v2008_v57  ;;  %v2010_v58 = vpop.permute.xlu1 %2009  ;;  %v10962_v57 = vld [vmem:[%s12107_s14 + $0x40] sm:$0xff]  }
 0x222   : > { %3033 = vrot.lane.b32.xlu0 %v10936_v55, %s11681_s21  ;;  %2049 = vst.msk [vmem:[#allocation2 + $0xf0] sm:$0xff] %vm2033_vm11, %v2010_v58  ;;  %v3280_v55 = vshrl.u32 %v10959_v33, 16  ;;  %v12784_v58 = vld [vmem:[%s12107_s14 + $0x48] sm:$0xff]   ;;  %v3304_v18 = vshrl.u32 %v10962_v57, 16  ;;  %v3332_v33 = vshll.u32 %v10966_v19, 16 }
 0x223   : > { %3035 = vrot.lane.b32.xlu1 %v10937_v56, %s11681_s21  ;;  %v3284_v56 = vshll.u32 %v10960_v43, 16  ;;  %v3312_v23 = vshrl.u32 %v12784_v58, 16 }
 0x224   : > { %v2012_v61 = vpop.permute.xlu0 %2011 }
 0x225   : > { %2050 = vst.msk [vmem:[#allocation2 + $0x100] sm:$0xff] %vm2033_vm11, %v2012_v61  ;;  %v2014_v62 = vpop.permute.xlu1 %2013  ;;  %v12788_v61 = vld [vmem:[%s12107_s14 + $0x50] sm:$0xff]  }
 0x226   : > { %3037 = vrot.lane.b32.xlu0 %v10938_v59, %s11681_s21  ;;  %2051 = vst.msk [vmem:[#allocation2 + $0x110] sm:$0xff] %vm2033_vm11, %v2014_v62  ;;  %v3255_v62 = vsel %vm16658_vm0, %v3250_v47, %v3254_v38  ;;  %v3320_v27 = vshrl.u32 %v12788_v61, 16  ;;  %v10969_v38 = vld [vmem:[%s12107_s14 + $0x78] sm:$0xff]   ;;  %v3348_v47 = vshll.u32 %v10968_v34, 16 }
 0x227   : > { %3039 = vrot.lane.b32.xlu1 %v10939_v60, %s11681_s21  ;;  %v3278_v60 = vrot.slane %v3276_v46, 1 }
 0x228   : > { %v2220_v2 = vpop.permute.xlu0 %2219 }
 0x229   : > { %2274 = vst.msk [vmem:[#allocation2] sm:$0xff] %vm16662_vm12, %v2220_v2  ;;  %v2222_v3 = vpop.permute.xlu1 %2221  ;;  %v12793_v2 = vld [vmem:[%s12107_s14 + $0x58] sm:$0xff]  }
 0x22a   : > { %3041 = vrot.lane.b32.xlu0 %v10940_v0, %s11681_s21  ;;  %2275 = vst.msk [vmem:[#allocation2 + $0x10] sm:$0xff] %vm16662_vm12, %v2222_v3  ;;  %v3266_v0 = vor.u32 %v3264_v45, %v3262_v48  ;;  %v3324_v15 = vshll.u32 %v12793_v2, 16 }
 0x22b   : > { %3043 = vrot.lane.b32.xlu1 %v10941_v1, %s11681_s21  ;;  %v3292_v1 = vshll.u32 %v10961_v49, 16 }
 0x22c   : > { %v2224_v63 = vpop.permute.xlu0 %2223  ;;  %v3271_v12 = vsel %vm16658_vm0, %v3266_v0, %v3270_v52  ;;  %v3326_v30 = vrot.slane %v3324_v15, 1 }
 0x22d   : > { %2276 = vst.msk [vmem:[#allocation2 + $0x20] sm:$0xff] %vm16662_vm12, %v2224_v63  ;;  %v2226_v6 = vpop.permute.xlu1 %2225  ;;  %v3274_v63 = vor.u32 %v3272_v53, %v3270_v52 }
 0x22e   : > { %3045 = vrot.lane.b32.xlu0 %v10942_v4, %s11681_s21  ;;  %2277 = vst.msk [vmem:[#allocation2 + $0x30] sm:$0xff] %vm16662_vm12, %v2226_v6  ;;  %v3263_v4 = vsel %vm16658_vm0, %v3258_v51, %v3262_v48  ;;  %v3288_v6 = vshrl.u32 %v10960_v43, 16  ;;  %v3334_v43 = vrot.slane %v3332_v33, 1  ;;  %v10970_v48 = vld [vmem:[%s12107_s14 + $0x80] sm:$0xff]  }
 0x22f   : > { %3047 = vrot.lane.b32.xlu1 %v10943_v5, %s11681_s21  ;;  %v3286_v5 = vrot.slane %v3284_v56, 1 }
 0x230   : > { %v2228_v8 = vpop.permute.xlu0 %2227 }
 0x231   : > { %2278 = vst.msk [vmem:[#allocation2 + $0x40] sm:$0xff] %vm16662_vm12, %v2228_v8  ;;  %v2230_v10 = vpop.permute.xlu1 %2229  ;;  %v3308_v8 = vshll.u32 %v12784_v58, 16 }
 0x232   : > { %3049 = vrot.lane.b32.xlu0 %v10944_v7, %s11681_s21  ;;  %2279 = vst.msk [vmem:[#allocation2 + $0x50] sm:$0xff] %vm16662_vm12, %v2230_v10  ;;  %v3300_v7 = vshll.u32 %v10962_v57, 16  ;;  %v3296_v10 = vshrl.u32 %v10961_v49, 16  ;;  %v3352_v57 = vshrl.u32 %v10968_v34, 16  ;;  %v10977_v34 = vld [vmem:[%s12107_s14 + $0x20] sm:$0xff]  }
 0x233   : > { %3051 = vrot.lane.b32.xlu1 %v10945_v9, %s11681_s21  ;;  %v3310_v22 = vrot.slane %v3308_v8, 1 }
 0x234   : > { %v2232_v13 = vpop.permute.xlu0 %2231 }
 0x235   : > { %2280 = vst.msk [vmem:[#allocation2 + $0x60] sm:$0xff] %vm16662_vm12, %v2232_v13  ;;  %v2234_v16 = vpop.permute.xlu1 %2233  ;;  %v3282_v13 = vor.u32 %v3280_v55, %v3278_v60  ;;  %v10971_v55 = vld [vmem:[%s12107_s14 + $0x88] sm:$0xff]  }
 0x236   : > { %3053 = vrot.lane.b32.xlu0 %v10946_v11, %s11681_s21  ;;  %2281 = vst.msk [vmem:[#allocation2 + $0x70] sm:$0xff] %vm16662_vm12, %v2234_v16  ;;  %v3316_v11 = vshll.u32 %v12788_v61, 16  ;;  %v3364_v61 = vshll.u32 %v10970_v48, 16 }
 0x237   : > { %3055 = vrot.lane.b32.xlu1 %v10947_v14, %s11681_s21  ;;  %v3294_v14 = vrot.slane %v3292_v1, 1  ;;  %v3360_v1 = vshrl.u32 %v10969_v38, 16 }
 0x238   : > { %v2236_v20 = vpop.permute.xlu0 %2235  ;;  %v3318_v26 = vrot.slane %v3316_v11, 1  ;;  %v3366_v8 = vrot.slane %v3364_v61, 1  ;;  %v3376_v11 = vshrl.u32 %v10971_v55, 16 }
 0x239   : > { %2282 = vst.msk [vmem:[#allocation2 + $0x80] sm:$0xff] %vm16662_vm12, %v2236_v20  ;;  %v2238_v24 = vpop.permute.xlu1 %2237  ;;  %v3290_v20 = vor.u32 %v3288_v6, %v3286_v5  ;;  %v3298_v29 = vor.u32 %v3296_v10, %v3294_v14 }
 0x23a   : > { %3057 = vrot.lane.b32.xlu0 %v10948_v17, %s11681_s21  ;;  %2283 = vst.msk [vmem:[#allocation2 + $0x90] sm:$0xff] %vm16662_vm12, %v2238_v24  ;;  %v3279_v17 = vsel %vm16658_vm0, %v3274_v63, %v3278_v60  ;;  %v10967_v24 = vld [vmem:[%s12107_s14 + $0x68] sm:$0xff]   ;;  %v3322_v46 = vor.u32 %v3320_v27, %v3318_v26  ;;  %v3350_v60 = vrot.slane %v3348_v47, 1  ;;  %v3372_v63 = vshll.u32 %v10971_v55, 16 }
 0x23b   : > { %3059 = vrot.lane.b32.xlu1 %v10949_v21, %s11681_s21  ;;  %v3302_v21 = vrot.slane %v3300_v7, 1  ;;  %v3295_v35 = vsel %vm16658_vm0, %v3290_v20, %v3294_v14  ;;  %v3344_v51 = vshrl.u32 %v10967_v24, 16  ;;  %v10973_v20 = vld [vmem:[%s12107_s14] sm:$0xfe]  }
 0x23c   : > { %v2240_v31 = vpop.permute.xlu0 %2239  ;;  %v3327_v58 = vsel %vm16658_vm0, %v3322_v46, %v3326_v30  ;;  %v3354_v7 = vor.u32 %v3352_v57, %v3350_v60  ;;  %v3374_v14 = vrot.slane %v3372_v63, 1  ;;  %v10980_v46 = vld [vmem:[%s12107_s14 + $0x38] sm:$0xff]  }
 0x23d   : > { %2284 = vst.msk [vmem:[#allocation2 + $0xa0] sm:$0xff] %vm16662_vm12, %v2240_v31  ;;  %v2242_v36 = vpop.permute.xlu1 %2241  ;;  %v3328_v31 = vshrl.u32 %v12793_v2, 16  ;;  %v3303_v40 = vsel %vm16658_vm0, %v3298_v29, %v3302_v21 }
 0x23e   : > { %3061 = vrot.lane.b32.xlu0 %v10950_v25, %s11681_s21  ;;  %2285 = vst.msk [vmem:[#allocation2 + $0xb0] sm:$0xff] %vm16662_vm12, %v2242_v36  ;;  %v3306_v36 = vor.u32 %v3304_v18, %v3302_v21 }
 0x23f   : > { %3063 = vrot.lane.b32.xlu1 %v10951_v28, %s11681_s21  ;;  %v3287_v28 = vsel %vm16658_vm0, %v3282_v13, %v3286_v5  ;;  %v3330_v53 = vor.u32 %v3328_v31, %v3326_v30  ;;  %v10976_v30 = vld [vmem:[%s12107_s14 + $0x18] sm:$0xff]  }
 0x240   : > { %v2244_v44 = vpop.permute.xlu0 %2243  ;;  %v3311_v45 = vsel %vm16658_vm0, %v3306_v36, %v3310_v22 }
 0x241   : > { %2286 = vst.msk [vmem:[#allocation2 + $0xc0] sm:$0xff] %vm16662_vm12, %v2244_v44  ;;  %v2246_v50 = vpop.permute.xlu1 %2245  ;;  %v3336_v44 = vshrl.u32 %v10966_v19, 16  ;;  %v3335_v2 = vsel %vm16658_vm0, %v3330_v53, %v3334_v43  ;;  %v3600_v53 = vrot.slane %v10980_v46, 1  ;;  %v10997_v46 = vld [vmem:[%s12107_s14 + $0x30] sm:$0xff]  }
 0x242   : > { %3065 = vrot.lane.b32.xlu0 %v10952_v37, %s11681_s21  ;;  %2287 = vst.msk [vmem:[#allocation2 + $0xd0] sm:$0xff] %vm16662_vm12, %v2246_v50  ;;  %v3340_v37 = vshll.u32 %v10967_v24, 16 }
 0x243   : > { %3067 = vrot.lane.b32.xlu1 %v10953_v41, %s11681_s21  ;;  %v3314_v41 = vor.u32 %v3312_v23, %v3310_v22  ;;  %v3378_v23 = vor.u32 %v3376_v11, %v3374_v14 }
 0x244   : > { %v2248_v59 = vpop.permute.xlu0 %2247  ;;  %v3342_v50 = vrot.slane %v3340_v37, 1  ;;  %v3592_v37 = vrot.slane %v10976_v30, 1 }
 0x245   : > { %2288 = vst.msk [vmem:[#allocation2 + $0xe0] sm:$0xff] %vm16662_vm12, %v2248_v59  ;;  %v2250_v3 = vpop.permute.xlu1 %2249  ;;  %v3319_v52 = vsel %vm16658_vm0, %v3314_v41, %v3318_v26  ;;  %v3338_v59 = vor.u32 %v3336_v44, %v3334_v43  ;;  %v3594_v41 = vrot.slane %v10977_v34, 1  ;;  %v10994_v34 = vld [vmem:[%s12107_s14 + $0x18] sm:$0xff]  }
 0x246   : > { %3384 = vrot.lane.b32.xlu0 %v3247_v54, %s11682_s4  ;;  %2289 = vst.msk [vmem:[#allocation2 + $0xf0] sm:$0xff] %vm16662_vm12, %v2250_v3  ;;  %v3356_v54 = vshll.u32 %v10969_v38, 16  ;;  %v3346_v3 = vor.u32 %v3344_v51, %v3342_v50  ;;  %v10978_v38 = vld [vmem:[%s12107_s14 + $0x28] sm:$0xff]  }
 0x247   : > { %3386 = vrot.lane.b32.xlu1 %v3255_v62, %s11682_s4  ;;  %v10972_v62 = vld [vmem:[%s12107_s14 + $0x90] ss:$0 sps:$4 sm:$0x11]   ;;  %v3343_v6 = vsel %vm16658_vm0, %v3338_v59, %v3342_v50  ;;  %v10981_v50 = vld [vmem:[%s12107_s14 + $0x40] sm:$0xff]  }
 0x248   : > { %v2252_v9 = vpop.permute.xlu0 %2251  ;;  %v3380_v15 = vshll.u32 %v10972_v62, 16  ;;  %v3602_v57 = vrot.slane %v10981_v50, 1 }
 0x249   : > { %2290 = vst.msk [vmem:[#allocation2 + $0x100] sm:$0xff] %vm16662_vm12, %v2252_v9  ;;  %v2254_v16 = vpop.permute.xlu1 %2253  ;;  %v3368_v9 = vshrl.u32 %v10970_v48, 16  ;;  %v3595_v48 = vsel %vm16672_vm1, %v3592_v37, %v3594_v41 }
 0x24a   : > { %3388 = vrot.lane.b32.xlu0 %v3263_v4, %s11682_s4  ;;  %2291 = vst.msk [vmem:[#allocation2 + $0x110] sm:$0xff] %vm16662_vm12, %v2254_v16  ;;  %v3358_v4 = vrot.slane %v3356_v54, 1  ;;  %v3382_v24 = vrot.slane %v3380_v15, 1  ;;  %v10982_v54 = vld [vmem:[%s12107_s14 + $0x48] sm:$0xff]  }
 0x24b   : > { %3390 = vrot.lane.b32.xlu1 %v3271_v12, %s11682_s4  ;;  %v3351_v12 = vsel %vm16658_vm0, %v3346_v3, %v3350_v60  ;;  %v3370_v19 = vor.u32 %v3368_v9, %v3366_v8  ;;  %v10984_v60 = vld [vmem:[%s12107_s14 + $0x58] sm:$0xff]   ;;  %v3604_v62 = vrot.slane %v10982_v54, 1  ;;  %v11000_v54 = vld [vmem:[%s12107_s14 + $0x48] sm:$0xff]  }
 0x24c   : > { %v2594_v25 = vpop.permute.xlu0 %2593  ;;  %v3362_v13 = vor.u32 %v3360_v1, %v3358_v4  ;;  %v3359_v18 = vsel %vm16658_vm0, %v3354_v7, %v3358_v4  ;;  %v3608_v63 = vrot.slane %v10984_v60, 1 }
 0x24d   : > { %2648 = vst.msk [vmem:[#allocation2] sm:$0xff] %vm16643_vm13, %v2594_v25  ;;  %v2596_v32 = vpop.permute.xlu1 %2595  ;;  %v10975_v25 = vld [vmem:[%s12107_s14 + $0x10] sm:$0xff]   ;;  %v3375_v27 = vsel %vm16658_vm0, %v3370_v19, %v3374_v14 }
 0x24e   : > { %3392 = vrot.lane.b32.xlu0 %v3279_v17, %s11682_s4  ;;  %2649 = vst.msk [vmem:[#allocation2 + $0x10] sm:$0xff] %vm16643_vm13, %v2596_v32  ;;  %v10974_v17 = vld [vmem:[%s12107_s14 + $0x8] sm:$0xff]   ;;  %v3367_v22 = vsel %vm16658_vm0, %v3362_v13, %v3366_v8  ;;  %v3383_v32 = vsel %vm16658_vm0, %v3378_v23, %v3382_v24  ;;  %v3590_v33 = vrot.slane %v10975_v25, 1  ;;  %v10987_v8 = vld [vmem:[%s12107_s14 + $0x70] sm:$0xff]  }
 0x24f   : > { %3394 = vrot.lane.b32.xlu1 %v3287_v28, %s11682_s4  ;;  %v3587_v28 = vrot.slane %v10973_v20, 1  ;;  %v3588_v29 = vrot.slane %v10974_v17, 1  ;;  %v3614_v17 = vrot.slane %v10987_v8, 1  ;;  %v10991_v23 = vld [vmem:[%s12107_s14 + $0x90] ss:$0 sps:$4 sm:$0x11]  }
 0x250   : > { %v2598_v39 = vpop.permute.xlu0 %2597  ;;  %v3593_v44 = vsel %vm16672_vm1, %v3590_v33, %v3592_v37 }
 0x251   : > { %2650 = vst.msk [vmem:[#allocation2 + $0x20] sm:$0xff] %vm16643_vm13, %v2598_v39  ;;  %v2600_v42 = vpop.permute.xlu1 %2599  ;;  %v3589_v36 = vsel %vm16672_vm1, %v3587_v28, %v3588_v29  ;;  %v10992_v28 = vld [vmem:[%s12107_s14 + $0x8] sm:$0xfe]  }
 0x252   : > { %3396 = vrot.lane.b32.xlu0 %v3295_v35, %s11682_s4  ;;  %2651 = vst.msk [vmem:[#allocation2 + $0x30] sm:$0xff] %vm16643_vm13, %v2600_v42  ;;  %v10979_v42 = vld [vmem:[%s12107_s14 + $0x30] sm:$0xff]  }
 0x253   : > { %3398 = vrot.lane.b32.xlu1 %v3303_v40, %s11682_s4  ;;  %v3591_v40 = vsel %vm16672_vm1, %v3588_v29, %v3590_v33  ;;  %v3622_v33 = vrot.slane %v10991_v23, 1  ;;  %v12991_v23 = vld [vmem:[%s12107_s14 + $0x90] sm:$0xff]  }
 0x254   : > { %v2602_v49 = vpop.permute.xlu0 %2601 }
 0x255   : > { %2652 = vst.msk [vmem:[#allocation2 + $0x40] sm:$0xff] %vm16643_vm13, %v2602_v49  ;;  %v2604_v56 = vpop.permute.xlu1 %2603  ;;  %v3598_v49 = vrot.slane %v10979_v42, 1  ;;  %v10996_v42 = vld [vmem:[%s12107_s14 + $0x28] sm:$0xff]  }
 0x256   : > { %3400 = vrot.lane.b32.xlu0 %v3311_v45, %s11682_s4  ;;  %2653 = vst.msk [vmem:[#allocation2 + $0x50] sm:$0xff] %vm16643_vm13, %v2604_v56  ;;  %v3596_v45 = vrot.slane %v10978_v38, 1  ;;  %v3827_v38 = vrot.slane %v10992_v28, 1 }
 0x257   : > { %3402 = vrot.lane.b32.xlu1 %v3319_v52, %s11682_s4  ;;  %v3601_v61 = vsel %vm16672_vm1, %v3598_v49, %v3600_v53 }
 0x258   : > { %v2606_v0 = vpop.permute.xlu0 %2605  ;;  %v3597_v52 = vsel %vm16672_vm1, %v3594_v41, %v3596_v45  ;;  %v3599_v56 = vsel %vm16672_vm1, %v3596_v45, %v3598_v49  ;;  %v10998_v49 = vld [vmem:[%s12107_s14 + $0x38] sm:$0xff]  }
 0x259   : > { %2654 = vst.msk [vmem:[#allocation2 + $0x60] sm:$0xff] %vm16643_vm13, %v2606_v0  ;;  %v2608_v5 = vpop.permute.xlu1 %2607  ;;  %v10985_v0 = vld [vmem:[%s12107_s14 + $0x60] sm:$0xff]  }
 0x25a   : > { %3404 = vrot.lane.b32.xlu0 %v3327_v58, %s11682_s4  ;;  %2655 = vst.msk [vmem:[#allocation2 + $0x70] sm:$0xff] %vm16643_vm13, %v2608_v5  ;;  %v10983_v58 = vld [vmem:[%s12107_s14 + $0x50] sm:$0xff]   ;;  %v10986_v5 = vld [vmem:[%s12107_s14 + $0x68] sm:$0xff]   ;;  %v3610_v7 = vrot.slane %v10985_v0, 1  ;;  %v12955_v0 = vld [vmem:[%s12107_s14 + $0x60] sm:$0xff]  }
 0x25b   : > { %3406 = vrot.lane.b32.xlu1 %v3335_v2, %s11682_s4  ;;  %v3603_v2 = vsel %vm16672_vm1, %v3600_v53, %v3602_v57  ;;  %v3606_v3 = vrot.slane %v10983_v58, 1  ;;  %v3612_v14 = vrot.slane %v10986_v5, 1  ;;  %v3836_v58 = vrot.slane %v10997_v46, 1 }
 0x25c   : > { %v2610_v10 = vpop.permute.xlu0 %2609  ;;  %v3842_v5 = vrot.slane %v11000_v54, 1 }
 0x25d   : > { %2656 = vst.msk [vmem:[#allocation2 + $0x80] sm:$0xff] %vm16643_vm13, %v2610_v10  ;;  %v2612_v16 = vpop.permute.xlu1 %2611  ;;  %v3607_v10 = vsel %vm16672_vm1, %v3604_v62, %v3606_v3  ;;  %v3609_v13 = vsel %vm16672_vm1, %v3606_v3, %v3608_v63  ;;  %v3615_v25 = vsel %vm16672_vm1, %v3612_v14, %v3614_v17 }
 0x25e   : > { %3408 = vrot.lane.b32.xlu0 %v3343_v6, %s11682_s4  ;;  %2657 = vst.msk [vmem:[#allocation2 + $0x90] sm:$0xff] %vm16643_vm13, %v2612_v16  ;;  %v3605_v6 = vsel %vm16672_vm1, %v3602_v57, %v3604_v62  ;;  %v3611_v16 = vsel %vm16672_vm1, %v3608_v63, %v3610_v7  ;;  %v3838_v62 = vrot.slane %v10998_v49, 1 }
 0x25f   : > { %3410 = vrot.lane.b32.xlu1 %v3351_v12, %s11682_s4  ;;  %v10988_v12 = vld [vmem:[%s12107_s14 + $0x78] sm:$0xff]  }
 0x260   : > { %v2614_v21 = vpop.permute.xlu0 %2613  ;;  %v3616_v20 = vrot.slane %v10988_v12, 1 }
 0x261   : > { %2658 = vst.msk [vmem:[#allocation2 + $0xa0] sm:$0xff] %vm16643_vm13, %v2614_v21  ;;  %v2616_v26 = vpop.permute.xlu1 %2615  ;;  %v3613_v21 = vsel %vm16672_vm1, %v3610_v7, %v3612_v14 }
 0x262   : > { %3412 = vrot.lane.b32.xlu0 %v3359_v18, %s11682_s4  ;;  %2659 = vst.msk [vmem:[#allocation2 + $0xb0] sm:$0xff] %vm16643_vm13, %v2616_v26  ;;  %v10989_v18 = vld [vmem:[%s12107_s14 + $0x80] sm:$0xff]   ;;  %v3617_v29 = vsel %vm16672_vm1, %v3614_v17, %v3616_v20 }
 0x263   : > { %3414 = vrot.lane.b32.xlu1 %v3367_v22, %s11682_s4  ;;  %v10990_v22 = vld [vmem:[%s12107_s14 + $0x88] sm:$0xff]   ;;  %v3618_v26 = vrot.slane %v10989_v18, 1 }
 0x264   : > { %v2618_v31 = vpop.permute.xlu0 %2617  ;;  %v3620_v30 = vrot.slane %v10990_v22, 1  ;;  %v12988_v22 = vld [vmem:[%s12107_s14 + $0x88] sm:$0xff]  }
 0x265   : > { %2660 = vst.msk [vmem:[#allocation2 + $0xc0] sm:$0xff] %vm16643_vm13, %v2618_v31  ;;  %v2620_v35 = vpop.permute.xlu1 %2619  ;;  %v10993_v31 = vld [vmem:[%s12107_s14 + $0x10] sm:$0xff]  }
 0x266   : > { %3416 = vrot.lane.b32.xlu0 %v3375_v27, %s11682_s4  ;;  %2661 = vst.msk [vmem:[#allocation2 + $0xd0] sm:$0xff] %vm16643_vm13, %v2620_v35  ;;  %v3619_v35 = vsel %vm16672_vm1, %v3616_v20, %v3618_v26  ;;  %v3621_v37 = vsel %vm16672_vm1, %v3618_v26, %v3620_v30  ;;  %v11013_v20 = vld [vmem:[%s12107_s14 + $0x18] sm:$0xff]  }
 0x267   : > { %3418 = vrot.lane.b32.xlu1 %v3383_v32, %s11682_s4 }
 0x268   : > { %v2622_v39 = vpop.permute.xlu0 %2621 }
 0x269   : > { %2662 = vst.msk [vmem:[#allocation2 + $0xe0] sm:$0xff] %vm16643_vm13, %v2622_v39  ;;  %v2624_v43 = vpop.permute.xlu1 %2623  ;;  %v3828_v39 = vrot.slane %v10993_v31, 1 }
 0x26a   : > { %3624 = vrot.lane.b32.xlu0 %v3589_v36, %s11683_s17  ;;  %2663 = vst.msk [vmem:[#allocation2 + $0xf0] sm:$0xff] %vm16643_vm13, %v2624_v43  ;;  %v3623_v43 = vsel %vm16672_vm1, %v3620_v30, %v3622_v33  ;;  %v4088_v33 = vshll.u32 %v11013_v20, 16 }
 0x26b   : > { %3626 = vrot.lane.b32.xlu1 %v3591_v40, %s11683_s17  ;;  %v10995_v40 = vld [vmem:[%s12107_s14 + $0x20] sm:$0xff]  }
 0x26c   : > { %v2626_v47 = vpop.permute.xlu0 %2625  ;;  %v4090_v49 = vrot.slane %v4088_v33, 2  ;;  %v11022_v33 = vld [vmem:[%s12107_s14 + $0x60] sm:$0xff]  }
 0x26d   : > { %2664 = vst.msk [vmem:[#allocation2 + $0x100] sm:$0xff] %vm16643_vm13, %v2626_v47  ;;  %v2628_v51 = vpop.permute.xlu1 %2627  ;;  %v3829_v47 = vsel %vm16672_vm1, %v3827_v38, %v3828_v39 }
 0x26e   : > { %3628 = vrot.lane.b32.xlu0 %v3593_v44, %s11683_s17  ;;  %2665 = vst.msk [vmem:[#allocation2 + $0x110] sm:$0xff] %vm16643_vm13, %v2628_v51  ;;  %v3830_v44 = vrot.slane %v10994_v34, 1  ;;  %v3834_v51 = vrot.slane %v10996_v42, 1  ;;  %vm422_vm13 = vcmask 1048256  }
 0x26f   : > { %3630 = vrot.lane.b32.xlu1 %v3595_v48, %s11683_s17  ;;  %v3832_v48 = vrot.slane %v10995_v40, 1  ;;  %v3860_v40 = vrot.slane %v12991_v23, 1 }
 0x270   : > { %v2835_v55 = vpop.permute.xlu0 %2834  ;;  %v3831_v53 = vsel %vm16672_vm1, %v3828_v39, %v3830_v44  ;;  %v3837_v63 = vsel %vm16672_vm1, %v3834_v51, %v3836_v58  ;;  %v3858_v39 = vrot.slane %v12988_v22, 1 }
 0x271   : > { %2889 = vst.msk [vmem:[#allocation2] sm:$0xff] %vm16641_vm14, %v2835_v55  ;;  %v2837_v59 = vpop.permute.xlu1 %2836  ;;  %v3833_v57 = vsel %vm16672_vm1, %v3830_v44, %v3832_v48 }
 0x272   : > { %3632 = vrot.lane.b32.xlu0 %v3597_v52, %s11683_s17  ;;  %2890 = vst.msk [vmem:[#allocation2 + $0x10] sm:$0xff] %vm16641_vm14, %v2837_v59  ;;  %v10999_v52 = vld [vmem:[%s12107_s14 + $0x40] sm:$0xff]   ;;  %v12949_v59 = vld [vmem:[%s12107_s14 + $0x58] sm:$0xff]  }
 0x273   : > { %3634 = vrot.lane.b32.xlu1 %v3599_v56, %s11683_s17  ;;  %v11001_v56 = vld [vmem:[%s12107_s14 + $0x50] sm:$0xff]   ;;  %v3840_v3 = vrot.slane %v10999_v52, 1 }
 0x274   : > { %v2839_v1 = vpop.permute.xlu0 %2838  ;;  %v3844_v8 = vrot.slane %v11001_v56, 1  ;;  %v11017_v56 = vld [vmem:[%s12107_s14 + $0x38] sm:$0xff]  }
 0x275   : > { %2891 = vst.msk [vmem:[#allocation2 + $0x20] sm:$0xff] %vm16641_vm14, %v2839_v1  ;;  %v2841_v4 = vpop.permute.xlu1 %2840  ;;  %v12958_v1 = vld [vmem:[%s12107_s14 + $0x68] sm:$0xff]   ;;  %v3841_v17 = vsel %vm16672_vm1, %v3838_v62, %v3840_v3 }
 0x276   : > { %3636 = vrot.lane.b32.xlu0 %v3601_v61, %s11683_s17  ;;  %2892 = vst.msk [vmem:[#allocation2 + $0x30] sm:$0xff] %vm16641_vm14, %v2841_v4  ;;  %v3835_v61 = vsel %vm16672_vm1, %v3832_v48, %v3834_v51  ;;  %v12962_v4 = vld [vmem:[%s12107_s14 + $0x70] sm:$0xff]   ;;  %v3850_v14 = vrot.slane %v12958_v1, 1  ;;  %v3845_v31 = vsel %vm16672_vm1, %v3842_v5, %v3844_v8 }
 0x277   : > { %3638 = vrot.lane.b32.xlu1 %v3603_v2, %s11683_s17 }
 0x278   : > { %v2843_v9 = vpop.permute.xlu0 %2842 }
 0x279   : > { %2893 = vst.msk [vmem:[#allocation2 + $0x40] sm:$0xff] %vm16641_vm14, %v2843_v9  ;;  %v2845_v11 = vpop.permute.xlu1 %2844  ;;  %v3846_v9 = vrot.slane %v12949_v59, 1 }
 0x27a   : > { %3640 = vrot.lane.b32.xlu0 %v3605_v6, %s11683_s17  ;;  %2894 = vst.msk [vmem:[#allocation2 + $0x50] sm:$0xff] %vm16641_vm14, %v2845_v11  ;;  %v12967_v6 = vld [vmem:[%s12107_s14 + $0x78] sm:$0xff]   ;;  %v11011_v11 = vld [vmem:[%s12107_s14 + $0x8] sm:$0xfe]  }
 0x27b   : > { %3642 = vrot.lane.b32.xlu1 %v3607_v10, %s11683_s17  ;;  %v3839_v10 = vsel %vm16672_vm1, %v3836_v58, %v3838_v62  ;;  %v3854_v18 = vrot.slane %v12967_v6, 1  ;;  %v4068_v26 = vshrl.u32 %v11011_v11, 16  ;;  %v3861_v6 = vsel %vm16672_vm1, %v3858_v39, %v3860_v40 }
 0x27c   : > { %v2847_v15 = vpop.permute.xlu0 %2846 }
 0x27d   : > { %2895 = vst.msk [vmem:[#allocation2 + $0x60] sm:$0xff] %vm16641_vm14, %v2847_v15  ;;  %v2849_v19 = vpop.permute.xlu1 %2848  ;;  %v3852_v15 = vrot.slane %v12962_v4, 1  ;;  %v13010_v42 = vrot.slane %v4068_v26, 1 }
 0x27e   : > { %3644 = vrot.lane.b32.xlu0 %v3609_v13, %s11683_s17  ;;  %2896 = vst.msk [vmem:[#allocation2 + $0x70] sm:$0xff] %vm16641_vm14, %v2849_v19  ;;  %v3848_v13 = vrot.slane %v12955_v0, 1  ;;  %v12983_v19 = vld [vmem:[%s12107_s14 + $0x80] sm:$0xff]  }
 0x27f   : > { %3646 = vrot.lane.b32.xlu1 %v3611_v16, %s11683_s17  ;;  %v11012_v16 = vld [vmem:[%s12107_s14 + $0x10] sm:$0xff]  }
 0x280   : > { %v2851_v24 = vpop.permute.xlu0 %2850  ;;  %v4079_v30 = vshll.u32 %v11012_v16, 16  ;;  %v3851_v51 = vsel %vm16672_vm1, %v3848_v13, %v3850_v14 }
 0x281   : > { %2897 = vst.msk [vmem:[#allocation2 + $0x80] sm:$0xff] %vm16641_vm14, %v2851_v24  ;;  %v2853_v27 = vpop.permute.xlu1 %2852  ;;  %v12994_v24 = vld [vmem:[%s12107_s14 + $0x98] ss:$0 sps:$4 sm:$0x11]  }
 0x282   : > { %3648 = vrot.lane.b32.xlu0 %v3613_v21, %s11683_s17  ;;  %2898 = vst.msk [vmem:[#allocation2 + $0x90] sm:$0xff] %vm16641_vm14, %v2853_v27  ;;  %v4071_v27 = vshll.u32 %v11011_v11, 16  ;;  %v11019_v11 = vld [vmem:[%s12107_s14 + $0x48] sm:$0xff]  }
 0x283   : > { %3650 = vrot.lane.b32.xlu1 %v3615_v25, %s11683_s17  ;;  %v3843_v25 = vsel %vm16672_vm1, %v3840_v3, %v3842_v5 }
 0x284   : > { %v2855_v32 = vpop.permute.xlu0 %2854  ;;  %v13014_v44 = vrot.slane %v4071_v27, 2 }
 0x285   : > { %2899 = vst.msk [vmem:[#allocation2 + $0xa0] sm:$0xff] %vm16641_vm14, %v2855_v32  ;;  %v2857_v36 = vpop.permute.xlu1 %2856  ;;  %v4085_v32 = vshrl.u32 %v11013_v20, 16  ;;  %v11021_v20 = vld [vmem:[%s12107_s14 + $0x58] sm:$0xff]  }
 0x286   : > { %3652 = vrot.lane.b32.xlu0 %v3617_v29, %s11683_s17  ;;  %2900 = vst.msk [vmem:[#allocation2 + $0xb0] sm:$0xff] %vm16641_vm14, %v2857_v36  ;;  %v4076_v29 = vshrl.u32 %v11012_v16, 16  ;;  %v3856_v36 = vrot.slane %v12983_v19, 1 }
 0x287   : > { %3654 = vrot.lane.b32.xlu1 %v3619_v35, %s11683_s17  ;;  %v3847_v35 = vsel %vm16672_vm1, %v3844_v8, %v3846_v9  ;;  %v4087_v48 = vrot.slane %v4085_v32, 1  ;;  %v4124_v8 = vshll.u32 %v11017_v56, 16 }
 0x288   : > { %v2859_v41 = vpop.permute.xlu0 %2858  ;;  %v3857_v3 = vsel %vm16672_vm1, %v3854_v18, %v3856_v36 }
 0x289   : > { %2901 = vst.msk [vmem:[#allocation2 + $0xc0] sm:$0xff] %vm16641_vm14, %v2859_v41  ;;  %v2861_v45 = vpop.permute.xlu1 %2860  ;;  %v3862_v41 = vrot.slane %v12994_v24, 1  ;;  %v4091_v23 = vor.u32 %v4090_v49, %v4087_v48 }
 0x28a   : > { %3656 = vrot.lane.b32.xlu0 %v3621_v37, %s11683_s17  ;;  %2902 = vst.msk [vmem:[#allocation2 + $0xd0] sm:$0xff] %vm16641_vm14, %v2861_v45  ;;  %v11014_v37 = vld [vmem:[%s12107_s14 + $0x20] sm:$0xff]   ;;  %v4078_v45 = vrot.slane %v4076_v29, 1  ;;  %v4142_v29 = vshll.u32 %v11019_v11, 16 }
 0x28b   : > { %3658 = vrot.lane.b32.xlu1 %v3623_v43, %s11683_s17  ;;  %v3849_v43 = vsel %vm16672_vm1, %v3846_v9, %v3848_v13  ;;  %v4094_v52 = vshrl.u32 %v11014_v37, 16  ;;  %v3859_v9 = vsel %vm16672_vm1, %v3856_v36, %v3858_v39  ;;  %v4074_v13 = vor.u32 %v13014_v44, %v13010_v42 }
 0x28c   : > { %v2863_v50 = vpop.permute.xlu0 %2862  ;;  %v3863_v22 = vsel %vm16672_vm1, %v3860_v40, %v3862_v41  ;;  %v4157_v36 = vshrl.u32 %v11021_v20, 16  ;;  %v4160_v39 = vshll.u32 %v11021_v20, 16  ;;  %v11023_v40 = vld [vmem:[%s12107_s14 + $0x68] sm:$0xff]   ;;  %v4166_v44 = vshrl.u32 %v11022_v33, 16 }
 0x28d   : > { %2903 = vst.msk [vmem:[#allocation2 + $0xe0] sm:$0xff] %vm16641_vm14, %v2863_v50  ;;  %v2865_v55 = vpop.permute.xlu1 %2864  ;;  %v11015_v50 = vld [vmem:[%s12107_s14 + $0x28] sm:$0xff]   ;;  %v4096_v0 = vrot.slane %v4094_v52, 1  ;;  %v4144_v49 = vrot.slane %v4142_v29, 2 }
 0x28e   : > { %3864 = vrot.lane.b32.xlu0 %v3829_v47, %s11684_s16  ;;  %2904 = vst.msk [vmem:[#allocation2 + $0xf0] sm:$0xff] %vm16641_vm14, %v2865_v55  ;;  %v4081_v47 = vrot.slane %v4079_v30, 2  ;;  %v4097_v55 = vshll.u32 %v11014_v37, 16  ;;  %v4103_v59 = vshrl.u32 %v11015_v50, 16 }
 0x28f   : > { %3866 = vrot.lane.b32.xlu1 %v3831_v53, %s11684_s16  ;;  %v11016_v53 = vld [vmem:[%s12107_s14 + $0x30] sm:$0xff]  }
 0x290   : > { %v2867_v60 = vpop.permute.xlu0 %2866  ;;  %v4099_v1 = vrot.slane %v4097_v55, 2  ;;  %v4112_v4 = vshrl.u32 %v11016_v53, 16  ;;  %v4082_v16 = vor.u32 %v4081_v47, %v4078_v45  ;;  %v4169_v45 = vshll.u32 %v11022_v33, 16 }
 0x291   : > { %2905 = vst.msk [vmem:[#allocation2 + $0x100] sm:$0xff] %vm16641_vm14, %v2867_v60  ;;  %v2869_v2 = vpop.permute.xlu1 %2868  ;;  %v13027_v60 = vld [vmem:[%s12107_s14 + $0x40] sm:$0xff]  }
 0x292   : > { %3868 = vrot.lane.b32.xlu0 %v3833_v57, %s11684_s16  ;;  %2906 = vst.msk [vmem:[#allocation2 + $0x110] sm:$0xff] %vm16641_vm14, %v2869_v2  ;;  %v3853_v57 = vsel %vm16672_vm1, %v3850_v14, %v3852_v15  ;;  %v4106_v2 = vshll.u32 %v11015_v50, 16  ;;  %v4105_v14 = vrot.slane %v4103_v59, 1  ;;  %v4133_v27 = vshll.u32 %v13027_v60, 16  ;;  %v11024_v50 = vld [vmem:[%s12107_s14 + $0x70] sm:$0xff]  }
 0x293   : > { %3870 = vrot.lane.b32.xlu1 %v3835_v61, %s11684_s16  ;;  %v3855_v61 = vsel %vm16672_vm1, %v3852_v15, %v3854_v18  ;;  %v11020_v15 = vld [vmem:[%s12107_s14 + $0x50] sm:$0xff]   ;;  %v4114_v18 = vrot.slane %v4112_v4, 1  ;;  %vm3438_vm14 = vcmask 720512   ;;  %v4092_v41 = vsel %vm16669_vm3, %v4082_v16, %v4091_v23 }
 0x294   : > { %v3034_v7 = vpop.permute.xlu0 %3033  ;;  %v4148_v32 = vshrl.u32 %v11020_v15, 16  ;;  %v4135_v47 = vrot.slane %v4133_v27, 2  ;;  %v4178_v59 = vshll.u32 %v11023_v40, 16  ;;  %v11099_v27 = vld [vmem:[#allocation9 + $0x10] ss:$8 sps:$4 sm:$0xff]  }
 0x295   : > { %3088 = vst.msk [vmem:[#allocation2] sm:$0xff] %vm16642_vm15, %v3034_v7  ;;  %v3036_v12 = vpop.permute.xlu1 %3035  ;;  %v4121_v7 = vshrl.u32 %v11017_v56, 16  ;;  %v4159_v56 = vrot.slane %v4157_v36, 1 }
 0x296   : > { %3872 = vrot.lane.b32.xlu0 %v3837_v63, %s11684_s16  ;;  %3089 = vst.msk [vmem:[#allocation2 + $0x10] sm:$0xff] %vm16642_vm15, %v3036_v12  ;;  %v4115_v63 = vshll.u32 %v11016_v53, 16 }
 0x297   : > { %3874 = vrot.lane.b32.xlu1 %v3839_v10, %s11684_s16  ;;  %v4130_v10 = vshrl.u32 %v13027_v60, 16  ;;  %v4123_v24 = vrot.slane %v4121_v7, 1  ;;  %v11026_v7 = vld [vmem:[%s12107_s14 + $0x80] sm:$0xff]  }
 0x298   : > { %v3038_v21 = vpop.permute.xlu0 %3037  ;;  %v4117_v19 = vrot.slane %v4115_v63, 2  ;;  %v4205_v29 = vshll.u32 %v11026_v7, 16 }
 0x299   : > { %3090 = vst.msk [vmem:[#allocation2 + $0x20] sm:$0xff] %vm16642_vm15, %v3038_v21  ;;  %v3040_v28 = vpop.permute.xlu1 %3039  ;;  %v4132_v26 = vrot.slane %v4130_v10, 1 }
 0x29a   : > { %3876 = vrot.lane.b32.xlu0 %v3841_v17, %s11684_s16  ;;  %3091 = vst.msk [vmem:[#allocation2 + $0x30] sm:$0xff] %vm16642_vm15, %v3040_v28  ;;  %v4108_v17 = vrot.slane %v4106_v2, 2  ;;  %v4139_v28 = vshrl.u32 %v11019_v11, 16  ;;  %v4184_v2 = vshrl.u32 %v11024_v50, 16  ;;  %v11094_v11 = vld [vmem:[#allocation9] ss:$8 sps:$4 sm:$0xff]  }
 0x29b   : > { %3878 = vrot.lane.b32.xlu1 %v3843_v25, %s11684_s16  ;;  %v4126_v25 = vrot.slane %v4124_v8, 2 }
 0x29c   : > { %v3042_v34 = vpop.permute.xlu0 %3041  ;;  %v4141_v48 = vrot.slane %v4139_v28, 1 }
 0x29d   : > { %3092 = vst.msk [vmem:[#allocation2 + $0x40] sm:$0xff] %vm16642_vm15, %v3042_v34  ;;  %v3044_v38 = vpop.permute.xlu1 %3043  ;;  %v4083_v34 = vsel %vm16669_vm3, %v4074_v13, %v4082_v16  ;;  %v4127_v53 = vor.u32 %v4126_v25, %v4123_v24 }
 0x29e   : > { %3880 = vrot.lane.b32.xlu0 %v3845_v31, %s11684_s16  ;;  %3093 = vst.msk [vmem:[#allocation2 + $0x50] sm:$0xff] %vm16642_vm15, %v3044_v38  ;;  %v4100_v31 = vor.u32 %v4099_v1, %v4096_v0  ;;  %v4109_v38 = vor.u32 %v4108_v17, %v4105_v14  ;;  %v4136_v1 = vor.u32 %v4135_v47, %v4132_v26  ;;  %v11027_v14 = vld [vmem:[%s12107_s14 + $0x88] sm:$0xff]   ;;  %v4202_v26 = vshrl.u32 %v11026_v7, 16 }
 0x29f   : > { %3882 = vrot.lane.b32.xlu1 %v3847_v35, %s11684_s16  ;;  %v4151_v35 = vshll.u32 %v11020_v15, 16  ;;  %v4145_v63 = vor.u32 %v4144_v49, %v4141_v48  ;;  %v4211_v33 = vshrl.u32 %v11027_v14, 16  ;;  %v11115_v7 = vld [vmem:[#allocation9 + $0x40] ss:$8 sps:$4 sm:$0xff]  }
 0x2a0   : > { %v3046_v46 = vpop.permute.xlu0 %3045  ;;  %v4110_v52 = vsel %vm16669_vm3, %v4100_v31, %v4109_v38 }
 0x2a1   : > { %3094 = vst.msk [vmem:[#allocation2 + $0x60] sm:$0xff] %vm16642_vm15, %v3046_v46  ;;  %v3048_v54 = vpop.permute.xlu1 %3047  ;;  %v4118_v46 = vor.u32 %v4117_v19, %v4114_v18  ;;  %v4153_v55 = vrot.slane %v4151_v35, 2  ;;  %v4146_v16 = vsel %vm16669_vm3, %v4136_v1, %v4145_v63  ;;  %v4180_v18 = vrot.slane %v4178_v59, 2 }
 0x2a2   : > { %3884 = vrot.lane.b32.xlu0 %v3849_v43, %s11684_s16  ;;  %3095 = vst.msk [vmem:[#allocation2 + $0x70] sm:$0xff] %vm16642_vm15, %v3048_v54  ;;  %v4101_v43 = vsel %vm16669_vm3, %v4091_v23, %v4100_v31  ;;  %v4150_v54 = vrot.slane %v4148_v32, 1  ;;  %v4186_v19 = vrot.slane %v4184_v2, 1  ;;  %v11029_v31 = vld [vmem:[%s12107_s14 + $0x98] ss:$0 sps:$4 sm:$0x33]  }
 0x2a3   : > { %3886 = vrot.lane.b32.xlu1 %v3851_v51, %s11684_s16  ;;  %v4119_v0 = vsel %vm16669_vm3, %v4109_v38, %v4118_v46  ;;  %v4128_v8 = vsel %vm16669_vm3, %v4118_v46, %v4127_v53  ;;  %v4213_v49 = vrot.slane %v4211_v33, 1  ;;  %v11135_v33 = vld [vmem:[%s12107_s14 + $0x18] sm:$0xff]  }
 0x2a4   : > { %v3050_v58 = vpop.permute.xlu0 %3049 }
 0x2a5   : > { %3096 = vst.msk [vmem:[#allocation2 + $0x80] sm:$0xff] %vm16642_vm15, %v3050_v58  ;;  %v3052_v62 = vpop.permute.xlu1 %3051  ;;  %v4175_v58 = vshrl.u32 %v11023_v40, 16 }
 0x2a6   : > { %3888 = vrot.lane.b32.xlu0 %v3853_v57, %s11684_s16  ;;  %3097 = vst.msk [vmem:[#allocation2 + $0x90] sm:$0xff] %vm16642_vm15, %v3052_v62  ;;  %v4162_v57 = vrot.slane %v4160_v39, 2  ;;  %v4171_v62 = vrot.slane %v4169_v45, 2  ;;  %v11101_v39 = vld [vmem:[#allocation9 + $0x24] ss:$8 sps:$4 sm:$0xff]   ;;  %v4207_v45 = vrot.slane %v4205_v29, 2 }
 0x2a7   : > { %3890 = vrot.lane.b32.xlu1 %v3855_v61, %s11684_s16  ;;  %v4168_v61 = vrot.slane %v4166_v44, 1  ;;  %v4177_v13 = vrot.slane %v4175_v58, 1  ;;  %v4204_v44 = vrot.slane %v4202_v26, 1  ;;  %v11123_v26 = vld [vmem:[#allocation9 + $0x64] ss:$8 sps:$4 sm:$0xff]  }
 0x2a8   : > { %v3054_v5 = vpop.permute.xlu0 %3053  ;;  %v4163_v17 = vor.u32 %v4162_v57, %v4159_v56  ;;  %v11109_v57 = vld [vmem:[#allocation9 + $0x30] ss:$8 sps:$4 sm:$0xff]  }
 0x2a9   : > { %3098 = vst.msk [vmem:[#allocation2 + $0xa0] sm:$0xff] %vm16642_vm15, %v3054_v5  ;;  %v3056_v12 = vpop.permute.xlu1 %3055  ;;  %v4187_v5 = vshll.u32 %v11024_v50, 16  ;;  %v4172_v24 = vor.u32 %v4171_v62, %v4168_v61  ;;  %v4181_v36 = vor.u32 %v4180_v18, %v4177_v13  ;;  %v4208_v59 = vor.u32 %v4207_v45, %v4204_v44  ;;  %v11120_v18 = vld [vmem:[#allocation9 + $0x50] ss:$8 sps:$4 sm:$0xff]  }
 0x2aa   : > { %3892 = vrot.lane.b32.xlu0 %v3857_v3, %s11684_s16  ;;  %3099 = vst.msk [vmem:[#allocation2 + $0xb0] sm:$0xff] %vm16642_vm15, %v3056_v12  ;;  %v11025_v3 = vld [vmem:[%s12107_s14 + $0x78] sm:$0xff]   ;;  %v4137_v12 = vsel %vm16669_vm3, %v4127_v53, %v4136_v1  ;;  %v4229_v53 = vshrl.u32 %v11029_v31, 16  ;;  %v13151_v44 = vld [vmem:[%s12107_s14 + $0x50] sm:$0xff]  }
 0x2ab   : > { %3894 = vrot.lane.b32.xlu1 %v3859_v9, %s11684_s16  ;;  %v11091_v9 = vld [vmem:[#allocation9 + $0x4] ss:$8 sps:$4 sm:$0xff]   ;;  %v4193_v20 = vshrl.u32 %v11025_v3, 16  ;;  %v4189_v25 = vrot.slane %v4187_v5, 2 }
 0x2ac   : > { %v3058_v21 = vpop.permute.xlu0 %3057  ;;  %8092 = vmatprep.subr.bf16.mxu0 %v11091_v9  ;;  %10468 = vmatprep.subr.bf16.mxu1 %v11091_v9  ;;  %v4231_v2 = vrot.slane %v4229_v53, 1  ;;  %v11030_v5 = vld [vmem:[%s12107_s14 + $0x8] sm:$0xfc]   ;;  %v13154_v45 = vld [vmem:[%s12107_s14 + $0x18] sm:$0xff]   ;;  %v13165_v53 = vld [vmem:[%s12114_s7 + $0x8] sm:$0xff]  }
 0x2ad   : > { %3100 = vst.msk [vmem:[#allocation2 + $0xc0] sm:$0xff] %vm16642_vm15, %v3058_v21  ;;  %v3060_v30 = vpop.permute.xlu1 %3059  ;;  %8093 = vmatpush1.bf16.msra.mxu0 %v11094_v11  ;;  %v4196_v21 = vshll.u32 %v11025_v3, 16  ;;  %10484 = vmatpush1.bf16.msra.mxu1 %v11094_v11  ;;  %v13110_v11 = vld [vmem:[%s12107_s14 + $0x18] sm:$0xff]  }
 0x2ae   : > { %3896 = vrot.lane.b32.xlu0 %v3861_v6, %s11684_s16  ;;  %3101 = vst.msk [vmem:[#allocation2 + $0xd0] sm:$0xff] %vm16642_vm15, %v3060_v30  ;;  %v4154_v6 = vor.u32 %v4153_v55, %v4150_v54  ;;  %v11028_v30 = vld [vmem:[%s12107_s14 + $0x90] sm:$0xff]   ;;  %v4232_v54 = vshll.u32 %v11029_v31, 16  ;;  %v11106_v55 = vld [vmem:[#allocation9 + $0x34] ss:$8 sps:$4 sm:$0xff]  }
 0x2af   : > { %3898 = vrot.lane.b32.xlu1 %v3863_v22, %s11684_s16  ;;  %v11096_v22 = vld [vmem:[#allocation9 + $0x14] ss:$8 sps:$4 sm:$0xff]   ;;  %v4198_v38 = vrot.slane %v4196_v21, 2  ;;  %v4220_v46 = vshrl.u32 %v11028_v30, 16  ;;  %v4223_v47 = vshll.u32 %v11028_v30, 16  ;;  %s9602_s16 = scalar_lea.sflag [#allocation5], %s12095_s23 }
 0x2b0   : > { %v3062_v37 = vpop.permute.xlu0 %3061  ;;  %v4155_v28 = vsel %vm16669_vm3, %v4145_v63, %v4154_v6  ;;  %8094 = vmatprep.subr.bf16.mxu0 %v11096_v22  ;;  %10469 = vmatprep.subr.bf16.mxu1 %v11096_v22  ;;  %v4164_v35 = vsel %vm16669_vm3, %v4154_v6, %v4163_v17  ;;  %v4234_v3 = vrot.slane %v4232_v54, 2  ;;  %v13133_v31 = vld [vmem:[%s12107_s14 + $0x38] sm:$0xff]  }
 0x2b1   : > { %3102 = vst.msk [vmem:[#allocation2 + $0xe0] sm:$0xff] %vm16642_vm15, %v3062_v37  ;;  %v3064_v42 = vpop.permute.xlu1 %3063  ;;  %8095 = vmatpush1.bf16.msra.mxu0 %v11099_v27  ;;  %v4195_v37 = vrot.slane %v4193_v20, 1  ;;  %10485 = vmatpush1.bf16.msra.mxu1 %v11099_v27  ;;  %v4225_v61 = vrot.slane %v4223_v47, 2  ;;  %v4440_v20 = vrot.slane %v11030_v5, 2  ;;  %v11134_v27 = vld [vmem:[%s12107_s14 + $0x10] sm:$0xfc]  }
 0x2b2   : > { %4237 = vrot.lane.b32.xlu0 %v4083_v34, %s11685_s3  ;;  %3103 = vst.msk [vmem:[#allocation2 + $0xf0] sm:$0xff] %vm16642_vm15, %v3064_v42  ;;  %v4214_v34 = vshll.u32 %v11027_v14, 16  ;;  %v4190_v42 = vor.u32 %v4189_v25, %v4186_v19  ;;  %8096 = vmatprep.subr.bf16.mxu0 %v11101_v39  ;;  %v4235_v13 = vor.u32 %v4234_v3, %v4231_v2  ;;  %v11033_v14 = vld [vmem:[%s12107_s14 + $0x20] sm:$0xff]   ;;  %v13127_v25 = vld [vmem:[%s12107_s14 + $0x30] sm:$0xff]   ;;  %v5257_v3 = vrot.slane %v13154_v45, 3 }
 0x2b3   : > { %4239 = vrot.lane.b32.xlu1 %v4092_v41, %s11685_s3  ;;  %v4173_v41 = vsel %vm16669_vm3, %v4163_v17, %v4172_v24  ;;  %10470 = vmatprep.subr.bf16.mxu1 %v11101_v39  ;;  %v13118_v17 = vld [vmem:[%s12107_s14 + $0x28] sm:$0xff]   ;;  %v4445_v29 = vrot.slane %v11033_v14, 2 }
 0x2b4   : > { %v3066_v51 = vpop.permute.xlu0 %3065  ;;  %v4216_v50 = vrot.slane %v4214_v34, 2  ;;  %v4191_v58 = vsel %vm16669_vm3, %v4181_v36, %v4190_v42  ;;  %v4447_v30 = vrot.slane %v13118_v17, 2  ;;  %v11132_v54 = vld [vmem:[#allocation9 + $0x70] ss:$8 sps:$4 sm:$0xff]   ;;  %v11142_v17 = vld [vmem:[#allocation9 + $0x94] ss:$8 sps:$4 sm:$0xff]  }
 0x2b5   : > { %3104 = vst.msk [vmem:[#allocation2 + $0x100] sm:$0xff] %vm16642_vm15, %v3066_v51  ;;  %v3068_v60 = vpop.permute.xlu1 %3067  ;;  %v4182_v51 = vsel %vm16669_vm3, %v4172_v24, %v4181_v36  ;;  %v13142_v36 = vld [vmem:[%s12107_s14 + $0x48] sm:$0xff]  }
 0x2b6   : > { %4241 = vrot.lane.b32.xlu0 %v4101_v43, %s11685_s3  ;;  %3105 = vst.msk [vmem:[#allocation2 + $0x110] sm:$0xff] %vm16642_vm15, %v3068_v60  ;;  %v11104_v43 = vld [vmem:[#allocation9 + $0x20] ss:$8 sps:$4 sm:$0xff]   ;;  %v4222_v60 = vrot.slane %v4220_v46, 1  ;;  %v4217_v1 = vor.u32 %v4216_v50, %v4213_v49  ;;  %v11129_v46 = vld [vmem:[#allocation9 + $0x74] ss:$8 sps:$4 sm:$0xff]  }
 0x2b7   : > { %4243 = vrot.lane.b32.xlu1 %v4110_v52, %s11685_s3  ;;  %8097 = vmatpush1.bf16.msra.mxu0 %v11104_v43  ;;  %v4199_v52 = vor.u32 %v4198_v38, %v4195_v37  ;;  %v4921_v37 = vshrl.u32 %v11134_v27, 16  ;;  %v4924_v38 = vshll.u32 %v11134_v27, 16  ;;  %vm3678_vm15 = vcmask 786112  }
 0x2b8   : > { %v3385_v4 = vpop.permute.xlu0 %3384  ;;  %10486 = vmatpush1.bf16.msra.mxu1 %v11104_v43  ;;  %8098 = vmatprep.subr.bf16.mxu0 %v11106_v55  ;;  %v4226_v9 = vor.u32 %v4225_v61, %v4222_v60  ;;  %v4218_v6 = vsel %vm16669_vm3, %v4208_v59, %v4217_v1 }
 0x2b9   : > { %3439 = vst.msk [vmem:[#allocation2] sm:$0xff] %vm3438_vm14, %v3385_v4  ;;  %v3387_v10 = vpop.permute.xlu1 %3386  ;;  %10471 = vmatprep.subr.bf16.mxu1 %v11106_v55  ;;  %v11112_v4 = vld [vmem:[#allocation9 + $0x44] ss:$8 sps:$4 sm:$0xff]   ;;  %v4923_v47 = vrot.slane %v4921_v37, 2  ;;  %v11151_v37 = vld [vmem:[#allocation9 + $0xa0] ss:$8 sps:$4 sm:$0xff]  }
 0x2ba   : > { %4245 = vrot.lane.b32.xlu0 %v4119_v0, %s11685_s3  ;;  %3440 = vst.msk [vmem:[#allocation2 + $0x10] sm:$0xff] %vm3438_vm14, %v3387_v10  ;;  %v4200_v0 = vsel %vm16669_vm3, %v4190_v42, %v4199_v52  ;;  %v11031_v10 = vld [vmem:[%s12107_s14 + $0x10] sm:$0xff]   ;;  %v4227_v19 = vsel %vm16669_vm3, %v4217_v1, %v4226_v9  ;;  %v4236_v24 = vsel %vm16669_vm3, %v4226_v9, %v4235_v13  ;;  %v4932_v42 = vshll.u32 %v11135_v33, 16  ;;  %v11049_v13 = vld [vmem:[%s12114_s7 + $0x8] sm:$0xfe]  }
 0x2bb   : > { %4247 = vrot.lane.b32.xlu1 %v4128_v8, %s11685_s3  ;;  %8099 = vmatpush1.bf16.msra.mxu0 %v11109_v57  ;;  %v4209_v8 = vsel %vm16669_vm3, %v4199_v52, %v4208_v59  ;;  %v4441_v21 = vrot.slane %v11031_v10, 2  ;;  %v13162_v52 = vld [vmem:[%s12114_s7] sm:$0xff]   ;;  %v4457_v1 = vrot.slane %v13151_v44, 2 }
 0x2bc   : > { %v3389_v15 = vpop.permute.xlu0 %3388  ;;  %10487 = vmatpush1.bf16.msra.mxu1 %v11109_v57  ;;  %8100 = vmatprep.subr.bf16.mxu0 %v11112_v4  ;;  %v4449_v57 = vrot.slane %v13127_v25, 2  ;;  %v11140_v10 = vld [vmem:[#allocation9 + $0x80] ss:$8 sps:$4 sm:$0xff]  }
 0x2bd   : > { %3441 = vst.msk [vmem:[#allocation2 + $0x20] sm:$0xff] %vm3438_vm14, %v3389_v15  ;;  %v3391_v23 = vpop.permute.xlu1 %3390  ;;  %10472 = vmatprep.subr.bf16.mxu1 %v11112_v4  ;;  %v11117_v15 = vld [vmem:[#allocation9 + $0x54] ss:$8 sps:$4 sm:$0xff]   ;;  %v4442_v34 = vsel %vm1941_vm5, %v4440_v20, %v4441_v21  ;;  %v11687_v4 = vmov 0   ;;  %v11145_v20 = vld [vmem:[#allocation9 + $0x90] ss:$8 sps:$4 sm:$0xff]  }
 0x2be   : > { %4249 = vrot.lane.b32.xlu0 %v4137_v12, %s11685_s3  ;;  %3442 = vst.msk [vmem:[#allocation2 + $0x30] sm:$0xff] %vm3438_vm14, %v3391_v23  ;;  %v4443_v23 = vrot.slane %v13110_v11, 2  ;;  %v4450_v11 = vsel %vm1941_vm5, %v4447_v30, %v4449_v57 }
 0x2bf   : > { %4251 = vrot.lane.b32.xlu1 %v4146_v16, %s11685_s3  ;;  %8101 = vmatpush1.bf16.msra.mxu0 %v11115_v7  ;;  %423 = vst.msk [vmem:[#allocation2 + $0x8] sm:$0xff] %vm422_vm13, %v11687_v4  ;;  %424 = vst.msk [vmem:[#allocation2 + $0x18] sm:$0xff] %vm422_vm13, %v11687_v4 }
 0x2c0   : > { %v3393_v32 = vpop.permute.xlu0 %3392  ;;  %10488 = vmatpush1.bf16.msra.mxu1 %v11115_v7  ;;  %8102 = vmatprep.subr.bf16.mxu0 %v11117_v15  ;;  %v4444_v43 = vsel %vm1941_vm5, %v4441_v21, %v4443_v23  ;;  %v4446_v50 = vsel %vm1941_vm5, %v4443_v23, %v4445_v29  ;;  %425 = vst.msk [vmem:[#allocation2 + $0x28] sm:$0xff] %vm422_vm13, %v11687_v4  ;;  %426 = vst.msk [vmem:[#allocation2 + $0x38] sm:$0xff] %vm422_vm13, %v11687_v4  ;;  %v5696_v7 = vshll.u32 %v13162_v52, 16  ;;  %v11050_v23 = vld [vmem:[%s12114_s7 + $0x10] sm:$0xff]  }
 0x2c1   : > { %3443 = vst.msk [vmem:[#allocation2 + $0x40] sm:$0xff] %vm3438_vm14, %v3393_v32  ;;  %v3395_v40 = vpop.permute.xlu1 %3394  ;;  %10473 = vmatprep.subr.bf16.mxu1 %v11117_v15  ;;  %v11126_v32 = vld [vmem:[#allocation9 + $0x60] ss:$8 sps:$4 sm:$0xff]   ;;  %v5694_v15 = vshrl.u32 %v13162_v52, 16 }
 0x2c2   : > { %4253 = vrot.lane.b32.xlu0 %v4155_v28, %s11685_s3  ;;  %3444 = vst.msk [vmem:[#allocation2 + $0x50] sm:$0xff] %vm3438_vm14, %v3395_v40  ;;  %v13146_v40 = vld [vmem:[%s12107_s14 + $0x10] sm:$0xf8]  }
 0x2c3   : > { %4255 = vrot.lane.b32.xlu1 %v4164_v35, %s11685_s3  ;;  %8103 = vmatpush1.bf16.msra.mxu0 %v11120_v18  ;;  %v13139_v35 = vld [vmem:[%s12107_s14 + $0x40] sm:$0xff]   ;;  %v5256_v2 = vrot.slane %v13146_v40, 3  ;;  %427 = vst.msk [vmem:[#allocation2 + $0x48] sm:$0xff] %vm422_vm13, %v11687_v4  ;;  %428 = vst.msk [vmem:[#allocation2 + $0x58] sm:$0xff] %vm422_vm13, %v11687_v4 }
 0x2c4   : > { %v3397_v48 = vpop.permute.xlu0 %3396  ;;  %10489 = vmatpush1.bf16.msra.mxu1 %v11120_v18  ;;  %8104 = vmatprep.subr.bf16.mxu0 %v11123_v26  ;;  %v4453_v61 = vrot.slane %v13139_v35, 2  ;;  %429 = vst.msk [vmem:[#allocation2 + $0x68] sm:$0xff] %vm422_vm13, %v11687_v4  ;;  %430 = vst.msk [vmem:[#allocation2 + $0x78] sm:$0xff] %vm422_vm13, %v11687_v4  ;;  %v6525_v35 = vshll.u32 %v11049_v13, 16 }
 0x2c5   : > { %3445 = vst.msk [vmem:[#allocation2 + $0x60] sm:$0xff] %vm3438_vm14, %v3397_v48  ;;  %v3399_v56 = vpop.permute.xlu1 %3398  ;;  %10474 = vmatprep.subr.bf16.mxu1 %v11123_v26  ;;  %v4926_v48 = vrot.slane %v4924_v38, 3  ;;  %v6522_v26 = vshrl.u32 %v11049_v13, 16  ;;  %v6530_v38 = vshrl.u32 %v11050_v23, 16  ;;  %v11163_v13 = vld [vmem:[#allocation9 + $0xc0] ss:$8 sps:$4 sm:$0xff]  }
 0x2c6   : > { %4257 = vrot.lane.b32.xlu0 %v4173_v41, %s11685_s3  ;;  %3446 = vst.msk [vmem:[#allocation2 + $0x70] sm:$0xff] %vm3438_vm14, %v3399_v56  ;;  %v4929_v41 = vshrl.u32 %v11135_v33, 16  ;;  %v4934_v56 = vrot.slane %v4932_v42, 3 }
 0x2c7   : > { %4259 = vrot.lane.b32.xlu1 %v4182_v51, %s11685_s3  ;;  %8105 = vmatpush1.bf16.msra.mxu0 %v11126_v32  ;;  %v4448_v51 = vsel %vm1941_vm5, %v4445_v29, %v4447_v30  ;;  %v4927_v59 = vor.u32 %v4926_v48, %v4923_v47  ;;  %431 = vst.msk [vmem:[#allocation2 + $0x88] sm:$0xff] %vm422_vm13, %v11687_v4  ;;  %432 = vst.msk [vmem:[#allocation2 + $0x98] sm:$0xff] %vm422_vm13, %v11687_v4  ;;  %v11148_v29 = vld [vmem:[#allocation9 + $0xa4] ss:$8 sps:$4 sm:$0xff]   ;;  %v11159_v30 = vld [vmem:[%s12107_s14 + $0x20] sm:$0xff]   ;;  %v13256_v47 = vrot.slane %v6522_v26, 1 }
 0x2c8   : > { %v3401_v62 = vpop.permute.xlu0 %3400  ;;  %10490 = vmatpush1.bf16.msra.mxu1 %v11126_v32  ;;  %v4931_v55 = vrot.slane %v4929_v41, 2  ;;  %8106 = vmatprep.subr.bf16.mxu0 %v11129_v46  ;;  %433 = vst.msk [vmem:[#allocation2 + $0xa8] sm:$0xff] %vm422_vm13, %v11687_v4  ;;  %434 = vst.msk [vmem:[#allocation2 + $0xb8] sm:$0xff] %vm422_vm13, %v11687_v4  ;;  %v4938_v41 = vshrl.u32 %v11159_v30, 16  ;;  %v4941_v42 = vshll.u32 %v11159_v30, 16  ;;  %v5258_v48 = vsel %vm2796_vm10, %v5256_v2, %v5257_v3 }
 0x2c9   : > { %3447 = vst.msk [vmem:[#allocation2 + $0x80] sm:$0xff] %vm3438_vm14, %v3401_v62  ;;  %v3403_v63 = vpop.permute.xlu1 %3402  ;;  %10475 = vmatprep.subr.bf16.mxu1 %v11129_v46  ;;  %v11166_v26 = vld [vmem:[#allocation9 + $0xd4] ss:$8 sps:$4 sm:$0xff]   ;;  %v11169_v30 = vld [vmem:[#allocation9 + $0xd0] ss:$8 sps:$4 sm:$0xff]  }
 0x2ca   : > { %4261 = vrot.lane.b32.xlu0 %v4191_v58, %s11685_s3  ;;  %3448 = vst.msk [vmem:[#allocation2 + $0x90] sm:$0xff] %vm3438_vm14, %v3403_v63  ;;  %v4451_v58 = vrot.slane %v13133_v31, 2  ;;  %v13172_v62 = vor.u32 %v4934_v56, %v4931_v55  ;;  %v11136_v63 = vld [vmem:[#allocation9 + $0x84] ss:$8 sps:$4 sm:$0xff]   ;;  %v4940_v52 = vrot.slane %v4938_v41, 2  ;;  %v6527_v56 = vrot.slane %v6525_v35, 2 }
 0x2cb   : > { %4263 = vrot.lane.b32.xlu1 %v4200_v0, %s11685_s3  ;;  %8107 = vmatpush1.bf16.msra.mxu0 %v11132_v54  ;;  %v4455_v0 = vrot.slane %v13142_v36, 2  ;;  %435 = vst.msk [vmem:[#allocation2 + $0xc8] sm:$0xff] %vm422_vm13, %v11687_v4  ;;  %436 = vst.msk [vmem:[#allocation2 + $0xd8] sm:$0xff] %vm422_vm13, %v11687_v4  ;;  %v11059_v41 = vld [vmem:[%s12114_s7 + $0x10] sm:$0xf8]  }
 0x2cc   : > { %v3405_v12 = vpop.permute.xlu0 %3404  ;;  %437 = vst.msk [vmem:[#allocation2 + $0xe8] sm:$0xff] %vm422_vm13, %v11687_v4  ;;  %438 = vst.msk [vmem:[#allocation2 + $0xf8] sm:$0xff] %vm422_vm13, %v11687_v4  ;;  %10491 = vmatpush1.bf16.msra.mxu1 %v11132_v54  ;;  %v4936_v9 = vsel %vm2422_vm8, %v4927_v59, %v13172_v62  ;;  %8108 = vmatprep.subr.bf16.mxu0 %v11136_v63  ;;  %v4452_v14 = vsel %vm1941_vm5, %v4449_v57, %v4451_v58  ;;  %v4943_v54 = vrot.slane %v4941_v42, 3  ;;  %v11057_v57 = vld [vmem:[%s12114_s7 + $0x18] sm:$0xff]  }
 0x2cd   : > { %3449 = vst.msk [vmem:[#allocation2 + $0xa0] sm:$0xff] %vm3438_vm14, %v3405_v12  ;;  %v3407_v16 = vpop.permute.xlu1 %3406  ;;  %v13207_v12 = vld [vmem:[%s12114_s7] sm:$0xfe]   ;;  %10476 = vmatprep.subr.bf16.mxu1 %v11136_v63  ;;  %v4454_v21 = vsel %vm1941_vm5, %v4451_v58, %v4453_v61  ;;  %v4456_v27 = vsel %vm1941_vm5, %v4453_v61, %v4455_v0  ;;  %v4458_v32 = vsel %vm1941_vm5, %v4455_v0, %v4457_v1  ;;  %v6532_v59 = vrot.slane %v6530_v38, 1  ;;  %v13319_v42 = vld [vmem:[%s12114_s7 + $0x18] sm:$0xff]  }
 0x2ce   : > { %4265 = vrot.lane.b32.xlu0 %v4209_v8, %s11685_s3  ;;  %3450 = vst.msk [vmem:[#allocation2 + $0xb0] sm:$0xff] %vm3438_vm14, %v3407_v16  ;;  %v5701_v8 = vshll.u32 %v13165_v53, 16  ;;  %v13218_v16 = vld [vmem:[%s12114_s7 + $0x8] sm:$0xff]   ;;  %v13269_v61 = vor.u32 %v4943_v54, %v4940_v52  ;;  %v11061_v54 = vld [vmem:[%s12107_s14 + $0x10] sm:$0xfc]   ;;  %v7743_v45 = vrot.slane %v11059_v41, 3 }
 0x2cf   : > { %4267 = vrot.lane.b32.xlu1 %v4218_v6, %s11685_s3  ;;  %439 = vst.msk [vmem:[#allocation2 + $0x108] sm:$0xff] %vm422_vm13, %v11687_v4  ;;  %440 = vst.msk [vmem:[#allocation2 + $0x118] sm:$0xff] %vm422_vm13, %v11687_v4  ;;  %8109 = vmatpush1.bf16.msra.mxu0 %v11140_v10  ;;  %v6044_v33 = vrot.slane %v13218_v16, 1  ;;  %v11156_v58 = vld [vmem:[#allocation9 + $0xb0] ss:$8 sps:$4 sm:$0xff]   ;;  %vm3918_vm13 = vcmask 851712  }
 0x2d0   : > { %v3409_v22 = vpop.permute.xlu0 %3408  ;;  %5108 = vst.msk [vmem:[#allocation2 + $0x8] sm:$0xff] %vm16671_vm2, %v4936_v9  ;;  %10492 = vmatpush1.bf16.msra.mxu1 %v11140_v10  ;;  %8110 = vmatprep.subr.bf16.mxu0 %v11142_v17  ;;  %v13232_v25 = vrot.slane %v5701_v8, 1  ;;  %v13274_v4 = vld [vmem:[%s12114_s7 + $0x10] sm:$0xff]   ;;  %v4945_v8 = vsel %vm2422_vm8, %v13172_v62, %v13269_v61  ;;  %v6528_v62 = vor.u32 %v6527_v56, %v13256_v47  ;;  %v13341_v56 = vld [vmem:[%s12107_s14 + $0x18] sm:$0xff]  }
 0x2d1   : > { %3451 = vst.msk [vmem:[#allocation2 + $0xc0] sm:$0xff] %vm3438_vm14, %v3409_v22  ;;  %v3411_v28 = vpop.permute.xlu1 %3410  ;;  %v5698_v22 = vrot.slane %v5696_v7, 1  ;;  %10477 = vmatprep.subr.bf16.mxu1 %v11142_v17  ;;  %v11160_v9 = vld [vmem:[#allocation9 + $0xc4] ss:$8 sps:$4 sm:$0xff]  }
 0x2d2   : > { %4269 = vrot.lane.b32.xlu0 %v4227_v19, %s11685_s3  ;;  %3452 = vst.msk [vmem:[#allocation2 + $0xd0] sm:$0xff] %vm3438_vm14, %v3411_v28  ;;  %v13222_v19 = vld [vmem:[%s12114_s7 + $0x8] sm:$0xfe]   ;;  %v6043_v28 = vrot.slane %v13207_v12, 1  ;;  %v11053_v17 = vld [vmem:[%s12114_s7 + $0x10] sm:$0xfc]  }
 0x2d3   : > { %4271 = vrot.lane.b32.xlu1 %v4236_v24, %s11685_s3  ;;  %8111 = vmatpush1.bf16.msra.mxu0 %v11145_v20  ;;  %v6282_v46 = vrot.slane %v13222_v19, 1  ;;  %5109 = vst.msk [vmem:[#allocation2 + $0x18] sm:$0xff] %vm16671_vm2, %v4945_v8  ;;  %v11058_v8 = vld [vmem:[%s12114_s7 + $0x8] sm:$0xff]  }
 0x2d4   : > { %v3413_v39 = vpop.permute.xlu0 %3412  ;;  %10493 = vmatpush1.bf16.msra.mxu1 %v11145_v20  ;;  %8112 = vmatprep.subr.bf16.mxu0 %v11148_v29 }
 0x2d5   : > { %3453 = vst.msk [vmem:[#allocation2 + $0xe0] sm:$0xff] %vm3438_vm14, %v3413_v39  ;;  %v3415_v49 = vpop.permute.xlu1 %3414  ;;  %v6533_v39 = vshll.u32 %v11050_v23, 16  ;;  %10478 = vmatprep.subr.bf16.mxu1 %v11148_v29 }
 0x2d6   : > { %4477 = vrot.lane.b32.xlu0 %v4442_v34, %s11686_s22  ;;  %3454 = vst.msk [vmem:[#allocation2 + $0xf0] sm:$0xff] %vm3438_vm14, %v3415_v49  ;;  %v13250_v34 = vld [vmem:[%s12114_s7 + $0x10] sm:$0xff]   ;;  %v5699_v49 = vor.u32 %v5698_v22, %v5694_v15  ;;  %v13304_v22 = vld [vmem:[%s12107_s14 + $0x20] sm:$0xff]  }
 0x2d7   : > { %4479 = vrot.lane.b32.xlu1 %v4444_v43, %s11686_s22  ;;  %v11042_v43 = vld [vmem:[%s12114_s7] sm:$0xff]   ;;  %8113 = vmatpush1.bf16.msra.mxu0 %v11151_v37  ;;  %v6535_v40 = vrot.slane %v6533_v39, 2  ;;  %v6283_v2 = vrot.slane %v13250_v34, 1  ;;  %v5259_v39 = vrot.slane %v13304_v22, 3 }
 0x2d8   : > { %v3417_v60 = vpop.permute.xlu0 %3416  ;;  %10494 = vmatpush1.bf16.msra.mxu1 %v11151_v37  ;;  %v5704_v63 = vsel %vm16658_vm0, %v5699_v49, %v13232_v25  ;;  %v11175_v49 = vld [vmem:[#allocation9 + $0xe0] ss:$8 sps:$4 sm:$0xff]  }
 0x2d9   : > { %3455 = vst.msk [vmem:[#allocation2 + $0x100] sm:$0xff] %vm3438_vm14, %v3417_v60  ;;  %v3419_v5 = vpop.permute.xlu1 %3418  ;;  %v11051_v60 = vld [vmem:[%s12114_s7 + $0x8] sm:$0xfc]   ;;  %v13291_v15 = vor.u32 %v6535_v40, %v6532_v59  ;;  %v6284_v12 = vsel %vm16672_vm1, %v6282_v46, %v6283_v2 }
 0x2da   : > { %4481 = vrot.lane.b32.xlu0 %v4446_v50, %s11686_s22  ;;  %3456 = vst.msk [vmem:[#allocation2 + $0x110] sm:$0xff] %vm3438_vm14, %v3419_v5  ;;  %v11056_v50 = vld [vmem:[%s12114_s7 + $0x10] sm:$0xfc]   ;;  %v6893_v20 = vrot.slane %v11051_v60, 2 }
 0x2db   : > { %4483 = vrot.lane.b32.xlu1 %v4448_v51, %s11686_s22  ;;  %v11153_v51 = vld [vmem:[#allocation9 + $0xb4] ss:$8 sps:$4 sm:$0xff]   ;;  %v7372_v5 = vshrl.u32 %v11056_v50, 16  ;;  %v7375_v7 = vshll.u32 %v11056_v50, 16 }
 0x2dc   : > { %v3625_v6 = vpop.permute.xlu0 %3624  ;;  %8114 = vmatprep.subr.bf16.mxu0 %v11153_v51  ;;  %10479 = vmatprep.subr.bf16.mxu1 %v11153_v51  ;;  %v11066_v51 = vld [vmem:[%s12114_s7 + $0x18] sm:$0xff]   ;;  %v13348_v60 = vld [vmem:[%s12114_s7 + $0x10] sm:$0xff]  }
 0x2dd   : > { %3679 = vst.msk [vmem:[#allocation2] sm:$0xff] %vm3678_vm15, %v3625_v6  ;;  %v3627_v18 = vpop.permute.xlu1 %3626  ;;  %8115 = vmatpush1.bf16.msra.mxu0 %v11156_v58  ;;  %10495 = vmatpush1.bf16.msra.mxu1 %v11156_v58  ;;  %v7383_v6 = vshll.u32 %v11057_v57, 16  ;;  %v7374_v23 = vrot.slane %v7372_v5, 2  ;;  %v6539_v5 = vshrl.u32 %v11066_v51, 16 }
 0x2de   : > { %4485 = vrot.lane.b32.xlu0 %v4450_v11, %s11686_s22  ;;  %3680 = vst.msk [vmem:[#allocation2 + $0x10] sm:$0xff] %vm3678_vm15, %v3627_v18  ;;  %v7380_v11 = vshrl.u32 %v11057_v57, 16  ;;  %v13295_v18 = vld [vmem:[%s12114_s7 + $0x18] sm:$0xff]   ;;  %8116 = vmatprep.subr.bf16.mxu0 %v11160_v9  ;;  %v11177_v57 = vld [vmem:[#allocation9 + $0xf4] ss:$8 sps:$4 sm:$0xff]  }
 0x2df   : > { %4487 = vrot.lane.b32.xlu1 %v4452_v14, %s11686_s22  ;;  %v6045_v14 = vsel %vm16672_vm1, %v6043_v28, %v6044_v33  ;;  %10480 = vmatprep.subr.bf16.mxu1 %v11160_v9  ;;  %v7385_v29 = vrot.slane %v7383_v6, 3  ;;  %v7133_v35 = vrot.slane %v13295_v18, 2  ;;  %v4680_v9 = vrot.slane %v11061_v54, 2  ;;  %v13403_v54 = vld [vmem:[%s12107_s14 + $0x28] sm:$0xff]   ;;  %v13451_v18 = vld [vmem:[%s12107_s14 + $0x20] sm:$0xff]  }
 0x2e0   : > { %v3629_v24 = vpop.permute.xlu0 %3628  ;;  %v7382_v28 = vrot.slane %v7380_v11, 2  ;;  %v11188_v11 = vld [vmem:[%s12107_s14 + $0x28] sm:$0xff]   ;;  %v4681_v6 = vrot.slane %v13341_v56, 2 }
 0x2e1   : > { %3681 = vst.msk [vmem:[#allocation2 + $0x20] sm:$0xff] %vm3678_vm15, %v3629_v24  ;;  %v3631_v31 = vpop.permute.xlu1 %3630  ;;  %8117 = vmatpush1.bf16.msra.mxu0 %v11163_v13  ;;  %v7377_v24 = vrot.slane %v7375_v7, 3  ;;  %10496 = vmatpush1.bf16.msra.mxu1 %v11163_v13 }
 0x2e2   : > { %4489 = vrot.lane.b32.xlu0 %v4454_v21, %s11686_s22  ;;  %3682 = vst.msk [vmem:[#allocation2 + $0x30] sm:$0xff] %vm3678_vm15, %v3631_v31  ;;  %v6894_v21 = vrot.slane %v13274_v4, 2  ;;  %v6537_v31 = vsel %vm16669_vm3, %v6528_v62, %v13291_v15  ;;  %8118 = vmatprep.subr.bf16.mxu0 %v11166_v26  ;;  %v13322_v47 = vor.u32 %v7385_v29, %v7382_v28  ;;  %v13363_v62 = vld [vmem:[%s12114_s7 + $0x18] sm:$0xff]   ;;  %v11070_v29 = vld [vmem:[%s12114_s7 + $0x20] sm:$0xff]  }
 0x2e3   : > { %4491 = vrot.lane.b32.xlu1 %v4456_v27, %s11686_s22  ;;  %10481 = vmatprep.subr.bf16.mxu1 %v11166_v26  ;;  %v7378_v46 = vor.u32 %v7377_v24, %v7374_v23  ;;  %v4950_v23 = vshll.u32 %v11188_v11, 16  ;;  %v4682_v28 = vsel %vm1941_vm5, %v4680_v9, %v4681_v6 }
 0x2e4   : > { %v3633_v36 = vpop.permute.xlu0 %3632  ;;  %v6895_v38 = vsel %vm1941_vm5, %v6893_v20, %v6894_v21 }
 0x2e5   : > { %3683 = vst.msk [vmem:[#allocation2 + $0x40] sm:$0xff] %vm3678_vm15, %v3633_v36  ;;  %v3635_v55 = vpop.permute.xlu1 %3634  ;;  %8119 = vmatpush1.bf16.msra.mxu0 %v11169_v30  ;;  %v11171_v36 = vld [vmem:[#allocation9 + $0xe4] ss:$8 sps:$4 sm:$0xff]   ;;  %10497 = vmatpush1.bf16.msra.mxu1 %v11169_v30  ;;  %v7387_v59 = vsel %vm2422_vm8, %v7378_v46, %v13322_v47  ;;  %v4952_v30 = vrot.slane %v4950_v23, 3 }
 0x2e6   : > { %4493 = vrot.lane.b32.xlu0 %v4458_v32, %s11686_s22  ;;  %3684 = vst.msk [vmem:[#allocation2 + $0x50] sm:$0xff] %vm3678_vm15, %v3635_v55  ;;  %v7132_v32 = vrot.slane %v11053_v17, 2  ;;  %8120 = vmatprep.subr.bf16.mxu0 %v11171_v36  ;;  %v5260_v55 = vsel %vm2796_vm10, %v5257_v3, %v5259_v39  ;;  %v7744_v3 = vrot.slane %v13319_v42, 3  ;;  %v4947_v17 = vshrl.u32 %v11188_v11, 16  ;;  %v13462_v11 = vld [vmem:[%s12114_s7 + $0x18] sm:$0xff]  }
 0x2e7   : > { %5293 = vrot.lane.b32.xlu1 %v5258_v48, %s11673_s9  ;;  %v13325_v48 = vld [vmem:[%s12114_s7 + $0x10] sm:$0xff]   ;;  %10482 = vmatprep.subr.bf16.mxu1 %v11171_v36 }
 0x2e8   : > { %v3637_v0 = vpop.permute.xlu0 %3636  ;;  %v7134_v50 = vsel %vm1941_vm5, %v7132_v32, %v7133_v35  ;;  %v5709_v40 = vshll.u32 %v13325_v48, 16  ;;  %v6285_v32 = vrot.slane %v13363_v62, 1  ;;  %v5713_v22 = vshrl.u32 %v13325_v48, 16 }
 0x2e9   : > { %3685 = vst.msk [vmem:[#allocation2 + $0x60] sm:$0xff] %vm3678_vm15, %v3637_v0  ;;  %v3639_v10 = vpop.permute.xlu1 %3638  ;;  %8121 = vmatpush1.bf16.msra.mxu0 %v11175_v49  ;;  %10498 = vmatpush1.bf16.msra.mxu1 %v11175_v49  ;;  %v11180_v0 = vld [vmem:[#allocation9 + $0xf0] ss:$8 sps:$4 sm:$0xff]   ;;  %v7389_v49 = vshrl.u32 %v11070_v29, 16 }
 0x2ea   : > { %5491 = vrot.lane.b32.xlu0 %v11042_v43, %s11674_s11  ;;  %3686 = vst.msk [vmem:[#allocation2 + $0x70] sm:$0xff] %vm3678_vm15, %v3639_v10  ;;  %8122 = vmatprep.subr.bf16.mxu0 %v11177_v57  ;;  %v6542_v10 = vshll.u32 %v11066_v51, 16  ;;  %v6286_v16 = vsel %vm16672_vm1, %v6283_v2, %v6285_v32  ;;  %v5261_v2 = vrot.slane %v13403_v54, 3  ;;  %v13578_v54 = vld [vmem:[%s12114_s7 + $0x20] sm:$0xff]  }
 0x2eb   : > { %5841 = vrot.lane.b32.xlu1 %v5704_v63, %s11675_s20  ;;  %v5705_v63 = vshrl.u32 %v13165_v53, 16  ;;  %10483 = vmatprep.subr.bf16.mxu1 %v11177_v57  ;;  %v13359_v53 = vrot.slane %v5709_v40, 1  ;;  %v13422_v40 = vld [vmem:[%s12114_s7 + $0x18] sm:$0xff]  }
 0x2ec   : > { %v3641_v19 = vpop.permute.xlu0 %3640  ;;  %v6544_v26 = vrot.slane %v6542_v10, 2 }
 0x2ed   : > { %3687 = vst.msk [vmem:[#allocation2 + $0x80] sm:$0xff] %vm3678_vm15, %v3641_v19  ;;  %v3643_v27 = vpop.permute.xlu1 %3642  ;;  %8123 = vmatpush1.bf16.msra.mxu0 %v11180_v0  ;;  %10499 = vmatpush1.bf16.msra.mxu1 %v11180_v0  ;;  %v7745_v19 = vsel %vm2796_vm10, %v7743_v45, %v7744_v3  ;;  %v5707_v20 = vor.u32 %v5705_v63, %v13232_v25  ;;  %v13432_v45 = vld [vmem:[%s12114_s7 + $0x20] sm:$0xff]  }
 0x2ee   : > { %6080 = vrot.lane.b32.xlu0 %v6045_v14, %s11676_s1  ;;  %3688 = vst.msk [vmem:[#allocation2 + $0x90] sm:$0xff] %vm3678_vm15, %v3643_v27  ;;  %v6046_v14 = vrot.slane %v13348_v60, 1  ;;  %v4949_v27 = vrot.slane %v4947_v17, 2  ;;  %v7746_v10 = vrot.slane %v13432_v45, 3  ;;  %v11071_v17 = vld [vmem:[%s12114_s7 + $0x10] sm:$0xff]  }
 0x2ef   : > { %6319 = vrot.lane.b32.xlu1 %v6284_v12, %s11677_s18  ;;  %v6541_v12 = vrot.slane %v6539_v5, 1  ;;  %v5712_v25 = vsel %vm16658_vm0, %v5707_v20, %v13359_v53  ;;  %v4683_v20 = vrot.slane %v13451_v18, 2 }
 0x2f0   : > { %v3645_v37 = vpop.permute.xlu0 %3644  ;;  %v6047_v36 = vsel %vm16672_vm1, %v6044_v33, %v6046_v14 }
 0x2f1   : > { %3689 = vst.msk [vmem:[#allocation2 + $0xa0] sm:$0xff] %vm3678_vm15, %v3645_v37  ;;  %v3647_v43 = vpop.permute.xlu1 %3646  ;;  %v13382_v37 = vld [vmem:[%s12114_s7 + $0x18] sm:$0xff]   ;;  %v13396_v46 = vor.u32 %v6544_v26, %v6541_v12  ;;  %v4684_v42 = vsel %vm1941_vm5, %v4681_v6, %v4683_v20  ;;  %v13503_v6 = vld [vmem:[%s12114_s7 + $0x28] sm:$0xff]  }
 0x2f2   : > { %6691 = vrot.lane.b32.xlu0 %v6537_v31, %s11678_s15  ;;  %3690 = vst.msk [vmem:[#allocation2 + $0xb0] sm:$0xff] %vm3678_vm15, %v3647_v43  ;;  %v13393_v43 = vld [vmem:[%s12114_s7 + $0x20] sm:$0xff]   ;;  %v6896_v33 = vrot.slane %v13382_v37, 2 }
 0x2f3   : > { %6930 = vrot.lane.b32.xlu1 %v6895_v38, %s11679_s30  ;;  %v13384_v38 = vor.u32 %v4952_v30, %v4949_v27  ;;  %v6546_v57 = vsel %vm16669_vm3, %v13291_v15, %v13396_v46  ;;  %v7747_v27 = vsel %vm2796_vm10, %v7744_v3, %v7746_v10 }
 0x2f4   : > { %v3649_v52 = vpop.permute.xlu0 %3648  ;;  %v6897_v0 = vsel %vm1941_vm5, %v6894_v21, %v6896_v33  ;;  %v11077_v21 = vld [vmem:[%s12114_s7 + $0x20] sm:$0xff]  }
 0x2f5   : > { %3691 = vst.msk [vmem:[#allocation2 + $0xc0] sm:$0xff] %vm3678_vm15, %v3649_v52  ;;  %v3651_v58 = vpop.permute.xlu1 %3650  ;;  %v4954_v51 = vsel %vm2422_vm8, %v13269_v61, %v13384_v38 }
 0x2f6   : > { %7169 = vrot.lane.b32.xlu0 %v7134_v50, %s11680_s2  ;;  %3692 = vst.msk [vmem:[#allocation2 + $0xd0] sm:$0xff] %vm3678_vm15, %v3651_v58  ;;  %v7392_v50 = vshll.u32 %v11070_v29, 16  ;;  %v7391_v58 = vrot.slane %v7389_v49, 2  ;;  %v6048_v29 = vrot.slane %v13462_v11, 1 }
 0x2f7   : > { %5295 = vrot.lane.b32.xlu1 %v5260_v55, %s11673_s9  ;;  %5110 = vst.msk [vmem:[#allocation2 + $0x28] sm:$0xff] %vm16671_vm2, %v4954_v51  ;;  %v7135_v55 = vrot.slane %v13393_v43, 2 }
 0x2f8   : > { %v3653_v7 = vpop.permute.xlu0 %3652 }
 0x2f9   : > { %3693 = vst.msk [vmem:[#allocation2 + $0xe0] sm:$0xff] %vm3678_vm15, %v3653_v7  ;;  %v3655_v13 = vpop.permute.xlu1 %3654  ;;  %v7136_v63 = vsel %vm1941_vm5, %v7133_v35, %v7135_v55  ;;  %v5262_v7 = vsel %vm2796_vm10, %v5259_v39, %v5261_v2  ;;  %v5717_v35 = vshll.u32 %v13422_v40, 16  ;;  %v11199_v39 = vld [vmem:[%s12107_s14 + $0x30] sm:$0xff]  }
 0x2fa   : > { %7541 = vrot.lane.b32.xlu0 %v7387_v59, %s11681_s21  ;;  %3694 = vst.msk [vmem:[#allocation2 + $0xf0] sm:$0xff] %vm3678_vm15, %v3655_v13  ;;  %v7394_v59 = vrot.slane %v7392_v50, 3  ;;  %v4956_v23 = vshrl.u32 %v11199_v39, 16  ;;  %v4959_v26 = vshll.u32 %v11199_v39, 16  ;;  %v11088_v39 = vld [vmem:[%s12114_s7 + $0x28] sm:$0xff]  }
 0x2fb   : > { %5493 = vrot.lane.b32.xlu1 %v11058_v8, %s11674_s11  ;;  %v13469_v12 = vrot.slane %v5717_v35, 1 }
 0x2fc   : > { %v3657_v24 = vpop.permute.xlu0 %3656  ;;  %v13440_v5 = vor.u32 %v7394_v59, %v7391_v58  ;;  %v4958_v30 = vrot.slane %v4956_v23, 2 }
 0x2fd   : > { %3695 = vst.msk [vmem:[#allocation2 + $0x100] sm:$0xff] %vm3678_vm15, %v3657_v24  ;;  %v3659_v31 = vpop.permute.xlu1 %3658  ;;  %v13473_v24 = vld [vmem:[%s12114_s7 + $0x20] sm:$0xff]  }
 0x2fe   : > { %7780 = vrot.lane.b32.xlu0 %v7745_v19, %s11682_s4  ;;  %3696 = vst.msk [vmem:[#allocation2 + $0x110] sm:$0xff] %vm3678_vm15, %v3659_v31  ;;  %v7396_v9 = vsel %vm2422_vm8, %v13322_v47, %v13440_v5  ;;  %v6548_v19 = vshrl.u32 %v11077_v21, 16  ;;  %v6551_v47 = vshll.u32 %v11077_v21, 16  ;;  %v6287_v51 = vrot.slane %v13473_v24, 1 }
 0x2ff   : > { %4717 = vrot.lane.b32.xlu1 %v4682_v28, %s11688_s6  ;;  %v5715_v28 = vor.u32 %v5713_v22, %v13359_v53  ;;  %v11081_v53 = vld [vmem:[%s12114_s7 + $0x28] sm:$0xff]   ;;  %vm4291_vm15 = vcmask 917312  }
 0x300   : > { %v3865_v41 = vpop.permute.xlu0 %3864  ;;  %v6553_v3 = vrot.slane %v6551_v47, 2  ;;  %v7398_v58 = vshrl.u32 %v11081_v53, 16  ;;  %v7401_v59 = vshll.u32 %v11081_v53, 16  ;;  %v6288_v60 = vsel %vm16672_vm1, %v6285_v32, %v6287_v51 }
 0x301   : > { %3919 = vst.msk [vmem:[#allocation2] sm:$0xff] %vm3918_vm13, %v3865_v41  ;;  %v3867_v52 = vpop.permute.xlu1 %3866  ;;  %v4961_v41 = vrot.slane %v4959_v26, 3  ;;  %v5720_v50 = vsel %vm16658_vm0, %v5715_v28, %v13469_v12  ;;  %v11212_v26 = vld [vmem:[%s12107_s14 + $0x38] sm:$0xff]   ;;  %v6050_v53 = vrot.slane %v13578_v54, 1 }
 0x302   : > { %5843 = vrot.lane.b32.xlu0 %v5712_v25, %s11675_s20  ;;  %3920 = vst.msk [vmem:[#allocation2 + $0x10] sm:$0xff] %vm3918_vm13, %v3867_v52  ;;  %v6550_v25 = vrot.slane %v6548_v19, 1  ;;  %v13499_v52 = vld [vmem:[%s12114_s7 + $0x20] sm:$0xff]   ;;  %v7403_v62 = vrot.slane %v7401_v59, 3  ;;  %v5721_v19 = vshrl.u32 %v13422_v40, 16 }
 0x303   : > { %6082 = vrot.lane.b32.xlu1 %v6047_v36, %s11676_s1  ;;  %v13492_v49 = vor.u32 %v4961_v41, %v4958_v30  ;;  %v4965_v30 = vshrl.u32 %v11212_v26, 16 }
 0x304   : > { %v3869_v61 = vpop.permute.xlu0 %3868 }
 0x305   : > { %3921 = vst.msk [vmem:[#allocation2 + $0x20] sm:$0xff] %vm3918_vm13, %v3869_v61  ;;  %v3871_v34 = vpop.permute.xlu1 %3870  ;;  %v6049_v61 = vsel %vm16672_vm1, %v6046_v14, %v6048_v29  ;;  %v6898_v14 = vrot.slane %v13499_v52, 2 }
 0x306   : > { %6321 = vrot.lane.b32.xlu0 %v6286_v16, %s11677_s18  ;;  %3922 = vst.msk [vmem:[#allocation2 + $0x30] sm:$0xff] %vm3918_vm13, %v3871_v34  ;;  %v4963_v16 = vsel %vm2422_vm8, %v13384_v38, %v13492_v49 }
 0x307   : > { %6693 = vrot.lane.b32.xlu1 %v6546_v57, %s11678_s15  ;;  %v13514_v57 = vor.u32 %v6553_v3, %v6550_v25  ;;  %5111 = vst.msk [vmem:[#allocation2 + $0x38] sm:$0xff] %vm16671_vm2, %v4963_v16  ;;  %v5723_v25 = vor.u32 %v5721_v19, %v13469_v12  ;;  %v11095_v12 = vld [vmem:[%s12114_s7 + $0x30] sm:$0xff]   ;;  %v13663_v19 = vld [vmem:[%s12114_s7 + $0x28] sm:$0xff]  }
 0x308   : > { %v3873_v15 = vpop.permute.xlu0 %3872 }
 0x309   : > { %3923 = vst.msk [vmem:[#allocation2 + $0x40] sm:$0xff] %vm3918_vm13, %v3873_v15  ;;  %v3875_v4 = vpop.permute.xlu1 %3874  ;;  %v7137_v15 = vrot.slane %v13503_v6, 2 }
 0x30a   : > { %6932 = vrot.lane.b32.xlu0 %v6897_v0, %s11679_s30  ;;  %3924 = vst.msk [vmem:[#allocation2 + $0x50] sm:$0xff] %vm3918_vm13, %v3875_v4  ;;  %v13519_v0 = vld [vmem:[%s12107_s14 + $0x30] sm:$0xff]   ;;  %v7400_v4 = vrot.slane %v7398_v58, 2 }
 0x30b   : > { %7171 = vrot.lane.b32.xlu1 %v7136_v63, %s11680_s2  ;;  %v6555_v63 = vsel %vm16669_vm3, %v13396_v46, %v13514_v57  ;;  %v5263_v21 = vrot.slane %v13519_v0, 3  ;;  %v13544_v46 = vld [vmem:[%s12114_s7 + $0x28] sm:$0xff]  }
 0x30c   : > { %v3877_v8 = vpop.permute.xlu0 %3876  ;;  %v13555_v22 = vor.u32 %v7403_v62, %v7400_v4  ;;  %v7407_v4 = vshrl.u32 %v11095_v12, 16  ;;  %v7410_v62 = vshll.u32 %v11095_v12, 16  ;;  %v13701_v12 = vld [vmem:[%s12107_s14 + $0x58] sm:$0xff]  }
 0x30d   : > { %3925 = vst.msk [vmem:[#allocation2 + $0x60] sm:$0xff] %vm3918_vm13, %v3877_v8  ;;  %v3879_v13 = vpop.permute.xlu1 %3878  ;;  %v13547_v8 = vld [vmem:[%s12114_s7 + $0x20] sm:$0xff]   ;;  %v5264_v43 = vsel %vm2796_vm10, %v5261_v2, %v5263_v21 }
 0x30e   : > { %5297 = vrot.lane.b32.xlu0 %v5262_v7, %s11673_s9  ;;  %3926 = vst.msk [vmem:[#allocation2 + $0x70] sm:$0xff] %vm3918_vm13, %v3879_v13  ;;  %v6899_v7 = vsel %vm1941_vm5, %v6896_v33, %v6898_v14  ;;  %v13559_v33 = vld [vmem:[%s12107_s14 + $0x28] sm:$0xff]   ;;  %v7405_v47 = vsel %vm2422_vm8, %v13440_v5, %v13555_v22  ;;  %v5725_v23 = vshll.u32 %v13547_v8, 16  ;;  %v4968_v5 = vshll.u32 %v11212_v26, 16 }
 0x30f   : > { %7543 = vrot.lane.b32.xlu1 %v7396_v9, %s11681_s21  ;;  %v7138_v9 = vsel %vm1941_vm5, %v7135_v55, %v7137_v15  ;;  %v11082_v55 = vld [vmem:[%s12114_s7 + $0x18] sm:$0xff]   ;;  %v4685_v40 = vrot.slane %v13559_v33, 2  ;;  %v7412_v24 = vrot.slane %v7410_v62, 3 }
 0x310   : > { %v3881_v48 = vpop.permute.xlu0 %3880  ;;  %v13592_v41 = vrot.slane %v5725_v23, 1 }
 0x311   : > { %3927 = vst.msk [vmem:[#allocation2 + $0x80] sm:$0xff] %vm3918_vm13, %v3881_v48  ;;  %v3883_v31 = vpop.permute.xlu1 %3882  ;;  %v6557_v48 = vshrl.u32 %v11088_v39, 16  ;;  %v4686_v45 = vsel %vm1941_vm5, %v4683_v20, %v4685_v40  ;;  %v13618_v20 = vld [vmem:[%s12114_s7 + $0x30] sm:$0xff]  }
 0x312   : > { %5495 = vrot.lane.b32.xlu0 %v11071_v17, %s11674_s11  ;;  %3928 = vst.msk [vmem:[#allocation2 + $0x90] sm:$0xff] %vm3918_vm13, %v3883_v31  ;;  %v7748_v17 = vrot.slane %v13544_v46, 3  ;;  %v5728_v58 = vsel %vm16658_vm0, %v5723_v25, %v13592_v41 }
 0x313   : > { %7782 = vrot.lane.b32.xlu1 %v7747_v27, %s11682_s4  ;;  %v6560_v27 = vshll.u32 %v11088_v39, 16  ;;  %v13650_v39 = vld [vmem:[%s12114_s7 + $0x30] sm:$0xff]  }
 0x314   : > { %v3885_v36 = vpop.permute.xlu0 %3884  ;;  %v7749_v31 = vsel %vm2796_vm10, %v7746_v10, %v7748_v17 }
 0x315   : > { %3929 = vst.msk [vmem:[#allocation2 + $0xa0] sm:$0xff] %vm3918_vm13, %v3885_v36  ;;  %v3887_v56 = vpop.permute.xlu1 %3886  ;;  %v6559_v36 = vrot.slane %v6557_v48, 1  ;;  %v6562_v10 = vrot.slane %v6560_v27, 2  ;;  %v7750_v27 = vrot.slane %v13650_v39, 3 }
 0x316   : > { %4719 = vrot.lane.b32.xlu0 %v4684_v42, %s11688_s6  ;;  %3930 = vst.msk [vmem:[#allocation2 + $0xb0] sm:$0xff] %vm3918_vm13, %v3887_v56  ;;  %v13595_v42 = vld [vmem:[%s12114_s7 + $0x28] sm:$0xff]   ;;  %v4970_v56 = vrot.slane %v4968_v5, 3  ;;  %v13677_v5 = vld [vmem:[%s12107_s14 + $0x30] sm:$0xff]  }
 0x317   : > { %5845 = vrot.lane.b32.xlu1 %v5720_v50, %s11675_s20  ;;  %v4967_v50 = vrot.slane %v4965_v30, 2  ;;  %v6289_v59 = vrot.slane %v13595_v42, 1  ;;  %v7751_v62 = vsel %vm2796_vm10, %v7748_v17, %v7750_v27 }
 0x318   : > { %v3889_v34 = vpop.permute.xlu0 %3888 }
 0x319   : > { %3931 = vst.msk [vmem:[#allocation2 + $0xc0] sm:$0xff] %vm3918_vm13, %v3889_v34  ;;  %v3891_v38 = vpop.permute.xlu1 %3890  ;;  %v13614_v34 = vld [vmem:[%s12114_s7 + $0x28] sm:$0xff]   ;;  %v6290_v11 = vsel %vm16672_vm1, %v6287_v51, %v6289_v59  ;;  %v11219_v51 = vld [vmem:[%s12107_s14 + $0x58] sm:$0xff]  }
 0x31a   : > { %6084 = vrot.lane.b32.xlu0 %v6049_v61, %s11676_s1  ;;  %3932 = vst.msk [vmem:[#allocation2 + $0xd0] sm:$0xff] %vm3918_vm13, %v3891_v38  ;;  %v13607_v61 = vor.u32 %v4970_v56, %v4967_v50  ;;  %v6051_v38 = vsel %vm16672_vm1, %v6048_v29, %v6050_v53  ;;  %v6900_v29 = vrot.slane %v13614_v34, 2  ;;  %v11098_v56 = vld [vmem:[%s12114_s7 + $0x20] sm:$0xff]  }
 0x31b   : > { %6323 = vrot.lane.b32.xlu1 %v6288_v60, %s11677_s18 }
 0x31c   : > { %v3893_v32 = vpop.permute.xlu0 %3892  ;;  %v4972_v60 = vsel %vm2422_vm8, %v13492_v49, %v13607_v61  ;;  %v13641_v49 = vld [vmem:[%s12107_s14 + $0x38] sm:$0xff]  }
 0x31d   : > { %3933 = vst.msk [vmem:[#allocation2 + $0xe0] sm:$0xff] %vm3918_vm13, %v3893_v32  ;;  %v3895_v35 = vpop.permute.xlu1 %3894 }
 0x31e   : > { %6695 = vrot.lane.b32.xlu0 %v6555_v63, %s11678_s15  ;;  %3934 = vst.msk [vmem:[#allocation2 + $0xf0] sm:$0xff] %vm3918_vm13, %v3895_v35  ;;  %v13629_v63 = vor.u32 %v6562_v10, %v6559_v36  ;;  %v13687_v36 = vld [vmem:[%s12114_s7 + $0x28] sm:$0xff]  }
 0x31f   : > { %6934 = vrot.lane.b32.xlu1 %v6899_v7, %s11679_s30  ;;  %5112 = vst.msk [vmem:[#allocation2 + $0x48] sm:$0xff] %vm16671_vm2, %v4972_v60  ;;  %v4687_v60 = vrot.slane %v13677_v5, 2 }
 0x320   : > { %v3897_v37 = vpop.permute.xlu0 %3896  ;;  %v6564_v35 = vsel %vm16669_vm3, %v13514_v57, %v13629_v63  ;;  %v5265_v57 = vrot.slane %v13641_v49, 3 }
 0x321   : > { %3935 = vst.msk [vmem:[#allocation2 + $0x100] sm:$0xff] %vm3918_vm13, %v3897_v37  ;;  %v3899_v13 = vpop.permute.xlu1 %3898  ;;  %v7409_v37 = vrot.slane %v7407_v4, 2  ;;  %v11121_v4 = vld [vmem:[%s12114_s7 + $0x48] sm:$0xff]   ;;  %v4688_v46 = vsel %vm1941_vm5, %v4685_v40, %v4687_v60 }
 0x322   : > { %7173 = vrot.lane.b32.xlu0 %v7138_v9, %s11680_s2  ;;  %3936 = vst.msk [vmem:[#allocation2 + $0x110] sm:$0xff] %vm3918_vm13, %v3899_v13  ;;  %v7139_v9 = vrot.slane %v13618_v20, 2  ;;  %v5266_v6 = vsel %vm2796_vm10, %v5263_v21, %v5265_v57  ;;  %v5729_v21 = vshrl.u32 %v13547_v8, 16  ;;  %vm16647_vm13 = vcmask 982912  }
 0x323   : > { %5299 = vrot.lane.b32.xlu1 %v5264_v43, %s11673_s9  ;;  %v11220_v43 = vld [vmem:[%s12107_s14 + $0x60] sm:$0xff]  }
 0x324   : > { %v4238_v2 = vpop.permute.xlu0 %4237  ;;  %v5010_v48 = vshrl.u32 %v11220_v43, 16  ;;  %v5013_v26 = vshll.u32 %v11220_v43, 16  ;;  %v7140_v52 = vsel %vm1941_vm5, %v7137_v15, %v7139_v9  ;;  %v5733_v15 = vshll.u32 %v13663_v19, 16  ;;  %v13740_v43 = vld [vmem:[%s12114_s7 + $0x50] sm:$0xff]  }
 0x325   : > { %4292 = vst.msk [vmem:[#allocation2] sm:$0xff] %vm4291_vm15, %v4238_v2  ;;  %v4240_v28 = vpop.permute.xlu1 %4239  ;;  %v5004_v2 = vshll.u32 %v11219_v51, 16 }
 0x326   : > { %7545 = vrot.lane.b32.xlu0 %v7405_v47, %s11681_s21  ;;  %4293 = vst.msk [vmem:[#allocation2 + $0x10] sm:$0xff] %vm4291_vm15, %v4240_v28  ;;  %v5001_v47 = vshrl.u32 %v11219_v51, 16  ;;  %v5012_v25 = vrot.slane %v5010_v48, 2 }
 0x327   : > { %5497 = vrot.lane.b32.xlu1 %v11082_v55, %s11674_s11  ;;  %v6901_v55 = vsel %vm1941_vm5, %v6898_v14, %v6900_v29  ;;  %v13672_v14 = vor.u32 %v7412_v24, %v7409_v37  ;;  %v13730_v24 = vld [vmem:[%s12114_s7 + $0x30] sm:$0xff]  }
 0x328   : > { %v4242_v3 = vpop.permute.xlu0 %4241  ;;  %v5003_v28 = vrot.slane %v5001_v47, 2  ;;  %v11229_v47 = vld [vmem:[%s12107_s14 + $0x40] sm:$0xff]   ;;  %v6291_v40 = vrot.slane %v13730_v24, 1  ;;  %v14003_v24 = vld [vmem:[%s12114_s7 + $0x60] sm:$0xff]  }
 0x329   : > { %4294 = vst.msk [vmem:[#allocation2 + $0x20] sm:$0xff] %vm4291_vm15, %v4242_v3  ;;  %v4244_v16 = vpop.permute.xlu1 %4243  ;;  %v5015_v3 = vrot.slane %v5013_v26, 3  ;;  %v7414_v0 = vsel %vm2422_vm8, %v13555_v22, %v13672_v14  ;;  %v13715_v22 = vrot.slane %v5733_v15, 1  ;;  %v4974_v26 = vshrl.u32 %v11229_v47, 16  ;;  %v11116_v15 = vld [vmem:[%s12114_s7 + $0x48] sm:$0xff]  }
 0x32a   : > { %7784 = vrot.lane.b32.xlu0 %v7749_v31, %s11682_s4  ;;  %4295 = vst.msk [vmem:[#allocation2 + $0x30] sm:$0xff] %vm4291_vm15, %v4244_v16  ;;  %v5006_v31 = vrot.slane %v5004_v2, 3 }
 0x32b   : > { %4721 = vrot.lane.b32.xlu1 %v4686_v45, %s11688_s6  ;;  %v13693_v10 = vor.u32 %v5015_v3, %v5012_v25  ;;  %v4976_v25 = vrot.slane %v4974_v26, 2  ;;  %v13824_v26 = vld [vmem:[%s12114_s7 + $0x50] sm:$0xff]  }
 0x32c   : > { %v4246_v18 = vpop.permute.xlu0 %4245  ;;  %v13691_v45 = vor.u32 %v5006_v31, %v5003_v28  ;;  %v5773_v31 = vshll.u32 %v13740_v43, 16 }
 0x32d   : > { %4296 = vst.msk [vmem:[#allocation2 + $0x40] sm:$0xff] %vm4291_vm15, %v4246_v18  ;;  %v4248_v32 = vpop.permute.xlu1 %4247 }
 0x32e   : > { %5847 = vrot.lane.b32.xlu0 %v5728_v58, %s11675_s20  ;;  %4297 = vst.msk [vmem:[#allocation2 + $0x50] sm:$0xff] %vm4291_vm15, %v4248_v32  ;;  %v13705_v58 = vld [vmem:[%s12107_s14 + $0x60] sm:$0xff]   ;;  %v5017_v18 = vsel %vm2422_vm8, %v13691_v45, %v13693_v10  ;;  %v5731_v32 = vor.u32 %v5729_v21, %v13592_v41 }
 0x32f   : > { %6086 = vrot.lane.b32.xlu1 %v6051_v38, %s11676_s1  ;;  %v11119_v38 = vld [vmem:[%s12114_s7 + $0x30] sm:$0xff]   ;;  %5117 = vst.msk [vmem:[#allocation2 + $0x98] sm:$0xff] %vm16671_vm2, %v5017_v18  ;;  %v5275_v37 = vrot.slane %v13705_v58, 3  ;;  %v13778_v21 = vld [vmem:[%s12114_s7 + $0x48] sm:$0xff]  }
 0x330   : > { %v4250_v7 = vpop.permute.xlu0 %4249  ;;  %v6566_v17 = vshrl.u32 %v11119_v38, 16  ;;  %v6569_v41 = vshll.u32 %v11119_v38, 16  ;;  %v13784_v38 = vld [vmem:[%s12114_s7 + $0x50] sm:$0xff]  }
 0x331   : > { %4298 = vst.msk [vmem:[#allocation2 + $0x60] sm:$0xff] %vm4291_vm15, %v4250_v7  ;;  %v4252_v13 = vpop.permute.xlu1 %4251  ;;  %v16649_v7 = vrot.slane %v13701_v12, 3 }
 0x332   : > { %6325 = vrot.lane.b32.xlu0 %v6290_v11, %s11677_s18  ;;  %4299 = vst.msk [vmem:[#allocation2 + $0x70] sm:$0xff] %vm4291_vm15, %v4252_v13  ;;  %v6052_v11 = vrot.slane %v13687_v36, 1  ;;  %v5765_v13 = vshll.u32 %v11121_v4, 16  ;;  %v6568_v2 = vrot.slane %v6566_v17, 1  ;;  %v6571_v48 = vrot.slane %v6569_v41, 2 }
 0x333   : > { %6697 = vrot.lane.b32.xlu1 %v6564_v35, %s11678_s15  ;;  %v5276_v54 = vsel %vm2796_vm10, %v16649_v7, %v5275_v37  ;;  %v16646_v17 = vrot.slane %v13778_v21, 1  ;;  %v6062_v41 = vrot.slane %v13784_v38, 1 }
 0x334   : > { %v4254_v23 = vpop.permute.xlu0 %4253  ;;  %v6053_v33 = vsel %vm16672_vm1, %v6050_v53, %v6052_v11  ;;  %v13760_v53 = vrot.slane %v5765_v13, 1 }
 0x335   : > { %4300 = vst.msk [vmem:[#allocation2 + $0x80] sm:$0xff] %vm4291_vm15, %v4254_v23  ;;  %v4256_v30 = vpop.permute.xlu1 %4255 }
 0x336   : > { %6936 = vrot.lane.b32.xlu0 %v6901_v55, %s11679_s30  ;;  %4301 = vst.msk [vmem:[#allocation2 + $0x90] sm:$0xff] %vm4291_vm15, %v4256_v30  ;;  %v5736_v55 = vsel %vm16658_vm0, %v5731_v32, %v13715_v22  ;;  %v5769_v30 = vshrl.u32 %v11121_v4, 16  ;;  %v13789_v4 = vrot.slane %v5773_v31, 1 }
 0x337   : > { %7175 = vrot.lane.b32.xlu1 %v7140_v52, %s11680_s2  ;;  %v4977_v52 = vshll.u32 %v11229_v47, 16  ;;  %v11146_v47 = vld [vmem:[%s12114_s7 + $0x50] sm:$0xff]  }
 0x338   : > { %v4258_v50 = vpop.permute.xlu0 %4257  ;;  %v5771_v42 = vor.u32 %v5769_v30, %v13760_v53 }
 0x339   : > { %4302 = vst.msk [vmem:[#allocation2 + $0xa0] sm:$0xff] %vm4291_vm15, %v4258_v50  ;;  %v4260_v16 = vpop.permute.xlu1 %4259  ;;  %v4979_v3 = vrot.slane %v4977_v52, 3  ;;  %v13767_v50 = vld [vmem:[%s12114_s7 + $0x30] sm:$0xff]   ;;  %v13827_v52 = vld [vmem:[%s12114_s7 + $0x58] sm:$0xff]  }
 0x33a   : > { %5301 = vrot.lane.b32.xlu0 %v5266_v6, %s11673_s9  ;;  %4303 = vst.msk [vmem:[#allocation2 + $0xb0] sm:$0xff] %vm4291_vm15, %v4260_v16 }
 0x33b   : > { %7547 = vrot.lane.b32.xlu1 %v7414_v0, %s11681_s21  ;;  %v13775_v0 = vor.u32 %v6571_v48, %v6568_v2  ;;  %v13780_v16 = vor.u32 %v4979_v3, %v4976_v25  ;;  %v6605_v25 = vshll.u32 %v11146_v47, 16 }
 0x33c   : > { %v4262_v8 = vpop.permute.xlu0 %4261 }
 0x33d   : > { %4304 = vst.msk [vmem:[#allocation2 + $0xc0] sm:$0xff] %vm4291_vm15, %v4262_v8  ;;  %v4264_v35 = vpop.permute.xlu1 %4263  ;;  %v11141_v8 = vld [vmem:[%s12114_s7 + $0x38] sm:$0xff]   ;;  %v6573_v32 = vsel %vm16669_vm3, %v13629_v63, %v13775_v0  ;;  %v5776_v63 = vsel %vm16658_vm0, %v5771_v42, %v13789_v4 }
 0x33e   : > { %5499 = vrot.lane.b32.xlu0 %v11098_v56, %s11674_s11  ;;  %4305 = vst.msk [vmem:[#allocation2 + $0xd0] sm:$0xff] %vm4291_vm15, %v4264_v35  ;;  %v6292_v56 = vsel %vm16672_vm1, %v6289_v59, %v6291_v40  ;;  %v4981_v59 = vsel %vm2422_vm8, %v13607_v61, %v13780_v16  ;;  %v6902_v35 = vrot.slane %v13767_v50, 2  ;;  %v7416_v13 = vshrl.u32 %v11141_v8, 16 }
 0x33f   : > { %7786 = vrot.lane.b32.xlu1 %v7751_v62, %s11682_s4  ;;  %5113 = vst.msk [vmem:[#allocation2 + $0x58] sm:$0xff] %vm16671_vm2, %v4981_v59 }
 0x340   : > { %v4266_v51 = vpop.permute.xlu0 %4265  ;;  %v6903_v2 = vsel %vm1941_vm5, %v6900_v29, %v6902_v35  ;;  %v7418_v34 = vrot.slane %v7416_v13, 2  ;;  %v6602_v29 = vshrl.u32 %v11146_v47, 16  ;;  %v11242_v47 = vld [vmem:[%s12107_s14 + $0x68] sm:$0xff]  }
 0x341   : > { %4306 = vst.msk [vmem:[#allocation2 + $0xe0] sm:$0xff] %vm4291_vm15, %v4266_v51  ;;  %v4268_v23 = vpop.permute.xlu1 %4267  ;;  %v13808_v51 = vld [vmem:[%s12107_s14 + $0x40] sm:$0xff]  }
 0x342   : > { %4723 = vrot.lane.b32.xlu0 %v4688_v46, %s11688_s6  ;;  %4307 = vst.msk [vmem:[#allocation2 + $0xf0] sm:$0xff] %vm4291_vm15, %v4268_v23  ;;  %v13802_v46 = vld [vmem:[%s12114_s7 + $0x38] sm:$0xff]   ;;  %v5267_v30 = vrot.slane %v13808_v51, 3  ;;  %v6604_v20 = vrot.slane %v6602_v29, 1 }
 0x343   : > { %5849 = vrot.lane.b32.xlu1 %v5736_v55, %s11675_s20  ;;  %v7419_v55 = vshll.u32 %v11141_v8, 16  ;;  %v11147_v23 = vld [vmem:[%s12114_s7 + $0x58] sm:$0xff]   ;;  %v7141_v48 = vrot.slane %v13802_v46, 2  ;;  %v6301_v8 = vrot.slane %v13827_v52, 1 }
 0x344   : > { %v4270_v28 = vpop.permute.xlu0 %4269  ;;  %v6611_v3 = vshrl.u32 %v11147_v23, 16  ;;  %v5268_v59 = vsel %vm2796_vm10, %v5265_v57, %v5267_v30  ;;  %v13866_v57 = vld [vmem:[%s12114_s7 + $0x38] sm:$0xff]  }
 0x345   : > { %4308 = vst.msk [vmem:[#allocation2 + $0x100] sm:$0xff] %vm4291_vm15, %v4270_v28  ;;  %v4272_v6 = vpop.permute.xlu1 %4271  ;;  %v7421_v31 = vrot.slane %v7419_v55, 3  ;;  %v13857_v55 = vld [vmem:[%s12114_s7 + $0x30] sm:$0xff]  }
 0x346   : > { %6088 = vrot.lane.b32.xlu0 %v6053_v33, %s11676_s1  ;;  %4309 = vst.msk [vmem:[#allocation2 + $0x110] sm:$0xff] %vm4291_vm15, %v4272_v6  ;;  %v6614_v6 = vshll.u32 %v11147_v23, 16  ;;  %v5741_v29 = vshll.u32 %v13857_v55, 16  ;;  %vm16736_vm15 = vcmask 523712  }
 0x347   : > { %5311 = vrot.lane.b32.xlu1 %v5276_v54, %s11673_s9  ;;  %v6063_v54 = vsel %vm16672_vm1, %v16646_v17, %v6062_v41 }
 0x348   : > { %v4478_v18 = vpop.permute.xlu0 %4477 }
 0x349   : > { %4532 = vst.msk [vmem:[#allocation2] sm:$0xff] %vm16647_vm13, %v4478_v18  ;;  %v4480_v62 = vpop.permute.xlu1 %4479  ;;  %v16645_v18 = vrot.slane %v13824_v26, 1 }
 0x34a   : > { %6327 = vrot.lane.b32.xlu0 %v6292_v56, %s11677_s18  ;;  %4533 = vst.msk [vmem:[#allocation2 + $0x10] sm:$0xff] %vm16647_vm13, %v4480_v62  ;;  %v7142_v56 = vsel %vm1941_vm5, %v7139_v9, %v7141_v48  ;;  %v13852_v62 = vor.u32 %v7421_v31, %v7418_v34  ;;  %v6607_v9 = vrot.slane %v6605_v25, 2  ;;  %v11144_v34 = vld [vmem:[%s12114_s7 + $0x28] sm:$0xff]   ;;  %v5737_v31 = vshrl.u32 %v13663_v19, 16 }
 0x34b   : > { %5509 = vrot.lane.b32.xlu1 %v11116_v15, %s11674_s11  ;;  %v6302_v49 = vsel %vm16672_vm1, %v16645_v18, %v6301_v8  ;;  %v5019_v25 = vshrl.u32 %v11242_v47, 16 }
 0x34c   : > { %v4482_v61 = vpop.permute.xlu0 %4481  ;;  %v7423_v23 = vsel %vm2422_vm8, %v13672_v14, %v13852_v62  ;;  %v7752_v14 = vrot.slane %v13866_v57, 3 }
 0x34d   : > { %4534 = vst.msk [vmem:[#allocation2 + $0x20] sm:$0xff] %vm16647_vm13, %v4482_v61  ;;  %v4484_v33 = vpop.permute.xlu1 %4483  ;;  %v6616_v61 = vrot.slane %v6614_v6, 2 }
 0x34e   : > { %6699 = vrot.lane.b32.xlu0 %v6573_v32, %s11678_s15  ;;  %4535 = vst.msk [vmem:[#allocation2 + $0x30] sm:$0xff] %vm16647_vm13, %v4484_v33  ;;  %v6613_v32 = vrot.slane %v6611_v3, 1  ;;  %v13874_v33 = vor.u32 %v6607_v9, %v6604_v20  ;;  %v5022_v3 = vshll.u32 %v11242_v47, 16  ;;  %v13897_v20 = vld [vmem:[%s12114_s7 + $0x58] sm:$0xff]  }
 0x34f   : > { %5859 = vrot.lane.b32.xlu1 %v5776_v63, %s11675_s20  ;;  %v11173_v47 = vld [vmem:[%s12114_s7 + $0x58] sm:$0xff]  }
 0x350   : > { %v4486_v28 = vpop.permute.xlu0 %4485 }
 0x351   : > { %4536 = vst.msk [vmem:[#allocation2 + $0x40] sm:$0xff] %vm16647_vm13, %v4486_v28  ;;  %v4488_v15 = vpop.permute.xlu1 %4487  ;;  %v13879_v28 = vld [vmem:[%s12107_s14 + $0x38] sm:$0xff]  }
 0x352   : > { %6938 = vrot.lane.b32.xlu0 %v6903_v2, %s11679_s30  ;;  %4537 = vst.msk [vmem:[#allocation2 + $0x50] sm:$0xff] %vm16647_vm13, %v4488_v15  ;;  %v13876_v2 = vor.u32 %v6616_v61, %v6613_v32  ;;  %v5021_v15 = vrot.slane %v5019_v25, 2  ;;  %v5739_v32 = vor.u32 %v5737_v31, %v13715_v22  ;;  %v13901_v61 = vrot.slane %v5741_v29, 1  ;;  %v13929_v31 = vld [vmem:[%s12114_s7 + $0x58] sm:$0xff]   ;;  %v13932_v29 = vld [vmem:[%s12114_s7 + $0x60] sm:$0xff]  }
 0x353   : > { %6098 = vrot.lane.b32.xlu1 %v6063_v54, %s11676_s1 }
 0x354   : > { %v4490_v42 = vpop.permute.xlu0 %4489  ;;  %v6618_v19 = vsel %vm16669_vm3, %v13874_v33, %v13876_v2  ;;  %v5744_v5 = vsel %vm16658_vm0, %v5739_v32, %v13901_v61  ;;  %v16648_v32 = vrot.slane %v13929_v31, 2 }
 0x355   : > { %4538 = vst.msk [vmem:[#allocation2 + $0x60] sm:$0xff] %vm16647_vm13, %v4490_v42  ;;  %v4492_v13 = vpop.permute.xlu1 %4491  ;;  %v4689_v42 = vrot.slane %v13879_v28, 2 }
 0x356   : > { %7177 = vrot.lane.b32.xlu0 %v7142_v56, %s11680_s2  ;;  %4539 = vst.msk [vmem:[#allocation2 + $0x70] sm:$0xff] %vm16647_vm13, %v4492_v13  ;;  %v5024_v56 = vrot.slane %v5022_v3, 3  ;;  %v13904_v13 = vld [vmem:[%s12114_s7 + $0x30] sm:$0xff]   ;;  %v7452_v3 = vshrl.u32 %v11173_v47, 16 }
 0x357   : > { %5303 = vrot.lane.b32.xlu1 %v5268_v59, %s11673_s9  ;;  %v13894_v59 = vld [vmem:[%s12114_s7 + $0x50] sm:$0xff]   ;;  %v4690_v39 = vsel %vm1941_vm5, %v4687_v60, %v4689_v42 }
 0x358   : > { %v4494_v63 = vpop.permute.xlu0 %4493  ;;  %v13940_v60 = vld [vmem:[%s12107_s14 + $0x68] sm:$0xff]  }
 0x359   : > { %4540 = vst.msk [vmem:[#allocation2 + $0x80] sm:$0xff] %vm16647_vm13, %v4494_v63  ;;  %v5294_v54 = vpop.permute.xlu1 %5293  ;;  %v7753_v63 = vsel %vm2796_vm10, %v7750_v27, %v7752_v14  ;;  %v16644_v27 = vrot.slane %v13894_v59, 2  ;;  %vm16737_vm13 = vcmask 589312  }
 0x35a   : > { %6337 = vrot.lane.b32.xlu0 %v6302_v49, %s11677_s18  ;;  %5347 = vst.msk [vmem:[#allocation2 + $0x8] sm:$0xff] %vm16673_vm4, %v5294_v54  ;;  %v13906_v49 = vor.u32 %v5024_v56, %v5021_v15 }
 0x35b   : > { %7549 = vrot.lane.b32.xlu1 %v7423_v23, %s11681_s21  ;;  %v11174_v23 = vld [vmem:[%s12114_s7 + $0x60] sm:$0xff]  }
 0x35c   : > { %v5492_v6 = vpop.permute.xlu0 %5491  ;;  %v5026_v54 = vsel %vm2422_vm8, %v13693_v10, %v13906_v49  ;;  %v6054_v10 = vrot.slane %v13904_v13, 1  ;;  %v7461_v15 = vshrl.u32 %v11174_v23, 16  ;;  %v7464_v56 = vshll.u32 %v11174_v23, 16  ;;  %v14224_v13 = vld [vmem:[%s12107_s14 + $0x60] sm:$0xff]  }
 0x35d   : > { %5545 = vst.msk [vmem:[#allocation2 + $0x8] sm:$0xff] %vm16670_vm6, %v5492_v6  ;;  %v5842_v9 = vpop.permute.xlu1 %5841  ;;  %v7455_v6 = vshll.u32 %v11173_v47, 16  ;;  %v11181_v47 = vld [vmem:[%s12114_s7 + $0x38] sm:$0xff]  }
 0x35e   : > { %5501 = vrot.lane.b32.xlu0 %v11144_v34, %s11674_s11  ;;  %5895 = vst.msk [vmem:[#allocation2 + $0x8] sm:$0xff] %vm1418_vm7, %v5842_v9  ;;  %v6912_v34 = vrot.slane %v13897_v20, 2  ;;  %v7466_v18 = vrot.slane %v7464_v56, 3 }
 0x35f   : > { %6709 = vrot.lane.b32.xlu1 %v6618_v19, %s11678_s15  ;;  %5118 = vst.msk [vmem:[#allocation2 + $0xa8] sm:$0xff] %vm16671_vm2, %v5026_v54  ;;  %v6055_v54 = vsel %vm16672_vm1, %v6052_v11, %v6054_v10 }
 0x360   : > { %v6081_v22 = vpop.permute.xlu0 %6080  ;;  %v6913_v9 = vsel %vm1941_vm5, %v16644_v27, %v6912_v34  ;;  %v7463_v27 = vrot.slane %v7461_v15, 2 }
 0x361   : > { %6134 = vst.msk [vmem:[#allocation2 + $0x8] sm:$0xff] %vm1792_vm9, %v6081_v22  ;;  %v6320_v25 = vpop.permute.xlu1 %6319  ;;  %v13953_v22 = vld [vmem:[%s12114_s7 + $0x38] sm:$0xff]  }
 0x362   : > { %7788 = vrot.lane.b32.xlu0 %v7753_v63, %s11682_s4  ;;  %6373 = vst.msk [vmem:[#allocation2 + $0x8] sm:$0xff] %vm2033_vm11, %v6320_v25  ;;  %v16653_v63 = vrot.slane %v13932_v29, 2  ;;  %v7454_v25 = vrot.slane %v7452_v3, 2  ;;  %v16651_v11 = vrot.slane %v13953_v22, 1  ;;  %v6578_v3 = vshll.u32 %v11181_v47, 16 }
 0x363   : > { %4725 = vrot.lane.b32.xlu1 %v4690_v39, %s11688_s6  ;;  %v16652_v39 = vrot.slane %v13940_v60, 3  ;;  %v13984_v56 = vor.u32 %v7466_v18, %v7463_v27 }
 0x364   : > { %v6692_v19 = vpop.permute.xlu0 %6691  ;;  %v7152_v36 = vsel %vm1941_vm5, %v16648_v32, %v16653_v63  ;;  %v6294_v58 = vsel %vm16672_vm1, %v6291_v40, %v16651_v11  ;;  %v14006_v40 = vld [vmem:[%s12114_s7 + $0x58] sm:$0xff]  }
 0x365   : > { %6745 = vst.msk [vmem:[#allocation2 + $0x8] sm:$0xff] %vm16662_vm12, %v6692_v19  ;;  %v6931_v23 = vpop.permute.xlu1 %6930  ;;  %v7457_v19 = vrot.slane %v7455_v6, 3  ;;  %v14039_v11 = vld [vmem:[%s12114_s7 + $0x38] sm:$0xff]  }
 0x366   : > { %5851 = vrot.lane.b32.xlu0 %v5744_v5, %s11675_s20  ;;  %6984 = vst.msk [vmem:[#allocation2 + $0x8] sm:$0xff] %vm16736_vm15, %v6931_v23  ;;  %v13973_v5 = vld [vmem:[%s12107_s14 + $0x58] sm:$0xff]   ;;  %v6575_v23 = vshrl.u32 %v11181_v47, 16  ;;  %vm4771_vm15 = vcmask 1048512  }
 0x367   : > { %6948 = vrot.lane.b32.xlu1 %v6913_v9, %s11679_s30  ;;  %v13982_v15 = vor.u32 %v7457_v19, %v7454_v25  ;;  %v16650_v47 = vrot.slane %v13973_v5, 2  ;;  %v14000_v25 = vld [vmem:[%s12114_s7 + $0x58] sm:$0xff]  }
 0x368   : > { %v7170_v17 = vpop.permute.xlu0 %7169  ;;  %v16655_v44 = vrot.slane %v14000_v25, 3 }
 0x369   : > { %7223 = vst.msk [vmem:[#allocation2 + $0x8] sm:$0xff] %vm16737_vm13, %v7170_v17  ;;  %v5296_v6 = vpop.permute.xlu1 %5295  ;;  %v5278_v17 = vsel %vm2796_vm10, %v5275_v37, %v16652_v39  ;;  %vm16738_vm13 = vcmask 654912   ;;  %v6577_v37 = vrot.slane %v6575_v23, 1  ;;  %v7468_v27 = vsel %vm2422_vm8, %v13982_v15, %v13984_v56  ;;  %v11193_v39 = vld [vmem:[%s12114_s7 + $0x40] sm:$0xff]  }
 0x36a   : > { %6090 = vrot.lane.b32.xlu0 %v6055_v54, %s11676_s1  ;;  %5348 = vst.msk [vmem:[#allocation2 + $0x18] sm:$0xff] %vm16673_vm4, %v5296_v6  ;;  %v6580_v54 = vrot.slane %v6578_v3, 2  ;;  %v4460_v23 = vsel %vm1941_vm5, %v4457_v1, %v16650_v47  ;;  %v14019_v6 = vld [vmem:[%s12107_s14 + $0x58] sm:$0xff]   ;;  %v7762_v1 = vrot.slane %v14003_v24, 3 }
 0x36b   : > { %7187 = vrot.lane.b32.xlu1 %v7152_v36, %s11680_s2  ;;  %v11252_v36 = vld [vmem:[%s12107_s14 + $0x48] sm:$0xff]  }
 0x36c   : > { %v7542_v9 = vpop.permute.xlu0 %7541  ;;  %v14016_v3 = vor.u32 %v6580_v54, %v6577_v37  ;;  %v4986_v32 = vshll.u32 %v11252_v36, 16  ;;  %v5777_v37 = vshrl.u32 %v13740_v43, 16  ;;  %v5781_v54 = vshll.u32 %v14006_v40, 16 }
 0x36d   : > { %7595 = vst.msk [vmem:[#allocation2 + $0x8] sm:$0xff] %vm16738_vm13, %v7542_v9  ;;  %v5494_v18 = vpop.permute.xlu1 %5493  ;;  %vm16739_vm13 = vcmask 523712  }
 0x36e   : > { %5313 = vrot.lane.b32.xlu0 %v5278_v17, %s11673_s9  ;;  %5546 = vst.msk [vmem:[#allocation2 + $0x18] sm:$0xff] %vm16670_vm6, %v5494_v18  ;;  %v14022_v17 = vld [vmem:[%s12107_s14 + $0x60] sm:$0xff]   ;;  %v4983_v18 = vshrl.u32 %v11252_v36, 16  ;;  %v4988_v7 = vrot.slane %v4986_v32, 3  ;;  %v6582_v36 = vsel %vm16669_vm3, %v13775_v0, %v14016_v3  ;;  %v7763_v0 = vsel %vm2796_vm10, %v16655_v44, %v7762_v1  ;;  %v11195_v44 = vld [vmem:[%s12114_s7 + $0x60] sm:$0xff]  }
 0x36f   : > { %6329 = vrot.lane.b32.xlu1 %v6294_v58, %s11677_s18  ;;  %v11179_v58 = vld [vmem:[%s12114_s7 + $0x50] sm:$0xff]   ;;  %v16656_v47 = vrot.slane %v14022_v17, 2  ;;  %v5779_v32 = vor.u32 %v5777_v37, %v13789_v4  ;;  %v16657_v37 = vrot.slane %v14039_v11, 2  ;;  %v16749_v24 = vrot.slane %v14022_v17, 2 }
 0x370   : > { %v7781_v19 = vpop.permute.xlu0 %7780 }
 0x371   : > { %7834 = vst.msk [vmem:[#allocation2 + $0x8] sm:$0xff] %vm3438_vm14, %v7781_v19  ;;  %v4718_v9 = vpop.permute.xlu1 %4717 }
 0x372   : > { %7559 = vrot.lane.b32.xlu0 %v7468_v27, %s11681_s21  ;;  %4772 = vst.msk [vmem:[#allocation2] sm:$0xff] %vm4771_vm15, %v4718_v9  ;;  %v4985_v27 = vrot.slane %v4983_v18, 2  ;;  %v16654_v9 = vrot.slane %v14019_v6, 2 }
 0x373   : > { %4495 = vrot.lane.b32.xlu1 %v4460_v23, %s11686_s22  ;;  %v14043_v23 = vld [vmem:[%s12114_s7 + $0x58] sm:$0xff]  }
 0x374   : > { %v5844_v19 = vpop.permute.xlu0 %5843  ;;  %v14045_v18 = vor.u32 %v4988_v7, %v4985_v27  ;;  %v4700_v4 = vsel %vm1941_vm5, %v16654_v9, %v16656_v47  ;;  %v7428_v9 = vshll.u32 %v11193_v39, 16 }
 0x375   : > { %5896 = vst.msk [vmem:[#allocation2 + $0x18] sm:$0xff] %vm1418_vm7, %v5844_v19  ;;  %v6083_v43 = vpop.permute.xlu1 %6082  ;;  %v14054_v19 = vrot.slane %v5781_v54, 1  ;;  %v14069_v54 = vld [vmem:[%s12114_s7 + $0x40] sm:$0xff]  }
 0x376   : > { %5511 = vrot.lane.b32.xlu0 %v11179_v58, %s11674_s11  ;;  %6135 = vst.msk [vmem:[#allocation2 + $0x18] sm:$0xff] %vm1792_vm9, %v6083_v43  ;;  %v4990_v7 = vsel %vm2422_vm8, %v13780_v16, %v14045_v18 }
 0x377   : > { %6701 = vrot.lane.b32.xlu1 %v6582_v36, %s11678_s15  ;;  %5114 = vst.msk [vmem:[#allocation2 + $0x68] sm:$0xff] %vm16671_vm2, %v4990_v7  ;;  %v6064_v36 = vrot.slane %v14043_v23, 1  ;;  %v5784_v43 = vsel %vm16658_vm0, %v5779_v32, %v14054_v19 }
 0x378   : > { %v6322_v58 = vpop.permute.xlu0 %6321  ;;  %v7853_v63 = vld [vmem:[#allocation2 + $0x8] sm:$0xff] }
 0x379   : > { %6374 = vst.msk [vmem:[#allocation2 + $0x18] sm:$0xff] %vm2033_vm11, %v6322_v58  ;;  %8124 = vmatprep.mubr.bf16.mxu0 %v7853_v63  ;;  %v6694_v27 = vpop.permute.xlu1 %6693  ;;  %v7852_v16 = vld [vmem:[#allocation2] sm:$0xff]  ;;  %v7425_v58 = vshrl.u32 %v11193_v39, 16  ;;  %v6065_v39 = vsel %vm16672_vm1, %v6062_v41, %v6064_v36 }
 0x37a   : > { %7798 = vrot.lane.b32.xlu0 %v7763_v0, %s11682_s4  ;;  %v14075_v63 = vld [vmem:[%s12107_s14 + $0x48] sm:$0xff]   ;;  %6746 = vst.msk [vmem:[#allocation2 + $0x18] sm:$0xff] %vm16662_vm12, %v6694_v27  ;;  %8125 = vmatmul.mubr.bf16.vlgmr.msra.gmra.mrb[0].mxu0 %v7852_v16  ;;  %v6905_v0 = vsel %vm1941_vm5, %v6902_v35, %v16657_v37  ;;  %v7143_v27 = vrot.slane %v14069_v54, 2  ;;  %v14090_v16 = vld [vmem:[%s12114_s7 + $0x60] sm:$0xff]   ;;  %v6620_v35 = vshrl.u32 %v11195_v44, 16 }
 0x37b   : > { %4735 = vrot.lane.b32.xlu1 %v4700_v4, %s11688_s6  ;;  %v5269_v32 = vrot.slane %v14075_v63, 3  ;;  %v7427_v50 = vrot.slane %v7425_v58, 2  ;;  %v7430_v4 = vrot.slane %v7428_v9, 3  ;;  %v6303_v41 = vrot.slane %v14090_v16, 1  ;;  %v11260_v58 = vld [vmem:[%s12107_s14 + $0x70] sm:$0xff]   ;;  %v14366_v63 = vld [vmem:[%s12114_s7 + $0x48] sm:$0xff]  }
 0x37c   : > { %v6933_v7 = vpop.permute.xlu0 %6932  ;;  %v7144_v38 = vsel %vm1941_vm5, %v7141_v48, %v7143_v27  ;;  %v6622_v46 = vrot.slane %v6620_v35, 1  ;;  %v5028_v35 = vshrl.u32 %v11260_v58, 16  ;;  %v5031_v52 = vshll.u32 %v11260_v58, 16  ;;  %v14154_v58 = vld [vmem:[%s12114_s7 + $0x60] sm:$0xff]  }
 0x37d   : > { %6985 = vst.msk [vmem:[#allocation2 + $0x18] sm:$0xff] %vm16739_vm13, %v6933_v7  ;;  %v7172_v47 = vpop.permute.xlu1 %7171  ;;  %vm16740_vm13 = vcmask 589312   ;;  %v6623_v7 = vshll.u32 %v11195_v44, 16  ;;  %v5270_v44 = vsel %vm2796_vm10, %v5267_v30, %v5269_v32  ;;  %v14115_v9 = vor.u32 %v7430_v4, %v7427_v50  ;;  %v14128_v30 = vld [vmem:[%s12114_s7 + $0x38] sm:$0xff]   ;;  %v14139_v4 = vld [vmem:[%s12107_s14 + $0x40] sm:$0xff]  }
 0x37e   : > { %5861 = vrot.lane.b32.xlu0 %v5784_v43, %s11675_s20  ;;  %7224 = vst.msk [vmem:[#allocation2 + $0x18] sm:$0xff] %vm16740_vm13, %v7172_v47  ;;  %vm16741_vm13 = vcmask 654912   ;;  %v14119_v43 = vld [vmem:[%s12114_s7 + $0x40] sm:$0xff]   ;;  %v6304_v51 = vsel %vm16672_vm1, %v6301_v8, %v6303_v41 }
 0x37f   : > { %6940 = vrot.lane.b32.xlu1 %v6905_v0, %s11679_s30 }
 0x380   : > { %v5298_v37 = vpop.permute.xlu0 %5297 }
 0x381   : > { %5349 = vst.msk [vmem:[#allocation2 + $0x28] sm:$0xff] %vm16673_vm4, %v5298_v37  ;;  %v7544_v47 = vpop.permute.xlu1 %7543  ;;  %v6625_v37 = vrot.slane %v6623_v7, 2  ;;  %v11194_v7 = vld [vmem:[%s12114_s7 + $0x30] sm:$0xff]  }
 0x382   : > { %6100 = vrot.lane.b32.xlu0 %v6065_v39, %s11676_s1  ;;  %7596 = vst.msk [vmem:[#allocation2 + $0x18] sm:$0xff] %vm16741_vm13, %v7544_v47  ;;  %v7432_v39 = vsel %vm2422_vm8, %v13852_v62, %v14115_v9  ;;  %v5745_v47 = vshrl.u32 %v13857_v55, 16  ;;  %v5030_v62 = vrot.slane %v5028_v35, 2  ;;  %vm16742_vm13 = vcmask 523712  }
 0x383   : > { %7179 = vrot.lane.b32.xlu1 %v7144_v38, %s11680_s2  ;;  %v14136_v50 = vor.u32 %v6625_v37, %v6622_v46  ;;  %v7754_v38 = vrot.slane %v14119_v43, 3  ;;  %v5033_v46 = vrot.slane %v5031_v52, 3  ;;  %v14169_v52 = vld [vmem:[%s12114_s7 + $0x38] sm:$0xff]  }
 0x384   : > { %v5496_v48 = vpop.permute.xlu0 %5495  ;;  %v6056_v28 = vrot.slane %v14169_v52, 1  ;;  %v14465_v52 = vld [vmem:[%s12107_s14 + $0x68] sm:$0xff]  }
 0x385   : > { %5547 = vst.msk [vmem:[#allocation2 + $0x28] sm:$0xff] %vm16670_vm6, %v5496_v48  ;;  %v7783_v0 = vpop.permute.xlu1 %7782  ;;  %v6627_v48 = vsel %vm16669_vm3, %v13876_v2, %v14136_v50  ;;  %v14156_v55 = vor.u32 %v5033_v46, %v5030_v62  ;;  %v5747_v2 = vor.u32 %v5745_v47, %v13901_v61  ;;  %v14185_v61 = vld [vmem:[%s12114_s7 + $0x68] sm:$0xff]  }
 0x386   : > { %5305 = vrot.lane.b32.xlu0 %v5270_v44, %s11673_s9  ;;  %7835 = vst.msk [vmem:[#allocation2 + $0x18] sm:$0xff] %vm3438_vm14, %v7783_v0  ;;  %v5749_v44 = vshll.u32 %v14128_v30, 16 }
 0x387   : > { %6339 = vrot.lane.b32.xlu1 %v6304_v51, %s11677_s18  ;;  %v4691_v51 = vrot.slane %v14139_v4, 2 }
 0x388   : > { %v4720_v8 = vpop.permute.xlu0 %4719  ;;  %v14166_v35 = vrot.slane %v5749_v44, 1 }
 0x389   : > { %4773 = vst.msk [vmem:[#allocation2 + $0x10] sm:$0xff] %vm4771_vm15, %v4720_v8  ;;  %v5846_v37 = vpop.permute.xlu1 %5845  ;;  %v11205_v8 = vld [vmem:[%s12114_s7 + $0x68] sm:$0xff]   ;;  %v4692_v57 = vsel %vm1941_vm5, %v4689_v42, %v4691_v51 }
 0x38a   : > { %7551 = vrot.lane.b32.xlu0 %v7432_v39, %s11681_s21  ;;  %5897 = vst.msk [vmem:[#allocation2 + $0x28] sm:$0xff] %vm1418_vm7, %v5846_v37  ;;  %v7755_v39 = vsel %vm2796_vm10, %v7752_v14, %v7754_v38  ;;  %v6914_v14 = vrot.slane %v14154_v58, 2  ;;  %v5752_v44 = vsel %vm16658_vm0, %v5747_v2, %v14166_v35  ;;  %v14193_v37 = vld [vmem:[%s12107_s14 + $0x70] sm:$0xff]   ;;  %v7470_v42 = vshrl.u32 %v11205_v8, 16 }
 0x38b   : > { %5503 = vrot.lane.b32.xlu1 %v11194_v7, %s11674_s11  ;;  %v5035_v7 = vsel %vm2422_vm8, %v13906_v49, %v14156_v55  ;;  %v7153_v2 = vrot.slane %v14185_v61, 2  ;;  %vm16743_vm0 = vcmask 589312   ;;  %v16660_v20 = vrot.slane %v14193_v37, 3 }
 0x38c   : > { %v6085_v0 = vpop.permute.xlu0 %6084  ;;  %5119 = vst.msk [vmem:[#allocation2 + $0xb8] sm:$0xff] %vm16671_vm2, %v5035_v7  ;;  %v14204_v7 = vld [vmem:[%s12114_s7 + $0x40] sm:$0xff]  }
 0x38d   : > { %6136 = vst.msk [vmem:[#allocation2 + $0x28] sm:$0xff] %vm1792_vm9, %v6085_v0  ;;  %v6324_v62 = vpop.permute.xlu1 %6323  ;;  %v7855_v46 = vld [vmem:[#allocation2 + $0x18] sm:$0xff] }
 0x38e   : > { %6711 = vrot.lane.b32.xlu0 %v6627_v48, %s11678_s15  ;;  %6375 = vst.msk [vmem:[#allocation2 + $0x28] sm:$0xff] %vm2033_vm11, %v6324_v62  ;;  %8134 = vmatprep.mubr.bf16.mxu0 %v7855_v46  ;;  %v7473_v48 = vshll.u32 %v11205_v8, 16  ;;  %v11208_v62 = vld [vmem:[%s12114_s7 + $0x40] sm:$0xff]   ;;  %v6057_v46 = vsel %vm16672_vm1, %v6054_v10, %v6056_v28 }
 0x38f   : > { %7790 = vrot.lane.b32.xlu1 %v7755_v39, %s11682_s4  ;;  %v6915_v39 = vsel %vm1941_vm5, %v6912_v34, %v6914_v14  ;;  %v7472_v34 = vrot.slane %v7470_v42, 2  ;;  %v6584_v10 = vshrl.u32 %v11208_v62, 16 }
 0x390   : > { %v6696_v49 = vpop.permute.xlu0 %6695  ;;  %v7854_v47 = vld [vmem:[#allocation2 + $0x10] sm:$0xff] }
 0x391   : > { %6747 = vst.msk [vmem:[#allocation2 + $0x28] sm:$0xff] %vm16662_vm12, %v6696_v49  ;;  %8135 = vmatmul.mubr.bf16.gmra.mrb[4].mxu0 %v7854_v47  ;;  %v6935_v0 = vpop.permute.xlu1 %6934  ;;  %v16744_v47 = vrot.slane %v13932_v29, 2 }
 0x392   : > { %4727 = vrot.lane.b32.xlu0 %v4692_v57, %s11688_s6  ;;  %6986 = vst.msk [vmem:[#allocation2 + $0x28] sm:$0xff] %vm16742_vm13, %v6935_v0  ;;  %v7475_v57 = vrot.slane %v7473_v48, 3  ;;  %v16659_v0 = vrot.slane %v14204_v7, 1  ;;  %v16746_v48 = vrot.slane %v13940_v60, 3  ;;  %v6586_v60 = vrot.slane %v6584_v10, 1 }
 0x393   : > { %5853 = vrot.lane.b32.xlu1 %v5752_v44, %s11675_s20  ;;  %v7154_v44 = vsel %vm1941_vm5, %v16744_v47, %v7153_v2  ;;  %v16661_v47 = vrot.slane %v14224_v13, 2  ;;  %v16748_v10 = vrot.slane %v13973_v5, 2  ;;  %v5785_v5 = vshrl.u32 %v14006_v40, 16 }
 0x394   : > { %v7174_v8 = vpop.permute.xlu0 %7173  ;;  %v5280_v29 = vsel %vm2796_vm10, %v16746_v48, %v16660_v20  ;;  %v11269_v48 = vld [vmem:[%s12107_s14 + $0x50] sm:$0xff]  }
 0x395   : > { %7225 = vst.msk [vmem:[#allocation2 + $0x28] sm:$0xff] %vm16743_vm0, %v7174_v8  ;;  %v5300_v49 = vpop.permute.xlu1 %5299  ;;  %v6587_v8 = vshll.u32 %v11208_v62, 16  ;;  %vm16745_vm0 = vcmask 654912   ;;  %v16747_v62 = vrot.slane %v13953_v22, 1  ;;  %v14252_v22 = vld [vmem:[%s12114_s7 + $0x60] sm:$0xff]   ;;  %v11207_v20 = vld [vmem:[%s12114_s7 + $0x58] sm:$0xff]  }
 0x396   : > { %6950 = vrot.lane.b32.xlu0 %v6915_v39, %s11679_s30  ;;  %5350 = vst.msk [vmem:[#allocation2 + $0x38] sm:$0xff] %vm16673_vm4, %v5300_v49  ;;  %v14233_v39 = vor.u32 %v7475_v57, %v7472_v34  ;;  %v14245_v57 = vld [vmem:[%s12114_s7 + $0x68] sm:$0xff]  }
 0x397   : > { %6092 = vrot.lane.b32.xlu1 %v6057_v46, %s11676_s1  ;;  %v6296_v46 = vsel %vm16672_vm1, %v16747_v62, %v16659_v0  ;;  %v14265_v62 = vld [vmem:[%s12107_s14 + $0x68] sm:$0xff]  }
 0x398   : > { %v7546_v42 = vpop.permute.xlu0 %7545 }
 0x399   : > { %7597 = vst.msk [vmem:[#allocation2 + $0x28] sm:$0xff] %vm16745_vm0, %v7546_v42  ;;  %v5498_v49 = vpop.permute.xlu1 %5497  ;;  %v6589_v42 = vrot.slane %v6587_v8, 2  ;;  %v4462_v8 = vsel %vm1941_vm5, %v16748_v10, %v16661_v47  ;;  %v14280_v47 = vld [vmem:[%s12114_s7 + $0x40] sm:$0xff]   ;;  %vm16750_vm0 = vsmask.f32 7424 }
 0x39a   : > { %7189 = vrot.lane.b32.xlu0 %v7154_v44, %s11680_s2  ;;  %5548 = vst.msk [vmem:[#allocation2 + $0x38] sm:$0xff] %vm16670_vm6, %v5498_v49  ;;  %v7477_v44 = vsel %vm2422_vm8, %v13984_v56, %v14233_v39  ;;  %v4995_v56 = vshll.u32 %v11269_v48, 16 }
 0x39b   : > { %5315 = vrot.lane.b32.xlu1 %v5280_v29, %s11673_s9  ;;  %v14262_v29 = vor.u32 %v6589_v42, %v6586_v60 }
 0x39c   : > { %v7785_v34 = vpop.permute.xlu0 %7784  ;;  %v4997_v42 = vrot.slane %v4995_v56, 3  ;;  %v14286_v56 = vld [vmem:[%s12114_s7 + $0x60] sm:$0xff]  }
 0x39d   : > { %7836 = vst.msk [vmem:[#allocation2 + $0x28] sm:$0xff] %vm3438_vm14, %v7785_v34  ;;  %v4722_v49 = vpop.permute.xlu1 %4721  ;;  %v4992_v34 = vshrl.u32 %v11269_v48, 16  ;;  %v16663_v48 = vrot.slane %v14265_v62, 2 }
 0x39e   : > { %6331 = vrot.lane.b32.xlu0 %v6296_v46, %s11677_s18  ;;  %4774 = vst.msk [vmem:[#allocation2 + $0x20] sm:$0xff] %vm4771_vm15, %v4722_v49  ;;  %v16665_v46 = vrot.slane %v14245_v57, 3  ;;  %v5789_v49 = vshll.u32 %v14252_v22, 16 }
 0x39f   : > { %7561 = vrot.lane.b32.xlu1 %v7477_v44, %s11681_s21  ;;  %v4994_v60 = vrot.slane %v4992_v34, 2  ;;  %v6591_v44 = vsel %vm16669_vm3, %v14016_v3, %v14262_v29 }
 0x3a0   : > { %v5848_v0 = vpop.permute.xlu0 %5847  ;;  %v7765_v3 = vsel %vm2796_vm10, %v7762_v1, %v16665_v46  ;;  %v4702_v1 = vsel %vm1941_vm5, %v16749_v24, %v16663_v48 }
 0x3a1   : > { %5898 = vst.msk [vmem:[#allocation2 + $0x38] sm:$0xff] %vm1418_vm7, %v5848_v0  ;;  %v6087_v10 = vpop.permute.xlu1 %6086  ;;  %v14282_v0 = vor.u32 %v4997_v42, %v4994_v60  ;;  %v14295_v60 = vrot.slane %v5789_v49, 1  ;;  %v6066_v49 = vrot.slane %v14286_v56, 1 }
 0x3a2   : > { %4497 = vrot.lane.b32.xlu0 %v4462_v8, %s11686_s22  ;;  %6137 = vst.msk [vmem:[#allocation2 + $0x38] sm:$0xff] %vm1792_vm9, %v6087_v10  ;;  %v5787_v8 = vor.u32 %v5785_v5, %v14054_v19  ;;  %v16664_v19 = vrot.slane %v14280_v47, 2 }
 0x3a3   : > { %5513 = vrot.lane.b32.xlu1 %v11207_v20, %s11674_s11  ;;  %v11218_v20 = vld [vmem:[%s12114_s7 + $0x48] sm:$0xff]   ;;  %v4999_v42 = vsel %vm2422_vm8, %v14045_v18, %v14282_v0 }
 0x3a4   : > { %v6326_v40 = vpop.permute.xlu0 %6325  ;;  %v7857_v34 = vld [vmem:[#allocation2 + $0x28] sm:$0xff]  ;;  %5115 = vst.msk [vmem:[#allocation2 + $0x78] sm:$0xff] %vm16671_vm2, %v4999_v42  ;;  %v7434_v17 = vshrl.u32 %v11218_v20, 16  ;;  %v7437_v42 = vshll.u32 %v11218_v20, 16  ;;  %v6067_v20 = vsel %vm16672_vm1, %v6064_v36, %v6066_v49 }
 0x3a5   : > { %6376 = vst.msk [vmem:[#allocation2 + $0x38] sm:$0xff] %vm2033_vm11, %v6326_v40  ;;  %8144 = vmatprep.mubr.bf16.mxu0 %v7857_v34  ;;  %v6698_v10 = vpop.permute.xlu1 %6697  ;;  %v7856_v40 = vld [vmem:[#allocation2 + $0x20] sm:$0xff]  ;;  %v5792_v34 = vsel %vm16750_vm0, %v5787_v8, %v14295_v60 }
 0x3a6   : > { %6703 = vrot.lane.b32.xlu0 %v6591_v44, %s11678_s15  ;;  %6748 = vst.msk [vmem:[#allocation2 + $0x38] sm:$0xff] %vm16662_vm12, %v6698_v10  ;;  %8145 = vmatmul.mubr.bf16.gmra.mrb[8].mxu0 %v7856_v40  ;;  %v14311_v18 = vld [vmem:[%s12114_s7 + $0x48] sm:$0xff]   ;;  %v14316_v44 = vld [vmem:[%s12107_s14 + $0x50] sm:$0xff]   ;;  %vm16751_vm12 = vcmask 589312  }
 0x3a7   : > { %7800 = vrot.lane.b32.xlu1 %v7765_v3, %s11682_s4  ;;  %v11222_v10 = vld [vmem:[%s12114_s7 + $0x68] sm:$0xff]   ;;  %v16752_v3 = vrot.slane %v14039_v11, 2  ;;  %v7145_v48 = vrot.slane %v14311_v18, 2  ;;  %v7436_v11 = vrot.slane %v7434_v17, 2 }
 0x3a8   : > { %v6937_v5 = vpop.permute.xlu0 %6936 }
 0x3a9   : > { %6987 = vst.msk [vmem:[#allocation2 + $0x38] sm:$0xff] %vm16742_vm13, %v6937_v5  ;;  %v7176_v40 = vpop.permute.xlu1 %7175  ;;  %v6907_v24 = vsel %vm1941_vm5, %v16752_v3, %v16664_v19  ;;  %v14331_v5 = vld [vmem:[%s12114_s7 + $0x68] sm:$0xff]   ;;  %v6629_v3 = vshrl.u32 %v11222_v10, 16  ;;  %v6632_v19 = vshll.u32 %v11222_v10, 16  ;;  %v7146_v23 = vsel %vm1941_vm5, %v7143_v27, %v7145_v48  ;;  %vm16754_vm13 = vmmov %vm16750_vm0 }
 0x3aa   : > { %4737 = vrot.lane.b32.xlu0 %v4702_v1, %s11688_s6  ;;  %7226 = vst.msk [vmem:[#allocation2 + $0x38] sm:$0xff] %vm16751_vm12, %v7176_v40  ;;  %v5271_v1 = vrot.slane %v14316_v44, 3  ;;  %v7439_v40 = vrot.slane %v7437_v42, 3  ;;  %vm16753_vm12 = vcmask 654912   ;;  %v6305_v36 = vrot.slane %v14331_v5, 1  ;;  %v14600_v44 = vld [vmem:[%s12114_s7 + $0x50] sm:$0xff]  }
 0x3ab   : > { %5863 = vrot.lane.b32.xlu1 %v5792_v34, %s11675_s20  ;;  %v6631_v54 = vrot.slane %v6629_v3, 1  ;;  %v6634_v42 = vrot.slane %v6632_v19, 2  ;;  %v11282_v19 = vld [vmem:[%s12107_s14 + $0x78] sm:$0xff]   ;;  %vm16755_vm0 = vcmask 458112  }
 0x3ac   : > { %v5302_v8 = vpop.permute.xlu0 %5301  ;;  %v14356_v17 = vor.u32 %v7439_v40, %v7436_v11  ;;  %v6306_v10 = vsel %vm16672_vm1, %v6303_v41, %v6305_v36  ;;  %v14380_v11 = vld [vmem:[%s12107_s14 + $0x48] sm:$0xff]   ;;  %v11221_v41 = vld [vmem:[%s12114_s7 + $0x38] sm:$0xff]   ;;  %v5037_v40 = vshrl.u32 %v11282_v19, 16  ;;  %v5040_v3 = vshll.u32 %v11282_v19, 16 }
 0x3ad   : > { %5351 = vst.msk [vmem:[#allocation2 + $0x48] sm:$0xff] %vm16673_vm4, %v5302_v8  ;;  %v7548_v46 = vpop.permute.xlu1 %7547 }
 0x3ae   : > { %6942 = vrot.lane.b32.xlu0 %v6907_v24, %s11679_s30  ;;  %7598 = vst.msk [vmem:[#allocation2 + $0x38] sm:$0xff] %vm16753_vm12, %v7548_v46  ;;  %v5272_v46 = vsel %vm2796_vm10, %v5269_v32, %v5271_v1  ;;  %v14369_v32 = vld [vmem:[%s12114_s7 + $0x40] sm:$0xff]   ;;  %v7441_v8 = vsel %vm2422_vm8, %v14115_v9, %v14356_v17  ;;  %vm16756_vm12 = vcmask 523712  }
 0x3af   : > { %6102 = vrot.lane.b32.xlu1 %v6067_v20, %s11676_s1  ;;  %v14377_v20 = vor.u32 %v6634_v42, %v6631_v54  ;;  %v5039_v54 = vrot.slane %v5037_v40, 2  ;;  %v5042_v42 = vrot.slane %v5040_v3, 3  ;;  %v14410_v3 = vld [vmem:[%s12114_s7 + $0x40] sm:$0xff]  }
 0x3b0   : > { %v5500_v34 = vpop.permute.xlu0 %5499  ;;  %v6058_v4 = vrot.slane %v14410_v3, 1 }
 0x3b1   : > { %5549 = vst.msk [vmem:[#allocation2 + $0x48] sm:$0xff] %vm16670_vm6, %v5500_v34  ;;  %v7787_v27 = vpop.permute.xlu1 %7786  ;;  %v5753_v34 = vshrl.u32 %v14128_v30, 16 }
 0x3b2   : > { %7181 = vrot.lane.b32.xlu0 %v7146_v23, %s11680_s2  ;;  %7837 = vst.msk [vmem:[#allocation2 + $0x38] sm:$0xff] %vm3438_vm14, %v7787_v27  ;;  %v7756_v23 = vrot.slane %v14366_v63, 3  ;;  %v6636_v27 = vsel %vm16669_vm3, %v14136_v50, %v14377_v20 }
 0x3b3   : > { %5307 = vrot.lane.b32.xlu1 %v5272_v46, %s11673_s9  ;;  %v5757_v46 = vshll.u32 %v14369_v32, 16 }
 0x3b4   : > { %v4724_v24 = vpop.permute.xlu0 %4723  ;;  %v7757_v50 = vsel %vm2796_vm10, %v7754_v38, %v7756_v23 }
 0x3b5   : > { %4775 = vst.msk [vmem:[#allocation2 + $0x30] sm:$0xff] %vm4771_vm15, %v4724_v24  ;;  %v5850_v16 = vpop.permute.xlu1 %5849  ;;  %v14395_v24 = vld [vmem:[%s12114_s7 + $0x68] sm:$0xff]   ;;  %v14407_v40 = vrot.slane %v5757_v46, 1  ;;  %v14434_v46 = vld [vmem:[%s12107_s14 + $0x78] sm:$0xff]  }
 0x3b6   : > { %6341 = vrot.lane.b32.xlu0 %v6306_v10, %s11677_s18  ;;  %5899 = vst.msk [vmem:[#allocation2 + $0x48] sm:$0xff] %vm1418_vm7, %v5850_v16  ;;  %v4693_v10 = vrot.slane %v14380_v11, 2  ;;  %v5755_v16 = vor.u32 %v5753_v34, %v14166_v35  ;;  %v6916_v38 = vrot.slane %v14395_v24, 2  ;;  %v14425_v35 = vld [vmem:[%s12114_s7 + $0x70] sm:$0xff]   ;;  %v5281_v58 = vrot.slane %v14434_v46, 3 }
 0x3b7   : > { %7553 = vrot.lane.b32.xlu1 %v7441_v8, %s11681_s21  ;;  %v14398_v8 = vor.u32 %v5042_v42, %v5039_v54 }
 0x3b8   : > { %v6089_v9 = vpop.permute.xlu0 %6088  ;;  %v4694_v43 = vsel %vm1941_vm5, %v4691_v51, %v4693_v10 }
 0x3b9   : > { %6138 = vst.msk [vmem:[#allocation2 + $0x48] sm:$0xff] %vm1792_vm9, %v6089_v9  ;;  %v5312_v30 = vpop.permute.xlu1 %5311  ;;  %v7859_v19 = vld [vmem:[#allocation2 + $0x38] sm:$0xff]  ;;  %v5044_v42 = vsel %vm2422_vm8, %v14156_v55, %v14398_v8  ;;  %v5760_v55 = vsel %vm16754_vm13, %v5755_v16, %v14407_v40  ;;  %vm16758_vm13 = vcmask 589312  }
 0x3ba   : > { %5505 = vrot.lane.b32.xlu0 %v11221_v41, %s11674_s11  ;;  %5356 = vst.msk [vmem:[#allocation2 + $0x98] sm:$0xff] %vm16673_vm4, %v5312_v30  ;;  %8154 = vmatprep.mubr.bf16.mxu0 %v7859_v19  ;;  %v11232_v41 = vld [vmem:[%s12114_s7 + $0x70] sm:$0xff]   ;;  %v6917_v19 = vsel %vm1941_vm5, %v6914_v14, %v6916_v38  ;;  %v14445_v16 = vld [vmem:[%s12114_s7 + $0x48] sm:$0xff]  }
 0x3bb   : > { %6713 = vrot.lane.b32.xlu1 %v6636_v27, %s11678_s15  ;;  %5120 = vst.msk [vmem:[#allocation2 + $0xc8] sm:$0xff] %vm16671_vm2, %v5044_v42  ;;  %v7479_v51 = vshrl.u32 %v11232_v41, 16  ;;  %v7482_v27 = vshll.u32 %v11232_v41, 16  ;;  %v6059_v41 = vsel %vm16672_vm1, %v6056_v28, %v6058_v4 }
 0x3bc   : > { %v6328_v9 = vpop.permute.xlu0 %6327  ;;  %v7858_v54 = vld [vmem:[#allocation2 + $0x30] sm:$0xff] }
 0x3bd   : > { %6377 = vst.msk [vmem:[#allocation2 + $0x48] sm:$0xff] %vm2033_vm11, %v6328_v9  ;;  %8155 = vmatmul.mubr.bf16.gmra.mrb[12].mxu0 %v7858_v54  ;;  %v5510_v34 = vpop.permute.xlu1 %5509  ;;  %v11235_v9 = vld [vmem:[%s12114_s7 + $0x48] sm:$0xff]   ;;  %v7481_v14 = vrot.slane %v7479_v51, 2  ;;  %v7484_v42 = vrot.slane %v7482_v27, 3  ;;  %v16757_v51 = vrot.slane %v14193_v37, 3 }
 0x3be   : > { %7792 = vrot.lane.b32.xlu0 %v7757_v50, %s11682_s4  ;;  %5554 = vst.msk [vmem:[#allocation2 + $0x98] sm:$0xff] %vm16670_vm6, %v5510_v34  ;;  %v7155_v50 = vrot.slane %v14425_v35, 2  ;;  %v6593_v28 = vshrl.u32 %v11235_v9, 16 }
 0x3bf   : > { %4729 = vrot.lane.b32.xlu1 %v4694_v43, %s11688_s6  ;;  %v5282_v61 = vsel %vm2796_vm10, %v16757_v51, %v5281_v58 }
 0x3c0   : > { %v6700_v30 = vpop.permute.xlu0 %6699  ;;  %v7156_v34 = vsel %vm1941_vm5, %v7153_v2, %v7155_v50  ;;  %v14474_v2 = vor.u32 %v7484_v42, %v7481_v14  ;;  %v14490_v42 = vld [vmem:[%s12114_s7 + $0x70] sm:$0xff]  }
 0x3c1   : > { %6749 = vst.msk [vmem:[#allocation2 + $0x48] sm:$0xff] %vm16755_vm0, %v6700_v30  ;;  %v5860_v54 = vpop.permute.xlu1 %5859  ;;  %v6596_v30 = vshll.u32 %v11235_v9, 16  ;;  %vm16761_vm0 = vcmask 654912  }
 0x3c2   : > { %5855 = vrot.lane.b32.xlu0 %v5760_v55, %s11675_s20  ;;  %5904 = vst.msk [vmem:[#allocation2 + $0x98] sm:$0xff] %vm1418_vm7, %v5860_v54  ;;  %v6297_v55 = vrot.slane %v14445_v16, 1  ;;  %v7486_v14 = vsel %vm2422_vm8, %v14233_v39, %v14474_v2  ;;  %v16778_v16 = vrot.slane %v14465_v52, 2 }
 0x3c3   : > { %6952 = vrot.lane.b32.xlu1 %v6917_v19, %s11679_s30  ;;  %v16759_v19 = vrot.slane %v14204_v7, 1  ;;  %v6598_v37 = vrot.slane %v6596_v30, 2  ;;  %v14493_v7 = vld [vmem:[%s12114_s7 + $0x68] sm:$0xff]  }
 0x3c4   : > { %v6939_v43 = vpop.permute.xlu0 %6938 }
 0x3c5   : > { %6988 = vst.msk [vmem:[#allocation2 + $0x48] sm:$0xff] %vm16756_vm12, %v6939_v43  ;;  %v6099_v54 = vpop.permute.xlu1 %6098  ;;  %v6298_v9 = vsel %vm16672_vm1, %v16759_v19, %v6297_v55  ;;  %v6595_v43 = vrot.slane %v6593_v28, 1  ;;  %v16760_v28 = vrot.slane %v14224_v13, 2  ;;  %v7766_v19 = vrot.slane %v14490_v42, 3 }
 0x3c6   : > { %6094 = vrot.lane.b32.xlu0 %v6059_v41, %s11676_s1  ;;  %6143 = vst.msk [vmem:[#allocation2 + $0x98] sm:$0xff] %vm1792_vm9, %v6099_v54  ;;  %v16666_v41 = vrot.slane %v14465_v52, 2  ;;  %v5797_v13 = vshll.u32 %v14493_v7, 16  ;;  %vm16762_vm12 = vcmask 458112  }
 0x3c7   : > { %7191 = vrot.lane.b32.xlu1 %v7156_v34, %s11680_s2  ;;  %v14502_v51 = vor.u32 %v6598_v37, %v6595_v43 }
 0x3c8   : > { %v7178_v27 = vpop.permute.xlu0 %7177  ;;  %v4464_v30 = vsel %vm1941_vm5, %v16760_v28, %v16666_v41  ;;  %v16763_v28 = vrot.slane %v14245_v57, 3  ;;  %v16764_v57 = vrot.slane %v14265_v62, 2 }
 0x3c9   : > { %7227 = vst.msk [vmem:[#allocation2 + $0x48] sm:$0xff] %vm16758_vm13, %v7178_v27  ;;  %v5304_v54 = vpop.permute.xlu1 %5303  ;;  %v11234_v27 = vld [vmem:[%s12114_s7 + $0x60] sm:$0xff]   ;;  %v6600_v37 = vsel %vm16669_vm3, %v14262_v29, %v14502_v51  ;;  %vm16765_vm13 = vsmask.f32 7424  ;;  %v6609_v52 = vsel %vm16669_vm3, %v14502_v51, %v13874_v33  ;;  %v11262_v33 = vld [vmem:[%s12114_s7 + $0x78] sm:$0xff]  }
 0x3ca   : > { %5317 = vrot.lane.b32.xlu0 %v5282_v61, %s11673_s9  ;;  %5352 = vst.msk [vmem:[#allocation2 + $0x58] sm:$0xff] %vm16673_vm4, %v5304_v54  ;;  %v14505_v61 = vld [vmem:[%s12107_s14 + $0x70] sm:$0xff]  }
 0x3cb   : > { %6333 = vrot.lane.b32.xlu1 %v6298_v9, %s11677_s18  ;;  %v5793_v9 = vshrl.u32 %v14252_v22, 16  ;;  %v16667_v54 = vrot.slane %v14505_v61, 2  ;;  %v14524_v22 = vld [vmem:[%s12114_s7 + $0x68] sm:$0xff]  }
 0x3cc   : > { %v6338_v34 = vpop.permute.xlu0 %6337 }
 0x3cd   : > { %6382 = vst.msk [vmem:[#allocation2 + $0x98] sm:$0xff] %vm2033_vm11, %v6338_v34  ;;  %v7550_v39 = vpop.permute.xlu1 %7549  ;;  %v5795_v29 = vor.u32 %v5793_v9, %v14295_v60  ;;  %v14548_v9 = vld [vmem:[%s12114_s7 + $0x50] sm:$0xff]  }
 0x3ce   : > { %7563 = vrot.lane.b32.xlu0 %v7486_v14, %s11681_s21  ;;  %7599 = vst.msk [vmem:[#allocation2 + $0x48] sm:$0xff] %vm16761_vm0, %v7550_v39  ;;  %v14520_v14 = vld [vmem:[%s12114_s7 + $0x48] sm:$0xff]   ;;  %v14533_v39 = vrot.slane %v5797_v13, 1  ;;  %vm16767_vm0 = vcmask 523712  }
 0x3cf   : > { %4499 = vrot.lane.b32.xlu1 %v4464_v30, %s11686_s22  ;;  %v7767_v30 = vsel %vm2796_vm10, %v16763_v28, %v7766_v19  ;;  %v16668_v60 = vrot.slane %v14520_v14, 2 }
 0x3d0   : > { %v5502_v43 = vpop.permute.xlu0 %5501 }
 0x3d1   : > { %5550 = vst.msk [vmem:[#allocation2 + $0x58] sm:$0xff] %vm16670_vm6, %v5502_v43  ;;  %v6710_v34 = vpop.permute.xlu1 %6709  ;;  %v11244_v43 = vld [vmem:[%s12114_s7 + $0x50] sm:$0xff]  }
 0x3d2   : > { %5515 = vrot.lane.b32.xlu0 %v11234_v27, %s11674_s11  ;;  %6754 = vst.msk [vmem:[#allocation2 + $0x98] sm:$0xff] %vm16762_vm12, %v6710_v34  ;;  %v5008_v27 = vsel %vm2422_vm8, %v14282_v0, %v13691_v45  ;;  %v4704_v34 = vsel %vm1941_vm5, %v16764_v57, %v16667_v54  ;;  %v6068_v45 = vrot.slane %v14524_v22, 1  ;;  %v5800_v0 = vsel %vm16765_vm13, %v5795_v29, %v14533_v39 }
 0x3d3   : > { %6705 = vrot.lane.b32.xlu1 %v6600_v37, %s11678_s15  ;;  %5116 = vst.msk [vmem:[#allocation2 + $0x88] sm:$0xff] %vm16671_vm2, %v5008_v27  ;;  %v7443_v62 = vshrl.u32 %v11244_v43, 16  ;;  %v11246_v37 = vld [vmem:[%s12114_s7 + $0x70] sm:$0xff]   ;;  %v16766_v27 = vrot.slane %v14280_v47, 2  ;;  %v7147_v57 = vrot.slane %v14548_v9, 2  ;;  %vm16768_vm12 = vcmask 589312  }
 0x3d4   : > { %v7789_v41 = vpop.permute.xlu0 %7788  ;;  %v6069_v29 = vsel %vm16672_vm1, %v6066_v49, %v6068_v45  ;;  %v6638_v47 = vshrl.u32 %v11246_v37, 16  ;;  %vm16770_vm13 = vcmask 654912  }
 0x3d5   : > { %7838 = vst.msk [vmem:[#allocation2 + $0x48] sm:$0xff] %vm3438_vm14, %v7789_v41  ;;  %v4726_v13 = vpop.permute.xlu1 %4725  ;;  %v7446_v41 = vshll.u32 %v11244_v43, 16  ;;  %v7445_v43 = vrot.slane %v7443_v62, 2  ;;  %v7148_v56 = vsel %vm1941_vm5, %v7145_v48, %v7147_v57  ;;  %v16769_v62 = vrot.slane %v13701_v12, 3 }
 0x3d6   : > { %7802 = vrot.lane.b32.xlu0 %v7767_v30, %s11682_s4  ;;  %4776 = vst.msk [vmem:[#allocation2 + $0x40] sm:$0xff] %vm4771_vm15, %v4726_v13  ;;  %v6909_v30 = vsel %vm1941_vm5, %v16766_v27, %v16668_v60  ;;  %v14566_v13 = vld [vmem:[%s12114_s7 + $0x70] sm:$0xff]   ;;  %v6640_v48 = vrot.slane %v6638_v47, 1  ;;  %v11245_v47 = vld [vmem:[%s12114_s7 + $0x40] sm:$0xff]  }
 0x3d7   : > { %4739 = vrot.lane.b32.xlu1 %v4704_v34, %s11688_s6  ;;  %v7448_v34 = vrot.slane %v7446_v41, 3  ;;  %v6307_v49 = vrot.slane %v14566_v13, 1  ;;  %v5274_v18 = vsel %vm2796_vm10, %v5271_v1, %v16769_v62 }
 0x3d8   : > { %v5852_v28 = vpop.permute.xlu0 %5851 }
 0x3d9   : > { %5900 = vst.msk [vmem:[#allocation2 + $0x58] sm:$0xff] %vm1418_vm7, %v5852_v28  ;;  %v6949_v54 = vpop.permute.xlu1 %6948  ;;  %v6641_v28 = vshll.u32 %v11246_v37, 16  ;;  %v6308_v12 = vsel %vm16672_vm1, %v6305_v36, %v6307_v49 }
 0x3da   : > { %5865 = vrot.lane.b32.xlu0 %v5800_v0, %s11675_s20  ;;  %6993 = vst.msk [vmem:[#allocation2 + $0x98] sm:$0xff] %vm16767_vm0, %v6949_v54  ;;  %vm16771_vm0 = vcmask 982912  }
 0x3db   : > { %6944 = vrot.lane.b32.xlu1 %v6909_v30, %s11679_s30  ;;  %v6643_v41 = vrot.slane %v6641_v28, 2  ;;  %v11305_v30 = vld [vmem:[%s12107_s14 + $0x80] sm:$0xff]   ;;  %v7758_v28 = vrot.slane %v14600_v44, 3 }
 0x3dc   : > { %v6091_v27 = vpop.permute.xlu0 %6090  ;;  %v7861_v60 = vld [vmem:[#allocation2 + $0x48] sm:$0xff]  ;;  %v5046_v5 = vshrl.u32 %v11305_v30, 16 }
 0x3dd   : > { %6139 = vst.msk [vmem:[#allocation2 + $0x58] sm:$0xff] %vm1792_vm9, %v6091_v27  ;;  %8164 = vmatprep.mubr.bf16.mxu0 %v7861_v60  ;;  %v7188_v54 = vpop.permute.xlu1 %7187  ;;  %v7860_v0 = vld [vmem:[#allocation2 + $0x40] sm:$0xff]  ;;  %v14590_v60 = vor.u32 %v7448_v34, %v7445_v43  ;;  %v14608_v43 = vor.u32 %v6643_v41, %v6640_v48  ;;  %v14611_v34 = vld [vmem:[%s12107_s14 + $0x50] sm:$0xff]   ;;  %v5761_v27 = vshrl.u32 %v14369_v32, 16  ;;  %v7759_v41 = vsel %vm2796_vm10, %v7756_v23, %v7758_v28 }
 0x3de   : > { %6104 = vrot.lane.b32.xlu0 %v6069_v29, %s11676_s1  ;;  %7232 = vst.msk [vmem:[#allocation2 + $0x98] sm:$0xff] %vm16768_vm12, %v7188_v54  ;;  %8165 = vmatmul.mubr.bf16.gmra.mrb[16].mxu0 %v7860_v0  ;;  %v4695_v62 = vrot.slane %v14611_v34, 2  ;;  %vm16772_vm12 = vcmask 458112  }
 0x3df   : > { %7183 = vrot.lane.b32.xlu1 %v7148_v56, %s11680_s2  ;;  %v7450_v29 = vsel %vm2422_vm8, %v14356_v17, %v14590_v60  ;;  %v5049_v56 = vshll.u32 %v11305_v30, 16  ;;  %v5048_v17 = vrot.slane %v5046_v5, 2  ;;  %v6645_v0 = vsel %vm16669_vm3, %v14377_v20, %v14608_v43 }
 0x3e0   : > { %v5314_v37 = vpop.permute.xlu0 %5313  ;;  %v5763_v20 = vor.u32 %v5761_v27, %v14407_v40 }
 0x3e1   : > { %5357 = vst.msk [vmem:[#allocation2 + $0xa8] sm:$0xff] %vm16673_vm4, %v5314_v37  ;;  %v6330_v1 = vpop.permute.xlu1 %6329  ;;  %v5051_v32 = vrot.slane %v5049_v56, 3  ;;  %v11253_v37 = vld [vmem:[%s12114_s7 + $0x78] sm:$0xff]   ;;  %v16774_v56 = vrot.slane %v13778_v21, 1 }
 0x3e2   : > { %5309 = vrot.lane.b32.xlu0 %v5274_v18, %s11673_s9  ;;  %6378 = vst.msk [vmem:[#allocation2 + $0x58] sm:$0xff] %vm2033_vm11, %v6330_v1  ;;  %v14625_v18 = vld [vmem:[%s12114_s7 + $0x70] sm:$0xff]   ;;  %v4696_v1 = vsel %vm1941_vm5, %v4693_v10, %v4695_v62  ;;  %v7488_v11 = vshrl.u32 %v11253_v37, 16  ;;  %v7491_v10 = vshll.u32 %v11253_v37, 16  ;;  %v14684_v21 = vld [vmem:[%s12107_s14 + $0x70] sm:$0xff]  }
 0x3e3   : > { %6343 = vrot.lane.b32.xlu1 %v6308_v12, %s11677_s18  ;;  %v14637_v30 = vor.u32 %v5051_v32, %v5048_v17  ;;  %v6918_v63 = vrot.slane %v14625_v18, 2  ;;  %v4465_v46 = vrot.slane %v14684_v21, 2  ;;  %v11321_v21 = vld [vmem:[%s12107_s14 + $0x90] sm:$0xff]  }
 0x3e4   : > { %v7560_v36 = vpop.permute.xlu0 %7559 }
 0x3e5   : > { %7604 = vst.msk [vmem:[#allocation2 + $0x98] sm:$0xff] %vm16770_vm13, %v7560_v36  ;;  %v4496_v54 = vpop.permute.xlu1 %4495  ;;  %v5053_v40 = vsel %vm2422_vm8, %v14398_v8, %v14637_v30  ;;  %vm16773_vm13 = vsmask.f32 7424  ;;  %v14657_v36 = vld [vmem:[%s12107_s14 + $0x80] sm:$0xff]   ;;  %v6919_v8 = vsel %vm1941_vm5, %v6916_v38, %v6918_v63 }
 0x3e6   : > { %7555 = vrot.lane.b32.xlu0 %v7450_v29, %s11681_s21  ;;  %4541 = vst.msk [vmem:[#allocation2 + $0x90] sm:$0xff] %vm16771_vm0, %v4496_v54  ;;  %v14647_v29 = vld [vmem:[%s12114_s7 + $0x78] sm:$0xff]   ;;  %v5768_v5 = vsel %vm16773_vm13, %v5763_v20, %v13760_v53  ;;  %v6061_v54 = vsel %vm16672_vm1, %v6058_v4, %v16774_v56  ;;  %v5283_v17 = vrot.slane %v14657_v36, 3  ;;  %vm16775_vm0 = vcmask 523712  }
 0x3e7   : > { %5507 = vrot.lane.b32.xlu1 %v11245_v47, %s11674_s11  ;;  %5121 = vst.msk [vmem:[#allocation2 + $0xd8] sm:$0xff] %vm16671_vm2, %v5053_v40  ;;  %v7157_v53 = vrot.slane %v14647_v29, 2  ;;  %v16777_v20 = vrot.slane %v13824_v26, 1  ;;  %v14722_v40 = vld [vmem:[%s12107_s14 + $0x78] sm:$0xff]   ;;  %vm16779_vm13 = vcmask 654912   ;;  %v14871_v29 = vld [vmem:[%s12114_s7 + $0x78] sm:$0xff]  }
 0x3e8   : > { %v5512_v48 = vpop.permute.xlu0 %5511  ;;  %v5284_v32 = vsel %vm2796_vm10, %v5281_v58, %v5283_v17 }
 0x3e9   : > { %5555 = vst.msk [vmem:[#allocation2 + $0xa8] sm:$0xff] %vm16670_vm6, %v5512_v48  ;;  %v6702_v12 = vpop.permute.xlu1 %6701  ;;  %v7493_v48 = vrot.slane %v7491_v10, 3  ;;  %v7158_v38 = vsel %vm1941_vm5, %v7155_v50, %v7157_v53  ;;  %v6300_v37 = vsel %vm16672_vm1, %v6297_v55, %v16777_v20  ;;  %v4466_v55 = vsel %vm1941_vm5, %v16778_v16, %v4465_v46 }
 0x3ea   : > { %6715 = vrot.lane.b32.xlu0 %v6645_v0, %s11678_s15  ;;  %6750 = vst.msk [vmem:[#allocation2 + $0x58] sm:$0xff] %vm16772_vm12, %v6702_v12  ;;  %v7490_v0 = vrot.slane %v7488_v11, 2  ;;  %vm16776_vm12 = vcmask 589312   ;;  %v5801_v10 = vshrl.u32 %v14493_v7, 16 }
 0x3eb   : > { %7794 = vrot.lane.b32.xlu1 %v7759_v41, %s11682_s4 }
 0x3ec   : > { %v7799_v23 = vpop.permute.xlu0 %7798  ;;  %v14693_v35 = vor.u32 %v7493_v48, %v7490_v0  ;;  %v14747_v48 = vld [vmem:[%s12114_s7 + $0x70] sm:$0xff]  }
 0x3ed   : > { %7843 = vst.msk [vmem:[#allocation2 + $0x98] sm:$0xff] %vm3438_vm14, %v7799_v23  ;;  %v4736_v47 = vpop.permute.xlu1 %4735  ;;  %v14712_v23 = vld [vmem:[%s12114_s7 + $0x70] sm:$0xff]  }
 0x3ee   : > { %4731 = vrot.lane.b32.xlu0 %v4696_v1, %s11688_s6  ;;  %4781 = vst.msk [vmem:[#allocation2 + $0x90] sm:$0xff] %vm4771_vm15, %v4736_v47  ;;  %v7495_v12 = vsel %vm2422_vm8, %v14474_v2, %v14693_v35  ;;  %v14709_v1 = vld [vmem:[%s12114_s7 + $0x78] sm:$0xff]   ;;  %v5805_v47 = vshll.u32 %v14712_v23, 16 }
 0x3ef   : > { %5857 = vrot.lane.b32.xlu1 %v5768_v5, %s11675_s20  ;;  %v11255_v5 = vld [vmem:[%s12114_s7 + $0x68] sm:$0xff]   ;;  %v7768_v11 = vrot.slane %v14709_v1, 3 }
 0x3f0   : > { %v5862_v27 = vpop.permute.xlu0 %5861  ;;  %v14744_v0 = vrot.slane %v5805_v47, 1 }
 0x3f1   : > { %5905 = vst.msk [vmem:[#allocation2 + $0xa8] sm:$0xff] %vm1418_vm7, %v5862_v27  ;;  %v6941_v24 = vpop.permute.xlu1 %6940  ;;  %v4705_v27 = vrot.slane %v14722_v40, 2  ;;  %v7769_v7 = vsel %vm2796_vm10, %v7766_v19, %v7768_v11 }
 0x3f2   : > { %6954 = vrot.lane.b32.xlu0 %v6919_v8, %s11679_s30  ;;  %6989 = vst.msk [vmem:[#allocation2 + $0x58] sm:$0xff] %vm16775_vm0, %v6941_v24  ;;  %vm16780_vm0 = vcmask 458112   ;;  %v16781_v24 = vrot.slane %v14505_v61, 2  ;;  %v16783_v61 = vrot.slane %v13894_v59, 2  ;;  %v11320_v59 = vld [vmem:[%s12107_s14 + $0x88] sm:$0xff]  }
 0x3f3   : > { %6096 = vrot.lane.b32.xlu1 %v6061_v54, %s11676_s1  ;;  %v5803_v54 = vor.u32 %v5801_v10, %v14533_v39 }
 0x3f4   : > { %v6101_v3 = vpop.permute.xlu0 %6100  ;;  %v7871_v4 = vld [vmem:[#allocation2 + $0x98] sm:$0xff]  ;;  %v4706_v42 = vsel %vm1941_vm5, %v16781_v24, %v4705_v27 }
 0x3f5   : > { %6144 = vst.msk [vmem:[#allocation2 + $0xa8] sm:$0xff] %vm1792_vm9, %v6101_v3  ;;  %8214 = vmatprep.mubr.bf16.mxu1 %v7871_v4  ;;  %v7180_v50 = vpop.permute.xlu1 %7179  ;;  %v7870_v41 = vld [vmem:[#allocation2 + $0x90] sm:$0xff]  ;;  %v6647_v4 = vshrl.u32 %v11262_v33, 16 }
 0x3f6   : > { %7193 = vrot.lane.b32.xlu0 %v7158_v38, %s11680_s2  ;;  %7228 = vst.msk [vmem:[#allocation2 + $0x58] sm:$0xff] %vm16776_vm12, %v7180_v50  ;;  %8215 = vmatmul.mubr.bf16.vlgmr.msra.gmra.mrb[0].mxu1 %v7870_v41  ;;  %vm16782_vm12 = vsmask.f32 7424  ;;  %v6070_v38 = vrot.slane %v14747_v48, 1  ;;  %v14763_v3 = vld [vmem:[%s12114_s7 + $0x78] sm:$0xff]   ;;  %v16784_v41 = vrot.slane %v14520_v14, 2 }
 0x3f7   : > { %5319 = vrot.lane.b32.xlu1 %v5284_v32, %s11673_s9  ;;  %v5808_v39 = vsel %vm16782_vm12, %v5803_v54, %v14744_v0  ;;  %v6650_v32 = vshll.u32 %v11262_v33, 16  ;;  %v14804_v54 = vld [vmem:[%s12114_s7 + $0x78] sm:$0xff]   ;;  %vm16788_vm12 = vcmask 654912  }
 0x3f8   : > { %v5306_v58 = vpop.permute.xlu0 %5305  ;;  %v6911_v20 = vsel %vm1941_vm5, %v16784_v41, %v16783_v61 }
 0x3f9   : > { %5353 = vst.msk [vmem:[#allocation2 + $0x68] sm:$0xff] %vm16673_vm4, %v5306_v58  ;;  %v6340_v26 = vpop.permute.xlu1 %6339  ;;  %v6071_v58 = vsel %vm16672_vm1, %v6068_v45, %v6070_v38  ;;  %v6652_v16 = vrot.slane %v6650_v32, 2  ;;  %v5055_v45 = vshrl.u32 %v11320_v59, 16  ;;  %v16791_v32 = vrot.slane %v14019_v6, 2 }
 0x3fa   : > { %6335 = vrot.lane.b32.xlu0 %v6300_v37, %s11677_s18  ;;  %6383 = vst.msk [vmem:[#allocation2 + $0xa8] sm:$0xff] %vm2033_vm11, %v6340_v26  ;;  %v6649_v26 = vrot.slane %v6647_v4, 1  ;;  %v14829_v4 = vld [vmem:[%s12107_s14 + $0x88] sm:$0xff]  }
 0x3fb   : > { %7565 = vrot.lane.b32.xlu1 %v7495_v12, %s11681_s21  ;;  %v6309_v12 = vrot.slane %v14763_v3, 1  ;;  %v5285_v34 = vrot.slane %v14829_v4, 3 }
 0x3fc   : > { %v7552_v2 = vpop.permute.xlu0 %7551  ;;  %v14795_v9 = vor.u32 %v6652_v16, %v6649_v26  ;;  %v11275_v16 = vld [vmem:[%s12114_s7 + $0x80] sm:$0xff]  }
 0x3fd   : > { %7600 = vst.msk [vmem:[#allocation2 + $0x58] sm:$0xff] %vm16779_vm13, %v7552_v2  ;;  %v5504_v8 = vpop.permute.xlu1 %5503  ;;  %vm16785_vm13 = vcmask 523712   ;;  %v16786_v2 = vrot.slane %v13929_v31, 2  ;;  %v6310_v31 = vsel %vm16672_vm1, %v6307_v49, %v6309_v12 }
 0x3fe   : > { %4501 = vrot.lane.b32.xlu0 %v4466_v55, %s11686_s22  ;;  %5551 = vst.msk [vmem:[#allocation2 + $0x68] sm:$0xff] %vm16670_vm6, %v5504_v8  ;;  %v5057_v8 = vrot.slane %v5055_v45, 2  ;;  %v6654_v33 = vsel %vm16669_vm3, %v14608_v43, %v14795_v9  ;;  %v11268_v45 = vld [vmem:[%s12114_s7 + $0x70] sm:$0xff]  }
 0x3ff   : > { %5517 = vrot.lane.b32.xlu1 %v11255_v5, %s11674_s11  ;;  %v7150_v22 = vsel %vm1941_vm5, %v7147_v57, %v16786_v2  ;;  %v5058_v5 = vshll.u32 %v11320_v59, 16  ;;  %v11266_v57 = vld [vmem:[%s12114_s7 + $0x80] sm:$0xff]   ;;  %v5809_v2 = vshrl.u32 %v14712_v23, 16 }
 0x400   : > { %v6712_v56 = vpop.permute.xlu0 %6711  ;;  %v7497_v24 = vshrl.u32 %v11266_v57, 16 }
 0x401   : > { %6755 = vst.msk [vmem:[#allocation2 + $0xa8] sm:$0xff] %vm16780_vm0, %v6712_v56  ;;  %v7791_v51 = vpop.permute.xlu1 %7790  ;;  %vm16787_vm0 = vcmask 589312  }
 0x402   : > { %6707 = vrot.lane.b32.xlu0 %v6609_v52, %s11678_s15  ;;  %7839 = vst.msk [vmem:[#allocation2 + $0x58] sm:$0xff] %vm3438_vm14, %v7791_v51  ;;  %v5060_v52 = vrot.slane %v5058_v5, 3  ;;  %v14814_v51 = vld [vmem:[%s12114_s7 + $0x80] sm:$0xff]   ;;  %v14895_v5 = vld [vmem:[%s12114_s7 + $0x78] sm:$0xff]  }
 0x403   : > { %7804 = vrot.lane.b32.xlu1 %v7769_v7, %s11682_s4  ;;  %v7459_v7 = vsel %vm2422_vm8, %v14590_v60, %v13982_v15  ;;  %v7159_v44 = vrot.slane %v14814_v51, 2  ;;  %v6072_v1 = vrot.slane %v14895_v5, 1 }
 0x404   : > { %v4728_v19 = vpop.permute.xlu0 %4727  ;;  %v14806_v13 = vor.u32 %v5060_v52, %v5057_v8  ;;  %v5811_v8 = vor.u32 %v5809_v2, %v14744_v0 }
 0x405   : > { %4777 = vst.msk [vmem:[#allocation2 + $0x50] sm:$0xff] %vm4771_vm15, %v4728_v19  ;;  %v5854_v50 = vpop.permute.xlu1 %5853  ;;  %v16789_v19 = vrot.slane %v14000_v25, 3  ;;  %v4698_v25 = vsel %vm1941_vm5, %v4695_v62, %v16791_v32  ;;  %v14848_v62 = vld [vmem:[%s12107_s14 + $0x78] sm:$0xff]  }
 0x406   : > { %4741 = vrot.lane.b32.xlu0 %v4706_v42, %s11688_s6  ;;  %5901 = vst.msk [vmem:[#allocation2 + $0x68] sm:$0xff] %vm1418_vm7, %v5854_v50  ;;  %v7500_v42 = vshll.u32 %v11266_v57, 16  ;;  %v5062_v15 = vsel %vm2422_vm8, %v14637_v30, %v14806_v13  ;;  %v7499_v50 = vrot.slane %v7497_v24, 2  ;;  %v4467_v26 = vrot.slane %v14848_v62, 2  ;;  %v15037_v62 = vld [vmem:[%s12114_s7 + $0x80] sm:$0xff]  }
 0x407   : > { %5867 = vrot.lane.b32.xlu1 %v5808_v39, %s11675_s20  ;;  %5122 = vst.msk [vmem:[#allocation2 + $0xe8] sm:$0xff] %vm16671_vm2, %v5062_v15  ;;  %v7761_v43 = vsel %vm2796_vm10, %v7758_v28, %v16789_v19  ;;  %v6920_v39 = vrot.slane %v14804_v54, 2  ;;  %v11279_v15 = vld [vmem:[%s12114_s7 + $0x88] sm:$0xff]  }
 0x408   : > { %v6951_v37 = vpop.permute.xlu0 %6950  ;;  %v7502_v28 = vrot.slane %v7500_v42, 3 }
 0x409   : > { %6994 = vst.msk [vmem:[#allocation2 + $0xa8] sm:$0xff] %vm16785_vm13, %v6951_v37  ;;  %v6093_v14 = vpop.permute.xlu1 %6092  ;;  %v7863_v55 = vld [vmem:[#allocation2 + $0x58] sm:$0xff]  ;;  %vm16790_vm13 = vcmask 982912   ;;  %v6921_v6 = vsel %vm1941_vm5, %v6918_v63, %v6920_v39 }
 0x40a   : > { %6946 = vrot.lane.b32.xlu0 %v6911_v20, %s11679_s30  ;;  %6140 = vst.msk [vmem:[#allocation2 + $0x68] sm:$0xff] %vm1792_vm9, %v6093_v14  ;;  %8174 = vmatprep.mubr.bf16.mxu0 %v7863_v55  ;;  %v7160_v20 = vsel %vm1941_vm5, %v7157_v53, %v7159_v44  ;;  %v14857_v18 = vor.u32 %v7502_v28, %v7499_v50  ;;  %v14861_v37 = vld [vmem:[%s12114_s7 + $0x80] sm:$0xff]   ;;  %v14880_v14 = vld [vmem:[%s12107_s14 + $0x80] sm:$0xff]  }
 0x40b   : > { %6106 = vrot.lane.b32.xlu1 %v6071_v58, %s11676_s1  ;;  %v5286_v58 = vsel %vm2796_vm10, %v5283_v17, %v5285_v34  ;;  %v7770_v17 = vrot.slane %v14861_v37, 3  ;;  %v4468_v55 = vsel %vm1941_vm5, %v4465_v46, %v4467_v26  ;;  %v14928_v50 = vld [vmem:[%s12114_s7 + $0x80] sm:$0xff]   ;;  %v6073_v28 = vsel %vm16672_vm1, %v6070_v38, %v6072_v1 }
 0x40c   : > { %v7190_v10 = vpop.permute.xlu0 %7189  ;;  %v7862_v47 = vld [vmem:[#allocation2 + $0x50] sm:$0xff]  ;;  %v7504_v59 = vsel %vm2422_vm8, %v14693_v35, %v14857_v18  ;;  %v5813_v35 = vshll.u32 %v14871_v29, 16  ;;  %v6922_v38 = vrot.slane %v14928_v50, 2 }
 0x40d   : > { %7233 = vst.msk [vmem:[#allocation2 + $0xa8] sm:$0xff] %vm16787_vm0, %v7190_v10  ;;  %8175 = vmatmul.mubr.bf16.gmra.mrb[20].mxu0 %v7862_v47  ;;  %v5316_v56 = vpop.permute.xlu1 %5315  ;;  %vm16792_vm0 = vcmask 458112   ;;  %v6656_v10 = vshrl.u32 %v11275_v16, 16  ;;  %v6659_v47 = vshll.u32 %v11275_v16, 16  ;;  %v7771_v23 = vsel %vm2796_vm10, %v7768_v11, %v7770_v17  ;;  %v14959_v16 = vld [vmem:[%s12107_s14 + $0x90] sm:$0xff]  }
 0x40e   : > { %7185 = vrot.lane.b32.xlu0 %v7150_v22, %s11680_s2  ;;  %5358 = vst.msk [vmem:[#allocation2 + $0xb8] sm:$0xff] %vm16673_vm4, %v5316_v56  ;;  %v14908_v52 = vrot.slane %v5813_v35, 1  ;;  %v14911_v56 = vld [vmem:[%s12114_s7 + $0x80] sm:$0xff]   ;;  %v5287_v35 = vrot.slane %v14959_v16, 3 }
 0x40f   : > { %6345 = vrot.lane.b32.xlu1 %v6310_v31, %s11677_s18  ;;  %v4707_v31 = vrot.slane %v14880_v14, 2  ;;  %v6658_v11 = vrot.slane %v6656_v10, 1  ;;  %v6661_v42 = vrot.slane %v6659_v47, 2 }
 0x410   : > { %v6332_v49 = vpop.permute.xlu0 %6331  ;;  %v5288_v51 = vsel %vm2796_vm10, %v5285_v34, %v5287_v35 }
 0x411   : > { %6379 = vst.msk [vmem:[#allocation2 + $0x68] sm:$0xff] %vm2033_vm11, %v6332_v49  ;;  %v7562_v60 = vpop.permute.xlu1 %7561  ;;  %v5067_v49 = vshll.u32 %v11321_v21, 16  ;;  %v4708_v0 = vsel %vm1941_vm5, %v4705_v27, %v4707_v31 }
 0x412   : > { %7557 = vrot.lane.b32.xlu0 %v7459_v7, %s11681_s21  ;;  %7605 = vst.msk [vmem:[#allocation2 + $0xa8] sm:$0xff] %vm16788_vm12, %v7562_v60  ;;  %vm16793_vm12 = vcmask 523712   ;;  %v5064_v7 = vshrl.u32 %v11321_v21, 16  ;;  %v7922_v60 = vlaneseq }
 0x413   : > { %6717 = vrot.lane.b32.xlu1 %v6654_v33, %s11678_s15 }
 0x414   : > { %v4498_v30 = vpop.permute.xlu0 %4497  ;;  %v5066_v19 = vrot.slane %v5064_v7, 2  ;;  %v15011_v7 = vld [vmem:[%s12114_s7 + $0x80] sm:$0xff]  }
 0x415   : > { %4542 = vst.msk [vmem:[#allocation2 + $0xa0] sm:$0xff] %vm16790_vm13, %v4498_v30  ;;  %v5514_v61 = vpop.permute.xlu1 %5513  ;;  %vm16794_vm13 = vcmask 589312  }
 0x416   : > { %7796 = vrot.lane.b32.xlu0 %v7761_v43, %s11682_s4  ;;  %5556 = vst.msk [vmem:[#allocation2 + $0xb8] sm:$0xff] %vm16670_vm6, %v5514_v61  ;;  %v5069_v43 = vrot.slane %v5067_v49, 3  ;;  %v14938_v61 = vor.u32 %v6661_v42, %v6658_v11 }
 0x417   : > { %4733 = vrot.lane.b32.xlu1 %v4698_v25, %s11688_s6  ;;  %v6311_v25 = vrot.slane %v14911_v56, 1 }
 0x418   : > { %v6704_v41 = vpop.permute.xlu0 %6703  ;;  %v14930_v40 = vor.u32 %v5069_v43, %v5066_v19  ;;  %v11281_v43 = vld [vmem:[%s12114_s7 + $0x78] sm:$0xff]  }
 0x419   : > { %6751 = vst.msk [vmem:[#allocation2 + $0x68] sm:$0xff] %vm16792_vm0, %v6704_v41  ;;  %v7801_v63 = vpop.permute.xlu1 %7800  ;;  %vm16795_vm0 = vsmask.f32 7424  ;;  %v7506_v41 = vshrl.u32 %v11279_v15, 16  ;;  %v6312_v48 = vsel %vm16672_vm1, %v6309_v12, %v6311_v25 }
 0x41a   : > { %6956 = vrot.lane.b32.xlu0 %v6921_v6, %s11679_s30  ;;  %7844 = vst.msk [vmem:[#allocation2 + $0xa8] sm:$0xff] %vm3438_vm14, %v7801_v63  ;;  %v5816_v32 = vsel %vm16795_vm0, %v5811_v8, %v14908_v52  ;;  %v14942_v6 = vld [vmem:[%s12114_s7 + $0x88] sm:$0xff]   ;;  %v14944_v63 = vshrl.u32 %v7922_v60, 7  ;;  %vm16798_vm0 = vcmask 523712  }
 0x41b   : > { %7195 = vrot.lane.b32.xlu1 %v7160_v20, %s11680_s2  ;;  %v7509_v20 = vshll.u32 %v11279_v15, 16  ;;  %v11288_v8 = vld [vmem:[%s12114_s7 + $0x88] sm:$0xff]   ;;  %v5817_v15 = vshrl.u32 %v14871_v29, 16  ;;  %v11322_v29 = vld [vmem:[%s12107_s14 + $0x98] sm:$0xff]  }
 0x41c   : > { %v4738_v53 = vpop.permute.xlu0 %4737  ;;  %v14968_v12 = vadd.s32 8, %v14944_v63  ;;  %v14983_v10 = vmul.u32.u64.low 3817748708, %v14944_v63  ;;  %v14984_v47 = vmul.u32.u64.high 3817748708, %v14944_v63, %v14983_v10  ;;  %v6665_v34 = vshrl.u32 %v11288_v8, 16 }
 0x41d   : > { %4782 = vst.msk [vmem:[#allocation2 + $0xa0] sm:$0xff] %vm4771_vm15, %v4738_v53  ;;  %v5864_v36 = vpop.permute.xlu1 %5863  ;;  %v7511_v3 = vrot.slane %v7509_v20, 3  ;;  %v6668_v42 = vshll.u32 %v11288_v8, 16  ;;  %v15048_v20 = vld [vmem:[%s12114_s7 + $0x88] sm:$0xff]  }
 0x41e   : > { %5321 = vrot.lane.b32.xlu0 %v5286_v58, %s11673_s9  ;;  %5906 = vst.msk [vmem:[#allocation2 + $0xb8] sm:$0xff] %vm1418_vm7, %v5864_v36  ;;  %v5071_v58 = vsel %vm2422_vm8, %v14806_v13, %v14930_v40  ;;  %v7161_v36 = vrot.slane %v14942_v6, 2 }
 0x41f   : > { %7567 = vrot.lane.b32.xlu1 %v7504_v59, %s11681_s21  ;;  %5123 = vst.msk [vmem:[#allocation2 + $0xf8] sm:$0xff] %vm16671_vm2, %v5071_v58  ;;  %v6663_v59 = vsel %vm16669_vm3, %v14795_v9, %v14938_v61  ;;  %v6923_v9 = vsel %vm1941_vm5, %v6920_v39, %v6922_v38  ;;  %v6667_v58 = vrot.slane %v6665_v34, 1 }
 0x420   : > { %v6943_v22 = vpop.permute.xlu0 %6942  ;;  %v7162_v54 = vsel %vm1941_vm5, %v7159_v44, %v7161_v36 }
 0x421   : > { %6990 = vst.msk [vmem:[#allocation2 + $0x68] sm:$0xff] %vm16793_vm12, %v6943_v22  ;;  %v6103_v57 = vpop.permute.xlu1 %6102  ;;  %v7873_v46 = vld [vmem:[#allocation2 + $0xa8] sm:$0xff]  ;;  %vm16796_vm12 = vcmask 654912  }
 0x422   : > { %4503 = vrot.lane.b32.xlu0 %v4468_v55, %s11686_s22  ;;  %6145 = vst.msk [vmem:[#allocation2 + $0xb8] sm:$0xff] %vm1792_vm9, %v6103_v57  ;;  %8224 = vmatprep.mubr.bf16.mxu1 %v7873_v46  ;;  %v7508_v55 = vrot.slane %v7506_v41, 2  ;;  %v14979_v22 = vld [vmem:[%s12107_s14 + $0x80] sm:$0xff]   ;;  %v14995_v21 = vmul.u32.u64.low 3817748708, %v14968_v12  ;;  %v14996_v57 = vmul.u32.u64.high 3817748708, %v14968_v12, %v14995_v21 }
 0x423   : > { %5519 = vrot.lane.b32.xlu1 %v11268_v45, %s11674_s11  ;;  %v4469_v44 = vrot.slane %v14979_v22, 2 }
 0x424   : > { %v7182_v33 = vpop.permute.xlu0 %7181  ;;  %v7872_v24 = vld [vmem:[#allocation2 + $0xa0] sm:$0xff]  ;;  %v14992_v39 = vor.u32 %v7511_v3, %v7508_v55  ;;  %v5073_v55 = vshrl.u32 %v11322_v29, 16  ;;  %v5076_v3 = vshll.u32 %v11322_v29, 16 }
 0x425   : > { %7229 = vst.msk [vmem:[#allocation2 + $0x68] sm:$0xff] %vm16794_vm13, %v7182_v33  ;;  %8225 = vmatmul.mubr.bf16.gmra.mrb[4].mxu1 %v7872_v24  ;;  %v5308_v30 = vpop.permute.xlu1 %5307  ;;  %vm16797_vm13 = vcmask 458112   ;;  %v15015_v33 = vld [vmem:[%s12107_s14 + $0x88] sm:$0xff]  }
 0x426   : > { %7806 = vrot.lane.b32.xlu0 %v7771_v23, %s11682_s4  ;;  %5354 = vst.msk [vmem:[#allocation2 + $0x78] sm:$0xff] %vm16673_vm4, %v5308_v30  ;;  %v15000_v23 = vld [vmem:[%s12114_s7 + $0x88] sm:$0xff]   ;;  %v7513_v24 = vsel %vm2422_vm8, %v14857_v18, %v14992_v39  ;;  %v5821_v18 = vshll.u32 %v15011_v7, 16  ;;  %v4709_v30 = vrot.slane %v15015_v33, 2  ;;  %v5078_v10 = vrot.slane %v5076_v3, 3 }
 0x427   : > { %4743 = vrot.lane.b32.xlu1 %v4708_v0, %s11688_s6  ;;  %v7772_v4 = vrot.slane %v15000_v23, 3  ;;  %v4470_v0 = vsel %vm1941_vm5, %v4467_v26, %v4469_v44  ;;  %v8611_v26 = vshrl.u32 %v14996_v57, 4  ;;  %v15074_v57 = vld [vmem:[%s12114_s7 + $0x90] sm:$0xff]  }
 0x428   : > { %v6342_v27 = vpop.permute.xlu0 %6341 }
 0x429   : > { %6384 = vst.msk [vmem:[#allocation2 + $0xb8] sm:$0xff] %vm2033_vm11, %v6342_v27  ;;  %v7554_v53 = vpop.permute.xlu1 %7553  ;;  %v7773_v41 = vsel %vm2796_vm10, %v7770_v17, %v7772_v4  ;;  %v4710_v17 = vsel %vm1941_vm5, %v4707_v31, %v4709_v30  ;;  %v15071_v31 = vld [vmem:[%s12114_s7 + $0x88] sm:$0xff]  }
 0x42a   : > { %5869 = vrot.lane.b32.xlu0 %v5816_v32, %s11675_s20  ;;  %7601 = vst.msk [vmem:[#allocation2 + $0x68] sm:$0xff] %vm16796_vm12, %v7554_v53  ;;  %v8600_v32 = vshrl.u32 %v14984_v47, 4  ;;  %v6670_v53 = vrot.slane %v6668_v42, 2  ;;  %vm16799_vm12 = vcmask 589312  }
 0x42b   : > { %6108 = vrot.lane.b32.xlu1 %v6073_v28, %s11676_s1 }
 0x42c   : > { %v5506_v13 = vpop.permute.xlu0 %5505  ;;  %v15065_v21 = vor.u32 %v6670_v53, %v6667_v58  ;;  %v15134_v58 = vld [vmem:[%s12107_s14 + $0x88] sm:$0xff]  }
 0x42d   : > { %5552 = vst.msk [vmem:[#allocation2 + $0x78] sm:$0xff] %vm16670_vm6, %v5506_v13  ;;  %v6714_v2 = vpop.permute.xlu1 %6713  ;;  %v15052_v13 = vrot.slane %v5821_v18, 1  ;;  %v15137_v53 = vld [vmem:[%s12114_s7 + $0x90] sm:$0xff]  }
 0x42e   : > { %6347 = vrot.lane.b32.xlu0 %v6312_v48, %s11677_s18  ;;  %6756 = vst.msk [vmem:[#allocation2 + $0xb8] sm:$0xff] %vm16797_vm13, %v6714_v2  ;;  %v5819_v48 = vor.u32 %v5817_v15, %v14908_v52  ;;  %v8601_v2 = vmul.u32 18, %v8600_v32  ;;  %v6074_v52 = vrot.slane %v15037_v62, 1  ;;  %vm16800_vm13 = vsmask.f32 7424 }
 0x42f   : > { %6719 = vrot.lane.b32.xlu1 %v6663_v59, %s11678_s15  ;;  %v11292_v59 = vld [vmem:[%s12114_s7 + $0x90] sm:$0xff]   ;;  %v7774_v6 = vrot.slane %v15137_v53, 3  ;;  %v11303_v62 = vld [vmem:[%s12107_s14 + $0xa0] ss:$0 sps:$4 sm:$0x77]  }
 0x430   : > { %v7793_v45 = vpop.permute.xlu0 %7792  ;;  %v5824_v14 = vsel %vm16800_vm13, %v5819_v48, %v15052_v13  ;;  %v7518_v8 = vshll.u32 %v11292_v59, 16  ;;  %v6075_v34 = vsel %vm16672_vm1, %v6072_v1, %v6074_v52  ;;  %v6672_v1 = vsel %vm16669_vm3, %v14938_v61, %v15065_v21 }
 0x431   : > { %7840 = vst.msk [vmem:[#allocation2 + $0x68] sm:$0xff] %vm3438_vm14, %v7793_v45  ;;  %v4730_v46 = vpop.permute.xlu1 %4729  ;;  %v5075_v45 = vrot.slane %v5073_v55, 2 }
 0x432   : > { %6958 = vrot.lane.b32.xlu0 %v6923_v9, %s11679_s30  ;;  %4778 = vst.msk [vmem:[#allocation2 + $0x60] sm:$0xff] %vm4771_vm15, %v4730_v46  ;;  %v8612_v9 = vmul.u32 18, %v8611_v26  ;;  %v7515_v46 = vshrl.u32 %v11292_v59, 16 }
 0x433   : > { %7197 = vrot.lane.b32.xlu1 %v7162_v54, %s11680_s2  ;;  %v6313_v54 = vrot.slane %v15048_v20, 1 }
 0x434   : > { %v5856_v49 = vpop.permute.xlu0 %5855  ;;  %v15092_v42 = vsub.s32 %v14968_v12, %v8612_v9  ;;  %v15110_v12 = vld [vmem:[%s12107_s14 + $0x98] sm:$0xff]   ;;  %v11300_v9 = vld [vmem:[%s12114_s7 + $0x90] sm:$0xff]  }
 0x435   : > { %5902 = vst.msk [vmem:[#allocation2 + $0x78] sm:$0xff] %vm1418_vm7, %v5856_v49  ;;  %v6953_v11 = vpop.permute.xlu1 %6952  ;;  %v6314_v5 = vsel %vm16672_vm1, %v6311_v25, %v6313_v54 }
 0x436   : > { %5323 = vrot.lane.b32.xlu0 %v5288_v51, %s11673_s9  ;;  %6995 = vst.msk [vmem:[#allocation2 + $0xb8] sm:$0xff] %vm16798_vm0, %v6953_v11  ;;  %v15076_v51 = vor.u32 %v5078_v10, %v5075_v45  ;;  %v15083_v11 = vadd.s32 16, %v14944_v63  ;;  %vm16801_vm0 = vcmask 654912   ;;  %vm9027_vm3 = vcmp.lt.s32.totalorder %v15092_v42, 0 }
 0x437   : > { %7569 = vrot.lane.b32.xlu1 %v7513_v24, %s11681_s21  ;;  %v15080_v24 = vsub.s32 %v14944_v63, %v8601_v2  ;;  %v9099_v3 = vadd.s32 18, %v15092_v42 }
 0x438   : > { %v6095_v60 = vpop.permute.xlu0 %6094  ;;  %v7865_v19 = vld [vmem:[#allocation2 + $0x68] sm:$0xff]  ;;  %v5080_v15 = vsel %vm2422_vm8, %v14930_v40, %v15076_v51  ;;  %v6924_v40 = vrot.slane %v15071_v31, 2  ;;  %v15120_v25 = vmul.u32.u64.low 3817748708, %v15083_v11  ;;  %v15121_v61 = vmul.u32.u64.high 3817748708, %v15083_v11, %v15120_v25 }
 0x439   : > { %6141 = vst.msk [vmem:[#allocation2 + $0x78] sm:$0xff] %vm1792_vm9, %v6095_v60  ;;  %8184 = vmatprep.mubr.bf16.mxu0 %v7865_v19  ;;  %v7192_v27 = vpop.permute.xlu1 %7191  ;;  %v7864_v28 = vld [vmem:[#allocation2 + $0x60] sm:$0xff]  ;;  %v7163_v60 = vrot.slane %v15074_v57, 2  ;;  %v7517_v19 = vrot.slane %v7515_v46, 2  ;;  %vm8990_vm13 = vcmp.ne.s32.totalorder %v15080_v24, 0  ;;  %v9098_v55 = vadd.s32 18, %v15080_v24 }
 0x43a   : > { %4505 = vrot.lane.b32.xlu0 %v4470_v0, %s11686_s22  ;;  %7234 = vst.msk [vmem:[#allocation2 + $0xb8] sm:$0xff] %vm16799_vm12, %v7192_v27  ;;  %8185 = vmatmul.mubr.bf16.gmra.mrb[24].mxu0 %v7864_v28  ;;  %v15095_v0 = vadd.s32 24, %v14944_v63  ;;  %vm16802_vm12 = vcmask 982912   ;;  %v7920_v27 = vld [vmem:[#allocation11] sm:$0x3]  ;;  %v7924_v28 = vsub.s32 0, %v14944_v63  ;;  %v6925_v48 = vsel %vm1941_vm5, %v6922_v38, %v6924_v40 }
 0x43b   : > { %5521 = vrot.lane.b32.xlu1 %v11281_v43, %s11674_s11  ;;  %5124 = vst.msk [vmem:[#allocation2 + $0x108] sm:$0xff] %vm16671_vm2, %v5080_v15  ;;  %v7520_v43 = vrot.slane %v7518_v8, 3  ;;  %v7928_v38 = vsub.s32 1, %v14944_v63  ;;  %v7164_v45 = vsel %vm1941_vm5, %v7161_v36, %v7163_v60  ;;  %v4471_v8 = vrot.slane %v15134_v58, 2  ;;  %v15200_v15 = vld [vmem:[%s12114_s7 + $0x88] sm:$0xff]  }
 0x43c   : > { %v5318_v37 = vpop.permute.xlu0 %5317  ;;  %v15127_v32 = vmul.u32.u64.low 3817748708, %v15095_v0  ;;  %v15128_v26 = vmul.u32.u64.high 3817748708, %v15095_v0, %v15127_v32 }
 0x43d   : > { %5359 = vst.msk [vmem:[#allocation2 + $0xc8] sm:$0xff] %vm16673_vm4, %v5318_v37  ;;  %v6334_v47 = vpop.permute.xlu1 %6333  ;;  %v15156_v37 = vld [vmem:[%s12107_s14 + $0x90] sm:$0xff]   ;;  %v15178_v10 = vor.u32 %v7520_v43, %v7517_v19  ;;  %v5825_v19 = vshrl.u32 %v15011_v7, 16  ;;  %v7775_v7 = vsel %vm2796_vm10, %v7772_v4, %v7774_v6 }
 0x43e   : > { %7808 = vrot.lane.b32.xlu0 %v7773_v41, %s11682_s4  ;;  %6380 = vst.msk [vmem:[#allocation2 + $0x78] sm:$0xff] %vm2033_vm11, %v6334_v47  ;;  %v5289_v41 = vrot.slane %v15110_v12, 3  ;;  %v8633_v43 = vshrl.u32 %v15128_v26, 4 }
 0x43f   : > { %4745 = vrot.lane.b32.xlu1 %v4710_v17, %s11688_s6  ;;  %v15159_v17 = vld [vmem:[%s12114_s7 + $0x88] sm:$0xff]   ;;  %v5827_v2 = vor.u32 %v5825_v19, %v15052_v13 }
 0x440   : > { %v7564_v49 = vpop.permute.xlu0 %7563  ;;  %v5290_v46 = vsel %vm2796_vm10, %v5287_v35, %v5289_v41  ;;  %v5829_v16 = vshll.u32 %v15159_v17, 16 }
 0x441   : > { %7606 = vst.msk [vmem:[#allocation2 + $0xb8] sm:$0xff] %vm16801_vm0, %v7564_v49  ;;  %v4500_v18 = vpop.permute.xlu1 %4499  ;;  %vm9026_vm0 = vcmp.lt.s32.totalorder %v15080_v24, 0 }
 0x442   : > { %5871 = vrot.lane.b32.xlu0 %v5824_v14, %s11675_s20  ;;  %4543 = vst.msk [vmem:[#allocation2 + $0xb0] sm:$0xff] %vm16802_vm12, %v4500_v18  ;;  %vm8991_vm12 = vcmp.ne.s32.totalorder %v15092_v42, 0  ;;  %vm15149_vm2 = vmand %vm9026_vm0, %vm8990_vm13  ;;  %v15181_v14 = vrot.slane %v7920_v27, %v7924_v28  ;;  %v15204_v18 = vrot.slane %v7920_v27, %v7928_v38  ;;  %vm16812_vm13 = vcmask 523712   ;;  %v11294_v27 = vld [vmem:[%s12114_s7 + $0x80] sm:$0xff]  }
 0x443   : > { %6110 = vrot.lane.b32.xlu1 %v6075_v34, %s11676_s1  ;;  %v9134_v36 = vsel %vm15149_vm2, %v9098_v55, %v15080_v24  ;;  %v4711_v34 = vrot.slane %v15156_v37, 2  ;;  %v8622_v24 = vshrl.u32 %v15121_v61, 4  ;;  %v15240_v28 = vrot.slane %v5829_v16, 1 }
 0x444   : > { %v5516_v56 = vpop.permute.xlu0 %5515  ;;  %vm15213_vm2 = vcmp.lt.s32.totalorder %v9134_v36, 16  ;;  %vm16813_vm0 = vcmask 589312  }
 0x445   : > { %5557 = vst.msk [vmem:[#allocation2 + $0xc8] sm:$0xff] %vm16670_vm6, %v5516_v56  ;;  %v6706_v29 = vpop.permute.xlu1 %6705  ;;  %vm16803_vm6 = vcmask 458112   ;;  %v4712_v22 = vsel %vm1941_vm5, %v4709_v30, %v4711_v34 }
 0x446   : > { %6349 = vrot.lane.b32.xlu0 %v6314_v5, %s11677_s18  ;;  %6752 = vst.msk [vmem:[#allocation2 + $0x78] sm:$0xff] %vm16803_vm6, %v6706_v29  ;;  %vm15167_vm6 = vmand %vm9027_vm3, %vm8991_vm12  ;;  %v6674_v5 = vshrl.u32 %v11300_v9, 16  ;;  %vm16814_vm12 = vsmask.f32 7424 }
 0x447   : > { %6721 = vrot.lane.b32.xlu1 %v6672_v1, %s11678_s15  ;;  %v9135_v49 = vsel %vm15167_vm6, %v9099_v3, %v15092_v42  ;;  %v6677_v1 = vshll.u32 %v11300_v9, 16  ;;  %v7522_v42 = vsel %vm2422_vm8, %v14992_v39, %v15178_v10  ;;  %v4472_v39 = vsel %vm1941_vm5, %v4469_v44, %v4471_v8 }
 0x448   : > { %v7803_v50 = vpop.permute.xlu0 %7802  ;;  %vm15218_vm3 = vcmp.lt.s32.totalorder %v9135_v49, 16  ;;  %v6076_v44 = vrot.slane %v15200_v15, 1  ;;  %v6676_v55 = vrot.slane %v6674_v5, 1  ;;  %v8634_v9 = vmul.u32 18, %v8633_v43  ;;  %v15256_v5 = vld [vmem:[%s12114_s7 + $0x90] sm:$0xff]  }
 0x449   : > { %7845 = vst.msk [vmem:[#allocation2 + $0xb8] sm:$0xff] %vm3438_vm14, %v7803_v50  ;;  %v4740_v47 = vpop.permute.xlu1 %4739  ;;  %v6679_v3 = vrot.slane %v6677_v1, 2  ;;  %v8623_v50 = vmul.u32 18, %v8622_v24  ;;  %v6315_v61 = vrot.slane %v15256_v5, 1  ;;  %vm16815_vm6 = vcmask 654912  }
 0x44a   : > { %6960 = vrot.lane.b32.xlu0 %v6925_v48, %s11679_s30  ;;  %4783 = vst.msk [vmem:[#allocation2 + $0xb0] sm:$0xff] %vm4771_vm15, %v4740_v47  ;;  %v11318_v5 = vld [vmem:[%s12114_s7 + $0xa0] ss:$0 sps:$4 sm:$0x77]  }
 0x44b   : > { %7199 = vrot.lane.b32.xlu1 %v7164_v45, %s11680_s2  ;;  %v11323_v45 = vld [vmem:[%s12107_s14 + $0xa0] ss:$0 sps:$4 sm:$0x77]  }
 0x44c   : > { %v5866_v35 = vpop.permute.xlu0 %5865  ;;  %v5082_v24 = vshrl.u32 %v11323_v45, 16 }
 0x44d   : > { %5907 = vst.msk [vmem:[#allocation2 + $0xc8] sm:$0xff] %vm1418_vm7, %v5866_v35  ;;  %v6945_v56 = vpop.permute.xlu1 %6944  ;;  %v8126_v25 = vpop.f32.mrb[0].mxu0 }
 0x44e   : > { %5325 = vrot.lane.b32.xlu0 %v5290_v46, %s11673_s9  ;;  %6991 = vst.msk [vmem:[#allocation2 + $0x78] sm:$0xff] %vm16812_vm13, %v6945_v56  ;;  %v8127_v26 = vadd.f32 %v8126_v25, %v15181_v14  ;;  %v8128_v29 = vpop.f32.mrb[1].mxu0 }
 0x44f   : > { %v8129_v23 = vadd.f32 %v8128_v29, %v15204_v18  ;;  %7571 = vrot.lane.b32.xlu1 %v7522_v42, %s11681_s21  ;;  %v8130_v4 = vpop.f32.mrb[2].mxu0  ;;  %v5085_v42 = vshll.u32 %v11323_v45, 16  ;;  %v5832_v45 = vsel %vm16814_vm12, %v5827_v2, %v15240_v28  ;;  %v6077_v2 = vsel %vm16672_vm1, %v6074_v52, %v6076_v44 }
 0x450   : > { %v6105_v48 = vpop.permute.xlu0 %6104  ;;  %v7875_v59 = vld [vmem:[#allocation2 + $0xb8] sm:$0xff]  ;;  %v9278_v33 = vsel %vm15213_vm2, %v8127_v26, 0.0  ;;  %v8131_v30 = vadd.f32 %v8130_v4, %v15181_v14  ;;  %v8132_v38 = vpop.f32.mrb[3].mxu0  ;;  %v5084_v4 = vrot.slane %v5082_v24, 2  ;;  %vm16817_vm12 = vcmask 195712  }
 0x451   : > { %6146 = vst.msk [vmem:[#allocation2 + $0xc8] sm:$0xff] %vm1792_vm9, %v6105_v48  ;;  %8234 = vmatprep.mubr.bf16.mxu1 %v7875_v59  ;;  %v9432_v47 = vmul.f32 %v9278_v33, %v9278_v33  ;;  %v10432_v46 = vpack.c.bf16 %v8129_v23, %v8127_v26  ;;  %v9279_v36 = vsel %vm15213_vm2, %v8129_v23, 0.0  ;;  %v8133_v49 = vadd.f32 %v8132_v38, %v15204_v18  ;;  %v7184_v16 = vpop.permute.xlu1 %7183  ;;  %v7874_v35 = vld [vmem:[#allocation2 + $0xb0] sm:$0xff] }
 0x452   : > { %4507 = vrot.lane.b32.xlu0 %v4472_v39, %s11686_s22  ;;  %v9433_v1 = vmul.f32 %v9279_v36, %v9279_v36  ;;  %v9280_v13 = vsel %vm15218_vm3, %v8131_v30, 0.0  ;;  %7230 = vst.msk [vmem:[#allocation2 + $0x78] sm:$0xff] %vm16813_vm0, %v7184_v16  ;;  %8235 = vmatmul.mubr.bf16.gmra.mrb[8].mxu1 %v7874_v35  ;;  %v11304_v39 = vld [vmem:[%s12114_s7 + $0x98] sm:$0xff]   ;;  %v15276_v23 = vld [vmem:[%s12114_s7 + $0x90] sm:$0xff]   ;;  %v5087_v48 = vrot.slane %v5085_v42, 3  ;;  %v6316_v16 = vsel %vm16672_vm1, %v6313_v54, %v6315_v61 }
 0x453   : > { %8521 = vst [vmem:[%s15263_s8] sm:$0xff] %v10432_v46  ;;  %v15266_v19 = vadd.f32 %v9280_v13, %v9278_v33  ;;  %v9434_v43 = vmul.f32 %v9280_v13, %v9280_v13  ;;  %v10433_v56 = vpack.c.bf16 %v8133_v49, %v8131_v30  ;;  %v9281_v25 = vsel %vm15218_vm3, %v8133_v49, 0.0  ;;  %5523 = vrot.lane.b32.xlu1 %v11294_v27, %s11674_s11  ;;  %v15336_v13 = vld [vmem:[%s12107_s14 + $0x90] sm:$0xff]  }
 0x454   : > { %v5310_v32 = vpop.permute.xlu0 %5309  ;;  %v15272_v26 = vadd.f32 %v9281_v25, %v9279_v36  ;;  %v9435_v29 = vmul.f32 %v9281_v25, %v9281_v25  ;;  %v15284_v27 = vsub.s32 %v15083_v11, %v8623_v50  ;;  %v15287_v30 = vsub.s32 %v15095_v0, %v8634_v9  ;;  %v15299_v11 = vld [vmem:[%s12114_s7 + $0x98] sm:$0xff]   ;;  %v11310_v25 = vld [vmem:[%s12114_s7 + $0x90] ss:$0 sps:$4 sm:$0x11]  }
 0x455   : > { %5355 = vst.msk [vmem:[#allocation2 + $0x88] sm:$0xff] %vm16673_vm4, %v5310_v32  ;;  %v15278_v59 = vadd.f32 %v9434_v43, %v9432_v47  ;;  %8522 = vst [vmem:[%s15263_s8 + $0x8] sm:$0xff] %v10433_v56  ;;  %v6344_v33 = vpop.permute.xlu1 %6343  ;;  %v15295_v47 = vadd.s32 32, %v14944_v63  ;;  %v5088_v46 = vor.u32 %v5087_v48, %v5084_v4  ;;  %v7524_v50 = vshrl.u32 %v11304_v39, 16  ;;  %v15352_v56 = vld [vmem:[%s12114_s7 + $0x98] sm:$0xff]  }
 0x456   : > { %7810 = vrot.lane.b32.xlu0 %v7775_v7, %s11682_s4  ;;  %v15289_v38 = vadd.f32 %v9435_v29, %v9433_v1  ;;  %6385 = vst.msk [vmem:[#allocation2 + $0xc8] sm:$0xff] %vm2033_vm11, %v6344_v33  ;;  %v7527_v0 = vshll.u32 %v11304_v39, 16  ;;  %v15307_v9 = vor.u32 %v6679_v3, %v6676_v55  ;;  %v6926_v36 = vrot.slane %v15276_v23, 2  ;;  %v15365_v39 = vld [vmem:[%s12114_s7 + $0x98] ss:$0 sps:$4 sm:$0x33]  }
 0x457   : > { %4747 = vrot.lane.b32.xlu1 %v4712_v22, %s11688_s6  ;;  %v5089_v22 = vsel %vm2422_vm8, %v15076_v51, %v5088_v46  ;;  %vm8992_vm2 = vcmp.ne.s32.totalorder %v15284_v27, 0  ;;  %vm9028_vm3 = vcmp.lt.s32.totalorder %v15284_v27, 0  ;;  %vm8993_vm13 = vcmp.ne.s32.totalorder %v15287_v30, 0 }
 0x458   : > { %v7556_v7 = vpop.permute.xlu0 %7555  ;;  %vm16816_vm0 = vcmask 64512   ;;  %v15326_v20 = vmul.u32.u64.low 3817748708, %v15295_v47  ;;  %v15327_v52 = vmul.u32.u64.high 3817748708, %v15295_v47, %v15326_v20  ;;  %v15330_v54 = vadd.s32 40, %v14944_v63  ;;  %vm15346_vm1 = vmand %vm9028_vm3, %vm8992_vm2 }
 0x459   : > { %7602 = vst.msk [vmem:[#allocation2 + $0x78] sm:$0xff] %vm16815_vm6, %v7556_v7  ;;  %v5508_v49 = vpop.permute.xlu1 %5507  ;;  %vm9029_vm6 = vcmp.lt.s32.totalorder %v15287_v30, 0  ;;  %v7165_v55 = vrot.slane %v15299_v11, 2  ;;  %v9100_v3 = vadd.s32 18, %v15284_v27  ;;  %v7526_v35 = vrot.slane %v7524_v50, 2  ;;  %v15390_v50 = vld [vmem:[%s12107_s14 + $0x98] sm:$0xff]  }
 0x45a   : > { %5873 = vrot.lane.b32.xlu0 %v5832_v45, %s11675_s20  ;;  %5125 = vst.msk [vmem:[#allocation2 + $0x118] sm:$0xff] %vm16816_vm0, %v5089_v22  ;;  %v7529_v1 = vrot.slane %v7527_v0, 3  ;;  %vm16818_vm0 = vcmask 458112   ;;  %v9101_v43 = vadd.s32 18, %v15287_v30  ;;  %v6927_v29 = vsel %vm1941_vm5, %v6924_v40, %v6926_v36 }
 0x45b   : > { %5553 = vst.msk [vmem:[#allocation2 + $0x88] sm:$0xff] %vm16817_vm12, %v5508_v49  ;;  %6112 = vrot.lane.b32.xlu1 %v6077_v2, %s11676_s1  ;;  %vm16819_vm12 = vsmask.f32 6400  ;;  %v5291_v4 = vrot.slane %v11303_v62, 3  ;;  %v15374_v48 = vmul.u32.u64.low 3817748708, %v15330_v54  ;;  %v15375_v33 = vmul.u32.u64.high 3817748708, %v15330_v54, %v15374_v48 }
 0x45c   : > { %v6716_v51 = vpop.permute.xlu0 %6715  ;;  %v6681_v24 = vsel %vm16819_vm12, %v15065_v21, %v15307_v9  ;;  %v7166_v46 = vsel %vm1941_vm5, %v7163_v60, %v7165_v55  ;;  %v9136_v31 = vsel %vm15346_vm1, %v9100_v3, %v15284_v27  ;;  %v15386_v40 = vor.u32 %v7529_v1, %v7526_v35  ;;  %v15400_v27 = vld [vmem:[%s12114_s7 + $0x90] ss:$0 sps:$4 sm:$0x11]  }
 0x45d   : > { %6757 = vst.msk [vmem:[#allocation2 + $0xc8] sm:$0xff] %vm16818_vm0, %v6716_v51  ;;  %v7795_v32 = vpop.permute.xlu1 %7794  ;;  %vm15360_vm0 = vmand %vm9029_vm6, %vm8993_vm13  ;;  %v4473_v7 = vrot.slane %v15336_v13, 2  ;;  %v7776_v57 = vrot.slane %v15352_v56, 3  ;;  %v5833_v60 = vshrl.u32 %v15159_v17, 16  ;;  %v5837_v2 = vshll.u32 %v11310_v25, 16 }
 0x45e   : > { %6351 = vrot.lane.b32.xlu0 %v6316_v16, %s11677_s18  ;;  %7841 = vst.msk [vmem:[#allocation2 + $0x78] sm:$0xff] %vm3438_vm14, %v7795_v32  ;;  %v9137_v0 = vsel %vm15360_vm0, %v9101_v43, %v15287_v30  ;;  %v6683_v49 = vshrl.u32 %v15365_v39, 16  ;;  %vm15404_vm1 = vcmp.lt.s32.totalorder %v9136_v31, 16  ;;  %v5292_v30 = vsel %vm2796_vm10, %v5289_v41, %v5291_v4 }
 0x45f   : > { %6723 = vrot.lane.b32.xlu1 %v6681_v24, %s11678_s15  ;;  %v8644_v17 = vshrl.u32 %v15327_v52, 4  ;;  %vm15413_vm2 = vcmp.lt.s32.totalorder %v9137_v0, 16  ;;  %v7531_v3 = vsel %vm2422_vm8, %v15178_v10, %v15386_v40  ;;  %v4474_v12 = vsel %vm1941_vm5, %v4471_v8, %v4473_v7 }
 0x460   : > { %v4732_v45 = vpop.permute.xlu0 %4731  ;;  %v4713_v41 = vrot.slane %v15390_v50, 2  ;;  %vm16828_vm3 = vcmask 523712   ;;  %v7777_v1 = vsel %vm2796_vm10, %v7774_v6, %v7776_v57  ;;  %v5835_v10 = vor.u32 %v5833_v60, %v15240_v28  ;;  %v11307_v60 = vld [vmem:[%s12114_s7 + $0x88] sm:$0xff]  }
 0x461   : > { %4779 = vst.msk [vmem:[#allocation2 + $0x70] sm:$0xff] %vm4771_vm15, %v4732_v45  ;;  %v5858_v22 = vpop.permute.xlu1 %5857  ;;  %v5839_v24 = vrot.slane %v5837_v2, 1  ;;  %v6078_v25 = vrot.slane %v15400_v27, 1  ;;  %v15437_v32 = vrot.slane %v6683_v49, 1  ;;  %v6686_v21 = vshll.u32 %v15365_v39, 16 }
 0x462   : > { %6962 = vrot.lane.b32.xlu0 %v6927_v29, %s11679_s30  ;;  %5903 = vst.msk [vmem:[#allocation2 + $0x88] sm:$0xff] %vm1418_vm7, %v5858_v22  ;;  %v8645_v29 = vmul.u32 18, %v8644_v17  ;;  %v8655_v4 = vshrl.u32 %v15375_v33, 4  ;;  %vm16829_vm13 = vcmask 589312   ;;  %v15482_v51 = vadd.s32 48, %v14944_v63 }
 0x463   : > { %7201 = vrot.lane.b32.xlu1 %v7166_v46, %s11680_s2  ;;  %v11316_v17 = vld [vmem:[%s12114_s7 + $0xa0] ss:$0 sps:$4 sm:$0x77]   ;;  %vm16830_vm6 = vcmask 654912   ;;  %vm16831_vm12 = vsmask.f32 7424 }
 0x464   : > { %v6955_v62 = vpop.permute.xlu0 %6954  ;;  %v8136_v20 = vpop.f32.mrb[4].mxu0  ;;  %vm16832_vm0 = vcmask 1046528  }
 0x465   : > { %6996 = vst.msk [vmem:[#allocation2 + $0xc8] sm:$0xff] %vm16828_vm3, %v6955_v62  ;;  %v8137_v52 = vadd.f32 %v8136_v20, %v15181_v14  ;;  %v8138_v35 = vpop.f32.mrb[5].mxu0  ;;  %v6097_v42 = vpop.permute.xlu1 %6096  ;;  %v7867_v43 = vld [vmem:[#allocation2 + $0x78] sm:$0xff] }
 0x466   : > { %v8139_v58 = vadd.f32 %v8138_v35, %v15204_v18  ;;  %5327 = vrot.lane.b32.xlu0 %v5292_v30, %s11673_s9  ;;  %v8140_v8 = vpop.f32.mrb[6].mxu0  ;;  %6142 = vst.msk [vmem:[#allocation2 + $0x88] sm:$0xff] %vm1792_vm9, %v6097_v42  ;;  %8194 = vmatprep.mubr.bf16.mxu0 %v7867_v43 }
 0x467   : > { %v9282_v53 = vsel %vm15404_vm1, %v8137_v52, 0.0  ;;  %v8141_v6 = vadd.f32 %v8140_v8, %v15181_v14  ;;  %v8142_v28 = vpop.f32.mrb[7].mxu0  ;;  %7573 = vrot.lane.b32.xlu1 %v7531_v3, %s11681_s21  ;;  %v15472_v8 = vsub.s32 %v15295_v47, %v8645_v29  ;;  %v11314_v47 = vld [vmem:[%s12114_s7 + $0x98] ss:$0 sps:$4 sm:$0x33]   ;;  %v7536_v29 = vshll.u32 %v11316_v17, 16 }
 0x468   : > { %v9351_v48 = vadd.f32 %v15266_v19, %v9282_v53  ;;  %v9436_v45 = vmul.f32 %v9282_v53, %v9282_v53  ;;  %v10434_v46 = vpack.c.bf16 %v8139_v58, %v8137_v52  ;;  %v9283_v39 = vsel %vm15404_vm1, %v8139_v58, 0.0  ;;  %v7194_v31 = vpop.permute.xlu0 %7193  ;;  %v7866_v0 = vld [vmem:[#allocation2 + $0x70] sm:$0xff] }
 0x469   : > { %v9392_v2 = vadd.f32 %v15272_v26, %v9283_v39  ;;  %v9437_v22 = vmul.f32 %v9283_v39, %v9283_v39  ;;  %v9284_v33 = vsel %vm15413_vm2, %v8141_v6, 0.0  ;;  %v8143_v19 = vadd.f32 %v8142_v28, %v15204_v18  ;;  %7235 = vst.msk [vmem:[#allocation2 + $0xc8] sm:$0xff] %vm16829_vm13, %v7194_v31  ;;  %8195 = vmatmul.mubr.bf16.gmra.mrb[28].mxu0 %v7866_v0  ;;  %v5320_v30 = vpop.permute.xlu1 %5319  ;;  %v11317_v39 = vld [vmem:[%s12107_s14 + $0x98] ss:$0 sps:$4 sm:$0x33]  }
 0x46a   : > { %v9505_v27 = vadd.f32 %v15278_v59, %v9436_v45  ;;  %8523 = vst [vmem:[%s15263_s8 + $0x10] sm:$0xff] %v10434_v46  ;;  %v15457_v49 = vadd.f32 %v9351_v48, %v9284_v33  ;;  %v9438_v16 = vmul.f32 %v9284_v33, %v9284_v33  ;;  %4509 = vrot.lane.b32.xlu0 %v4474_v12, %s11686_s22  ;;  %v6688_v26 = vrot.slane %v6686_v21, 2  ;;  %v11312_v59 = vld [vmem:[%s12114_s7 + $0x98] ss:$0 sps:$4 sm:$0x11]  }
 0x46b   : > { %v9546_v62 = vadd.f32 %v15289_v38, %v9437_v22  ;;  %v10435_v20 = vpack.c.bf16 %v8143_v19, %v8141_v6  ;;  %v9285_v3 = vsel %vm15413_vm2, %v8143_v19, 0.0  ;;  %5360 = vst.msk [vmem:[#allocation2 + $0xd8] sm:$0xff] %vm16673_vm4, %v5320_v30  ;;  %v8656_v52 = vmul.u32 18, %v8655_v4  ;;  %5525 = vrot.lane.b32.xlu1 %v11307_v60, %s11674_s11 }
 0x46c   : > { %v15466_v35 = vadd.f32 %v9505_v27, %v9438_v16  ;;  %v15468_v42 = vadd.f32 %v9392_v2, %v9285_v3  ;;  %v9439_v58 = vmul.f32 %v9285_v3, %v9285_v3  ;;  %v6336_v12 = vpop.permute.xlu0 %6335  ;;  %v4714_v38 = vsel %vm1941_vm5, %v4711_v34, %v4713_v41 }
 0x46d   : > { %8524 = vst [vmem:[%s15263_s8 + $0x18] sm:$0xff] %v10435_v20  ;;  %6381 = vst.msk [vmem:[#allocation2 + $0x88] sm:$0xff] %vm2033_vm11, %v6336_v12  ;;  %v7566_v21 = vpop.permute.xlu1 %7565  ;;  %v7533_v53 = vshrl.u32 %v11316_v17, 16  ;;  %v5840_v6 = vsel %vm16831_vm12, %v5835_v10, %v5839_v24  ;;  %v6317_v28 = vrot.slane %v11312_v59, 1  ;;  %v8657_v37 = vsub.s32 %v15330_v54, %v8656_v52 }
 0x46e   : > { %v15484_v43 = vadd.f32 %v9546_v62, %v9439_v58  ;;  %7812 = vrot.lane.b32.xlu0 %v7777_v1, %s11682_s4  ;;  %7607 = vst.msk [vmem:[#allocation2 + $0xc8] sm:$0xff] %vm16830_vm6, %v7566_v21  ;;  %v6079_v4 = vsel %vm16832_vm0, %v6076_v44, %v6078_v25  ;;  %v6689_v48 = vor.u32 %v6688_v26, %v15437_v32  ;;  %vm8994_vm1 = vcmp.ne.s32.totalorder %v15472_v8, 0  ;;  %v11315_v1 = vld [vmem:[%s12114_s7 + $0xa0] ss:$0 sps:$4 sm:$0x33]   ;;  %vm16835_vm6 = vmmov %vm16832_vm0  ;;  %s16955_s7 = sld [smem:[#allocation26_spill]] }
 0x46f   : > { %4749 = vrot.lane.b32.xlu1 %v4714_v38, %s11688_s6  ;;  %vm16833_vm2 = vcmask 982912   ;;  %vm9030_vm3 = vcmp.lt.s32.totalorder %v15472_v8, 0  ;;  %v15501_v54 = vmul.u32.u64.low 3817748708, %v15482_v51  ;;  %v15502_v10 = vmul.u32.u64.high 3817748708, %v15482_v51, %v15501_v54 }
 0x470   : > { %v4502_v34 = vpop.permute.xlu0 %4501  ;;  %v15505_v24 = vadd.s32 56, %v14944_v63  ;;  %v9102_v44 = vadd.s32 18, %v15472_v8  ;;  %v6928_v25 = vrot.slane %v11314_v47, 2  ;;  %v7535_v32 = vrot.slane %v7533_v53, 2  ;;  %vm15521_vm4 = vmand %vm9030_vm3, %vm8994_vm1 }
 0x471   : > { %4544 = vst.msk [vmem:[#allocation2 + $0xc0] sm:$0xff] %vm16833_vm2, %v4502_v34  ;;  %v5518_v15 = vpop.permute.xlu1 %5517  ;;  %vm16834_vm13 = vcmask 195712   ;;  %v6318_v45 = vsel %vm16835_vm6, %v6315_v61, %v6317_v28  ;;  %vm8995_vm12 = vcmp.ne.s32.totalorder %v8657_v37, 0  ;;  %vm9031_vm0 = vcmp.lt.s32.totalorder %v8657_v37, 0 }
 0x472   : > { %5875 = vrot.lane.b32.xlu0 %v5840_v6, %s11675_s20  ;;  %5558 = vst.msk [vmem:[#allocation2 + $0xd8] sm:$0xff] %vm16834_vm13, %v5518_v15  ;;  %v7538_v46 = vrot.slane %v7536_v29, 3  ;;  %vm16836_vm2 = vsmask.f32 6400  ;;  %vm16839_vm13 = vcmask 458112   ;;  %v7167_v61 = vrot.slane %v11315_v1, 2  ;;  %vm15534_vm6 = vmand %vm9031_vm0, %vm8995_vm12 }
 0x473   : > { %6114 = vrot.lane.b32.xlu1 %v6079_v4, %s11676_s1  ;;  %v6690_v0 = vsel %vm16836_vm2, %v15307_v9, %v6689_v48  ;;  %v9103_v2 = vadd.s32 18, %v8657_v37  ;;  %v15528_v22 = vmul.u32.u64.low 3817748708, %v15505_v24  ;;  %v15529_v33 = vmul.u32.u64.high 3817748708, %v15505_v24, %v15528_v22  ;;  %v11319_v20 = vld [vmem:[%s12107_s14 + $0xa0] ss:$0 sps:$4 sm:$0x33]   ;;  %vm16849_vm3 = vmmov %vm16839_vm13 }
 0x474   : > { %v6708_v31 = vpop.permute.xlu0 %6707  ;;  %v9138_v27 = vsel %vm15521_vm4, %v9102_v44, %v15472_v8  ;;  %v6929_v16 = vsel %vm1941_vm5, %v6926_v36, %v6928_v25  ;;  %v7539_v30 = vor.u32 %v7538_v46, %v7535_v32  ;;  %v4475_v26 = vrot.slane %v11317_v39, 2  ;;  %s16954_s14 = sld [smem:[#allocation25_spill]]  ;;  %s10582_s20 = smul.u32 576, %s16955_s7 }
 0x475   : > { %6753 = vst.msk [vmem:[#allocation2 + $0x88] sm:$0xff] %vm16839_vm13, %v6708_v31  ;;  %v7805_v19 = vpop.permute.xlu1 %7804  ;;  %v7778_v62 = vrot.slane %v11318_v5, 3  ;;  %v7168_v3 = vsel %vm1941_vm5, %v7165_v55, %v7167_v61  ;;  %v9139_v59 = vsel %vm15534_vm6, %v9103_v2, %v8657_v37  ;;  %v8666_v23 = vshrl.u32 %v15502_v10, 4 }
 0x476   : > { %6353 = vrot.lane.b32.xlu0 %v6318_v45, %s11677_s18  ;;  %7846 = vst.msk [vmem:[#allocation2 + $0xc8] sm:$0xff] %vm3438_vm14, %v7805_v19  ;;  %vm15554_vm4 = vcmp.lt.s32.totalorder %v9138_v27, 16  ;;  %v7540_v55 = vsel %vm2422_vm8, %v15386_v40, %v7539_v30  ;;  %v4476_v8 = vsel %vm1941_vm5, %v4473_v7, %v4475_v26  ;;  %vm15568_vm1 = vcmp.lt.s32.totalorder %v9139_v59, 16  ;;  %s9622_s18 = sshll.u32 %s15263_s8, 4  ;;  %s16488_s18 = int_to_ptr.vmem [resolvable:$true] %s9622_s18 }
 0x477   : > { %6725 = vrot.lane.b32.xlu1 %v6690_v0, %s11678_s15  ;;  %v7779_v6 = vsel %vm2796_vm10, %v7776_v57, %v7778_v62  ;;  %v4715_v28 = vrot.slane %v11319_v20, 2  ;;  %vm16846_vm8 = vcmask 523712   ;;  %v8667_v37 = vmul.u32 18, %v8666_v23  ;;  %s11472_s3 = scalar_lea.vmem %s16488_s18, 4608 }
 0x478   : > { %v4742_v17 = vpop.permute.xlu0 %4741  ;;  %v8677_v29 = vshrl.u32 %v15529_v33, 4  ;;  %vm16847_vm10 = vcmask 589312   ;;  %v15625_v20 = vadd.s32 72, %v14944_v63  ;;  %p11473_p0 = scmp.ne.s32.totalorder %s16488_s18, %s11472_s3 }
 0x479   : > { %4784 = vst.msk [vmem:[#allocation2 + $0xc0] sm:$0xff] %vm4771_vm15, %v4742_v17  ;;  %v5868_v52 = vpop.permute.xlu1 %5867  ;;  %v8146_v36 = vpop.f32.mrb[8].mxu0  ;;  %v4716_v46 = vsel %vm1941_vm5, %v4713_v41, %v4715_v28  ;;  %v8668_v50 = vsub.s32 %v15482_v51, %v8667_v37  ;;  %vm16848_vm5 = vcmask 654912   ;;  %v15619_v17 = vadd.s32 64, %v14944_v63 }
 0x47a   : > { %6964 = vrot.lane.b32.xlu0 %v6929_v16, %s11679_s30  ;;  %5908 = vst.msk [vmem:[#allocation2 + $0xd8] sm:$0xff] %vm1418_vm7, %v5868_v52  ;;  %v8147_v12 = vadd.f32 %v8146_v36, %v15181_v14  ;;  %v8148_v11 = vpop.f32.mrb[9].mxu0  ;;  %s10581_s11 = smul.u32 72, %s16954_s14  ;;  %p11474_p6 = pnand %p11473_p0, %p16960_p1 }
 0x47b   : > { %v8149_v38 = vadd.f32 %v8148_v11, %v15204_v18  ;;  %7203 = vrot.lane.b32.xlu1 %v7168_v3, %s11680_s2  ;;  %v8150_v21 = vpop.f32.mrb[10].mxu0  ;;  %vm8996_vm12 = vcmp.ne.s32.totalorder %v8668_v50, 0  ;;  %vm9032_vm0 = vcmp.lt.s32.totalorder %v8668_v50, 0  ;;  %v9104_v9 = vadd.s32 18, %v8668_v50 }
 0x47c   : > { %v6947_v53 = vpop.permute.xlu0 %6946  ;;  %v9286_v13 = vsel %vm15554_vm4, %v8147_v12, 0.0  ;;  %v8151_v40 = vadd.f32 %v8150_v21, %v15181_v14  ;;  %v8152_v7 = vpop.f32.mrb[11].mxu0  ;;  %vm9068_vm6 = vmand %vm9032_vm0, %vm8996_vm12  ;;  %v15639_v21 = vmul.u32.u64.low 3817748708, %v15619_v17  ;;  %v15640_v47 = vmul.u32.u64.high 3817748708, %v15619_v17, %v15639_v21  ;;  %s9619_s1 = sadd.s32 %s10582_s20, %s10581_s11  ;;  %p11475_p3 = pneg %p11474_p6 }
 0x47d   : > { %6992 = vst.msk [vmem:[#allocation2 + $0x88] sm:$0xff] %vm16846_vm8, %v6947_v53  ;;  %v9353_v34 = vadd.f32 %v15457_v49, %v9286_v13  ;;  %v9440_v4 = vmul.f32 %v9286_v13, %v9286_v13  ;;  %v10436_v48 = vpack.c.bf16 %v8149_v38, %v8147_v12  ;;  %v9287_v56 = vsel %vm15554_vm4, %v8149_v38, 0.0  ;;  %v6107_v57 = vpop.permute.xlu1 %6106  ;;  %v7877_v1 = vld [vmem:[#allocation2 + $0xc8] sm:$0xff]  ;;  %s10426_s15 = sshll.u32 %s9619_s1, 6 }
 0x47e   : > { %7575 = vrot.lane.b32.xlu0 %v7540_v55, %s11681_s21  ;;  %v9394_v54 = vadd.f32 %v15468_v42, %v9287_v56  ;;  %v9441_v10 = vmul.f32 %v9287_v56, %v9287_v56  ;;  %v9288_v15 = vsel %vm15568_vm1, %v8151_v40, 0.0  ;;  %v8153_v44 = vadd.f32 %v8152_v7, %v15204_v18  ;;  %6147 = vst.msk [vmem:[#allocation2 + $0xd8] sm:$0xff] %vm1792_vm9, %v6107_v57  ;;  %s16958_s21 = sld [smem:[#allocation38_spill]] }
 0x47f   : > { %8244 = vmatprep.mubr.bf16.mxu1 %v7877_v1  ;;  %v9507_v49 = vadd.f32 %v15466_v35, %v9440_v4  ;;  %8525 = vst [vmem:[%s15263_s8 + $0x20] sm:$0xff] %v10436_v48  ;;  %v15591_v25 = vadd.f32 %v9353_v34, %v9288_v15  ;;  %v9442_v32 = vmul.f32 %v9288_v15, %v9288_v15  ;;  %v8678_v35 = vmul.u32 18, %v8677_v29 }
 0x480   : > { %4511 = vrot.lane.b32.xlu1 %v4476_v8, %s11686_s22  ;;  %v7186_v45 = vpop.permute.xlu0 %7185  ;;  %v7876_v42 = vld [vmem:[#allocation2 + $0xc0] sm:$0xff]  ;;  %v9548_v39 = vadd.f32 %v15484_v43, %v9441_v10  ;;  %v10437_v31 = vpack.c.bf16 %v8153_v44, %v8151_v40  ;;  %v9289_v0 = vsel %vm15568_vm1, %v8153_v44, 0.0  ;;  %vm16852_vm1 = vmmov %vm16846_vm8  ;;  %vm16859_vm12 = vcmask 654912   ;;  %s11689_s22 = smov [#allocation12]  }
 0x481   : > { %7231 = vst.msk [vmem:[#allocation2 + $0x88] sm:$0xff] %vm16847_vm10, %v7186_v45  ;;  %8245 = vmatmul.mubr.bf16.gmra.mrb[12].mxu1 %v7876_v42  ;;  %v15601_v60 = vadd.f32 %v9507_v49, %v9442_v32  ;;  %v9395_v5 = vadd.f32 %v9394_v54, %v9289_v0  ;;  %v9443_v61 = vmul.f32 %v9289_v0, %v9289_v0  ;;  %v6346_v2 = vpop.permute.xlu1 %6345  ;;  %vm16853_vm8 = vmmov %vm16847_vm10  ;;  %vm16860_vm0 = vcmask 982912  }
 0x482   : > { %7814 = vrot.lane.b32.xlu0 %v7779_v6, %s11682_s4  ;;  %8526 = vst [vmem:[%s15263_s8 + $0x28] sm:$0xff] %v10437_v31  ;;  %6386 = vst.msk [vmem:[#allocation2 + $0xd8] sm:$0xff] %vm2033_vm11, %v6346_v2  ;;  %v8679_v22 = vsub.s32 %v15505_v24, %v8678_v35  ;;  %v9140_v24 = vsel %vm9068_vm6, %v9104_v9, %v8668_v50  ;;  %v15647_v13 = vmul.u32.u64.low 3817748708, %v15625_v20  ;;  %v15648_v40 = vmul.u32.u64.high 3817748708, %v15625_v20, %v15647_v13 }
 0x483   : > { %v9549_v41 = vadd.f32 %v9548_v39, %v9443_v61  ;;  %vm15627_vm10 = vcmp.lt.s32.totalorder %v9140_v24, 16  ;;  %vm16863_vm6 = vmmov %vm16852_vm1 }
 0x484   : > { %4751 = vrot.lane.b32.xlu1 %v4716_v46, %s11688_s6  ;;  %v7558_v43 = vpop.permute.xlu0 %7557  ;;  %vm8997_vm2 = vcmp.ne.s32.totalorder %v8679_v22, 0  ;;  %vm9033_vm13 = vcmp.lt.s32.totalorder %v8679_v22, 0  ;;  %v9105_v27 = vadd.s32 18, %v8679_v22  ;;  %v8699_v61 = vshrl.u32 %v15648_v40, 4  ;;  %s16959_s4 = smov %s16958_s21  ;;  %s16495_s17 = scalar_lea.hbm %s16958_s21, %s10426_s15 }
 0x485   : > { %7603 = vst.msk [vmem:[#allocation2 + $0x88] sm:$0xff] %vm16848_vm5, %v7558_v43  ;;  %v6718_v33 = vpop.permute.xlu1 %6717  ;;  %vm15613_vm4 = vmand %vm9033_vm13, %vm8997_vm2  ;;  %vm16856_vm5 = vcmask 130112   ;;  %vm16861_vm2 = vcmask 195712   ;;  %vm16862_vm13 = vcmask 458112   ;;  %s11476_s6 = sshll.u32 %s11689_s22, 4  ;;  %s11477_s6 = int_to_ptr.vmem [resolvable:$false] %s11476_s6 }
 0x486   : > { %6758 = vst.msk [vmem:[#allocation2 + $0xd8] sm:$0xff] %vm16849_vm3, %v6718_v33  ;;  %v9141_v62 = vsel %vm15613_vm4, %v9105_v27, %v8679_v22  ;;  %v8700_v33 = vmul.u32 18, %v8699_v61  ;;  %vm16864_vm4 = vmmov %vm16853_vm8  ;;  %s11478_s5 = scalar_lea.vmem %s11477_s6, 9216  ;;  %p11479_p12 = scmp.lt.s32.totalorder %s16488_s18, %s11477_s6 }
 0x487   : > { %vm15634_vm3 = vcmp.lt.s32.totalorder %v9141_v62, 16  ;;  %p11480_p5 = scmp.lt.s32.totalorder %s11478_s5, %s11472_s3 }
 0x488   : > { %v7797_v19 = vpop.permute.xlu0 %7796  ;;  %v8701_v27 = vsub.s32 %v15625_v20, %v8700_v33 }
 0x489   : > { %7842 = vst.msk [vmem:[#allocation2 + $0x88] sm:$0xff] %vm3438_vm14, %v7797_v19  ;;  %v4734_v51 = vpop.permute.xlu1 %4733  ;;  %p11481_p7 = por %p11480_p5, %p11479_p12 }
 0x48a   : > { %4780 = vst.msk [vmem:[#allocation2 + $0x80] sm:$0xff] %vm4771_vm15, %v4734_v51 }
 0x48b   : > { %p11482_p10 = pnand %p11481_p7, %p11475_p3 }
 0x48c   : > { %v6957_v16 = vpop.permute.xlu0 %6956 }
 0x48d   : > { %6997 = vst.msk [vmem:[#allocation2 + $0xd8] sm:$0xff] %vm16852_vm1, %v6957_v16  ;;  %v7196_v26 = vpop.permute.xlu1 %7195  ;;  %vm16865_vm1 = vmmov %vm16856_vm5 }
 0x48e   : > { %7236 = vst.msk [vmem:[#allocation2 + $0xd8] sm:$0xff] %vm16853_vm8, %v7196_v26 }
 0x490   : > { %v5322_v3 = vpop.permute.xlu0 %5321  ;;  %v8156_v59 = vpop.f32.mrb[12].mxu0  ;;  %v7869_v52 = vld [vmem:[#allocation2 + $0x88] sm:$0xff] }
 0x491   : > { %5361 = vst.msk [vmem:[#allocation2 + $0xe8] sm:$0xff] %vm16856_vm5, %v5322_v3  ;;  %v8157_v36 = vadd.f32 %v8156_v59, %v15181_v14  ;;  %v8158_v58 = vpop.f32.mrb[13].mxu0  ;;  %8204 = vmatprep.mubr.bf16.mxu0 %v7869_v52  ;;  %v7568_v12 = vpop.permute.xlu1 %7567  ;;  %v7868_v38 = vld [vmem:[#allocation2 + $0x80] sm:$0xff]  ;;  %vm16866_vm5 = vmmov %vm16859_vm12 }
 0x492   : > { %v8159_v11 = vadd.f32 %v8158_v58, %v15204_v18  ;;  %v8160_v55 = vpop.f32.mrb[14].mxu0  ;;  %7608 = vst.msk [vmem:[#allocation2 + $0xd8] sm:$0xff] %vm16859_vm12, %v7568_v12  ;;  %8205 = vmatmul.mubr.bf16.gmra.mrb[32].mxu0 %v7868_v38  ;;  %vm9035_vm12 = vcmp.lt.s32.totalorder %v8701_v27, 0 }
 0x493   : > { %v9290_v53 = vsel %vm15627_vm10, %v8157_v36, 0.0  ;;  %v8161_v6 = vadd.f32 %v8160_v55, %v15181_v14  ;;  %v8162_v28 = vpop.f32.mrb[15].mxu0 }
 0x494   : > { %v9355_v7 = vadd.f32 %v15591_v25, %v9290_v53  ;;  %v9444_v37 = vmul.f32 %v9290_v53, %v9290_v53  ;;  %v10438_v29 = vpack.c.bf16 %v8159_v11, %v8157_v36  ;;  %v9291_v34 = vsel %vm15627_vm10, %v8159_v11, 0.0  ;;  %v4504_v4 = vpop.permute.xlu0 %4503 }
 0x495   : > { %v9396_v48 = vadd.f32 %v9395_v5, %v9291_v34  ;;  %v9445_v56 = vmul.f32 %v9291_v34, %v9291_v34  ;;  %v9292_v57 = vsel %vm15634_vm3, %v8161_v6, 0.0  ;;  %v8163_v1 = vadd.f32 %v8162_v28, %v15204_v18  ;;  %4545 = vst.msk [vmem:[#allocation2 + $0xd0] sm:$0xff] %vm16860_vm0, %v4504_v4  ;;  %v5520_v44 = vpop.permute.xlu1 %5519 }
 0x496   : > { %v9509_v54 = vadd.f32 %v15601_v60, %v9444_v37  ;;  %8527 = vst [vmem:[%s15263_s8 + $0x30] sm:$0xff] %v10438_v29  ;;  %v15659_v10 = vadd.f32 %v9355_v7, %v9292_v57  ;;  %v9446_v15 = vmul.f32 %v9292_v57, %v9292_v57  ;;  %5559 = vst.msk [vmem:[#allocation2 + $0xe8] sm:$0xff] %vm16861_vm2, %v5520_v44  ;;  %v8688_v60 = vshrl.u32 %v15640_v47, 4 }
 0x497   : > { %v9550_v49 = vadd.f32 %v9549_v41, %v9445_v56  ;;  %v10439_v25 = vpack.c.bf16 %v8163_v1, %v8161_v6  ;;  %v9293_v32 = vsel %vm15634_vm3, %v8163_v1, 0.0  ;;  %vm8999_vm3 = vcmp.ne.s32.totalorder %v8701_v27, 0 }
 0x498   : > { %v15664_v45 = vadd.f32 %v9509_v54, %v9446_v15  ;;  %v15666_v42 = vadd.f32 %v9396_v48, %v9293_v32  ;;  %v9447_v46 = vmul.f32 %v9293_v32, %v9293_v32  ;;  %v7807_v39 = vpop.permute.xlu0 %7806  ;;  %v8689_v41 = vmul.u32 18, %v8688_v60 }
 0x499   : > { %8528 = vst [vmem:[%s15263_s8 + $0x38] sm:$0xff] %v10439_v25  ;;  %7847 = vst.msk [vmem:[#allocation2 + $0xd8] sm:$0xff] %vm3438_vm14, %v7807_v39  ;;  %v4744_v0 = vpop.permute.xlu1 %4743  ;;  %vm16867_vm2 = vcmask 982912  }
 0x49a   : > { %v15670_v31 = vadd.f32 %v9550_v49, %v9447_v46  ;;  %4785 = vst.msk [vmem:[#allocation2 + $0xd0] sm:$0xff] %vm4771_vm15, %v4744_v0  ;;  %v8690_v9 = vsub.s32 %v15619_v17, %v8689_v41  ;;  %v9107_v17 = vadd.s32 18, %v8701_v27 }
 0x49c   : > { %v5870_v35 = vpop.permute.xlu0 %5869  ;;  %vm8998_vm8 = vcmp.ne.s32.totalorder %v8690_v9, 0  ;;  %vm9034_vm10 = vcmp.lt.s32.totalorder %v8690_v9, 0  ;;  %v9106_v24 = vadd.s32 18, %v8690_v9 }
 0x49d   : > { %5909 = vst.msk [vmem:[#allocation2 + $0xe8] sm:$0xff] %vm1418_vm7, %v5870_v35  ;;  %v6109_v5 = vpop.permute.xlu1 %6108  ;;  %vm9070_vm0 = vmand %vm9034_vm10, %vm8998_vm8  ;;  %vm16871_vm8 = vcmask 458112   ;;  %vm16872_vm10 = vcmask 523712   ;;  %v8569_v35 = vadd.s32 88, %v14944_v63 }
 0x49e   : > { %6148 = vst.msk [vmem:[#allocation2 + $0xe8] sm:$0xff] %vm1792_vm9, %v6109_v5  ;;  %v9142_v20 = vsel %vm9070_vm0, %v9106_v24, %v8690_v9  ;;  %vm16876_vm0 = vmmov %vm16867_vm2 }
 0x4a0   : > { %v6348_v2 = vpop.permute.xlu0 %6347  ;;  %v7879_v50 = vld [vmem:[#allocation2 + $0xd8] sm:$0xff] }
 0x4a1   : > { %6387 = vst.msk [vmem:[#allocation2 + $0xe8] sm:$0xff] %vm2033_vm11, %v6348_v2  ;;  %8254 = vmatprep.mubr.bf16.mxu1 %v7879_v50  ;;  %v6720_v43 = vpop.permute.xlu1 %6719  ;;  %v7878_v22 = vld [vmem:[#allocation2 + $0xd0] sm:$0xff]  ;;  %v15729_v50 = vmul.u32.u64.low 3817748708, %v8569_v35  ;;  %v15730_v41 = vmul.u32.u64.high 3817748708, %v8569_v35, %v15729_v50 }
 0x4a2   : > { %6759 = vst.msk [vmem:[#allocation2 + $0xe8] sm:$0xff] %vm16862_vm13, %v6720_v43  ;;  %8255 = vmatmul.mubr.bf16.gmra.mrb[16].mxu1 %v7878_v22  ;;  %vm9071_vm13 = vmand %vm9035_vm12, %vm8999_vm3  ;;  %vm16874_vm3 = vcmask 130112   ;;  %vm16875_vm12 = vcmask 654912  }
 0x4a3   : > { %v9143_v59 = vsel %vm9071_vm13, %v9107_v17, %v8701_v27  ;;  %vm16878_vm13 = vmmov %vm16871_vm8 }
 0x4a4   : > { %v6959_v19 = vpop.permute.xlu0 %6958 }
 0x4a5   : > { %6998 = vst.msk [vmem:[#allocation2 + $0xe8] sm:$0xff] %vm16863_vm6, %v6959_v19  ;;  %v7198_v51 = vpop.permute.xlu1 %7197  ;;  %vm16868_vm6 = vcmask 195712  }
 0x4a6   : > { %7237 = vst.msk [vmem:[#allocation2 + $0xe8] sm:$0xff] %vm16864_vm4, %v7198_v51  ;;  %vm9178_vm4 = vcmp.lt.s32.totalorder %v9142_v20, 16 }
 0x4a8   : > { %v5324_v16 = vpop.permute.xlu0 %5323 }
 0x4a9   : > { %5362 = vst.msk [vmem:[#allocation2 + $0xf8] sm:$0xff] %vm16865_vm1, %v5324_v16  ;;  %v7570_v30 = vpop.permute.xlu1 %7569  ;;  %vm15691_vm1 = vcmp.lt.s32.totalorder %v9143_v59, 16 }
 0x4aa   : > { %7609 = vst.msk [vmem:[#allocation2 + $0xe8] sm:$0xff] %vm16866_vm5, %v7570_v30  ;;  %vm16873_vm5 = vcmask 589312  }
 0x4ac   : > { %v4506_v26 = vpop.permute.xlu0 %4505 }
 0x4ad   : > { %4546 = vst.msk [vmem:[#allocation2 + $0xe0] sm:$0xff] %vm16867_vm2, %v4506_v26  ;;  %v5522_v62 = vpop.permute.xlu1 %5521  ;;  %vm16877_vm2 = vmmov %vm16868_vm6 }
 0x4ae   : > { %5560 = vst.msk [vmem:[#allocation2 + $0xf8] sm:$0xff] %vm16868_vm6, %v5522_v62  ;;  %v8721_v62 = vshrl.u32 %v15730_v41, 4  ;;  %vm16879_vm6 = vmmov %vm16872_vm10 }
 0x4b0   : > { %v7809_v3 = vpop.permute.xlu0 %7808 }
 0x4b1   : > { %7848 = vst.msk [vmem:[#allocation2 + $0xe8] sm:$0xff] %vm3438_vm14, %v7809_v3  ;;  %v4746_v23 = vpop.permute.xlu1 %4745  ;;  %v8166_v52 = vpop.f32.mrb[16].mxu0 }
 0x4b2   : > { %4786 = vst.msk [vmem:[#allocation2 + $0xe0] sm:$0xff] %vm4771_vm15, %v4746_v23  ;;  %v8167_v36 = vadd.f32 %v8166_v52, %v15181_v14  ;;  %v8168_v58 = vpop.f32.mrb[17].mxu0 }
 0x4b3   : > { %v8169_v12 = vadd.f32 %v8168_v58, %v15204_v18  ;;  %v8170_v11 = vpop.f32.mrb[18].mxu0 }
 0x4b4   : > { %v5872_v8 = vpop.permute.xlu0 %5871  ;;  %v9294_v38 = vsel %vm9178_vm4, %v8167_v36, 0.0  ;;  %v8171_v21 = vadd.f32 %v8170_v11, %v15181_v14  ;;  %v8172_v47 = vpop.f32.mrb[19].mxu0 }
 0x4b5   : > { %5910 = vst.msk [vmem:[#allocation2 + $0xf8] sm:$0xff] %vm1418_vm7, %v5872_v8  ;;  %v9357_v53 = vadd.f32 %v15659_v10, %v9294_v38  ;;  %v9448_v6 = vmul.f32 %v9294_v38, %v9294_v38  ;;  %v10440_v28 = vpack.c.bf16 %v8169_v12, %v8167_v36  ;;  %v9295_v13 = vsel %vm9178_vm4, %v8169_v12, 0.0  ;;  %v6111_v40 = vpop.permute.xlu1 %6110  ;;  %vm16880_vm4 = vmmov %vm16873_vm5 }
 0x4b6   : > { %v9398_v7 = vadd.f32 %v15666_v42, %v9295_v13  ;;  %v9449_v37 = vmul.f32 %v9295_v13, %v9295_v13  ;;  %v9296_v29 = vsel %vm15691_vm1, %v8171_v21, 0.0  ;;  %v8173_v34 = vadd.f32 %v8172_v47, %v15204_v18  ;;  %6149 = vst.msk [vmem:[#allocation2 + $0xf8] sm:$0xff] %vm1792_vm9, %v6111_v40 }
 0x4b7   : > { %v9511_v4 = vadd.f32 %v15664_v45, %v9448_v6  ;;  %8529 = vst [vmem:[%s15263_s8 + $0x40] sm:$0xff] %v10440_v28  ;;  %v15705_v48 = vadd.f32 %v9357_v53, %v9296_v29  ;;  %v9450_v56 = vmul.f32 %v9296_v29, %v9296_v29  ;;  %v8722_v12 = vmul.u32 18, %v8721_v62 }
 0x4b8   : > { %v6350_v57 = vpop.permute.xlu0 %6349  ;;  %v7881_v1 = vld [vmem:[#allocation2 + $0xe8] sm:$0xff]  ;;  %v9552_v54 = vadd.f32 %v15670_v31, %v9449_v37  ;;  %v10441_v10 = vpack.c.bf16 %v8173_v34, %v8171_v21  ;;  %v9297_v15 = vsel %vm15691_vm1, %v8173_v34, 0.0  ;;  %v8568_v31 = vadd.s32 80, %v14944_v63 }
 0x4b9   : > { %6388 = vst.msk [vmem:[#allocation2 + $0xf8] sm:$0xff] %vm2033_vm11, %v6350_v57  ;;  %8264 = vmatprep.mubr.bf16.mxu1 %v7881_v1  ;;  %v15711_v44 = vadd.f32 %v9511_v4, %v9450_v56  ;;  %v15713_v49 = vadd.f32 %v9398_v7, %v9297_v15  ;;  %v9451_v25 = vmul.f32 %v9297_v15, %v9297_v15  ;;  %v6722_v32 = vpop.permute.xlu1 %6721  ;;  %v7880_v45 = vld [vmem:[#allocation2 + $0xe0] sm:$0xff] }
 0x4ba   : > { %8530 = vst [vmem:[%s15263_s8 + $0x48] sm:$0xff] %v10441_v10  ;;  %6760 = vst.msk [vmem:[#allocation2 + $0xf8] sm:$0xff] %vm16871_vm8, %v6722_v32  ;;  %8265 = vmatmul.mubr.bf16.gmra.mrb[20].mxu1 %v7880_v45  ;;  %v15725_v5 = vmul.u32.u64.low 3817748708, %v8568_v31  ;;  %v15726_v61 = vmul.u32.u64.high 3817748708, %v8568_v31, %v15725_v5  ;;  %v8723_v21 = vsub.s32 %v8569_v35, %v8722_v12 }
 0x4bb   : > { %v15717_v42 = vadd.f32 %v9552_v54, %v9451_v25 }
 0x4bc   : > { %v6961_v46 = vpop.permute.xlu0 %6960  ;;  %v8710_v27 = vshrl.u32 %v15726_v61, 4  ;;  %v9109_v13 = vadd.s32 18, %v8723_v21 }
 0x4bd   : > { %6999 = vst.msk [vmem:[#allocation2 + $0xf8] sm:$0xff] %vm16872_vm10, %v6961_v46  ;;  %v7200_v39 = vpop.permute.xlu1 %7199  ;;  %vm16881_vm10 = vmmov %vm16874_vm3 }
 0x4be   : > { %7238 = vst.msk [vmem:[#allocation2 + $0xf8] sm:$0xff] %vm16873_vm5, %v7200_v39  ;;  %v8711_v23 = vmul.u32 18, %v8710_v27  ;;  %vm9001_vm5 = vcmp.ne.s32.totalorder %v8723_v21, 0 }
 0x4c0   : > { %v5326_v0 = vpop.permute.xlu0 %5325  ;;  %v8712_v8 = vsub.s32 %v8568_v31, %v8711_v23  ;;  %v8571_v23 = vadd.s32 104, %v14944_v63 }
 0x4c1   : > { %5363 = vst.msk [vmem:[#allocation2 + $0x108] sm:$0xff] %vm16874_vm3, %v5326_v0  ;;  %v7572_v60 = vpop.permute.xlu1 %7571  ;;  %vm9037_vm3 = vcmp.lt.s32.totalorder %v8723_v21, 0 }
 0x4c2   : > { %7610 = vst.msk [vmem:[#allocation2 + $0xf8] sm:$0xff] %vm16875_vm12, %v7572_v60  ;;  %vm9000_vm1 = vcmp.ne.s32.totalorder %v8712_v8, 0  ;;  %vm9036_vm8 = vcmp.lt.s32.totalorder %v8712_v8, 0  ;;  %v9108_v6 = vadd.s32 18, %v8712_v8 }
 0x4c3   : > { %vm9072_vm12 = vmand %vm9036_vm8, %vm9000_vm1  ;;  %vm16889_vm8 = vcmask 589312  }
 0x4c4   : > { %v4508_v2 = vpop.permute.xlu0 %4507  ;;  %v9144_v7 = vsel %vm9072_vm12, %v9108_v6, %v8712_v8 }
 0x4c5   : > { %4547 = vst.msk [vmem:[#allocation2 + $0xf0] sm:$0xff] %vm16876_vm0, %v4508_v2  ;;  %v5524_v43 = vpop.permute.xlu1 %5523  ;;  %vm16882_vm0 = vcmask 654912  }
 0x4c6   : > { %5561 = vst.msk [vmem:[#allocation2 + $0x108] sm:$0xff] %vm16877_vm2, %v5524_v43  ;;  %vm9073_vm2 = vmand %vm9037_vm3, %vm9001_vm5 }
 0x4c7   : > { %v9145_v29 = vsel %vm9073_vm2, %v9109_v13, %v8723_v21 }
 0x4c8   : > { %v7811_v22 = vpop.permute.xlu0 %7810  ;;  %vm15768_vm1 = vcmp.lt.s32.totalorder %v9145_v29, 16 }
 0x4c9   : > { %7849 = vst.msk [vmem:[#allocation2 + $0xf8] sm:$0xff] %vm3438_vm14, %v7811_v22  ;;  %v4748_v33 = vpop.permute.xlu1 %4747  ;;  %v8216_v19 = vpop.f32.mrb[0].mxu1 }
 0x4ca   : > { %4787 = vst.msk [vmem:[#allocation2 + $0xf0] sm:$0xff] %vm4771_vm15, %v4748_v33  ;;  %v15736_v9 = vadd.f32 %v8216_v19, %v15181_v14  ;;  %v8218_v51 = vpop.f32.mrb[1].mxu1 }
 0x4cb   : > { %v15740_v16 = vadd.f32 %v8218_v51, %v15204_v18  ;;  %v8220_v30 = vpop.f32.mrb[2].mxu1 }
 0x4cc   : > { %v5874_v24 = vpop.permute.xlu0 %5873  ;;  %v15743_v26 = vadd.f32 %v8220_v30, %v15181_v14  ;;  %v8222_v17 = vpop.f32.mrb[3].mxu1 }
 0x4cd   : > { %5911 = vst.msk [vmem:[#allocation2 + $0x108] sm:$0xff] %vm1418_vm7, %v5874_v24  ;;  %v10450_v20 = vpack.c.bf16 %v15740_v16, %v15736_v9  ;;  %v15750_v3 = vadd.f32 %v8222_v17, %v15204_v18  ;;  %v6113_v59 = vpop.permute.xlu1 %6112 }
 0x4ce   : > { %6150 = vst.msk [vmem:[#allocation2 + $0x108] sm:$0xff] %vm1792_vm9, %v6113_v59 }
 0x4cf   : > { %8539 = vst [vmem:[%s15263_s8 + $0x90] sm:$0xff] %v10450_v20  ;;  %v10451_v52 = vpack.c.bf16 %v15750_v3, %v15743_v26  ;;  %v8570_v20 = vadd.s32 96, %v14944_v63 }
 0x4d0   : > { %v6352_v36 = vpop.permute.xlu0 %6351  ;;  %v7883_v58 = vld [vmem:[#allocation2 + $0xf8] sm:$0xff] }
 0x4d1   : > { %6389 = vst.msk [vmem:[#allocation2 + $0x108] sm:$0xff] %vm2033_vm11, %v6352_v36  ;;  %8274 = vmatprep.mubr.bf16.mxu1 %v7883_v58  ;;  %8540 = vst [vmem:[%s15263_s8 + $0x98] sm:$0xff] %v10451_v52  ;;  %v6724_v11 = vpop.permute.xlu1 %6723  ;;  %v7882_v55 = vld [vmem:[#allocation2 + $0xf0] sm:$0xff]  ;;  %v15802_v36 = vmul.u32.u64.low 3817748708, %v8570_v20  ;;  %v15803_v58 = vmul.u32.u64.high 3817748708, %v8570_v20, %v15802_v36 }
 0x4d2   : > { %6761 = vst.msk [vmem:[#allocation2 + $0x108] sm:$0xff] %vm16878_vm13, %v6724_v11  ;;  %8275 = vmatmul.mubr.bf16.gmra.mrb[24].mxu1 %v7882_v55  ;;  %vm16883_vm13 = vcmask 982912   ;;  %v15806_v11 = vmul.u32.u64.low 3817748708, %v8571_v23  ;;  %v15807_v55 = vmul.u32.u64.high 3817748708, %v8571_v23, %v15806_v11 }
 0x4d3   : > { %v8732_v6 = vshrl.u32 %v15803_v58, 4  ;;  %v8573_v58 = vadd.s32 120, %v14944_v63 }
 0x4d4   : > { %v6963_v38 = vpop.permute.xlu0 %6962 }
 0x4d5   : > { %7000 = vst.msk [vmem:[#allocation2 + $0x108] sm:$0xff] %vm16879_vm6, %v6963_v38  ;;  %v7202_v47 = vpop.permute.xlu1 %7201  ;;  %vm16884_vm6 = vcmask 195712  }
 0x4d6   : > { %7239 = vst.msk [vmem:[#allocation2 + $0x108] sm:$0xff] %vm16880_vm4, %v7202_v47  ;;  %vm9180_vm4 = vcmp.lt.s32.totalorder %v9144_v7, 16 }
 0x4d8   : > { %v5328_v53 = vpop.permute.xlu0 %5327 }
 0x4d9   : > { %5364 = vst.msk [vmem:[#allocation2 + $0x118] sm:$0xff] %vm16881_vm10, %v5328_v53  ;;  %v7574_v28 = vpop.permute.xlu1 %7573  ;;  %vm16891_vm10 = vmmov %vm16883_vm13 }
 0x4da   : > { %7611 = vst.msk [vmem:[#allocation2 + $0x108] sm:$0xff] %vm16882_vm0, %v7574_v28 }
 0x4dc   : > { %v4510_v40 = vpop.permute.xlu0 %4509 }
 0x4dd   : > { %4548 = vst.msk [vmem:[#allocation2 + $0x100] sm:$0xff] %vm16883_vm13, %v4510_v40  ;;  %v5526_v37 = vpop.permute.xlu1 %5525 }
 0x4de   : > { %5562 = vst.msk [vmem:[#allocation2 + $0x118] sm:$0xff] %vm16884_vm6, %v5526_v37  ;;  %v8743_v37 = vshrl.u32 %v15807_v55, 4 }
 0x4e0   : > { %v7813_v34 = vpop.permute.xlu0 %7812  ;;  %v8176_v4 = vpop.f32.mrb[20].mxu0 }
 0x4e1   : > { %7850 = vst.msk [vmem:[#allocation2 + $0x108] sm:$0xff] %vm3438_vm14, %v7813_v34  ;;  %v8177_v56 = vadd.f32 %v8176_v4, %v15181_v14  ;;  %v8178_v57 = vpop.f32.mrb[21].mxu0  ;;  %v4750_v1 = vpop.permute.xlu1 %4749 }
 0x4e2   : > { %v8179_v54 = vadd.f32 %v8178_v57, %v15204_v18  ;;  %v8180_v10 = vpop.f32.mrb[22].mxu0  ;;  %4788 = vst.msk [vmem:[#allocation2 + $0x100] sm:$0xff] %vm4771_vm15, %v4750_v1 }
 0x4e3   : > { %v9298_v25 = vsel %vm9180_vm4, %v8177_v56, 0.0  ;;  %v8181_v32 = vadd.f32 %v8180_v10, %v15181_v14  ;;  %v8182_v45 = vpop.f32.mrb[23].mxu0 }
 0x4e4   : > { %v9359_v46 = vadd.f32 %v15705_v48, %v9298_v25  ;;  %v9452_v39 = vmul.f32 %v9298_v25, %v9298_v25  ;;  %v10442_v31 = vpack.c.bf16 %v8179_v54, %v8177_v56  ;;  %v9299_v0 = vsel %vm9180_vm4, %v8179_v54, 0.0  ;;  %v5876_v35 = vpop.permute.xlu0 %5875 }
 0x4e5   : > { %v9400_v60 = vadd.f32 %v15713_v49, %v9299_v0  ;;  %v9453_v5 = vmul.f32 %v9299_v0, %v9299_v0  ;;  %v9300_v61 = vsel %vm15768_vm1, %v8181_v32, 0.0  ;;  %v8183_v2 = vadd.f32 %v8182_v45, %v15204_v18  ;;  %5912 = vst.msk [vmem:[#allocation2 + $0x118] sm:$0xff] %vm1418_vm7, %v5876_v35  ;;  %v6115_v43 = vpop.permute.xlu1 %6114 }
 0x4e6   : > { %v9513_v50 = vadd.f32 %v15711_v44, %v9452_v39  ;;  %8531 = vst [vmem:[%s15263_s8 + $0x50] sm:$0xff] %v10442_v31  ;;  %v15782_v41 = vadd.f32 %v9359_v46, %v9300_v61  ;;  %v9454_v48 = vmul.f32 %v9300_v61, %v9300_v61  ;;  %6151 = vst.msk [vmem:[#allocation2 + $0x118] sm:$0xff] %vm1792_vm9, %v6115_v43  ;;  %vm16887_vm7 = vcmask 458112  }
 0x4e7   : > { %v9554_v22 = vadd.f32 %v15717_v42, %v9453_v5  ;;  %v10443_v33 = vpack.c.bf16 %v8183_v2, %v8181_v32  ;;  %v9301_v49 = vsel %vm15768_vm1, %v8183_v2, 0.0  ;;  %vm16888_vm9 = vcmask 523712  }
 0x4e8   : > { %v15788_v19 = vadd.f32 %v9513_v50, %v9454_v48  ;;  %v15790_v51 = vadd.f32 %v9400_v60, %v9301_v49  ;;  %v9455_v27 = vmul.f32 %v9301_v49, %v9301_v49  ;;  %v6354_v30 = vpop.permute.xlu0 %6353  ;;  %v7885_v44 = vld [vmem:[#allocation2 + $0x108] sm:$0xff]  ;;  %v8733_v56 = vmul.u32 18, %v8732_v6 }
 0x4e9   : > { %8532 = vst [vmem:[%s15263_s8 + $0x58] sm:$0xff] %v10443_v33  ;;  %6390 = vst.msk [vmem:[#allocation2 + $0x118] sm:$0xff] %vm2033_vm11, %v6354_v30  ;;  %8284 = vmatprep.mubr.bf16.mxu1 %v7885_v44  ;;  %v6726_v42 = vpop.permute.xlu1 %6725  ;;  %v7884_v17 = vld [vmem:[#allocation2 + $0x100] sm:$0xff]  ;;  %v8744_v54 = vmul.u32 18, %v8743_v37 }
 0x4ea   : > { %v15794_v24 = vadd.f32 %v9554_v22, %v9455_v27  ;;  %6762 = vst.msk [vmem:[#allocation2 + $0x118] sm:$0xff] %vm16887_vm7, %v6726_v42  ;;  %8285 = vmatmul.mubr.bf16.gmra.mrb[28].mxu1 %v7884_v17  ;;  %vm16890_vm11 = vmmov %vm16882_vm0  ;;  %v8734_v10 = vsub.s32 %v8570_v20, %v8733_v56 }
 0x4eb   : > { %v8745_v15 = vsub.s32 %v8571_v23, %v8744_v54 }
 0x4ec   : > { %v6965_v62 = vpop.permute.xlu0 %6964  ;;  %v9110_v25 = vadd.s32 18, %v8734_v10 }
 0x4ed   : > { %7001 = vst.msk [vmem:[#allocation2 + $0x118] sm:$0xff] %vm16888_vm9, %v6965_v62  ;;  %v7204_v59 = vpop.permute.xlu1 %7203  ;;  %vm9003_vm5 = vcmp.ne.s32.totalorder %v8745_v15, 0  ;;  %vm9039_vm3 = vcmp.lt.s32.totalorder %v8745_v15, 0  ;;  %v9111_v32 = vadd.s32 18, %v8745_v15 }
 0x4ee   : > { %7240 = vst.msk [vmem:[#allocation2 + $0x118] sm:$0xff] %vm16889_vm8, %v7204_v59  ;;  %vm9075_vm0 = vmand %vm9039_vm3, %vm9003_vm5 }
 0x4ef   : > { %v9147_v46 = vsel %vm9075_vm0, %v9111_v32, %v8745_v15 }
 0x4f0   : > { %v7576_v52 = vpop.permute.xlu0 %7575  ;;  %vm15833_vm13 = vcmp.lt.s32.totalorder %v9147_v46, 16 }
 0x4f1   : > { %7612 = vst.msk [vmem:[#allocation2 + $0x118] sm:$0xff] %vm16890_vm11, %v7576_v52 }
 0x4f2   : > { %v4512_v12 = vpop.permute.xlu1 %4511 }
 0x4f3   : > { %4549 = vst.msk [vmem:[#allocation2 + $0x110] sm:$0xff] %vm16891_vm10, %v4512_v12 }
 0x4f4   : > { %v7815_v8 = vpop.permute.xlu0 %7814 }
 0x4f5   : > { %7851 = vst.msk [vmem:[#allocation2 + $0x118] sm:$0xff] %vm3438_vm14, %v7815_v8  ;;  %vm9002_vm14 = vcmp.ne.s32.totalorder %v8734_v10, 0 }
 0x4f6   : > { %v4752_v38 = vpop.permute.xlu1 %4751 }
 0x4f7   : > { %4789 = vst.msk [vmem:[#allocation2 + $0x110] sm:$0xff] %vm4771_vm15, %v4752_v38  ;;  %vm9038_vm15 = vcmp.lt.s32.totalorder %v8734_v10, 0 }
 0x4f8   : > { %v8226_v21 = vpop.f32.mrb[4].mxu1  ;;  %vm9074_vm12 = vmand %vm9038_vm15, %vm9002_vm14 }
 0x4f9   : > { %v15812_v47 = vadd.f32 %v8226_v21, %v15181_v14  ;;  %v8228_v53 = vpop.f32.mrb[5].mxu1  ;;  %v9146_v45 = vsel %vm9074_vm12, %v9110_v25, %v8734_v10 }
 0x4fa   : > { %v15816_v28 = vadd.f32 %v8228_v53, %v15204_v18  ;;  %v8230_v13 = vpop.f32.mrb[6].mxu1  ;;  %vm9182_vm2 = vcmp.lt.s32.totalorder %v9146_v45, 16  ;;  %v15893_v45 = vadd.s32 152, %v14944_v63 }
 0x4fb   : > { %v15819_v40 = vadd.f32 %v8230_v13, %v15181_v14  ;;  %v8232_v7 = vpop.f32.mrb[7].mxu1 }
 0x4fc   : > { %v10452_v29 = vpack.c.bf16 %v15816_v28, %v15812_v47  ;;  %v15825_v34 = vadd.f32 %v8232_v7, %v15204_v18  ;;  %v7887_v4 = vld [vmem:[#allocation2 + $0x118] sm:$0xff] }
 0x4fd   : > { %8294 = vmatprep.mubr.bf16.mxu1 %v7887_v4 }
 0x4fe   : > { %8541 = vst [vmem:[%s15263_s8 + $0xa0] sm:$0xff] %v10452_v29  ;;  %v10453_v57 = vpack.c.bf16 %v15825_v34, %v15819_v40  ;;  %v7886_v1 = vld [vmem:[#allocation2 + $0x110] sm:$0xff] }
 0x4ff   : > { %8295 = vmatmul.mubr.bf16.gmra.mrb[32].mxu1 %v7886_v1  ;;  %v15882_v1 = vadd.s32 144, %v14944_v63 }
 0x500   : > { %8542 = vst [vmem:[%s15263_s8 + $0xa8] sm:$0xff] %v10453_v57 }
 0x501   : > { %v15889_v25 = vmul.u32.u64.low 3817748708, %v15882_v1  ;;  %v15890_v32 = vmul.u32.u64.high 3817748708, %v15882_v1, %v15889_v25 }
 0x502   : > { %v15953_v25 = vadd.s32 184, %v14944_v63 }
 0x50d   : > { %v8186_v39 = vpop.f32.mrb[24].mxu0 }
 0x50e   : > { %v8187_v31 = vadd.f32 %v8186_v39, %v15181_v14  ;;  %v8188_v0 = vpop.f32.mrb[25].mxu0 }
 0x50f   : > { %v8189_v35 = vadd.f32 %v8188_v0, %v15204_v18  ;;  %v8190_v60 = vpop.f32.mrb[26].mxu0 }
 0x510   : > { %v9302_v61 = vsel %vm9182_vm2, %v8187_v31, 0.0  ;;  %v8191_v2 = vadd.f32 %v8190_v60, %v15181_v14  ;;  %v8192_v50 = vpop.f32.mrb[27].mxu0  ;;  %v8798_v60 = vshrl.u32 %v15890_v32, 4 }
 0x511   : > { %v9361_v48 = vadd.f32 %v15782_v41, %v9302_v61  ;;  %v9456_v43 = vmul.f32 %v9302_v61, %v9302_v61  ;;  %v10444_v22 = vpack.c.bf16 %v8189_v35, %v8187_v31  ;;  %v9303_v33 = vsel %vm9182_vm2, %v8189_v35, 0.0 }
 0x512   : > { %v9402_v49 = vadd.f32 %v15790_v51, %v9303_v33  ;;  %v9457_v27 = vmul.f32 %v9303_v33, %v9303_v33  ;;  %v9304_v30 = vsel %vm15833_vm13, %v8191_v2, 0.0  ;;  %v8193_v44 = vadd.f32 %v8192_v50, %v15204_v18 }
 0x513   : > { %v9515_v42 = vadd.f32 %v15788_v19, %v9456_v43  ;;  %8533 = vst [vmem:[%s15263_s8 + $0x60] sm:$0xff] %v10444_v22  ;;  %v15845_v17 = vadd.f32 %v9361_v48, %v9304_v30  ;;  %v9458_v62 = vmul.f32 %v9304_v30, %v9304_v30  ;;  %v8572_v19 = vadd.s32 112, %v14944_v63 }
 0x514   : > { %v9556_v41 = vadd.f32 %v15794_v24, %v9457_v27  ;;  %v10445_v20 = vpack.c.bf16 %v8193_v44, %v8191_v2  ;;  %v9305_v59 = vsel %vm15833_vm13, %v8193_v44, 0.0  ;;  %v15905_v61 = vadd.s32 160, %v14944_v63 }
 0x515   : > { %v15850_v23 = vadd.f32 %v9515_v42, %v9458_v62  ;;  %v15852_v51 = vadd.f32 %v9402_v49, %v9305_v59  ;;  %v9459_v52 = vmul.f32 %v9305_v59, %v9305_v59  ;;  %v15908_v50 = vadd.s32 168, %v14944_v63 }
 0x516   : > { %8534 = vst [vmem:[%s15263_s8 + $0x68] sm:$0xff] %v10445_v20  ;;  %v15859_v12 = vmul.u32.u64.low 3817748708, %v8572_v19  ;;  %v15860_v11 = vmul.u32.u64.high 3817748708, %v8572_v19, %v15859_v12  ;;  %v15862_v24 = vmul.u32.u64.low 3817748708, %v8573_v58  ;;  %v15863_v55 = vmul.u32.u64.high 3817748708, %v8573_v58, %v15862_v24 }
 0x517   : > { %v15855_v36 = vadd.f32 %v9556_v41, %v9459_v52  ;;  %v15896_v39 = vmul.u32.u64.low 3817748708, %v15893_v45  ;;  %v15897_v31 = vmul.u32.u64.high 3817748708, %v15893_v45, %v15896_v39  ;;  %v15911_v48 = vadd.s32 176, %v14944_v63 }
 0x518   : > { %v8754_v53 = vshrl.u32 %v15860_v11, 4  ;;  %v8765_v29 = vshrl.u32 %v15863_v55, 4  ;;  %v8799_v22 = vmul.u32 18, %v8798_v60  ;;  %v15968_v60 = vadd.s32 136, %v14944_v63 }
 0x519   : > { %v8809_v27 = vshrl.u32 %v15897_v31, 4  ;;  %v15921_v30 = vmul.u32.u64.low 3817748708, %v15905_v61  ;;  %v15922_v44 = vmul.u32.u64.high 3817748708, %v15905_v61, %v15921_v30 }
 0x51a   : > { %v8755_v57 = vmul.u32 18, %v8754_v53  ;;  %v8766_v10 = vmul.u32 18, %v8765_v29  ;;  %v15987_v30 = vadd.s32 200, %v14944_v63 }
 0x51b   : > { %v15926_v41 = vmul.u32.u64.low 3817748708, %v15908_v50  ;;  %v15927_v20 = vmul.u32.u64.high 3817748708, %v15908_v50, %v15926_v41 }
 0x51c   : > { %v8756_v15 = vsub.s32 %v8572_v19, %v8755_v57  ;;  %v8767_v46 = vsub.s32 %v8573_v58, %v8766_v10  ;;  %v15935_v58 = vmul.u32.u64.low 3817748708, %v15911_v48  ;;  %v15936_v12 = vmul.u32.u64.high 3817748708, %v15911_v48, %v15935_v58 }
 0x51d   : > { %v16009_v19 = vmul.u32.u64.low 3817748708, %v15987_v30  ;;  %v16010_v58 = vmul.u32.u64.high 3817748708, %v15987_v30, %v16009_v19 }
 0x51e   : > { %vm9004_vm6 = vcmp.ne.s32.totalorder %v8756_v15, 0  ;;  %vm9040_vm4 = vcmp.lt.s32.totalorder %v8756_v15, 0  ;;  %v9112_v0 = vadd.s32 18, %v8756_v15  ;;  %vm9005_vm1 = vcmp.ne.s32.totalorder %v8767_v46, 0 }
 0x51f   : > { %vm9041_vm7 = vcmp.lt.s32.totalorder %v8767_v46, 0  ;;  %vm9076_vm9 = vmand %vm9040_vm4, %vm9004_vm6  ;;  %v9113_v35 = vadd.s32 18, %v8767_v46  ;;  %v8842_v41 = vshrl.u32 %v15936_v12, 4 }
 0x520   : > { %vm15900_vm8 = vmand %vm9041_vm7, %vm9005_vm1  ;;  %v9148_v2 = vsel %vm9076_vm9, %v9112_v0, %v8756_v15 }
 0x521   : > { %v9149_v43 = vsel %vm15900_vm8, %v9113_v35, %v8767_v46  ;;  %vm15915_vm11 = vcmp.lt.s32.totalorder %v9148_v2, 16  ;;  %v8820_v35 = vshrl.u32 %v15922_v44, 4  ;;  %v15976_v2 = vsub.s32 %v15882_v1, %v8799_v22 }
 0x522   : > { %vm15930_vm10 = vcmp.lt.s32.totalorder %v9149_v43, 16  ;;  %v15994_v1 = vmul.u32.u64.low 3817748708, %v15968_v60  ;;  %v15995_v22 = vmul.u32.u64.high 3817748708, %v15968_v60, %v15994_v1 }
 0x523   : > { %vm9008_vm14 = vcmp.ne.s32.totalorder %v15976_v2, 0  ;;  %vm9044_vm15 = vcmp.lt.s32.totalorder %v15976_v2, 0 }
 0x524   : > { %vm16019_vm12 = vmand %vm9044_vm15, %vm9008_vm14 }
 0x525   : > { %v8236_v8 = vpop.f32.mrb[8].mxu1 }
 0x526   : > { %v15866_v38 = vadd.f32 %v8236_v8, %v15181_v14  ;;  %v8238_v21 = vpop.f32.mrb[9].mxu1 }
 0x527   : > { %v15870_v6 = vadd.f32 %v8238_v21, %v15204_v18  ;;  %v8240_v13 = vpop.f32.mrb[10].mxu1 }
 0x528   : > { %v15873_v7 = vadd.f32 %v8240_v13, %v15181_v14  ;;  %v8242_v37 = vpop.f32.mrb[11].mxu1 }
 0x529   : > { %v10454_v4 = vpack.c.bf16 %v15870_v6, %v15866_v38  ;;  %v15879_v56 = vadd.f32 %v8242_v37, %v15204_v18 }
 0x52b   : > { %8543 = vst [vmem:[%s15263_s8 + $0xb0] sm:$0xff] %v10454_v4  ;;  %v10455_v54 = vpack.c.bf16 %v15879_v56, %v15873_v7 }
 0x52d   : > { %8544 = vst [vmem:[%s15263_s8 + $0xb8] sm:$0xff] %v10455_v54  ;;  %v8810_v54 = vmul.u32 18, %v8809_v27  ;;  %v8831_v27 = vshrl.u32 %v15927_v20, 4 }
 0x52f   : > { %v15979_v43 = vsub.s32 %v15893_v45, %v8810_v54  ;;  %v15998_v45 = vadd.s32 208, %v14944_v63 }
 0x531   : > { %vm9009_vm5 = vcmp.ne.s32.totalorder %v15979_v43, 0  ;;  %vm9045_vm3 = vcmp.lt.s32.totalorder %v15979_v43, 0 }
 0x532   : > { %vm16029_vm0 = vmand %vm9045_vm3, %vm9009_vm5 }
 0x53c   : > { %v8196_v33 = vpop.f32.mrb[28].mxu0 }
 0x53d   : > { %v8197_v42 = vadd.f32 %v8196_v33, %v15181_v14  ;;  %v8198_v62 = vpop.f32.mrb[29].mxu0  ;;  %v15982_v33 = vmul.u32.u64.low 3817748708, %v15953_v25  ;;  %v15983_v49 = vmul.u32.u64.high 3817748708, %v15953_v25, %v15982_v33 }
 0x53e   : > { %v8199_v59 = vadd.f32 %v8198_v62, %v15204_v18  ;;  %v8200_v52 = vpop.f32.mrb[30].mxu0  ;;  %v8821_v62 = vmul.u32 18, %v8820_v35  ;;  %v8875_v35 = vshrl.u32 %v16010_v58, 4 }
 0x53f   : > { %v9306_v11 = vsel %vm15915_vm11, %v8197_v42, 0.0  ;;  %v8201_v24 = vadd.f32 %v8200_v52, %v15181_v14  ;;  %v8202_v55 = vpop.f32.mrb[31].mxu0  ;;  %v8832_v52 = vmul.u32 18, %v8831_v27 }
 0x540   : > { %v9363_v8 = vadd.f32 %v15845_v17, %v9306_v11  ;;  %v9460_v21 = vmul.f32 %v9306_v11, %v9306_v11  ;;  %v10446_v53 = vpack.c.bf16 %v8199_v59, %v8197_v42  ;;  %v9307_v13 = vsel %vm15915_vm11, %v8199_v59, 0.0 }
 0x541   : > { %v9404_v37 = vadd.f32 %v15852_v51, %v9307_v13  ;;  %v9461_v29 = vmul.f32 %v9307_v13, %v9307_v13  ;;  %v9308_v4 = vsel %vm15930_vm10, %v8201_v24, 0.0  ;;  %v8203_v57 = vadd.f32 %v8202_v55, %v15204_v18 }
 0x542   : > { %v9517_v10 = vadd.f32 %v15850_v23, %v9460_v21  ;;  %8535 = vst [vmem:[%s15263_s8 + $0x70] sm:$0xff] %v10446_v53  ;;  %v15950_v15 = vadd.f32 %v9363_v8, %v9308_v4  ;;  %v9462_v17 = vmul.f32 %v9308_v4, %v9308_v4  ;;  %v15963_v23 = vadd.s32 128, %v14944_v63 }
 0x543   : > { %v9558_v32 = vadd.f32 %v15855_v36, %v9461_v29  ;;  %v10447_v51 = vpack.c.bf16 %v8203_v57, %v8201_v24  ;;  %v9309_v46 = vsel %vm15930_vm10, %v8203_v57, 0.0  ;;  %v15973_v36 = vadd.s32 192, %v14944_v63 }
 0x544   : > { %v15958_v39 = vadd.f32 %v9517_v10, %v9462_v17  ;;  %v15960_v31 = vadd.f32 %v9404_v37, %v9309_v46  ;;  %v9463_v0 = vmul.f32 %v9309_v46, %v9309_v46  ;;  %v8822_v11 = vsub.s32 %v15905_v61, %v8821_v62 }
 0x545   : > { %8536 = vst [vmem:[%s15263_s8 + $0x78] sm:$0xff] %v10447_v51  ;;  %v15990_v44 = vmul.u32.u64.low 3817748708, %v15963_v23  ;;  %v15991_v42 = vmul.u32.u64.high 3817748708, %v15963_v23, %v15990_v44  ;;  %v16002_v59 = vmul.u32.u64.low 3817748708, %v15973_v36  ;;  %v16003_v20 = vmul.u32.u64.high 3817748708, %v15973_v36, %v16002_v59 }
 0x546   : > { %v15970_v5 = vadd.f32 %v9558_v32, %v9463_v0  ;;  %v16015_v12 = vmul.u32.u64.low 3817748708, %v15998_v45  ;;  %v16016_v24 = vmul.u32.u64.high 3817748708, %v15998_v45, %v16015_v12  ;;  %v9116_v55 = vadd.s32 18, %v15976_v2 }
 0x547   : > { %v8843_v8 = vmul.u32 18, %v8842_v41  ;;  %v9117_v53 = vadd.s32 18, %v15979_v43  ;;  %v16025_v13 = vadd.s32 216, %v14944_v63  ;;  %v16034_v37 = vsub.s32 %v15908_v50, %v8832_v52 }
 0x548   : > { %v8776_v29 = vshrl.u32 %v15991_v42, 4  ;;  %vm9010_vm2 = vcmp.ne.s32.totalorder %v8822_v11, 0  ;;  %vm9046_vm13 = vcmp.lt.s32.totalorder %v8822_v11, 0  ;;  %v8853_v4 = vshrl.u32 %v15983_v49, 4 }
 0x549   : > { %v8787_v57 = vshrl.u32 %v15995_v22, 4  ;;  %v9152_v54 = vsel %vm16019_vm12, %v9116_v55, %v15976_v2  ;;  %v16043_v10 = vsub.s32 %v15911_v48, %v8843_v8  ;;  %v8864_v17 = vshrl.u32 %v16003_v20, 4  ;;  %vm16053_vm6 = vmand %vm9046_vm13, %vm9010_vm2 }
 0x54a   : > { %v9153_v50 = vsel %vm16029_vm0, %v9117_v53, %v15979_v43  ;;  %v9118_v32 = vadd.s32 18, %v8822_v11  ;;  %v16050_v51 = vmul.u32.u64.low 3817748708, %v16025_v13  ;;  %v16051_v46 = vmul.u32.u64.high 3817748708, %v16025_v13, %v16050_v51 }
 0x54b   : > { %vm9011_vm4 = vcmp.ne.s32.totalorder %v16034_v37, 0  ;;  %vm9047_vm1 = vcmp.lt.s32.totalorder %v16034_v37, 0  ;;  %v8777_v2 = vmul.u32 18, %v8776_v29  ;;  %v8854_v33 = vmul.u32 18, %v8853_v4 }
 0x54c   : > { %v8788_v27 = vmul.u32 18, %v8787_v57  ;;  %v8886_v44 = vshrl.u32 %v16016_v24, 4  ;;  %vm9012_vm7 = vcmp.ne.s32.totalorder %v16043_v10, 0  ;;  %vm9048_vm9 = vcmp.lt.s32.totalorder %v16043_v10, 0  ;;  %vm16082_vm8 = vmand %vm9047_vm1, %vm9011_vm4 }
 0x54d   : > { %v8865_v42 = vmul.u32 18, %v8864_v17  ;;  %v9154_v22 = vsel %vm16053_vm6, %v9118_v32, %v8822_v11  ;;  %v9119_v41 = vadd.s32 18, %v16034_v37  ;;  %v16073_v59 = vadd.s32 18, %v16043_v10  ;;  %vm16098_vm11 = vmand %vm9048_vm9, %vm9012_vm7 }
 0x54e   : > { %v8876_v11 = vmul.u32 18, %v8875_v35  ;;  %v16092_v24 = vsub.s32 %v15963_v23, %v8777_v2  ;;  %v16103_v8 = vsub.s32 %v15968_v60, %v8788_v27  ;;  %v8887_v21 = vmul.u32 18, %v8886_v44 }
 0x54f   : > { %vm16105_vm10 = vcmp.lt.s32.totalorder %v9152_v54, 16  ;;  %v16110_v61 = vsub.s32 %v15953_v25, %v8854_v33  ;;  %v16113_v23 = vsub.s32 %v15973_v36, %v8865_v42  ;;  %vm16118_vm14 = vcmp.lt.s32.totalorder %v9153_v50, 16 }
 0x550   : > { %vm16122_vm15 = vcmp.lt.s32.totalorder %v9154_v22, 16  ;;  %v9155_v25 = vsel %vm16082_vm8, %v9119_v41, %v16034_v37  ;;  %v8897_v57 = vshrl.u32 %v16051_v46, 4  ;;  %v9156_v36 = vsel %vm16098_vm11, %v16073_v59, %v16043_v10 }
 0x551   : > { %v16135_v54 = vsub.s32 %v15987_v30, %v8876_v11  ;;  %vm9006_vm5 = vcmp.ne.s32.totalorder %v16092_v24, 0  ;;  %vm9042_vm3 = vcmp.lt.s32.totalorder %v16092_v24, 0  ;;  %vm9007_vm12 = vcmp.ne.s32.totalorder %v16103_v8, 0 }
 0x552   : > { %vm9043_vm0 = vcmp.lt.s32.totalorder %v16103_v8, 0  ;;  %v16143_v37 = vsub.s32 %v15998_v45, %v8887_v21  ;;  %v16146_v17 = vadd.s32 224, %v14944_v63  ;;  %vm9013_vm2 = vcmp.ne.s32.totalorder %v16110_v61, 0  ;;  %vm16153_vm1 = vmand %vm9042_vm3, %vm9006_vm5 }
 0x553   : > { %vm9049_vm13 = vcmp.lt.s32.totalorder %v16110_v61, 0  ;;  %v9121_v30 = vadd.s32 18, %v16110_v61  ;;  %vm9014_vm6 = vcmp.ne.s32.totalorder %v16113_v23, 0  ;;  %vm9050_vm4 = vcmp.lt.s32.totalorder %v16113_v23, 0  ;;  %vm16171_vm8 = vmand %vm9043_vm0, %vm9007_vm12 }
 0x554   : > { %v8246_v48 = vpop.f32.mrb[12].mxu1  ;;  %v9114_v45 = vadd.s32 18, %v16092_v24  ;;  %v9115_v50 = vadd.s32 18, %v16103_v8  ;;  %v8898_v32 = vmul.u32 18, %v8897_v57  ;;  %v16162_v51 = vsel %vm16105_vm10, %v15736_v9, 0.0  ;;  %vm16175_vm11 = vmand %vm9049_vm13, %vm9013_vm2 }
 0x555   : > { %v16061_v43 = vadd.f32 %v8246_v48, %v15181_v14  ;;  %v8248_v49 = vpop.f32.mrb[13].mxu1  ;;  %v9122_v46 = vadd.s32 18, %v16113_v23  ;;  %vm9015_vm7 = vcmp.ne.s32.totalorder %v16135_v54, 0  ;;  %vm9051_vm9 = vcmp.lt.s32.totalorder %v16135_v54, 0  ;;  %vm16204_vm12 = vmand %vm9050_vm4, %vm9014_vm6 }
 0x556   : > { %v16067_v62 = vadd.f32 %v8248_v49, %v15204_v18  ;;  %v8250_v1 = vpop.f32.mrb[14].mxu1  ;;  %vm9016_vm5 = vcmp.ne.s32.totalorder %v16143_v37, 0  ;;  %vm9052_vm3 = vcmp.lt.s32.totalorder %v16143_v37, 0  ;;  %v16188_v2 = vsel %vm16105_vm10, %v15740_v16, 0.0  ;;  %vm16209_vm10 = vmand %vm9051_vm9, %vm9015_vm7 }
 0x557   : > { %v16076_v20 = vadd.f32 %v8250_v1, %v15181_v14  ;;  %v8252_v52 = vpop.f32.mrb[15].mxu1  ;;  %v16182_v9 = vmul.u32.u64.low 3817748708, %v16146_v17  ;;  %v16183_v35 = vmul.u32.u64.high 3817748708, %v16146_v17, %v16182_v9  ;;  %v16193_v33 = vsel %vm16118_vm14, %v15743_v26, 0.0  ;;  %vm16238_vm0 = vmand %vm9052_vm3, %vm9016_vm5 }
 0x558   : > { %v10456_v58 = vpack.c.bf16 %v16067_v62, %v16061_v43  ;;  %v16089_v12 = vadd.f32 %v8252_v52, %v15204_v18  ;;  %v16198_v49 = vsel %vm16118_vm14, %v15750_v3, 0.0  ;;  %v9123_v16 = vadd.s32 18, %v16135_v54 }
 0x559   : > { %v9150_v26 = vsel %vm16153_vm1, %v9114_v45, %v16092_v24  ;;  %v9151_v3 = vsel %vm16171_vm8, %v9115_v50, %v16103_v8  ;;  %v16220_v42 = vadd.s32 18, %v16143_v37  ;;  %v16223_v1 = vsub.s32 %v16025_v13, %v8898_v32 }
 0x55a   : > { %8545 = vst [vmem:[%s15263_s8 + $0xc0] sm:$0xff] %v10456_v58  ;;  %v10457_v29 = vpack.c.bf16 %v16089_v12, %v16076_v20  ;;  %v9468_v22 = vmul.f32 %v16162_v51, %v16162_v51  ;;  %vm16227_vm14 = vcmp.lt.s32.totalorder %v9155_v25, 16  ;;  %v9157_v59 = vsel %vm16175_vm11, %v9121_v30, %v16110_v61 }
 0x55b   : > { %v16243_v13 = vadd.s32 232, %v14944_v63  ;;  %v16247_v19 = vmul.f32 %v16188_v2, %v16188_v2  ;;  %v16251_v58 = vmul.f32 %v16193_v33, %v16193_v33  ;;  %v16255_v11 = vmul.f32 %v16198_v49, %v16198_v49 }
 0x55c   : > { %8546 = vst [vmem:[%s15263_s8 + $0xc8] sm:$0xff] %v10457_v29  ;;  %v9158_v24 = vsel %vm16204_vm12, %v9122_v46, %v16113_v23  ;;  %v9318_v55 = vsel %vm16122_vm15, %v15812_v47, 0.0  ;;  %vm16263_vm2 = vcmp.lt.s32.totalorder %v9156_v36, 16  ;;  %v9159_v21 = vsel %vm16209_vm10, %v9123_v16, %v16135_v54 }
 0x55d   : > { %vm16270_vm13 = vcmp.lt.s32.totalorder %v9150_v26, 16  ;;  %vm16274_vm6 = vcmp.lt.s32.totalorder %v9151_v3, 16  ;;  %v9160_v4 = vsel %vm16238_vm0, %v16220_v42, %v16143_v37  ;;  %vm9017_vm4 = vcmp.ne.s32.totalorder %v16223_v1, 0 }
 0x55e   : > { %vm9053_vm1 = vcmp.lt.s32.totalorder %v16223_v1, 0  ;;  %vm16285_vm7 = vcmp.lt.s32.totalorder %v9157_v59, 16  ;;  %v9125_v54 = vadd.s32 18, %v16223_v1  ;;  %v9472_v45 = vmul.f32 %v9318_v55, %v9318_v55 }
 0x55f   : > { %v16292_v30 = vmul.u32.u64.low 3817748708, %v16243_v13  ;;  %v16293_v10 = vmul.u32.u64.high 3817748708, %v16243_v13, %v16292_v30  ;;  %v8908_v46 = vshrl.u32 %v16183_v35, 4  ;;  %v9319_v42 = vsel %vm16122_vm15, %v15816_v28, 0.0  ;;  %vm16319_vm8 = vmand %vm9053_vm1, %vm9017_vm4 }
 0x560   : > { %vm16309_vm9 = vcmp.lt.s32.totalorder %v9158_v24, 16  ;;  %v9320_v28 = vsel %vm16227_vm14, %v15819_v40, 0.0  ;;  %vm16329_vm15 = vcmp.lt.s32.totalorder %v9159_v21, 16  ;;  %v9321_v40 = vsel %vm16227_vm14, %v15825_v34, 0.0 }
 0x561   : > { %v8909_v29 = vmul.u32 18, %v8908_v46  ;;  %vm16343_vm11 = vcmp.lt.s32.totalorder %v9160_v4, 16  ;;  %v9322_v34 = vsel %vm16263_vm2, %v15866_v38, 0.0  ;;  %v8919_v41 = vshrl.u32 %v16293_v10, 4 }
 0x562   : > { %v9324_v46 = vsel %vm16285_vm7, %v15873_v7, 0.0  ;;  %v9328_v52 = vsel %vm16329_vm15, %v16076_v20, 0.0  ;;  %v9329_v20 = vsel %vm16329_vm15, %v16089_v12, 0.0  ;;  %v8589_v38 = vadd.s32 248, %v14944_v63 }
 0x565   : > { %v8206_v53 = vpop.f32.mrb[32].mxu0 }
 0x566   : > { %v8207_v23 = vadd.f32 %v8206_v53, %v15181_v14  ;;  %v8208_v47 = vpop.f32.mrb[33].mxu0 }
 0x567   : > { %v8209_v57 = vadd.f32 %v8208_v47, %v15204_v18  ;;  %v8210_v36 = vpop.f32.mrb[34].mxu0 }
 0x568   : > { %v9310_v37 = vsel %vm16270_vm13, %v8207_v23, 0.0  ;;  %v8211_v50 = vadd.f32 %v8210_v36, %v15181_v14  ;;  %v8212_v32 = vpop.f32.mrb[35].mxu0  ;;  %v9473_v36 = vmul.f32 %v9319_v42, %v9319_v42 }
 0x569   : > { %v9365_v0 = vadd.f32 %v15950_v15, %v9310_v37  ;;  %v9464_v48 = vmul.f32 %v9310_v37, %v9310_v37  ;;  %v10448_v9 = vpack.c.bf16 %v8209_v57, %v8207_v23  ;;  %v9311_v27 = vsel %vm16270_vm13, %v8209_v57, 0.0 }
 0x56a   : > { %v9406_v16 = vadd.f32 %v15960_v31, %v9311_v27  ;;  %v9465_v44 = vmul.f32 %v9311_v27, %v9311_v27  ;;  %v9312_v26 = vsel %vm16274_vm6, %v8211_v50, 0.0  ;;  %v8213_v3 = vadd.f32 %v8212_v32, %v15204_v18 }
 0x56b   : > { %v9519_v15 = vadd.f32 %v15958_v39, %v9464_v48  ;;  %8537 = vst [vmem:[%s15263_s8 + $0x80] sm:$0xff] %v10448_v9  ;;  %v9366_v59 = vadd.f32 %v9365_v0, %v9312_v26  ;;  %v9466_v31 = vmul.f32 %v9312_v26, %v9312_v26  ;;  %v9474_v32 = vmul.f32 %v9320_v28, %v9320_v28 }
 0x56c   : > { %v9560_v60 = vadd.f32 %v15970_v5, %v9465_v44  ;;  %v10449_v24 = vpack.c.bf16 %v8213_v3, %v8211_v50  ;;  %v9313_v39 = vsel %vm16274_vm6, %v8213_v3, 0.0  ;;  %v9161_v5 = vsel %vm16319_vm8, %v9125_v54, %v16223_v1 }
 0x56d   : > { %v9367_v61 = vadd.f32 %v9366_v59, %v16162_v51  ;;  %v9520_v23 = vadd.f32 %v9519_v15, %v9466_v31  ;;  %v9407_v47 = vadd.f32 %v9406_v16, %v9313_v39  ;;  %v9467_v57 = vmul.f32 %v9313_v39, %v9313_v39 }
 0x56e   : > { %8538 = vst [vmem:[%s15263_s8 + $0x88] sm:$0xff] %v10449_v24  ;;  %v9323_v1 = vsel %vm16263_vm2, %v15870_v6, 0.0  ;;  %v9475_v54 = vmul.f32 %v9321_v40, %v9321_v40  ;;  %vm16360_vm5 = vcmp.lt.s32.totalorder %v9161_v5, 16  ;;  %v16365_v6 = vsub.s32 %v16146_v17, %v8909_v29 }
 0x56f   : > { %v9368_v21 = vadd.f32 %v9367_v61, %v16193_v33  ;;  %v9521_v30 = vadd.f32 %v9520_v23, %v9468_v22  ;;  %v9408_v37 = vadd.f32 %v9407_v47, %v16188_v2  ;;  %v9561_v51 = vadd.f32 %v9560_v60, %v9467_v57 }
 0x570   : > { %v9477_v0 = vmul.f32 %v9323_v1, %v9323_v1  ;;  %v8920_v48 = vmul.u32 18, %v8919_v41  ;;  %v9478_v26 = vmul.f32 %v9324_v46, %v9324_v46  ;;  %v9326_v17 = vsel %vm16309_vm9, %v16061_v43, 0.0 }
 0x571   : > { %v9369_v33 = vadd.f32 %v9368_v21, %v9318_v55  ;;  %v9522_v22 = vadd.f32 %v9521_v30, %v16251_v58  ;;  %v9409_v2 = vadd.f32 %v9408_v37, %v16198_v49  ;;  %v9562_v4 = vadd.f32 %v9561_v51, %v16247_v19 }
 0x572   : > { %v9476_v49 = vmul.f32 %v9322_v34, %v9322_v34  ;;  %v9325_v19 = vsel %vm16285_vm7, %v15879_v56, 0.0  ;;  %v9483_v41 = vmul.f32 %v9329_v20, %v9329_v20  ;;  %v8921_v50 = vsub.s32 %v16243_v13, %v8920_v48 }
 0x573   : > { %v9370_v8 = vadd.f32 %v9369_v33, %v9320_v28  ;;  %v9523_v55 = vadd.f32 %v9522_v22, %v9472_v45  ;;  %v9410_v10 = vadd.f32 %v9409_v2, %v9319_v42  ;;  %v9563_v58 = vadd.f32 %v9562_v4, %v16255_v11 }
 0x574   : > { %v9327_v11 = vsel %vm16309_vm9, %v16067_v62, 0.0  ;;  %v9479_v31 = vmul.f32 %v9325_v19, %v9325_v19  ;;  %v9480_v62 = vmul.f32 %v9326_v17, %v9326_v17  ;;  %vm9018_vm3 = vcmp.ne.s32.totalorder %v16365_v6, 0 }
 0x575   : > { %v9524_v7 = vadd.f32 %v9523_v55, %v9474_v32  ;;  %v9411_v9 = vadd.f32 %v9410_v10, %v9321_v40  ;;  %v9564_v27 = vadd.f32 %v9563_v58, %v9473_v36  ;;  %v8256_v16 = vpop.f32.mrb[16].mxu1  ;;  %v9371_v44 = vadd.f32 %v9370_v8, %v9322_v34 }
 0x576   : > { %v8257_v45 = vadd.f32 %v8256_v16, %v15181_v14  ;;  %v8258_v3 = vpop.f32.mrb[17].mxu1  ;;  %v9481_v61 = vmul.f32 %v9327_v11, %v9327_v11  ;;  %v9482_v36 = vmul.f32 %v9328_v52, %v9328_v52  ;;  %vm9054_vm12 = vcmp.lt.s32.totalorder %v16365_v6, 0 }
 0x577   : > { %v9565_v25 = vadd.f32 %v9564_v27, %v9475_v54  ;;  %v9372_v56 = vadd.f32 %v9371_v44, %v9324_v46  ;;  %v9525_v42 = vadd.f32 %v9524_v7, %v9476_v49  ;;  %v8259_v15 = vadd.f32 %v8258_v3, %v15204_v18  ;;  %v8260_v59 = vpop.f32.mrb[18].mxu1  ;;  %vm9090_vm0 = vmand %vm9054_vm12, %vm9018_vm3 }
 0x578   : > { %v9412_v43 = vadd.f32 %v9411_v9, %v9323_v1  ;;  %v8261_v28 = vadd.f32 %v8260_v59, %v15181_v14  ;;  %v8262_v35 = vpop.f32.mrb[19].mxu1  ;;  %v9330_v23 = vsel %vm16343_vm11, %v8257_v45, 0.0  ;;  %v8588_v7 = vadd.s32 240, %v14944_v63 }
 0x579   : > { %v9373_v60 = vadd.f32 %v9372_v56, %v9326_v17  ;;  %v9526_v24 = vadd.f32 %v9525_v42, %v9478_v26  ;;  %v10458_v39 = vpack.c.bf16 %v8259_v15, %v8257_v45  ;;  %v9566_v57 = vadd.f32 %v9565_v25, %v9477_v0 }
 0x57a   : > { %v9413_v47 = vadd.f32 %v9412_v43, %v9325_v19  ;;  %v9332_v30 = vsel %vm16360_vm5, %v8261_v28, 0.0  ;;  %v8263_v37 = vadd.f32 %v8262_v35, %v15204_v18  ;;  %v9484_v32 = vmul.f32 %v9330_v23, %v9330_v23 }
 0x57b   : > { %v9374_v40 = vadd.f32 %v9373_v60, %v9328_v52  ;;  %v9527_v5 = vadd.f32 %v9526_v24, %v9480_v62  ;;  %8547 = vst [vmem:[%s15263_s8 + $0xd0] sm:$0xff] %v10458_v39  ;;  %v9567_v21 = vadd.f32 %v9566_v57, %v9479_v31  ;;  %v9331_v1 = vsel %vm16343_vm11, %v8259_v15, 0.0 }
 0x57c   : > { %v9414_v29 = vadd.f32 %v9413_v47, %v9327_v11  ;;  %v10459_v33 = vpack.c.bf16 %v8263_v37, %v8261_v28  ;;  %v9486_v4 = vmul.f32 %v9332_v30, %v9332_v30  ;;  %v9333_v54 = vsel %vm16360_vm5, %v8263_v37, 0.0 }
 0x57d   : > { %v9375_v51 = vadd.f32 %v9374_v40, %v9330_v23  ;;  %v9528_v34 = vadd.f32 %v9527_v5, %v9482_v36  ;;  %v9568_v12 = vadd.f32 %v9567_v21, %v9481_v61  ;;  %v9485_v8 = vmul.f32 %v9331_v1, %v9331_v1 }
 0x57e   : > { %v9415_v53 = vadd.f32 %v9414_v29, %v9329_v20  ;;  %8548 = vst [vmem:[%s15263_s8 + $0xd8] sm:$0xff] %v10459_v33  ;;  %v9487_v0 = vmul.f32 %v9333_v54, %v9333_v54  ;;  %v9126_v9 = vadd.s32 18, %v16365_v6  ;;  %vm9019_vm10 = vcmp.ne.s32.totalorder %v8921_v50, 0 }
 0x57f   : > { %v9529_v22 = vadd.f32 %v9528_v34, %v9484_v32  ;;  %v9376_v2 = vadd.f32 %v9375_v51, %v9332_v30  ;;  %v9569_v55 = vadd.f32 %v9568_v12, %v9483_v41  ;;  %vm9055_vm14 = vcmp.lt.s32.totalorder %v8921_v50, 0 }
 0x580   : > { %v9416_v46 = vadd.f32 %v9415_v53, %v9331_v1  ;;  %v9127_v27 = vadd.s32 18, %v8921_v50  ;;  %v16403_v16 = vmul.u32.u64.low 3817748708, %v8588_v7  ;;  %v16404_v44 = vmul.u32.u64.high 3817748708, %v8588_v7, %v16403_v16  ;;  %vm9091_vm2 = vmand %vm9055_vm14, %vm9019_vm10 }
 0x581   : > { %v9530_v10 = vadd.f32 %v9529_v22, %v9486_v4  ;;  %v9570_v58 = vadd.f32 %v9569_v55, %v9485_v8  ;;  %v16406_v26 = vmul.u32.u64.low 3817748708, %v8589_v38  ;;  %v16407_v13 = vmul.u32.u64.high 3817748708, %v8589_v38, %v16406_v26 }
 0x582   : > { %v9417_v49 = vadd.f32 %v9416_v46, %v9333_v54  ;;  %v9162_v48 = vsel %vm9090_vm0, %v9126_v9, %v16365_v6  ;;  %v9163_v17 = vsel %vm9091_vm2, %v9127_v27, %v8921_v50  ;;  %v8930_v6 = vshrl.u32 %v16404_v44, 4 }
 0x583   : > { %v9571_v19 = vadd.f32 %v9570_v58, %v9487_v0  ;;  %vm9198_vm13 = vcmp.lt.s32.totalorder %v9162_v48, 16  ;;  %vm16412_vm6 = vcmp.lt.s32.totalorder %v9163_v17, 16  ;;  %v8941_v52 = vshrl.u32 %v16407_v13, 4 }
 0x584   : > { %v8931_v5 = vmul.u32 18, %v8930_v6  ;;  %v8590_v1 = vadd.s32 256, %v14944_v63  ;;  %v8591_v41 = vadd.s32 264, %v14944_v63 }
 0x585   : > { %v8942_v37 = vmul.u32 18, %v8941_v52 }
 0x586   : > { %v8932_v32 = vsub.s32 %v8588_v7, %v8931_v5  ;;  %v16428_v12 = vmul.u32.u64.low 3817748708, %v8590_v1  ;;  %v16429_v33 = vmul.u32.u64.high 3817748708, %v8590_v1, %v16428_v12 }
 0x587   : > { %v8943_v34 = vsub.s32 %v8589_v38, %v8942_v37 }
 0x588   : > { %vm9020_vm4 = vcmp.ne.s32.totalorder %v8932_v32, 0  ;;  %vm9056_vm1 = vcmp.lt.s32.totalorder %v8932_v32, 0  ;;  %v9128_v53 = vadd.s32 18, %v8932_v32  ;;  %v8952_v50 = vshrl.u32 %v16429_v33, 4 }
 0x589   : > { %vm9021_vm7 = vcmp.ne.s32.totalorder %v8943_v34, 0  ;;  %vm9057_vm9 = vcmp.lt.s32.totalorder %v8943_v34, 0  ;;  %vm9092_vm8 = vmand %vm9056_vm1, %vm9020_vm4  ;;  %v9129_v22 = vadd.s32 18, %v8943_v34 }
 0x58a   : > { %vm9093_vm15 = vmand %vm9057_vm9, %vm9021_vm7  ;;  %v9164_v54 = vsel %vm9092_vm8, %v9128_v53, %v8932_v32 }
 0x58b   : > { %v9165_v46 = vsel %vm9093_vm15, %v9129_v22, %v8943_v34  ;;  %vm9200_vm11 = vcmp.lt.s32.totalorder %v9164_v54, 16 }
 0x58c   : > { %vm16436_vm5 = vcmp.lt.s32.totalorder %v9165_v46, 16 }
 0x58d   : > { %v8266_v11 = vpop.f32.mrb[20].mxu1 }
 0x58e   : > { %v8267_v45 = vadd.f32 %v8266_v11, %v15181_v14  ;;  %v8268_v3 = vpop.f32.mrb[21].mxu1 }
 0x58f   : > { %v8269_v25 = vadd.f32 %v8268_v3, %v15204_v18  ;;  %v8270_v56 = vpop.f32.mrb[22].mxu1 }
 0x590   : > { %v9334_v15 = vsel %vm9198_vm13, %v8267_v45, 0.0  ;;  %v8271_v59 = vadd.f32 %v8270_v56, %v15181_v14  ;;  %v8272_v31 = vpop.f32.mrb[23].mxu1  ;;  %v8953_v56 = vmul.u32 18, %v8952_v50 }
 0x591   : > { %v9377_v43 = vadd.f32 %v9376_v2, %v9334_v15  ;;  %v9488_v28 = vmul.f32 %v9334_v15, %v9334_v15  ;;  %v10460_v35 = vpack.c.bf16 %v8269_v25, %v8267_v45  ;;  %v9335_v62 = vsel %vm9198_vm13, %v8269_v25, 0.0 }
 0x592   : > { %v9418_v60 = vadd.f32 %v9417_v49, %v9335_v62  ;;  %v9489_v24 = vmul.f32 %v9335_v62, %v9335_v62  ;;  %v9336_v39 = vsel %vm16412_vm6, %v8271_v59, 0.0  ;;  %v8273_v61 = vadd.f32 %v8272_v31, %v15204_v18 }
 0x593   : > { %v9531_v23 = vadd.f32 %v9530_v10, %v9488_v28  ;;  %8549 = vst [vmem:[%s15263_s8 + $0xe0] sm:$0xff] %v10460_v35  ;;  %v9378_v47 = vadd.f32 %v9377_v43, %v9336_v39  ;;  %v9490_v57 = vmul.f32 %v9336_v39, %v9336_v39  ;;  %v8954_v35 = vsub.s32 %v8590_v1, %v8953_v56 }
 0x594   : > { %v9572_v36 = vadd.f32 %v9571_v19, %v9489_v24  ;;  %v10461_v20 = vpack.c.bf16 %v8273_v61, %v8271_v59  ;;  %v9337_v40 = vsel %vm16412_vm6, %v8273_v61, 0.0  ;;  %v8592_v62 = vadd.s32 272, %v14944_v63 }
 0x595   : > { %v9532_v29 = vadd.f32 %v9531_v23, %v9490_v57  ;;  %v9419_v21 = vadd.f32 %v9418_v60, %v9337_v40  ;;  %v9491_v30 = vmul.f32 %v9337_v40, %v9337_v40  ;;  %v8593_v60 = vadd.s32 280, %v14944_v63 }
 0x596   : > { %8550 = vst [vmem:[%s15263_s8 + $0xe8] sm:$0xff] %v10461_v20  ;;  %v16431_v2 = vmul.u32.u64.low 3817748708, %v8591_v41  ;;  %v16432_v4 = vmul.u32.u64.high 3817748708, %v8591_v41, %v16431_v2  ;;  %vm9022_vm3 = vcmp.ne.s32.totalorder %v8954_v35, 0  ;;  %vm9058_vm12 = vcmp.lt.s32.totalorder %v8954_v35, 0 }
 0x597   : > { %v9573_v51 = vadd.f32 %v9572_v36, %v9491_v30  ;;  %v16452_v39 = vmul.u32.u64.low 3817748708, %v8592_v62  ;;  %v16453_v61 = vmul.u32.u64.high 3817748708, %v8592_v62, %v16452_v39  ;;  %v9130_v57 = vadd.s32 18, %v8954_v35  ;;  %vm9094_vm0 = vmand %vm9058_vm12, %vm9022_vm3 }
 0x598   : > { %v8963_v9 = vshrl.u32 %v16432_v4, 4 }
 0x599   : > { %v9166_v20 = vsel %vm9094_vm0, %v9130_v57, %v8954_v35  ;;  %v8974_v5 = vshrl.u32 %v16453_v61, 4 }
 0x59a   : > { %v8964_v43 = vmul.u32 18, %v8963_v9  ;;  %vm9202_vm13 = vcmp.lt.s32.totalorder %v9166_v20, 16 }
 0x59b   : > { %v8975_v53 = vmul.u32 18, %v8974_v5 }
 0x59c   : > { %v8965_v24 = vsub.s32 %v8591_v41, %v8964_v43 }
 0x59e   : > { %vm9023_vm10 = vcmp.ne.s32.totalorder %v8965_v24, 0  ;;  %vm9059_vm14 = vcmp.lt.s32.totalorder %v8965_v24, 0  ;;  %v9131_v36 = vadd.s32 18, %v8965_v24 }
 0x59f   : > { %vm9095_vm2 = vmand %vm9059_vm14, %vm9023_vm10 }
 0x5a0   : > { %v9167_v40 = vsel %vm9095_vm2, %v9131_v36, %v8965_v24 }
 0x5a1   : > { %vm16462_vm6 = vcmp.lt.s32.totalorder %v9167_v40, 16 }
 0x5a5   : > { %v8276_v8 = vpop.f32.mrb[24].mxu1 }
 0x5a6   : > { %v8277_v55 = vadd.f32 %v8276_v8, %v15181_v14  ;;  %v8278_v10 = vpop.f32.mrb[25].mxu1 }
 0x5a7   : > { %v8279_v58 = vadd.f32 %v8278_v10, %v15204_v18  ;;  %v8280_v49 = vpop.f32.mrb[26].mxu1 }
 0x5a8   : > { %v9338_v19 = vsel %vm9200_vm11, %v8277_v55, 0.0  ;;  %v8281_v7 = vadd.f32 %v8280_v49, %v15181_v14  ;;  %v8282_v38 = vpop.f32.mrb[27].mxu1 }
 0x5a9   : > { %v9379_v27 = vadd.f32 %v9378_v47, %v9338_v19  ;;  %v9492_v16 = vmul.f32 %v9338_v19, %v9338_v19  ;;  %v10462_v44 = vpack.c.bf16 %v8279_v58, %v8277_v55  ;;  %v9339_v26 = vsel %vm9200_vm11, %v8279_v58, 0.0 }
 0x5aa   : > { %v9420_v13 = vadd.f32 %v9419_v21, %v9339_v26  ;;  %v9493_v48 = vmul.f32 %v9339_v26, %v9339_v26  ;;  %v9340_v17 = vsel %vm16436_vm5, %v8281_v7, 0.0  ;;  %v8283_v11 = vadd.f32 %v8282_v38, %v15204_v18 }
 0x5ab   : > { %v9533_v45 = vadd.f32 %v9532_v29, %v9492_v16  ;;  %8551 = vst [vmem:[%s15263_s8 + $0xf0] sm:$0xff] %v10462_v44  ;;  %v9380_v3 = vadd.f32 %v9379_v27, %v9340_v17  ;;  %v9494_v25 = vmul.f32 %v9340_v17, %v9340_v17 }
 0x5ac   : > { %v9574_v42 = vadd.f32 %v9573_v51, %v9493_v48  ;;  %v10463_v15 = vpack.c.bf16 %v8283_v11, %v8281_v7  ;;  %v9341_v59 = vsel %vm16436_vm5, %v8283_v11, 0.0  ;;  %v8976_v7 = vsub.s32 %v8592_v62, %v8975_v53 }
 0x5ad   : > { %v9534_v31 = vadd.f32 %v9533_v45, %v9494_v25  ;;  %v9421_v6 = vadd.f32 %v9420_v13, %v9341_v59  ;;  %v9495_v52 = vmul.f32 %v9341_v59, %v9341_v59 }
 0x5ae   : > { %8552 = vst [vmem:[%s15263_s8 + $0xf8] sm:$0xff] %v10463_v15  ;;  %v16455_v23 = vmul.u32.u64.low 3817748708, %v8593_v60  ;;  %v16456_v47 = vmul.u32.u64.high 3817748708, %v8593_v60, %v16455_v23  ;;  %vm9024_vm4 = vcmp.ne.s32.totalorder %v8976_v7, 0  ;;  %vm9060_vm1 = vcmp.lt.s32.totalorder %v8976_v7, 0 }
 0x5af   : > { %v9575_v28 = vadd.f32 %v9574_v42, %v9495_v52  ;;  %v9132_v26 = vadd.s32 18, %v8976_v7  ;;  %vm9096_vm8 = vmand %vm9060_vm1, %vm9024_vm4 }
 0x5b0   : > { %v8985_v63 = vshrl.u32 %v16456_v47, 4 }
 0x5b1   : > { %v9168_v48 = vsel %vm9096_vm8, %v9132_v26, %v8976_v7 }
 0x5b2   : > { %v8986_v12 = vmul.u32 18, %v8985_v63  ;;  %vm9204_vm11 = vcmp.lt.s32.totalorder %v9168_v48, 16 }
 0x5b4   : > { %v8987_v16 = vsub.s32 %v8593_v60, %v8986_v12 }
 0x5b6   : > { %vm9025_vm7 = vcmp.ne.s32.totalorder %v8987_v16, 0  ;;  %vm9061_vm9 = vcmp.lt.s32.totalorder %v8987_v16, 0  ;;  %v9133_v13 = vadd.s32 18, %v8987_v16 }
 0x5b7   : > { %vm9097_vm15 = vmand %vm9061_vm9, %vm9025_vm7 }
 0x5b8   : > { %v9169_v17 = vsel %vm9097_vm15, %v9133_v13, %v8987_v16 }
 0x5b9   : > { %vm16478_vm5 = vcmp.lt.s32.totalorder %v9169_v17, 16 }
 0x5bd   : > { %v8286_v29 = vpop.f32.mrb[28].mxu1 }
 0x5be   : > { %v8287_v21 = vadd.f32 %v8286_v29, %v15181_v14  ;;  %v8288_v30 = vpop.f32.mrb[29].mxu1 }
 0x5bf   : > { %v8289_v37 = vadd.f32 %v8288_v30, %v15204_v18  ;;  %v8290_v51 = vpop.f32.mrb[30].mxu1 }
 0x5c0   : > { %v9342_v34 = vsel %vm9202_vm13, %v8287_v21, 0.0  ;;  %v8291_v1 = vadd.f32 %v8290_v51, %v15181_v14  ;;  %v8292_v41 = vpop.f32.mrb[31].mxu1 }
 0x5c1   : > { %v9381_v33 = vadd.f32 %v9380_v3, %v9342_v34  ;;  %v9496_v22 = vmul.f32 %v9342_v34, %v9342_v34  ;;  %v10464_v2 = vpack.c.bf16 %v8289_v37, %v8287_v21  ;;  %v9343_v4 = vsel %vm9202_vm13, %v8289_v37, 0.0 }
 0x5c2   : > { %v9422_v54 = vadd.f32 %v9421_v6, %v9343_v4  ;;  %v9497_v46 = vmul.f32 %v9343_v4, %v9343_v4  ;;  %v9344_v8 = vsel %vm16462_vm6, %v8291_v1, 0.0  ;;  %v8293_v55 = vadd.f32 %v8292_v41, %v15204_v18 }
 0x5c3   : > { %v9535_v10 = vadd.f32 %v9534_v31, %v9496_v22  ;;  %8553 = vst [vmem:[%s15263_s8 + $0x100] sm:$0xff] %v10464_v2  ;;  %v9382_v58 = vadd.f32 %v9381_v33, %v9344_v8  ;;  %v9498_v49 = vmul.f32 %v9344_v8, %v9344_v8 }
 0x5c4   : > { %v9576_v0 = vadd.f32 %v9575_v28, %v9497_v46  ;;  %v10465_v50 = vpack.c.bf16 %v8293_v55, %v8291_v1  ;;  %v9345_v19 = vsel %vm16462_vm6, %v8293_v55, 0.0 }
 0x5c5   : > { %v9536_v38 = vadd.f32 %v9535_v10, %v9498_v49  ;;  %v9423_v9 = vadd.f32 %v9422_v54, %v9345_v19  ;;  %v9499_v27 = vmul.f32 %v9345_v19, %v9345_v19 }
 0x5c6   : > { %8554 = vst [vmem:[%s15263_s8 + $0x108] sm:$0xff] %v10465_v50 }
 0x5c7   : > { %v9577_v44 = vadd.f32 %v9576_v0, %v9499_v27 }
 0x5d2   : > { %v8296_v11 = vpop.f32.mrb[32].mxu1 }
 0x5d3   : > { %v8297_v45 = vadd.f32 %v8296_v11, %v15181_v14  ;;  %v8298_v3 = vpop.f32.mrb[33].mxu1 }
 0x5d4   : > { %v8299_v25 = vadd.f32 %v8298_v3, %v15204_v18  ;;  %v8300_v56 = vpop.f32.mrb[34].mxu1 }
 0x5d5   : > { %v9346_v15 = vsel %vm9204_vm11, %v8297_v45, 0.0  ;;  %v8301_v59 = vadd.f32 %v8300_v56, %v15181_v14  ;;  %v8302_v31 = vpop.f32.mrb[35].mxu1 }
 0x5d6   : > { %v9383_v6 = vadd.f32 %v9382_v58, %v9346_v15  ;;  %v9500_v52 = vmul.f32 %v9346_v15, %v9346_v15  ;;  %v10466_v43 = vpack.c.bf16 %v8299_v25, %v8297_v45  ;;  %v9347_v28 = vsel %vm9204_vm11, %v8299_v25, 0.0 }
 0x5d7   : > { %v9424_v35 = vadd.f32 %v9423_v9, %v9347_v28  ;;  %v9501_v62 = vmul.f32 %v9347_v28, %v9347_v28  ;;  %v9348_v60 = vsel %vm16478_vm5, %v8301_v59, 0.0  ;;  %v8303_v24 = vadd.f32 %v8302_v31, %v15204_v18 }
 0x5d8   : > { %v9537_v39 = vadd.f32 %v9536_v38, %v9500_v52  ;;  %8555 = vst [vmem:[%s15263_s8 + $0x110] sm:$0xff] %v10466_v43  ;;  %v9384_v61 = vadd.f32 %v9383_v6, %v9348_v60  ;;  %v9502_v14 = vmul.f32 %v9348_v60, %v9348_v60 }
 0x5d9   : > { %v9578_v23 = vadd.f32 %v9577_v44, %v9501_v62  ;;  %v10467_v47 = vpack.c.bf16 %v8303_v24, %v8301_v59  ;;  %v9349_v57 = vsel %vm16478_vm5, %v8303_v24, 0.0 }
 0x5da   : > { %v9385_v18 = vrot.slane %v9384_v61, 4  ;;  %v9538_v36 = vadd.f32 %v9537_v39, %v9502_v14  ;;  %v9425_v20 = vadd.f32 %v9424_v35, %v9349_v57  ;;  %v9503_v40 = vmul.f32 %v9349_v57, %v9349_v57 }
 0x5db   : > { %8556 = vst [vmem:[%s15263_s8 + $0x118] sm:$0xff] %v10467_v47 }
 0x5dc   : > { %v9386_v5 = vadd.f32 %v9385_v18, %v9384_v61  ;;  %v9539_v63 = vrot.slane %v9538_v36, 4  ;;  %v9426_v29 = vrot.slane %v9425_v20, 4  ;;  %v9579_v21 = vadd.f32 %v9578_v23, %v9503_v40 }
 0x5dd   : > { %11485 = shalt.err (!%p11482_p10)
}
 0x5de   : > { %s11486_s8 = scalar_lea.hbm %s16495_s17, 4608  ;;  %s11490_s1 = scalar_lea.hbm %s16959_s4, 73728 }
 0x5df   : > { %p11487_p8 = scmp.ne.s32.totalorder %s16495_s17, %s11486_s8  ;;  %p11491_p13 = scmp.lt.u32.totalorder %s16495_s17, %s16959_s4 }
 0x5e0   : > { %p11492_p2 = scmp.lt.u32.totalorder %s11490_s1, %s11486_s8  ;;  %p11494_p0 = scmp.lt.u32.totalorder %s11486_s8, %s16495_s17 }
 0x5e1   : > { %p11488_p4 = pnand %p11487_p8, %p16960_p1 }
 0x5e2   : > { %p11493_p9 = por %p11492_p2, %p11491_p13 }
 0x5e3   : > { %p11489_p11 = pneg %p11488_p4 }
 0x5e4   : > { %p11495_p6 = por %p11494_p0, %p11493_p9 }
 0x5e6   : > { %p11496_p3 = pnand %p11495_p6, %p11489_p11 }
 0x5e8   : > { %11499 = shalt.err (!%p11496_p3)
}
 0x5e9   : > { %s11690_s2 = smov 128   ;;  %v9387_v30 = vrot.slane %v9386_v5, 2  ;;  %v9540_v37 = vadd.f32 %v9539_v63, %v9538_v36  ;;  %v9427_v51 = vadd.f32 %v9426_v29, %v9425_v20  ;;  %v9580_v32 = vrot.slane %v9579_v21, 4  ;;  %s9845_s21 = sshll.u32 %s12095_s23, 2 }
 0x5ea   : > { %10597 = dma.vmem_to_hbm [thread:$0]  (%p16960_p1), %s16488_s18, 4608, %s16495_s17, %s9602_s16, %s11690_s2, %s11690_s2, %s11673_s9   ;;  %vm9586_vm3 = vcmask 1040384  }
 0x5eb   : > { %v9388_v34 = vadd.f32 %v9387_v30, %v9386_v5  ;;  %v9541_v1 = vrot.slane %v9540_v37, 2  ;;  %v9428_v41 = vrot.slane %v9427_v51, 2  ;;  %v9581_v53 = vadd.f32 %v9580_v32, %v9579_v21  ;;  %s10427_s3 = sshll.u32 %s16954_s14, 1  ;;  %s10428_s22 = sshll.u32 %s16955_s7, 4 }
 0x5ec   : > { %s9637_s9 = sadd.s32 %s10428_s22, %s10427_s3  ;;  %s418_s17 = scalar_lea.vmem [#allocation13], %s9845_s21 }
 0x5ed   : > { %v9389_v12 = vrot.slane %v9388_v34, 1  ;;  %v9542_v33 = vadd.f32 %v9541_v1, %v9540_v37  ;;  %v9429_v22 = vadd.f32 %v9428_v41, %v9427_v51  ;;  %v9582_v2 = vrot.slane %v9581_v53, 2  ;;  %s10429_s18 = sshll.u32 %s9637_s9, 5  ;;  %s9641_s16 = sshll.u32 %s418_s17, 4  ;;  %s16531_s16 = int_to_ptr.vmem [resolvable:$true] %s9641_s16 }
 0x5ee   : > { %s16961_s6 = sld [smem:[#allocation39_spill]]  ;;  %s9607_s8 = scalar_lea.sflag [#allocation14], %s12095_s23 }
 0x5ef   : > { %v9543_v4 = vrot.slane %v9542_v33, 1  ;;  %v9430_v54 = vrot.slane %v9429_v22, 1  ;;  %v9583_v46 = vadd.f32 %v9582_v2, %v9581_v53  ;;  %v9390_v8 = vadd.f32 %v9389_v12, %v9388_v34  ;;  %s11500_s11 = scalar_lea.vmem %s16531_s16, 64  ;;  %s11691_s20 = smov [#allocation13]  }
 0x5f0   : > { %p11501_p12 = scmp.ne.s32.totalorder %s16531_s16, %s11500_s11  ;;  %s11504_s1 = sshll.u32 %s11691_s20, 4  ;;  %s11505_s1 = int_to_ptr.vmem [resolvable:$false] %s11504_s1 }
 0x5f1   : > { %v9544_v55 = vadd.f32 %v9543_v4, %v9542_v33  ;;  %v9584_v10 = vrot.slane %v9583_v46, 1  ;;  %v9431_v58 = vadd.f32 %v9430_v54, %v9429_v22  ;;  %s11506_s15 = scalar_lea.vmem %s11505_s1, 128  ;;  %p11507_p10 = scmp.lt.s32.totalorder %s16531_s16, %s11505_s1 }
 0x5f2   : > { %p11502_p5 = pnand %p11501_p12, %p16960_p1  ;;  %p11508_p8 = scmp.lt.s32.totalorder %s11506_s15, %s11500_s11 }
 0x5f3   : > { %v9585_v49 = vadd.f32 %v9584_v10, %v9583_v46  ;;  %v9587_v0 = vsel %vm9586_vm3, %v9390_v8, %v9544_v55 }
 0x5f4   : > { %s16529_s5 = scalar_lea.hbm %s16961_s6, %s10429_s18  ;;  %p11503_p7 = pneg %p11502_p5 }
 0x5f5   : > { %v9588_v50 = vsel %vm9586_vm3, %v9431_v58, %v9585_v49  ;;  %p11509_p4 = por %p11508_p8, %p11507_p10 }
 0x5f6   : > { %v9591_v19 = vcombine.low %v9587_v0, %v9588_v50 }
 0x5f7   : > { %p11510_p11 = pnand %p11509_p4, %p11503_p7 }
 0x5f8   : > { %10424 = vst.sshfl [vmem:[%s418_s17] sm:$0x33 pattern:$0x76325410] %v9591_v19 }
 0x5f9   : > { %11513 = shalt.err (!%p11510_p11)
}
 0x5fa   : > { %s11514_s23 = scalar_lea.hbm %s16529_s5, 64  ;;  %s11518_s21 = scalar_lea.hbm %s16961_s6, 1024 }
 0x5fb   : > { %p11515_p13 = scmp.ne.s32.totalorder %s16529_s5, %s11514_s23  ;;  %p11519_p0 = scmp.lt.u32.totalorder %s16529_s5, %s16961_s6 }
 0x5fc   : > { %p11520_p6 = scmp.lt.u32.totalorder %s11518_s21, %s11514_s23  ;;  %p11522_p12 = scmp.lt.u32.totalorder %s11514_s23, %s16529_s5 }
 0x5fd   : > { %p11516_p2 = pnand %p11515_p13, %p16960_p1 }
 0x5fe   : > { %p11521_p3 = por %p11520_p6, %p11519_p0 }
 0x5ff   : > { %p11517_p9 = pneg %p11516_p2 }
 0x600   : > { %p11523_p5 = por %p11522_p12, %p11521_p3 }
 0x602   : > { %p11524_p7 = pnand %p11523_p5, %p11517_p9 }
 0x604   : > { %11527 = shalt.err (!%p11524_p7)
}
 0x605   : > { %10598 = dma.vmem_to_hbm [thread:$0]  (%p16960_p1), %s16531_s16, 64, %s16529_s5, %s9607_s8  }
 0x606 PF: > { %p10630_p10 = scmp.ge.s32.totalorder %s11662_s10, 2  ;;  %s9653_s9 = sand.u32 1, %s11634_s27  }
 0x607   : > { %p16962_p8 = scmp.ne.s32.totalorder %s16712_s12, 0  ;;  %s9654_s18 = scalar_lea.sflag [#allocation5], %s9653_s9 }
 0x609   : > { %p10619_p4 = pnand %p10630_p10, %p16962_p8 }
 0x60b   : > { %11601 = dma.done.wait (!%p10619_p4), %s9654_s18, 4608  }
 0x60c   : > { %11603 = vsyncadd (!%p10619_p4), %s9654_s18, 4294962688  ;;  %s9663_s17 = scalar_lea.sflag [#allocation14], %s9653_s9 }
 0x60d   : > { %11605 = dma.done.wait (!%p10619_p4), %s9663_s17, 64  }
 0x60e   : > { %11607 = vsyncadd (!%p10619_p4), %s9663_s17, 4294967232  ;;  %s30_s10 = sadd.s32 1, %s11662_s10   ;;  %s16964_s21 = sld [smem:[#allocation22_spill]] }
 0x60f   : > { %p16560_p11 = scmp.ge.s32.totalorder %s30_s10, 18   ;;  %s16965_s22 = sld [smem:[#allocation23_spill]] }
 0x610   : > { %s16966_s16 = sld [smem:[#allocation24_spill]]  ;;  %s16967_s27 = smov %s11880_s25 }
 0x611   : > { %s16968_s30 = sld [smem:[#allocation27_spill]]  ;;  %s16969_s7 = sld [smem:[#allocation28_spill]] }
 0x612   : > { %s16970_s8 = sld [smem:[#allocation30_spill]]  ;;  %s16971_s9 = sld [smem:[#allocation31_spill]] }
 0x613   : > { %s16973_s23 = smov %s12037_s19  ;;  %s16975_s25 = smov %s11630_s26 }
 0x614   : > { %s16976_s26 = smov %s16967_s27  ;;  %s16977_s27 = smov %s11638_s28 }
 0x615   : > { %s16978_s28 = smov %s11642_s29  ;;  %s16979_s29 = smov %s11965_s13 }
 0x616   : > { %s16974_s24 = smov %s16966_s16  ;;  %29 = sbr.rel (!%p16560_p11) target bundleno = 23 (0x17), region = 134 }
 0x61d   :  { %9668 = vsyncpa [#allocation4], 1 }
 0x61e   :  { %9670 = vsyncpa [#allocation4 + $0x1], 1 }
 0x61f   :  { %9671 = vsyncpa [#allocation7], 1 }
 0x620   :  { %9673 = vsyncpa [#allocation7 + $0x1], 1 }
 0x621   :  { %9674 = vsyncpa [#allocation10], 1 }
 0x622   :  { %9675 = vsyncpa [#allocation5], 1 }
 0x623   :  { %9677 = vsyncpa [#allocation5 + $0x1], 1 }
 0x624   :  { %9678 = vsyncpa [#allocation14], 1 }
 0x625   :  { %9680 = vsyncpa [#allocation14 + $0x1], 1 }

</bundles_post_ra>
